<compile_context>
chip_gen: v5e
topology: v5e:2x2
jax: 0.10.0
libtpu: 0.0.40
codegen_flags: <defaults>
</compile_context>

<pallas_src>
import functools

import jax
import jax.numpy as jnp
from jax.experimental import pallas as pl
from jax.experimental.pallas import tpu as pltpu

N_PAD = 128  # lane-dense output width used for every layer's N dimension

CONV_CFG = [  # (in_ch, out_ch, kernel, stride)
    (3, 24, 5, 2),
    (24, 36, 5, 2),
    (36, 48, 5, 2),
    (48, 64, 3, 1),
    (64, 64, 3, 1),
]
FC_CFG = [  # (in_features, out_features, relu)
    (64 * 1 * 18, 100, True),
    (100, 50, True),
    (50, 10, True),
    (10, 1, False),
]


def _cdiv(a, b):
    return -(-a // b)


def _round_up(v, m):
    return _cdiv(v, m) * m


# ----------------------------------------------------------------------------
# Pallas kernel for conv0..conv2: out = relu(x @ w + b)
#   x bf16 (tm, K0), w bf16 (K0, 128) resident, b f32 (1, 128); f32 epilogue.
# ----------------------------------------------------------------------------
def _matmul_bias_relu_kernel(x_ref, w_ref, b_ref, o_ref):
    acc = jnp.dot(x_ref[...], w_ref[...], preferred_element_type=jnp.float32)
    o_ref[...] = jnp.maximum(acc + b_ref[...], 0.0).astype(o_ref.dtype)


def _choose_row_tiling(m, bytes_per_row, target_bytes=256 * 1024, min_steps=4):
    """Byte-budget row tiling: ~256 KB activation tiles (fixed, independent of
    batch) and >=min_steps pipelined grid steps on large layers so the DMA is
    hidden behind the MXU and both v7x TensorCores get several steps each."""
    tm = max(8, (target_bytes // max(bytes_per_row, 1)) // 8 * 8)
    if m >= min_steps * 512:
        tm = min(tm, _round_up(_cdiv(m, min_steps), 8))
    tm = min(tm, _round_up(m, 8))
    return tm, _cdiv(m, tm)


def pallas_conv_matmul(x, w, b):
    """x: (M, K0) bf16, w: (K0, N_PAD) bf16, b: (1, N_PAD) f32 -> (M, N_PAD)."""
    m, k0 = x.shape
    n = w.shape[1]
    tm, n_tiles = _choose_row_tiling(m, k0 * x.dtype.itemsize)
    mp = tm * n_tiles
    if mp != m:
        x = jnp.pad(x, ((0, mp - m), (0, 0)))

    out = pl.pallas_call(
        _matmul_bias_relu_kernel,
        out_shape=jax.ShapeDtypeStruct((mp, n), jnp.bfloat16),
        grid=(n_tiles,),
        in_specs=[
            # True K0 as the (full-dim) last block dim: no runtime K padding.
            # (If DMA is still exposed on v5e, add pipeline_mode=pl.Buffered(3).)
            pl.BlockSpec((tm, k0), lambda i: (i, 0)),   # activation row tile
            pl.BlockSpec((k0, n), lambda i: (0, 0)),    # weight, VMEM-resident
            pl.BlockSpec((1, n), lambda i: (0, 0)),     # bias row
        ],
        out_specs=pl.BlockSpec((tm, n), lambda i: (i, 0)),
        compiler_params=pltpu.CompilerParams(
            dimension_semantics=("parallel",)),
    )(x, w, b)
    return out[:m]


# ----------------------------------------------------------------------------
# Fused tail: conv3(3x3) + ReLU + conv4(3x3) + ReLU + NCHW flatten + fc0..fc3
# in ONE pallas_call.  ~0.6 MB of weights + the (B*110, 128) activation stay
# VMEM-resident for the whole call.
# ----------------------------------------------------------------------------
def _tail_kernel(x2_ref, w3_ref, b3_ref, w4_ref, b4_ref,
                 w0_ref, b0_ref, w1_ref, b1_ref, w2_ref, b2_ref,
                 wo_ref, bo_ref, o_ref, *, batch):
    """x2_ref: (batch*110, 128) bf16 -- conv2 output, rows ordered (b, h, w)
    with h in [0,5), w in [0,22); channels zero-padded to 128 lanes (the conv3
    tap weights have zero rows for channels >= 48, so no slicing is needed).

    conv3/conv4 are 9-tap shifted matmuls over the flattened rows: for tap
    (dh, dw) the contiguous row window starting at dh*22+dw lines input row
    (h+dh, w+dw) up with output row h*22+w (rows 20/21/42/43 are don't-care).
    The torch x.view(B,-1) flatten (index c*18+w) is baked into fc0's per-width
    tap weights, so no in-kernel transpose/reshape is needed.
    """
    h_rows = []
    for bi in range(batch):
        base = bi * 110
        # ---- conv3: 48 -> 64, 3x3 valid; outputs live at rows h*22+w of acc3.
        acc3 = jnp.zeros((64, 64), jnp.float32)
        for dh in range(3):
            for dw in range(3):
                s = base + dh * 22 + dw
                acc3 += jnp.dot(x2_ref[s:s + 64, :], w3_ref[dh * 3 + dw],
                                preferred_element_type=jnp.float32)
        y3 = jnp.maximum(acc3 + b3_ref[...], 0.0).astype(jnp.bfloat16)
        # ---- conv4: 64 -> 64, 3x3 valid; output width 18 (single output row).
        acc4 = jnp.zeros((18, 64), jnp.float32)
        for dh in range(3):
            for dw in range(3):
                s = dh * 22 + dw
                acc4 += jnp.dot(y3[s:s + 18, :], w4_ref[dh * 3 + dw],
                                preferred_element_type=jnp.float32)
        y4 = jnp.maximum(acc4 + b4_ref[...], 0.0).astype(jnp.bfloat16)  # (w, c)
        # ---- fc0 as an 18-tap accumulation over the width positions.
        acc0 = jnp.zeros((1, N_PAD), jnp.float32)
        for w in range(18):
            part = jnp.dot(y4, w0_ref[w], preferred_element_type=jnp.float32)
            acc0 += part[w:w + 1, :]
        h_rows.append(jnp.maximum(acc0 + b0_ref[...], 0.0))
    # Pad the batch rows to a sublane multiple so the FC matmuls are aligned.
    for _ in range(_round_up(batch, 8) - batch):
        h_rows.append(jnp.zeros((1, N_PAD), jnp.float32))
    h = jnp.concatenate(h_rows, axis=0).astype(jnp.bfloat16)
    h = jnp.maximum(jnp.dot(h, w1_ref[...], preferred_element_type=jnp.float32)
                    + b1_ref[...], 0.0).astype(jnp.bfloat16)
    h = jnp.maximum(jnp.dot(h, w2_ref[...], preferred_element_type=jnp.float32)
                    + b2_ref[...], 0.0).astype(jnp.bfloat16)
    o_ref[...] = (jnp.dot(h, wo_ref[...], preferred_element_type=jnp.float32)
                  + bo_ref[...])


_TAIL_PARAM_NAMES = ("conv3_w", "conv3_b", "conv4_w", "conv4_b",
                     "fc0_w", "fc0_b", "fc1_w", "fc1_b",
                     "fc2_w", "fc2_b", "fc3_w", "fc3_b")


def pallas_tail(x2, params, batch):
    """x2: (batch*110, 128) bf16 (channel-padded conv2 output) -> (batch, 1)."""
    mp = _round_up(batch, 8)
    args = [x2]
    in_specs = [pl.BlockSpec(x2.shape, lambda i: (0, 0))]
    for nm in _TAIL_PARAM_NAMES:
        p = params[nm]
        args.append(p)
        in_specs.append(pl.BlockSpec(p.shape, lambda i, nd=p.ndim: (0,) * nd))

    out = pl.pallas_call(
        functools.partial(_tail_kernel, batch=batch),
        out_shape=jax.ShapeDtypeStruct((mp, N_PAD), jnp.float32),
        grid=(1,),
        in_specs=in_specs,
        out_specs=pl.BlockSpec((mp, N_PAD), lambda i: (0, 0)),
        compiler_params=pltpu.CompilerParams(
            dimension_semantics=("arbitrary",)),
    )(*args)
    return out[:batch, :1]


# ----------------------------------------------------------------------------
# Parameter setup (deterministic synthetic weights, stored padded + bf16)
# ----------------------------------------------------------------------------
def init_params(key):
    # Note: to load real PyTorch weights, conv0-2 (oc, ic, kh, kw) tensors must
    # be permuted to the (c, kh, kw)-ordered im2col rows used below (the order
    # produced by lax.conv_general_dilated_patches); conv3/conv4 go to per-tap
    # (ic, oc) slices and fc0 to per-width (64, out) slices.
    params = {}
    # conv0..conv2: im2col weight matrices, cols zero-padded to N_PAD lanes.
    for idx, (ic, oc, k, _) in enumerate(CONV_CFG[:3]):
        key, kw_, kb_ = jax.random.split(key, 3)
        k0 = k * k * ic
        w = jax.random.normal(kw_, (k0, oc), jnp.float32) * (2.0 / k0) ** 0.5
        wp = jnp.zeros((k0, N_PAD), jnp.float32).at[:, :oc].set(w)
        params[f"conv{idx}_w"] = wp.astype(jnp.bfloat16)
        b = jax.random.normal(kb_, (oc,), jnp.float32) * 0.01
        params[f"conv{idx}_b"] = (
            jnp.zeros((1, N_PAD), jnp.float32).at[0, :oc].set(b))
    # conv3 / conv4: per-tap (IC, OC) matrices for the fused tail kernel.
    for idx, (ic, oc, k, _) in enumerate(CONV_CFG[3:], start=3):
        key, kw_, kb_ = jax.random.split(key, 3)
        icp = N_PAD if idx == 3 else ic   # conv3 eats the 128-lane-padded input
        w = (jax.random.normal(kw_, (k * k, ic, oc), jnp.float32)
             * (2.0 / (k * k * ic)) ** 0.5)
        wp = jnp.zeros((k * k, icp, oc), jnp.float32).at[:, :ic, :].set(w)
        params[f"conv{idx}_w"] = wp.astype(jnp.bfloat16)
        params[f"conv{idx}_b"] = (
            jax.random.normal(kb_, (1, oc), jnp.float32) * 0.01)
    # fc0: 18 per-width (64, N_PAD) taps -- bakes the torch NCHW flatten
    # permutation (row index c*18 + w) into the weight layout.
    key, kw_, kb_ = jax.random.split(key, 3)
    fi, fo = FC_CFG[0][0], FC_CFG[0][1]
    w = jax.random.normal(kw_, (18, 64, fo), jnp.float32) * (2.0 / fi) ** 0.5
    wp = jnp.zeros((18, 64, N_PAD), jnp.float32).at[..., :fo].set(w)
    params["fc0_w"] = wp.astype(jnp.bfloat16)
    b = jax.random.normal(kb_, (fo,), jnp.float32) * 0.01
    params["fc0_b"] = jnp.zeros((1, N_PAD), jnp.float32).at[0, :fo].set(b)
    # fc1..fc3: (128, 128) padded matrices.
    for idx, (fi, fo, _) in enumerate(FC_CFG[1:], start=1):
        key, kw_, kb_ = jax.random.split(key, 3)
        w = jax.random.normal(kw_, (fi, fo), jnp.float32) * (2.0 / fi) ** 0.5
        wp = jnp.zeros((N_PAD, N_PAD), jnp.float32).at[:fi, :fo].set(w)
        params[f"fc{idx}_w"] = wp.astype(jnp.bfloat16)
        b = jax.random.normal(kb_, (fo,), jnp.float32) * 0.01
        params[f"fc{idx}_b"] = (
            jnp.zeros((1, N_PAD), jnp.float32).at[0, :fo].set(b))
    return params


# ----------------------------------------------------------------------------
# Forward pass (Pallas)
# ----------------------------------------------------------------------------
def pilotnet_forward(params, x_nchw):
    x = jnp.transpose(x_nchw, (0, 2, 3, 1)).astype(jnp.bfloat16)  # NHWC, bf16
    batch = x.shape[0]

    x2 = None
    for idx, (_, oc, k, s) in enumerate(CONV_CFG[:3]):
        # One fused XLA gather producing im2col patches (feature order c,kh,kw).
        patches = jax.lax.conv_general_dilated_patches(
            x, (k, k), (s, s), "VALID",
            dimension_numbers=("NHWC", "HWIO", "NHWC"))
        _, oh, ow, k0 = patches.shape
        patches = patches.reshape(batch * oh * ow, k0)   # true K0, no padding
        out = pallas_conv_matmul(patches, params[f"conv{idx}_w"],
                                 params[f"conv{idx}_b"])
        if idx < 2:
            # Next layer's XLA gather needs the real channel count.
            x = out.reshape(batch, oh, ow, N_PAD)[..., :oc]
        else:
            assert (oh, ow) == (5, 22), (oh, ow)
            x2 = out                       # (batch*110, 128), stays lane-dense

    # conv3 + conv4 + flatten + fc0..fc3 fused into a single kernel.
    return pallas_tail(x2, params, batch)  # (batch, 1) f32


# ----------------------------------------------------------------------------
# Pure-JAX reference (no Pallas).  The tail is computed the straightforward way
# (im2col + NCHW flatten + dense matmuls), so it genuinely cross-checks the
# fused kernel's tap/row indexing.  bf16 casts mirror the Pallas path.
# ----------------------------------------------------------------------------
def reference_forward(params, x_nchw):
    x = jnp.transpose(x_nchw, (0, 2, 3, 1)).astype(jnp.bfloat16)
    batch = x.shape[0]
    for idx, (ic, oc, k, s) in enumerate(CONV_CFG):
        if idx < 3:
            w = params[f"conv{idx}_w"][:, :oc].astype(jnp.float32)
            b = params[f"conv{idx}_b"][:, :oc]
        else:
            taps = params[f"conv{idx}_w"][:, :ic, :oc].astype(jnp.float32)
            # patches feature order is (c, kh, kw): row index c*(k*k) + tap.
            w = jnp.transpose(taps, (1, 0, 2)).reshape(ic * k * k, oc)
            b = params[f"conv{idx}_b"][:, :oc].astype(jnp.float32)
        patches = jax.lax.conv_general_dilated_patches(
            x, (k, k), (s, s), "VALID",
            dimension_numbers=("NHWC", "HWIO", "NHWC")).astype(jnp.float32)
        b_, oh, ow, k0 = patches.shape
        y = jnp.maximum(patches.reshape(-1, k0) @ w + b, 0.0)
        x = y.reshape(b_, oh, ow, oc).astype(jnp.bfloat16)
    # torch x.view(B, -1) on an NCHW tensor: channel-major flatten.
    h = jnp.transpose(x, (0, 3, 1, 2)).reshape(batch, -1).astype(jnp.float32)
    w0 = jnp.transpose(params["fc0_w"][:, :, :100].astype(jnp.float32),
                       (1, 0, 2)).reshape(64 * 18, 100)
    fcs = [
        (w0, params["fc0_b"][:, :100], True),
        (params["fc1_w"][:100, :50].astype(jnp.float32),
         params["fc1_b"][:, :50], True),
        (params["fc2_w"][:50, :10].astype(jnp.float32),
         params["fc2_b"][:, :10], True),
        (params["fc3_w"][:10, :1].astype(jnp.float32),
         params["fc3_b"][:, :1], False),
    ]
    for w, b, relu in fcs:
        h = h.astype(jnp.bfloat16).astype(jnp.float32) @ w + b
        if relu:
            h = jnp.maximum(h, 0.0)
    return h


if __name__ == "__main__":
    key = jax.random.PRNGKey(0)
    pkey, xkey = jax.random.split(key)
    params = init_params(pkey)

    # PilotNet's first FC layer (64*1*18 inputs) pins the input to 3x66x200.
    batch = 2
    x = jax.random.normal(xkey, (batch, 3, 66, 200), jnp.float32)

    fwd = jax.jit(pilotnet_forward)
    y = fwd(params, x)
    jax.block_until_ready(y)
    assert y.shape == (batch, 1), y.shape
    assert bool(jnp.all(jnp.isfinite(y)))

    y_ref = jax.jit(reference_forward)(params, x)
    jax.block_until_ready(y_ref)
    assert bool(jnp.allclose(y, y_ref, atol=5e-2, rtol=5e-2)), (y, y_ref)

    print("KERNEL_OK")
</pallas_src>

<mosaic_0001>
module attributes {stable_mosaic.version = 11 : i64} {
  func.func @_matmul_bias_relu_kernel(%arg0: i32, %arg1: memref<1520x75xbf16, #tpu.memory_space<vmem>>, %arg2: memref<75x128xbf16, #tpu.memory_space<vmem>>, %arg3: memref<1x128xf32, #tpu.memory_space<vmem>>, %arg4: memref<1520x128xbf16, #tpu.memory_space<vmem>>) attributes {dimension_semantics = [#tpu.dimension_semantics<parallel>], iteration_bounds = array<i64: 4>, scalar_prefetch = 0 : i64, scratch_operands = 0 : i64, tpu.core_type = #tpu.core_type<tc>, window_params = [{transform_indices = @transform_0, window_bounds = array<i64: 1520, 75>}, {pipeline_mode = #tpu.pipeline_mode<synchronous>, transform_indices = @transform_1, window_bounds = array<i64: 75, 128>}, {pipeline_mode = #tpu.pipeline_mode<synchronous>, transform_indices = @transform_2, window_bounds = array<i64: 1, 128>}, {transform_indices = @transform_3, window_bounds = array<i64: 1520, 128>}]} {
    %c0 = arith.constant 0 : index
    %c0_0 = arith.constant 0 : index
    %0 = vector.load %arg1[%c0, %c0_0] : memref<1520x75xbf16, #tpu.memory_space<vmem>>, vector<1520x75xbf16>
    %c0_1 = arith.constant 0 : index
    %c0_2 = arith.constant 0 : index
    %1 = vector.load %arg2[%c0_1, %c0_2] : memref<75x128xbf16, #tpu.memory_space<vmem>>, vector<75x128xbf16>
    %cst = arith.constant dense<0.000000e+00> : vector<1520x128xf32>
    %2 = tpu.matmul %0, %1, %cst {dimension_numbers = #tpu.dot_dimension_numbers<[1], [0], [0], [1], [0, 0, 1, 1], [], []>} : vector<1520x75xbf16>, vector<75x128xbf16>, vector<1520x128xf32> -> vector<1520x128xf32>
    %c0_3 = arith.constant 0 : index
    %c0_4 = arith.constant 0 : index
    %3 = vector.load %arg3[%c0_3, %c0_4] : memref<1x128xf32, #tpu.memory_space<vmem>>, vector<1x128xf32>
    %4 = vector.broadcast %3 : vector<1x128xf32> to vector<1520x128xf32>
    %5 = arith.addf %2, %4 : vector<1520x128xf32>
    %cst_5 = arith.constant 0.000000e+00 : f32
    %6 = vector.broadcast %cst_5 : f32 to vector<1520x128xf32>
    %7 = arith.maximumf %5, %6 : vector<1520x128xf32>
    %8 = arith.truncf %7 : vector<1520x128xf32> to vector<1520x128xbf16>
    %c0_6 = arith.constant 0 : index
    %c0_7 = arith.constant 0 : index
    %9 = vector.load %arg4[%c0_6, %c0_7] : memref<1520x128xbf16, #tpu.memory_space<vmem>>, vector<1520x128xbf16>
    tpu.vector_store %arg4[%c0_6, %c0_7], %8 {strides = array<i32>} : memref<1520x128xbf16, #tpu.memory_space<vmem>>, vector<1520x128xbf16>,
    return
  }
  func.func @transform_0(%arg0: i32) -> (i32, i32) {
    %c0_i32 = arith.constant 0 : i32
    %c0_i32_0 = arith.constant 0 : i32
    return %arg0, %c0_i32 : i32, i32
  }
  func.func @transform_1(%arg0: i32) -> (i32, i32) {
    %c0_i32 = arith.constant 0 : i32
    %c0_i32_0 = arith.constant 0 : i32
    %c0_i32_1 = arith.constant 0 : i32
    return %c0_i32, %c0_i32_0 : i32, i32
  }
  func.func @transform_2(%arg0: i32) -> (i32, i32) {
    %c0_i32 = arith.constant 0 : i32
    %c0_i32_0 = arith.constant 0 : i32
    %c0_i32_1 = arith.constant 0 : i32
    return %c0_i32, %c0_i32_0 : i32, i32
  }
  func.func @transform_3(%arg0: i32) -> (i32, i32) {
    %c0_i32 = arith.constant 0 : i32
    %c0_i32_0 = arith.constant 0 : i32
    return %arg0, %c0_i32 : i32, i32
  }
}

module attributes {stable_mosaic.version = 11 : i64} {
  func.func @_matmul_bias_relu_kernel(%arg0: i32, %arg1: memref<216x600xbf16, #tpu.memory_space<vmem>>, %arg2: memref<600x128xbf16, #tpu.memory_space<vmem>>, %arg3: memref<1x128xf32, #tpu.memory_space<vmem>>, %arg4: memref<216x128xbf16, #tpu.memory_space<vmem>>) attributes {dimension_semantics = [#tpu.dimension_semantics<parallel>], iteration_bounds = array<i64: 7>, scalar_prefetch = 0 : i64, scratch_operands = 0 : i64, tpu.core_type = #tpu.core_type<tc>, window_params = [{transform_indices = @transform_0, window_bounds = array<i64: 216, 600>}, {pipeline_mode = #tpu.pipeline_mode<synchronous>, transform_indices = @transform_1, window_bounds = array<i64: 600, 128>}, {pipeline_mode = #tpu.pipeline_mode<synchronous>, transform_indices = @transform_2, window_bounds = array<i64: 1, 128>}, {transform_indices = @transform_3, window_bounds = array<i64: 216, 128>}]} {
    %c0 = arith.constant 0 : index
    %c0_0 = arith.constant 0 : index
    %0 = vector.load %arg1[%c0, %c0_0] : memref<216x600xbf16, #tpu.memory_space<vmem>>, vector<216x600xbf16>
    %c0_1 = arith.constant 0 : index
    %c0_2 = arith.constant 0 : index
    %1 = vector.load %arg2[%c0_1, %c0_2] : memref<600x128xbf16, #tpu.memory_space<vmem>>, vector<600x128xbf16>
    %cst = arith.constant dense<0.000000e+00> : vector<216x128xf32>
    %2 = tpu.matmul %0, %1, %cst {dimension_numbers = #tpu.dot_dimension_numbers<[1], [0], [0], [1], [0, 0, 1, 1], [], []>} : vector<216x600xbf16>, vector<600x128xbf16>, vector<216x128xf32> -> vector<216x128xf32>
    %c0_3 = arith.constant 0 : index
    %c0_4 = arith.constant 0 : index
    %3 = vector.load %arg3[%c0_3, %c0_4] : memref<1x128xf32, #tpu.memory_space<vmem>>, vector<1x128xf32>
    %4 = vector.broadcast %3 : vector<1x128xf32> to vector<216x128xf32>
    %5 = arith.addf %2, %4 : vector<216x128xf32>
    %cst_5 = arith.constant 0.000000e+00 : f32
    %6 = vector.broadcast %cst_5 : f32 to vector<216x128xf32>
    %7 = arith.maximumf %5, %6 : vector<216x128xf32>
    %8 = arith.truncf %7 : vector<216x128xf32> to vector<216x128xbf16>
    %c0_6 = arith.constant 0 : index
    %c0_7 = arith.constant 0 : index
    %9 = vector.load %arg4[%c0_6, %c0_7] : memref<216x128xbf16, #tpu.memory_space<vmem>>, vector<216x128xbf16>
    tpu.vector_store %arg4[%c0_6, %c0_7], %8 {strides = array<i32>} : memref<216x128xbf16, #tpu.memory_space<vmem>>, vector<216x128xbf16>,
    return
  }
  func.func @transform_0(%arg0: i32) -> (i32, i32) {
    %c0_i32 = arith.constant 0 : i32
    %c0_i32_0 = arith.constant 0 : i32
    return %arg0, %c0_i32 : i32, i32
  }
  func.func @transform_1(%arg0: i32) -> (i32, i32) {
    %c0_i32 = arith.constant 0 : i32
    %c0_i32_0 = arith.constant 0 : i32
    %c0_i32_1 = arith.constant 0 : i32
    return %c0_i32, %c0_i32_0 : i32, i32
  }
  func.func @transform_2(%arg0: i32) -> (i32, i32) {
    %c0_i32 = arith.constant 0 : i32
    %c0_i32_0 = arith.constant 0 : i32
    %c0_i32_1 = arith.constant 0 : i32
    return %c0_i32, %c0_i32_0 : i32, i32
  }
  func.func @transform_3(%arg0: i32) -> (i32, i32) {
    %c0_i32 = arith.constant 0 : i32
    %c0_i32_0 = arith.constant 0 : i32
    return %arg0, %c0_i32 : i32, i32
  }
}

module attributes {stable_mosaic.version = 11 : i64} {
  func.func @_matmul_bias_relu_kernel(%arg0: i32, %arg1: memref<144x900xbf16, #tpu.memory_space<vmem>>, %arg2: memref<900x128xbf16, #tpu.memory_space<vmem>>, %arg3: memref<1x128xf32, #tpu.memory_space<vmem>>, %arg4: memref<144x128xbf16, #tpu.memory_space<vmem>>) attributes {dimension_semantics = [#tpu.dimension_semantics<parallel>], iteration_bounds = array<i64: 2>, scalar_prefetch = 0 : i64, scratch_operands = 0 : i64, tpu.core_type = #tpu.core_type<tc>, window_params = [{transform_indices = @transform_0, window_bounds = array<i64: 144, 900>}, {pipeline_mode = #tpu.pipeline_mode<synchronous>, transform_indices = @transform_1, window_bounds = array<i64: 900, 128>}, {pipeline_mode = #tpu.pipeline_mode<synchronous>, transform_indices = @transform_2, window_bounds = array<i64: 1, 128>}, {transform_indices = @transform_3, window_bounds = array<i64: 144, 128>}]} {
    %c0 = arith.constant 0 : index
    %c0_0 = arith.constant 0 : index
    %0 = vector.load %arg1[%c0, %c0_0] : memref<144x900xbf16, #tpu.memory_space<vmem>>, vector<144x900xbf16>
    %c0_1 = arith.constant 0 : index
    %c0_2 = arith.constant 0 : index
    %1 = vector.load %arg2[%c0_1, %c0_2] : memref<900x128xbf16, #tpu.memory_space<vmem>>, vector<900x128xbf16>
    %cst = arith.constant dense<0.000000e+00> : vector<144x128xf32>
    %2 = tpu.matmul %0, %1, %cst {dimension_numbers = #tpu.dot_dimension_numbers<[1], [0], [0], [1], [0, 0, 1, 1], [], []>} : vector<144x900xbf16>, vector<900x128xbf16>, vector<144x128xf32> -> vector<144x128xf32>
    %c0_3 = arith.constant 0 : index
    %c0_4 = arith.constant 0 : index
    %3 = vector.load %arg3[%c0_3, %c0_4] : memref<1x128xf32, #tpu.memory_space<vmem>>, vector<1x128xf32>
    %4 = vector.broadcast %3 : vector<1x128xf32> to vector<144x128xf32>
    %5 = arith.addf %2, %4 : vector<144x128xf32>
    %cst_5 = arith.constant 0.000000e+00 : f32
    %6 = vector.broadcast %cst_5 : f32 to vector<144x128xf32>
    %7 = arith.maximumf %5, %6 : vector<144x128xf32>
    %8 = arith.truncf %7 : vector<144x128xf32> to vector<144x128xbf16>
    %c0_6 = arith.constant 0 : index
    %c0_7 = arith.constant 0 : index
    %9 = vector.load %arg4[%c0_6, %c0_7] : memref<144x128xbf16, #tpu.memory_space<vmem>>, vector<144x128xbf16>
    tpu.vector_store %arg4[%c0_6, %c0_7], %8 {strides = array<i32>} : memref<144x128xbf16, #tpu.memory_space<vmem>>, vector<144x128xbf16>,
    return
  }
  func.func @transform_0(%arg0: i32) -> (i32, i32) {
    %c0_i32 = arith.constant 0 : i32
    %c0_i32_0 = arith.constant 0 : i32
    return %arg0, %c0_i32 : i32, i32
  }
  func.func @transform_1(%arg0: i32) -> (i32, i32) {
    %c0_i32 = arith.constant 0 : i32
    %c0_i32_0 = arith.constant 0 : i32
    %c0_i32_1 = arith.constant 0 : i32
    return %c0_i32, %c0_i32_0 : i32, i32
  }
  func.func @transform_2(%arg0: i32) -> (i32, i32) {
    %c0_i32 = arith.constant 0 : i32
    %c0_i32_0 = arith.constant 0 : i32
    %c0_i32_1 = arith.constant 0 : i32
    return %c0_i32, %c0_i32_0 : i32, i32
  }
  func.func @transform_3(%arg0: i32) -> (i32, i32) {
    %c0_i32 = arith.constant 0 : i32
    %c0_i32_0 = arith.constant 0 : i32
    return %arg0, %c0_i32 : i32, i32
  }
}

module attributes {stable_mosaic.version = 11 : i64} {
  func.func @_tail_kernel(%arg0: i32, %arg1: memref<220x128xbf16, #tpu.memory_space<vmem>>, %arg2: memref<9x128x64xbf16, #tpu.memory_space<vmem>>, %arg3: memref<1x64xf32, #tpu.memory_space<vmem>>, %arg4: memref<9x64x64xbf16, #tpu.memory_space<vmem>>, %arg5: memref<1x64xf32, #tpu.memory_space<vmem>>, %arg6: memref<18x64x128xbf16, #tpu.memory_space<vmem>>, %arg7: memref<1x128xf32, #tpu.memory_space<vmem>>, %arg8: memref<128x128xbf16, #tpu.memory_space<vmem>>, %arg9: memref<1x128xf32, #tpu.memory_space<vmem>>, %arg10: memref<128x128xbf16, #tpu.memory_space<vmem>>, %arg11: memref<1x128xf32, #tpu.memory_space<vmem>>, %arg12: memref<128x128xbf16, #tpu.memory_space<vmem>>, %arg13: memref<1x128xf32, #tpu.memory_space<vmem>>, %arg14: memref<8x128xf32, #tpu.memory_space<vmem>>) attributes {dimension_semantics = [#tpu.dimension_semantics<arbitrary>], iteration_bounds = array<i64: 1>, scalar_prefetch = 0 : i64, scratch_operands = 0 : i64, tpu.core_type = #tpu.core_type<tc>, window_params = [{pipeline_mode = #tpu.pipeline_mode<synchronous>, transform_indices = @transform_0, window_bounds = array<i64: 220, 128>}, {pipeline_mode = #tpu.pipeline_mode<synchronous>, transform_indices = @transform_1, window_bounds = array<i64: 9, 128, 64>}, {pipeline_mode = #tpu.pipeline_mode<synchronous>, transform_indices = @transform_2, window_bounds = array<i64: 1, 64>}, {pipeline_mode = #tpu.pipeline_mode<synchronous>, transform_indices = @transform_3, window_bounds = array<i64: 9, 64, 64>}, {pipeline_mode = #tpu.pipeline_mode<synchronous>, transform_indices = @transform_4, window_bounds = array<i64: 1, 64>}, {pipeline_mode = #tpu.pipeline_mode<synchronous>, transform_indices = @transform_5, window_bounds = array<i64: 18, 64, 128>}, {pipeline_mode = #tpu.pipeline_mode<synchronous>, transform_indices = @transform_6, window_bounds = array<i64: 1, 128>}, {pipeline_mode = #tpu.pipeline_mode<synchronous>, transform_indices = @transform_7, window_bounds = array<i64: 128, 128>}, {pipeline_mode = #tpu.pipeline_mode<synchronous>, transform_indices = @transform_8, window_bounds = array<i64: 1, 128>}, {pipeline_mode = #tpu.pipeline_mode<synchronous>, transform_indices = @transform_9, window_bounds = array<i64: 128, 128>}, {pipeline_mode = #tpu.pipeline_mode<synchronous>, transform_indices = @transform_10, window_bounds = array<i64: 1, 128>}, {pipeline_mode = #tpu.pipeline_mode<synchronous>, transform_indices = @transform_11, window_bounds = array<i64: 128, 128>}, {pipeline_mode = #tpu.pipeline_mode<synchronous>, transform_indices = @transform_12, window_bounds = array<i64: 1, 128>}, {pipeline_mode = #tpu.pipeline_mode<synchronous>, transform_indices = @transform_13, window_bounds = array<i64: 8, 128>}]} {
    %cst = arith.constant 0.000000e+00 : f32
    %0 = vector.broadcast %cst : f32 to vector<64x64xf32>
    %c0 = arith.constant 0 : index
    %c0_0 = arith.constant 0 : index
    %1 = vector.load %arg1[%c0, %c0_0] : memref<220x128xbf16, #tpu.memory_space<vmem>>, vector<64x128xbf16>
    %c0_1 = arith.constant 0 : index
    %c0_2 = arith.constant 0 : index
    %c0_3 = arith.constant 0 : index
    %2 = vector.load %arg2[%c0_1, %c0_2, %c0_3] : memref<9x128x64xbf16, #tpu.memory_space<vmem>>, vector<1x128x64xbf16>
    %3 = vector.shape_cast %2 : vector<1x128x64xbf16> to vector<128x64xbf16>
    %cst_4 = arith.constant dense<0.000000e+00> : vector<64x64xf32>
    %4 = tpu.matmul %1, %3, %cst_4 {dimension_numbers = #tpu.dot_dimension_numbers<[1], [0], [0], [1], [0, 0, 1, 1], [], []>} : vector<64x128xbf16>, vector<128x64xbf16>, vector<64x64xf32> -> vector<64x64xf32>
    %5 = arith.addf %0, %4 : vector<64x64xf32>
    %c1 = arith.constant 1 : index
    %c0_5 = arith.constant 0 : index
    %6 = vector.load %arg1[%c1, %c0_5] : memref<220x128xbf16, #tpu.memory_space<vmem>>, vector<64x128xbf16>
    %c1_6 = arith.constant 1 : index
    %c0_7 = arith.constant 0 : index
    %c0_8 = arith.constant 0 : index
    %7 = vector.load %arg2[%c1_6, %c0_7, %c0_8] : memref<9x128x64xbf16, #tpu.memory_space<vmem>>, vector<1x128x64xbf16>
    %8 = vector.shape_cast %7 : vector<1x128x64xbf16> to vector<128x64xbf16>
    %cst_9 = arith.constant dense<0.000000e+00> : vector<64x64xf32>
    %9 = tpu.matmul %6, %8, %cst_9 {dimension_numbers = #tpu.dot_dimension_numbers<[1], [0], [0], [1], [0, 0, 1, 1], [], []>} : vector<64x128xbf16>, vector<128x64xbf16>, vector<64x64xf32> -> vector<64x64xf32>
    %10 = arith.addf %5, %9 : vector<64x64xf32>
    %c2 = arith.constant 2 : index
    %c0_10 = arith.constant 0 : index
    %11 = vector.load %arg1[%c2, %c0_10] : memref<220x128xbf16, #tpu.memory_space<vmem>>, vector<64x128xbf16>
    %c2_11 = arith.constant 2 : index
    %c0_12 = arith.constant 0 : index
    %c0_13 = arith.constant 0 : index
    %12 = vector.load %arg2[%c2_11, %c0_12, %c0_13] : memref<9x128x64xbf16, #tpu.memory_space<vmem>>, vector<1x128x64xbf16>
    %13 = vector.shape_cast %12 : vector<1x128x64xbf16> to vector<128x64xbf16>
    %cst_14 = arith.constant dense<0.000000e+00> : vector<64x64xf32>
    %14 = tpu.matmul %11, %13, %cst_14 {dimension_numbers = #tpu.dot_dimension_numbers<[1], [0], [0], [1], [0, 0, 1, 1], [], []>} : vector<64x128xbf16>, vector<128x64xbf16>, vector<64x64xf32> -> vector<64x64xf32>
    %15 = arith.addf %10, %14 : vector<64x64xf32>
    %c22 = arith.constant 22 : index
    %c0_15 = arith.constant 0 : index
    %16 = vector.load %arg1[%c22, %c0_15] : memref<220x128xbf16, #tpu.memory_space<vmem>>, vector<64x128xbf16>
    %c3 = arith.constant 3 : index
    %c0_16 = arith.constant 0 : index
    %c0_17 = arith.constant 0 : index
    %17 = vector.load %arg2[%c3, %c0_16, %c0_17] : memref<9x128x64xbf16, #tpu.memory_space<vmem>>, vector<1x128x64xbf16>
    %18 = vector.shape_cast %17 : vector<1x128x64xbf16> to vector<128x64xbf16>
    %cst_18 = arith.constant dense<0.000000e+00> : vector<64x64xf32>
    %19 = tpu.matmul %16, %18, %cst_18 {dimension_numbers = #tpu.dot_dimension_numbers<[1], [0], [0], [1], [0, 0, 1, 1], [], []>} : vector<64x128xbf16>, vector<128x64xbf16>, vector<64x64xf32> -> vector<64x64xf32>
    %20 = arith.addf %15, %19 : vector<64x64xf32>
    %c23 = arith.constant 23 : index
    %c0_19 = arith.constant 0 : index
    %21 = vector.load %arg1[%c23, %c0_19] : memref<220x128xbf16, #tpu.memory_space<vmem>>, vector<64x128xbf16>
    %c4 = arith.constant 4 : index
    %c0_20 = arith.constant 0 : index
    %c0_21 = arith.constant 0 : index
    %22 = vector.load %arg2[%c4, %c0_20, %c0_21] : memref<9x128x64xbf16, #tpu.memory_space<vmem>>, vector<1x128x64xbf16>
    %23 = vector.shape_cast %22 : vector<1x128x64xbf16> to vector<128x64xbf16>
    %cst_22 = arith.constant dense<0.000000e+00> : vector<64x64xf32>
    %24 = tpu.matmul %21, %23, %cst_22 {dimension_numbers = #tpu.dot_dimension_numbers<[1], [0], [0], [1], [0, 0, 1, 1], [], []>} : vector<64x128xbf16>, vector<128x64xbf16>, vector<64x64xf32> -> vector<64x64xf32>
    %25 = arith.addf %20, %24 : vector<64x64xf32>
    %c24 = arith.constant 24 : index
    %c0_23 = arith.constant 0 : index
    %26 = vector.load %arg1[%c24, %c0_23] : memref<220x128xbf16, #tpu.memory_space<vmem>>, vector<64x128xbf16>
    %c5 = arith.constant 5 : index
    %c0_24 = arith.constant 0 : index
    %c0_25 = arith.constant 0 : index
    %27 = vector.load %arg2[%c5, %c0_24, %c0_25] : memref<9x128x64xbf16, #tpu.memory_space<vmem>>, vector<1x128x64xbf16>
    %28 = vector.shape_cast %27 : vector<1x128x64xbf16> to vector<128x64xbf16>
    %cst_26 = arith.constant dense<0.000000e+00> : vector<64x64xf32>
    %29 = tpu.matmul %26, %28, %cst_26 {dimension_numbers = #tpu.dot_dimension_numbers<[1], [0], [0], [1], [0, 0, 1, 1], [], []>} : vector<64x128xbf16>, vector<128x64xbf16>, vector<64x64xf32> -> vector<64x64xf32>
    %30 = arith.addf %25, %29 : vector<64x64xf32>
    %c44 = arith.constant 44 : index
    %c0_27 = arith.constant 0 : index
    %31 = vector.load %arg1[%c44, %c0_27] : memref<220x128xbf16, #tpu.memory_space<vmem>>, vector<64x128xbf16>
    %c6 = arith.constant 6 : index
    %c0_28 = arith.constant 0 : index
    %c0_29 = arith.constant 0 : index
    %32 = vector.load %arg2[%c6, %c0_28, %c0_29] : memref<9x128x64xbf16, #tpu.memory_space<vmem>>, vector<1x128x64xbf16>
    %33 = vector.shape_cast %32 : vector<1x128x64xbf16> to vector<128x64xbf16>
    %cst_30 = arith.constant dense<0.000000e+00> : vector<64x64xf32>
    %34 = tpu.matmul %31, %33, %cst_30 {dimension_numbers = #tpu.dot_dimension_numbers<[1], [0], [0], [1], [0, 0, 1, 1], [], []>} : vector<64x128xbf16>, vector<128x64xbf16>, vector<64x64xf32> -> vector<64x64xf32>
    %35 = arith.addf %30, %34 : vector<64x64xf32>
    %c45 = arith.constant 45 : index
    %c0_31 = arith.constant 0 : index
    %36 = vector.load %arg1[%c45, %c0_31] : memref<220x128xbf16, #tpu.memory_space<vmem>>, vector<64x128xbf16>
    %c7 = arith.constant 7 : index
    %c0_32 = arith.constant 0 : index
    %c0_33 = arith.constant 0 : index
    %37 = vector.load %arg2[%c7, %c0_32, %c0_33] : memref<9x128x64xbf16, #tpu.memory_space<vmem>>, vector<1x128x64xbf16>
    %38 = vector.shape_cast %37 : vector<1x128x64xbf16> to vector<128x64xbf16>
    %cst_34 = arith.constant dense<0.000000e+00> : vector<64x64xf32>
    %39 = tpu.matmul %36, %38, %cst_34 {dimension_numbers = #tpu.dot_dimension_numbers<[1], [0], [0], [1], [0, 0, 1, 1], [], []>} : vector<64x128xbf16>, vector<128x64xbf16>, vector<64x64xf32> -> vector<64x64xf32>
    %40 = arith.addf %35, %39 : vector<64x64xf32>
    %c46 = arith.constant 46 : index
    %c0_35 = arith.constant 0 : index
    %41 = vector.load %arg1[%c46, %c0_35] : memref<220x128xbf16, #tpu.memory_space<vmem>>, vector<64x128xbf16>
    %c8 = arith.constant 8 : index
    %c0_36 = arith.constant 0 : index
    %c0_37 = arith.constant 0 : index
    %42 = vector.load %arg2[%c8, %c0_36, %c0_37] : memref<9x128x64xbf16, #tpu.memory_space<vmem>>, vector<1x128x64xbf16>
    %43 = vector.shape_cast %42 : vector<1x128x64xbf16> to vector<128x64xbf16>
    %cst_38 = arith.constant dense<0.000000e+00> : vector<64x64xf32>
    %44 = tpu.matmul %41, %43, %cst_38 {dimension_numbers = #tpu.dot_dimension_numbers<[1], [0], [0], [1], [0, 0, 1, 1], [], []>} : vector<64x128xbf16>, vector<128x64xbf16>, vector<64x64xf32> -> vector<64x64xf32>
    %45 = arith.addf %40, %44 : vector<64x64xf32>
    %c0_39 = arith.constant 0 : index
    %c0_40 = arith.constant 0 : index
    %46 = vector.load %arg3[%c0_39, %c0_40] : memref<1x64xf32, #tpu.memory_space<vmem>>, vector<1x64xf32>
    %47 = vector.broadcast %46 : vector<1x64xf32> to vector<64x64xf32>
    %48 = arith.addf %45, %47 : vector<64x64xf32>
    %cst_41 = arith.constant 0.000000e+00 : f32
    %49 = vector.broadcast %cst_41 : f32 to vector<64x64xf32>
    %50 = arith.maximumf %48, %49 : vector<64x64xf32>
    %51 = arith.truncf %50 : vector<64x64xf32> to vector<64x64xbf16>
    %cst_42 = arith.constant 0.000000e+00 : f32
    %52 = vector.broadcast %cst_42 : f32 to vector<18x64xf32>
    %53 = vector.extract_strided_slice %51 {offsets = [0, 0], sizes = [18, 64], strides = [1, 1]} : vector<64x64xbf16> to vector<18x64xbf16>
    %c0_43 = arith.constant 0 : index
    %c0_44 = arith.constant 0 : index
    %c0_45 = arith.constant 0 : index
    %54 = vector.load %arg4[%c0_43, %c0_44, %c0_45] : memref<9x64x64xbf16, #tpu.memory_space<vmem>>, vector<1x64x64xbf16>
    %55 = vector.shape_cast %54 : vector<1x64x64xbf16> to vector<64x64xbf16>
    %cst_46 = arith.constant dense<0.000000e+00> : vector<18x64xf32>
    %56 = tpu.matmul %53, %55, %cst_46 {dimension_numbers = #tpu.dot_dimension_numbers<[1], [0], [0], [1], [0, 0, 1, 1], [], []>} : vector<18x64xbf16>, vector<64x64xbf16>, vector<18x64xf32> -> vector<18x64xf32>
    %57 = arith.addf %52, %56 : vector<18x64xf32>
    %58 = vector.extract_strided_slice %51 {offsets = [1, 0], sizes = [18, 64], strides = [1, 1]} : vector<64x64xbf16> to vector<18x64xbf16>
    %c1_47 = arith.constant 1 : index
    %c0_48 = arith.constant 0 : index
    %c0_49 = arith.constant 0 : index
    %59 = vector.load %arg4[%c1_47, %c0_48, %c0_49] : memref<9x64x64xbf16, #tpu.memory_space<vmem>>, vector<1x64x64xbf16>
    %60 = vector.shape_cast %59 : vector<1x64x64xbf16> to vector<64x64xbf16>
    %cst_50 = arith.constant dense<0.000000e+00> : vector<18x64xf32>
    %61 = tpu.matmul %58, %60, %cst_50 {dimension_numbers = #tpu.dot_dimension_numbers<[1], [0], [0], [1], [0, 0, 1, 1], [], []>} : vector<18x64xbf16>, vector<64x64xbf16>, vector<18x64xf32> -> vector<18x64xf32>
    %62 = arith.addf %57, %61 : vector<18x64xf32>
    %63 = vector.extract_strided_slice %51 {offsets = [2, 0], sizes = [18, 64], strides = [1, 1]} : vector<64x64xbf16> to vector<18x64xbf16>
    %c2_51 = arith.constant 2 : index
    %c0_52 = arith.constant 0 : index
    %c0_53 = arith.constant 0 : index
    %64 = vector.load %arg4[%c2_51, %c0_52, %c0_53] : memref<9x64x64xbf16, #tpu.memory_space<vmem>>, vector<1x64x64xbf16>
    %65 = vector.shape_cast %64 : vector<1x64x64xbf16> to vector<64x64xbf16>
    %cst_54 = arith.constant dense<0.000000e+00> : vector<18x64xf32>
    %66 = tpu.matmul %63, %65, %cst_54 {dimension_numbers = #tpu.dot_dimension_numbers<[1], [0], [0], [1], [0, 0, 1, 1], [], []>} : vector<18x64xbf16>, vector<64x64xbf16>, vector<18x64xf32> -> vector<18x64xf32>
    %67 = arith.addf %62, %66 : vector<18x64xf32>
    %68 = vector.extract_strided_slice %51 {offsets = [22, 0], sizes = [18, 64], strides = [1, 1]} : vector<64x64xbf16> to vector<18x64xbf16>
    %c3_55 = arith.constant 3 : index
    %c0_56 = arith.constant 0 : index
    %c0_57 = arith.constant 0 : index
    %69 = vector.load %arg4[%c3_55, %c0_56, %c0_57] : memref<9x64x64xbf16, #tpu.memory_space<vmem>>, vector<1x64x64xbf16>
    %70 = vector.shape_cast %69 : vector<1x64x64xbf16> to vector<64x64xbf16>
    %cst_58 = arith.constant dense<0.000000e+00> : vector<18x64xf32>
    %71 = tpu.matmul %68, %70, %cst_58 {dimension_numbers = #tpu.dot_dimension_numbers<[1], [0], [0], [1], [0, 0, 1, 1], [], []>} : vector<18x64xbf16>, vector<64x64xbf16>, vector<18x64xf32> -> vector<18x64xf32>
    %72 = arith.addf %67, %71 : vector<18x64xf32>
    %73 = vector.extract_strided_slice %51 {offsets = [23, 0], sizes = [18, 64], strides = [1, 1]} : vector<64x64xbf16> to vector<18x64xbf16>
    %c4_59 = arith.constant 4 : index
    %c0_60 = arith.constant 0 : index
    %c0_61 = arith.constant 0 : index
    %74 = vector.load %arg4[%c4_59, %c0_60, %c0_61] : memref<9x64x64xbf16, #tpu.memory_space<vmem>>, vector<1x64x64xbf16>
    %75 = vector.shape_cast %74 : vector<1x64x64xbf16> to vector<64x64xbf16>
    %cst_62 = arith.constant dense<0.000000e+00> : vector<18x64xf32>
    %76 = tpu.matmul %73, %75, %cst_62 {dimension_numbers = #tpu.dot_dimension_numbers<[1], [0], [0], [1], [0, 0, 1, 1], [], []>} : vector<18x64xbf16>, vector<64x64xbf16>, vector<18x64xf32> -> vector<18x64xf32>
    %77 = arith.addf %72, %76 : vector<18x64xf32>
    %78 = vector.extract_strided_slice %51 {offsets = [24, 0], sizes = [18, 64], strides = [1, 1]} : vector<64x64xbf16> to vector<18x64xbf16>
    %c5_63 = arith.constant 5 : index
    %c0_64 = arith.constant 0 : index
    %c0_65 = arith.constant 0 : index
    %79 = vector.load %arg4[%c5_63, %c0_64, %c0_65] : memref<9x64x64xbf16, #tpu.memory_space<vmem>>, vector<1x64x64xbf16>
    %80 = vector.shape_cast %79 : vector<1x64x64xbf16> to vector<64x64xbf16>
    %cst_66 = arith.constant dense<0.000000e+00> : vector<18x64xf32>
    %81 = tpu.matmul %78, %80, %cst_66 {dimension_numbers = #tpu.dot_dimension_numbers<[1], [0], [0], [1], [0, 0, 1, 1], [], []>} : vector<18x64xbf16>, vector<64x64xbf16>, vector<18x64xf32> -> vector<18x64xf32>
    %82 = arith.addf %77, %81 : vector<18x64xf32>
    %83 = vector.extract_strided_slice %51 {offsets = [44, 0], sizes = [18, 64], strides = [1, 1]} : vector<64x64xbf16> to vector<18x64xbf16>
    %c6_67 = arith.constant 6 : index
    %c0_68 = arith.constant 0 : index
    %c0_69 = arith.constant 0 : index
    %84 = vector.load %arg4[%c6_67, %c0_68, %c0_69] : memref<9x64x64xbf16, #tpu.memory_space<vmem>>, vector<1x64x64xbf16>
    %85 = vector.shape_cast %84 : vector<1x64x64xbf16> to vector<64x64xbf16>
    %cst_70 = arith.constant dense<0.000000e+00> : vector<18x64xf32>
    %86 = tpu.matmul %83, %85, %cst_70 {dimension_numbers = #tpu.dot_dimension_numbers<[1], [0], [0], [1], [0, 0, 1, 1], [], []>} : vector<18x64xbf16>, vector<64x64xbf16>, vector<18x64xf32> -> vector<18x64xf32>
    %87 = arith.addf %82, %86 : vector<18x64xf32>
    %88 = vector.extract_strided_slice %51 {offsets = [45, 0], sizes = [18, 64], strides = [1, 1]} : vector<64x64xbf16> to vector<18x64xbf16>
    %c7_71 = arith.constant 7 : index
    %c0_72 = arith.constant 0 : index
    %c0_73 = arith.constant 0 : index
    %89 = vector.load %arg4[%c7_71, %c0_72, %c0_73] : memref<9x64x64xbf16, #tpu.memory_space<vmem>>, vector<1x64x64xbf16>
    %90 = vector.shape_cast %89 : vector<1x64x64xbf16> to vector<64x64xbf16>
    %cst_74 = arith.constant dense<0.000000e+00> : vector<18x64xf32>
    %91 = tpu.matmul %88, %90, %cst_74 {dimension_numbers = #tpu.dot_dimension_numbers<[1], [0], [0], [1], [0, 0, 1, 1], [], []>} : vector<18x64xbf16>, vector<64x64xbf16>, vector<18x64xf32> -> vector<18x64xf32>
    %92 = arith.addf %87, %91 : vector<18x64xf32>
    %93 = vector.extract_strided_slice %51 {offsets = [46, 0], sizes = [18, 64], strides = [1, 1]} : vector<64x64xbf16> to vector<18x64xbf16>
    %c8_75 = arith.constant 8 : index
    %c0_76 = arith.constant 0 : index
    %c0_77 = arith.constant 0 : index
    %94 = vector.load %arg4[%c8_75, %c0_76, %c0_77] : memref<9x64x64xbf16, #tpu.memory_space<vmem>>, vector<1x64x64xbf16>
    %95 = vector.shape_cast %94 : vector<1x64x64xbf16> to vector<64x64xbf16>
    %cst_78 = arith.constant dense<0.000000e+00> : vector<18x64xf32>
    %96 = tpu.matmul %93, %95, %cst_78 {dimension_numbers = #tpu.dot_dimension_numbers<[1], [0], [0], [1], [0, 0, 1, 1], [], []>} : vector<18x64xbf16>, vector<64x64xbf16>, vector<18x64xf32> -> vector<18x64xf32>
    %97 = arith.addf %92, %96 : vector<18x64xf32>
    %c0_79 = arith.constant 0 : index
    %c0_80 = arith.constant 0 : index
    %98 = vector.load %arg5[%c0_79, %c0_80] : memref<1x64xf32, #tpu.memory_space<vmem>>, vector<1x64xf32>
    %99 = vector.broadcast %98 : vector<1x64xf32> to vector<18x64xf32>
    %100 = arith.addf %97, %99 : vector<18x64xf32>
    %cst_81 = arith.constant 0.000000e+00 : f32
    %101 = vector.broadcast %cst_81 : f32 to vector<18x64xf32>
    %102 = arith.maximumf %100, %101 : vector<18x64xf32>
    %103 = arith.truncf %102 : vector<18x64xf32> to vector<18x64xbf16>
    %cst_82 = arith.constant 0.000000e+00 : f32
    %104 = vector.broadcast %cst_82 : f32 to vector<1x128xf32>
    %c0_83 = arith.constant 0 : index
    %c0_84 = arith.constant 0 : index
    %c0_85 = arith.constant 0 : index
    %105 = vector.load %arg6[%c0_83, %c0_84, %c0_85] : memref<18x64x128xbf16, #tpu.memory_space<vmem>>, vector<1x64x128xbf16>
    %106 = vector.shape_cast %105 : vector<1x64x128xbf16> to vector<64x128xbf16>
    %cst_86 = arith.constant dense<0.000000e+00> : vector<18x128xf32>
    %107 = tpu.matmul %103, %106, %cst_86 {dimension_numbers = #tpu.dot_dimension_numbers<[1], [0], [0], [1], [0, 0, 1, 1], [], []>} : vector<18x64xbf16>, vector<64x128xbf16>, vector<18x128xf32> -> vector<18x128xf32>
    %108 = vector.extract_strided_slice %107 {offsets = [0, 0], sizes = [1, 128], strides = [1, 1]} : vector<18x128xf32> to vector<1x128xf32>
    %109 = arith.addf %104, %108 : vector<1x128xf32>
    %c1_87 = arith.constant 1 : index
    %c0_88 = arith.constant 0 : index
    %c0_89 = arith.constant 0 : index
    %110 = vector.load %arg6[%c1_87, %c0_88, %c0_89] : memref<18x64x128xbf16, #tpu.memory_space<vmem>>, vector<1x64x128xbf16>
    %111 = vector.shape_cast %110 : vector<1x64x128xbf16> to vector<64x128xbf16>
    %cst_90 = arith.constant dense<0.000000e+00> : vector<18x128xf32>
    %112 = tpu.matmul %103, %111, %cst_90 {dimension_numbers = #tpu.dot_dimension_numbers<[1], [0], [0], [1], [0, 0, 1, 1], [], []>} : vector<18x64xbf16>, vector<64x128xbf16>, vector<18x128xf32> -> vector<18x128xf32>
    %113 = vector.extract_strided_slice %112 {offsets = [1, 0], sizes = [1, 128], strides = [1, 1]} : vector<18x128xf32> to vector<1x128xf32>
    %114 = arith.addf %109, %113 : vector<1x128xf32>
    %c2_91 = arith.constant 2 : index
    %c0_92 = arith.constant 0 : index
    %c0_93 = arith.constant 0 : index
    %115 = vector.load %arg6[%c2_91, %c0_92, %c0_93] : memref<18x64x128xbf16, #tpu.memory_space<vmem>>, vector<1x64x128xbf16>
    %116 = vector.shape_cast %115 : vector<1x64x128xbf16> to vector<64x128xbf16>
    %cst_94 = arith.constant dense<0.000000e+00> : vector<18x128xf32>
    %117 = tpu.matmul %103, %116, %cst_94 {dimension_numbers = #tpu.dot_dimension_numbers<[1], [0], [0], [1], [0, 0, 1, 1], [], []>} : vector<18x64xbf16>, vector<64x128xbf16>, vector<18x128xf32> -> vector<18x128xf32>
    %118 = vector.extract_strided_slice %117 {offsets = [2, 0], sizes = [1, 128], strides = [1, 1]} : vector<18x128xf32> to vector<1x128xf32>
    %119 = arith.addf %114, %118 : vector<1x128xf32>
    %c3_95 = arith.constant 3 : index
    %c0_96 = arith.constant 0 : index
    %c0_97 = arith.constant 0 : index
    %120 = vector.load %arg6[%c3_95, %c0_96, %c0_97] : memref<18x64x128xbf16, #tpu.memory_space<vmem>>, vector<1x64x128xbf16>
    %121 = vector.shape_cast %120 : vector<1x64x128xbf16> to vector<64x128xbf16>
    %cst_98 = arith.constant dense<0.000000e+00> : vector<18x128xf32>
    %122 = tpu.matmul %103, %121, %cst_98 {dimension_numbers = #tpu.dot_dimension_numbers<[1], [0], [0], [1], [0, 0, 1, 1], [], []>} : vector<18x64xbf16>, vector<64x128xbf16>, vector<18x128xf32> -> vector<18x128xf32>
    %123 = vector.extract_strided_slice %122 {offsets = [3, 0], sizes = [1, 128], strides = [1, 1]} : vector<18x128xf32> to vector<1x128xf32>
    %124 = arith.addf %119, %123 : vector<1x128xf32>
    %c4_99 = arith.constant 4 : index
    %c0_100 = arith.constant 0 : index
    %c0_101 = arith.constant 0 : index
    %125 = vector.load %arg6[%c4_99, %c0_100, %c0_101] : memref<18x64x128xbf16, #tpu.memory_space<vmem>>, vector<1x64x128xbf16>
    %126 = vector.shape_cast %125 : vector<1x64x128xbf16> to vector<64x128xbf16>
    %cst_102 = arith.constant dense<0.000000e+00> : vector<18x128xf32>
    %127 = tpu.matmul %103, %126, %cst_102 {dimension_numbers = #tpu.dot_dimension_numbers<[1], [0], [0], [1], [0, 0, 1, 1], [], []>} : vector<18x64xbf16>, vector<64x128xbf16>, vector<18x128xf32> -> vector<18x128xf32>
    %128 = vector.extract_strided_slice %127 {offsets = [4, 0], sizes = [1, 128], strides = [1, 1]} : vector<18x128xf32> to vector<1x128xf32>
    %129 = arith.addf %124, %128 : vector<1x128xf32>
    %c5_103 = arith.constant 5 : index
    %c0_104 = arith.constant 0 : index
    %c0_105 = arith.constant 0 : index
    %130 = vector.load %arg6[%c5_103, %c0_104, %c0_105] : memref<18x64x128xbf16, #tpu.memory_space<vmem>>, vector<1x64x128xbf16>
    %131 = vector.shape_cast %130 : vector<1x64x128xbf16> to vector<64x128xbf16>
    %cst_106 = arith.constant dense<0.000000e+00> : vector<18x128xf32>
    %132 = tpu.matmul %103, %131, %cst_106 {dimension_numbers = #tpu.dot_dimension_numbers<[1], [0], [0], [1], [0, 0, 1, 1], [], []>} : vector<18x64xbf16>, vector<64x128xbf16>, vector<18x128xf32> -> vector<18x128xf32>
    %133 = vector.extract_strided_slice %132 {offsets = [5, 0], sizes = [1, 128], strides = [1, 1]} : vector<18x128xf32> to vector<1x128xf32>
    %134 = arith.addf %129, %133 : vector<1x128xf32>
    %c6_107 = arith.constant 6 : index
    %c0_108 = arith.constant 0 : index
    %c0_109 = arith.constant 0 : index
    %135 = vector.load %arg6[%c6_107, %c0_108, %c0_109] : memref<18x64x128xbf16, #tpu.memory_space<vmem>>, vector<1x64x128xbf16>
    %136 = vector.shape_cast %135 : vector<1x64x128xbf16> to vector<64x128xbf16>
    %cst_110 = arith.constant dense<0.000000e+00> : vector<18x128xf32>
    %137 = tpu.matmul %103, %136, %cst_110 {dimension_numbers = #tpu.dot_dimension_numbers<[1], [0], [0], [1], [0, 0, 1, 1], [], []>} : vector<18x64xbf16>, vector<64x128xbf16>, vector<18x128xf32> -> vector<18x128xf32>
    %138 = vector.extract_strided_slice %137 {offsets = [6, 0], sizes = [1, 128], strides = [1, 1]} : vector<18x128xf32> to vector<1x128xf32>
    %139 = arith.addf %134, %138 : vector<1x128xf32>
    %c7_111 = arith.constant 7 : index
    %c0_112 = arith.constant 0 : index
    %c0_113 = arith.constant 0 : index
    %140 = vector.load %arg6[%c7_111, %c0_112, %c0_113] : memref<18x64x128xbf16, #tpu.memory_space<vmem>>, vector<1x64x128xbf16>
    %141 = vector.shape_cast %140 : vector<1x64x128xbf16> to vector<64x128xbf16>
    %cst_114 = arith.constant dense<0.000000e+00> : vector<18x128xf32>
    %142 = tpu.matmul %103, %141, %cst_114 {dimension_numbers = #tpu.dot_dimension_numbers<[1], [0], [0], [1], [0, 0, 1, 1], [], []>} : vector<18x64xbf16>, vector<64x128xbf16>, vector<18x128xf32> -> vector<18x128xf32>
    %143 = vector.extract_strided_slice %142 {offsets = [7, 0], sizes = [1, 128], strides = [1, 1]} : vector<18x128xf32> to vector<1x128xf32>
    %144 = arith.addf %139, %143 : vector<1x128xf32>
    %c8_115 = arith.constant 8 : index
    %c0_116 = arith.constant 0 : index
    %c0_117 = arith.constant 0 : index
    %145 = vector.load %arg6[%c8_115, %c0_116, %c0_117] : memref<18x64x128xbf16, #tpu.memory_space<vmem>>, vector<1x64x128xbf16>
    %146 = vector.shape_cast %145 : vector<1x64x128xbf16> to vector<64x128xbf16>
    %cst_118 = arith.constant dense<0.000000e+00> : vector<18x128xf32>
    %147 = tpu.matmul %103, %146, %cst_118 {dimension_numbers = #tpu.dot_dimension_numbers<[1], [0], [0], [1], [0, 0, 1, 1], [], []>} : vector<18x64xbf16>, vector<64x128xbf16>, vector<18x128xf32> -> vector<18x128xf32>
    %148 = vector.extract_strided_slice %147 {offsets = [8, 0], sizes = [1, 128], strides = [1, 1]} : vector<18x128xf32> to vector<1x128xf32>
    %149 = arith.addf %144, %148 : vector<1x128xf32>
    %c9 = arith.constant 9 : index
    %c0_119 = arith.constant 0 : index
    %c0_120 = arith.constant 0 : index
    %150 = vector.load %arg6[%c9, %c0_119, %c0_120] : memref<18x64x128xbf16, #tpu.memory_space<vmem>>, vector<1x64x128xbf16>
    %151 = vector.shape_cast %150 : vector<1x64x128xbf16> to vector<64x128xbf16>
    %cst_121 = arith.constant dense<0.000000e+00> : vector<18x128xf32>
    %152 = tpu.matmul %103, %151, %cst_121 {dimension_numbers = #tpu.dot_dimension_numbers<[1], [0], [0], [1], [0, 0, 1, 1], [], []>} : vector<18x64xbf16>, vector<64x128xbf16>, vector<18x128xf32> -> vector<18x128xf32>
    %153 = vector.extract_strided_slice %152 {offsets = [9, 0], sizes = [1, 128], strides = [1, 1]} : vector<18x128xf32> to vector<1x128xf32>
    %154 = arith.addf %149, %153 : vector<1x128xf32>
    %c10 = arith.constant 10 : index
    %c0_122 = arith.constant 0 : index
    %c0_123 = arith.constant 0 : index
    %155 = vector.load %arg6[%c10, %c0_122, %c0_123] : memref<18x64x128xbf16, #tpu.memory_space<vmem>>, vector<1x64x128xbf16>
    %156 = vector.shape_cast %155 : vector<1x64x128xbf16> to vector<64x128xbf16>
    %cst_124 = arith.constant dense<0.000000e+00> : vector<18x128xf32>
    %157 = tpu.matmul %103, %156, %cst_124 {dimension_numbers = #tpu.dot_dimension_numbers<[1], [0], [0], [1], [0, 0, 1, 1], [], []>} : vector<18x64xbf16>, vector<64x128xbf16>, vector<18x128xf32> -> vector<18x128xf32>
    %158 = vector.extract_strided_slice %157 {offsets = [10, 0], sizes = [1, 128], strides = [1, 1]} : vector<18x128xf32> to vector<1x128xf32>
    %159 = arith.addf %154, %158 : vector<1x128xf32>
    %c11 = arith.constant 11 : index
    %c0_125 = arith.constant 0 : index
    %c0_126 = arith.constant 0 : index
    %160 = vector.load %arg6[%c11, %c0_125, %c0_126] : memref<18x64x128xbf16, #tpu.memory_space<vmem>>, vector<1x64x128xbf16>
    %161 = vector.shape_cast %160 : vector<1x64x128xbf16> to vector<64x128xbf16>
    %cst_127 = arith.constant dense<0.000000e+00> : vector<18x128xf32>
    %162 = tpu.matmul %103, %161, %cst_127 {dimension_numbers = #tpu.dot_dimension_numbers<[1], [0], [0], [1], [0, 0, 1, 1], [], []>} : vector<18x64xbf16>, vector<64x128xbf16>, vector<18x128xf32> -> vector<18x128xf32>
    %163 = vector.extract_strided_slice %162 {offsets = [11, 0], sizes = [1, 128], strides = [1, 1]} : vector<18x128xf32> to vector<1x128xf32>
    %164 = arith.addf %159, %163 : vector<1x128xf32>
    %c12 = arith.constant 12 : index
    %c0_128 = arith.constant 0 : index
    %c0_129 = arith.constant 0 : index
    %165 = vector.load %arg6[%c12, %c0_128, %c0_129] : memref<18x64x128xbf16, #tpu.memory_space<vmem>>, vector<1x64x128xbf16>
    %166 = vector.shape_cast %165 : vector<1x64x128xbf16> to vector<64x128xbf16>
    %cst_130 = arith.constant dense<0.000000e+00> : vector<18x128xf32>
    %167 = tpu.matmul %103, %166, %cst_130 {dimension_numbers = #tpu.dot_dimension_numbers<[1], [0], [0], [1], [0, 0, 1, 1], [], []>} : vector<18x64xbf16>, vector<64x128xbf16>, vector<18x128xf32> -> vector<18x128xf32>
    %168 = vector.extract_strided_slice %167 {offsets = [12, 0], sizes = [1, 128], strides = [1, 1]} : vector<18x128xf32> to vector<1x128xf32>
    %169 = arith.addf %164, %168 : vector<1x128xf32>
    %c13 = arith.constant 13 : index
    %c0_131 = arith.constant 0 : index
    %c0_132 = arith.constant 0 : index
    %170 = vector.load %arg6[%c13, %c0_131, %c0_132] : memref<18x64x128xbf16, #tpu.memory_space<vmem>>, vector<1x64x128xbf16>
    %171 = vector.shape_cast %170 : vector<1x64x128xbf16> to vector<64x128xbf16>
    %cst_133 = arith.constant dense<0.000000e+00> : vector<18x128xf32>
    %172 = tpu.matmul %103, %171, %cst_133 {dimension_numbers = #tpu.dot_dimension_numbers<[1], [0], [0], [1], [0, 0, 1, 1], [], []>} : vector<18x64xbf16>, vector<64x128xbf16>, vector<18x128xf32> -> vector<18x128xf32>
    %173 = vector.extract_strided_slice %172 {offsets = [13, 0], sizes = [1, 128], strides = [1, 1]} : vector<18x128xf32> to vector<1x128xf32>
    %174 = arith.addf %169, %173 : vector<1x128xf32>
    %c14 = arith.constant 14 : index
    %c0_134 = arith.constant 0 : index
    %c0_135 = arith.constant 0 : index
    %175 = vector.load %arg6[%c14, %c0_134, %c0_135] : memref<18x64x128xbf16, #tpu.memory_space<vmem>>, vector<1x64x128xbf16>
    %176 = vector.shape_cast %175 : vector<1x64x128xbf16> to vector<64x128xbf16>
    %cst_136 = arith.constant dense<0.000000e+00> : vector<18x128xf32>
    %177 = tpu.matmul %103, %176, %cst_136 {dimension_numbers = #tpu.dot_dimension_numbers<[1], [0], [0], [1], [0, 0, 1, 1], [], []>} : vector<18x64xbf16>, vector<64x128xbf16>, vector<18x128xf32> -> vector<18x128xf32>
    %178 = vector.extract_strided_slice %177 {offsets = [14, 0], sizes = [1, 128], strides = [1, 1]} : vector<18x128xf32> to vector<1x128xf32>
    %179 = arith.addf %174, %178 : vector<1x128xf32>
    %c15 = arith.constant 15 : index
    %c0_137 = arith.constant 0 : index
    %c0_138 = arith.constant 0 : index
    %180 = vector.load %arg6[%c15, %c0_137, %c0_138] : memref<18x64x128xbf16, #tpu.memory_space<vmem>>, vector<1x64x128xbf16>
    %181 = vector.shape_cast %180 : vector<1x64x128xbf16> to vector<64x128xbf16>
    %cst_139 = arith.constant dense<0.000000e+00> : vector<18x128xf32>
    %182 = tpu.matmul %103, %181, %cst_139 {dimension_numbers = #tpu.dot_dimension_numbers<[1], [0], [0], [1], [0, 0, 1, 1], [], []>} : vector<18x64xbf16>, vector<64x128xbf16>, vector<18x128xf32> -> vector<18x128xf32>
    %183 = vector.extract_strided_slice %182 {offsets = [15, 0], sizes = [1, 128], strides = [1, 1]} : vector<18x128xf32> to vector<1x128xf32>
    %184 = arith.addf %179, %183 : vector<1x128xf32>
    %c16 = arith.constant 16 : index
    %c0_140 = arith.constant 0 : index
    %c0_141 = arith.constant 0 : index
    %185 = vector.load %arg6[%c16, %c0_140, %c0_141] : memref<18x64x128xbf16, #tpu.memory_space<vmem>>, vector<1x64x128xbf16>
    %186 = vector.shape_cast %185 : vector<1x64x128xbf16> to vector<64x128xbf16>
    %cst_142 = arith.constant dense<0.000000e+00> : vector<18x128xf32>
    %187 = tpu.matmul %103, %186, %cst_142 {dimension_numbers = #tpu.dot_dimension_numbers<[1], [0], [0], [1], [0, 0, 1, 1], [], []>} : vector<18x64xbf16>, vector<64x128xbf16>, vector<18x128xf32> -> vector<18x128xf32>
    %188 = vector.extract_strided_slice %187 {offsets = [16, 0], sizes = [1, 128], strides = [1, 1]} : vector<18x128xf32> to vector<1x128xf32>
    %189 = arith.addf %184, %188 : vector<1x128xf32>
    %c17 = arith.constant 17 : index
    %c0_143 = arith.constant 0 : index
    %c0_144 = arith.constant 0 : index
    %190 = vector.load %arg6[%c17, %c0_143, %c0_144] : memref<18x64x128xbf16, #tpu.memory_space<vmem>>, vector<1x64x128xbf16>
    %191 = vector.shape_cast %190 : vector<1x64x128xbf16> to vector<64x128xbf16>
    %cst_145 = arith.constant dense<0.000000e+00> : vector<18x128xf32>
    %192 = tpu.matmul %103, %191, %cst_145 {dimension_numbers = #tpu.dot_dimension_numbers<[1], [0], [0], [1], [0, 0, 1, 1], [], []>} : vector<18x64xbf16>, vector<64x128xbf16>, vector<18x128xf32> -> vector<18x128xf32>
    %193 = vector.extract_strided_slice %192 {offsets = [17, 0], sizes = [1, 128], strides = [1, 1]} : vector<18x128xf32> to vector<1x128xf32>
    %194 = arith.addf %189, %193 : vector<1x128xf32>
    %c0_146 = arith.constant 0 : index
    %c0_147 = arith.constant 0 : index
    %195 = vector.load %arg7[%c0_146, %c0_147] : memref<1x128xf32, #tpu.memory_space<vmem>>, vector<1x128xf32>
    %196 = arith.addf %194, %195 : vector<1x128xf32>
    %cst_148 = arith.constant 0.000000e+00 : f32
    %197 = vector.broadcast %cst_148 : f32 to vector<1x128xf32>
    %198 = arith.maximumf %196, %197 : vector<1x128xf32>
    %cst_149 = arith.constant 0.000000e+00 : f32
    %199 = vector.broadcast %cst_149 : f32 to vector<64x64xf32>
    %c110 = arith.constant 110 : index
    %c0_150 = arith.constant 0 : index
    %200 = vector.load %arg1[%c110, %c0_150] : memref<220x128xbf16, #tpu.memory_space<vmem>>, vector<64x128xbf16>
    %c0_151 = arith.constant 0 : index
    %c0_152 = arith.constant 0 : index
    %c0_153 = arith.constant 0 : index
    %201 = vector.load %arg2[%c0_151, %c0_152, %c0_153] : memref<9x128x64xbf16, #tpu.memory_space<vmem>>, vector<1x128x64xbf16>
    %202 = vector.shape_cast %201 : vector<1x128x64xbf16> to vector<128x64xbf16>
    %cst_154 = arith.constant dense<0.000000e+00> : vector<64x64xf32>
    %203 = tpu.matmul %200, %202, %cst_154 {dimension_numbers = #tpu.dot_dimension_numbers<[1], [0], [0], [1], [0, 0, 1, 1], [], []>} : vector<64x128xbf16>, vector<128x64xbf16>, vector<64x64xf32> -> vector<64x64xf32>
    %204 = arith.addf %199, %203 : vector<64x64xf32>
    %c111 = arith.constant 111 : index
    %c0_155 = arith.constant 0 : index
    %205 = vector.load %arg1[%c111, %c0_155] : memref<220x128xbf16, #tpu.memory_space<vmem>>, vector<64x128xbf16>
    %c1_156 = arith.constant 1 : index
    %c0_157 = arith.constant 0 : index
    %c0_158 = arith.constant 0 : index
    %206 = vector.load %arg2[%c1_156, %c0_157, %c0_158] : memref<9x128x64xbf16, #tpu.memory_space<vmem>>, vector<1x128x64xbf16>
    %207 = vector.shape_cast %206 : vector<1x128x64xbf16> to vector<128x64xbf16>
    %cst_159 = arith.constant dense<0.000000e+00> : vector<64x64xf32>
    %208 = tpu.matmul %205, %207, %cst_159 {dimension_numbers = #tpu.dot_dimension_numbers<[1], [0], [0], [1], [0, 0, 1, 1], [], []>} : vector<64x128xbf16>, vector<128x64xbf16>, vector<64x64xf32> -> vector<64x64xf32>
    %209 = arith.addf %204, %208 : vector<64x64xf32>
    %c112 = arith.constant 112 : index
    %c0_160 = arith.constant 0 : index
    %210 = vector.load %arg1[%c112, %c0_160] : memref<220x128xbf16, #tpu.memory_space<vmem>>, vector<64x128xbf16>
    %c2_161 = arith.constant 2 : index
    %c0_162 = arith.constant 0 : index
    %c0_163 = arith.constant 0 : index
    %211 = vector.load %arg2[%c2_161, %c0_162, %c0_163] : memref<9x128x64xbf16, #tpu.memory_space<vmem>>, vector<1x128x64xbf16>
    %212 = vector.shape_cast %211 : vector<1x128x64xbf16> to vector<128x64xbf16>
    %cst_164 = arith.constant dense<0.000000e+00> : vector<64x64xf32>
    %213 = tpu.matmul %210, %212, %cst_164 {dimension_numbers = #tpu.dot_dimension_numbers<[1], [0], [0], [1], [0, 0, 1, 1], [], []>} : vector<64x128xbf16>, vector<128x64xbf16>, vector<64x64xf32> -> vector<64x64xf32>
    %214 = arith.addf %209, %213 : vector<64x64xf32>
    %c132 = arith.constant 132 : index
    %c0_165 = arith.constant 0 : index
    %215 = vector.load %arg1[%c132, %c0_165] : memref<220x128xbf16, #tpu.memory_space<vmem>>, vector<64x128xbf16>
    %c3_166 = arith.constant 3 : index
    %c0_167 = arith.constant 0 : index
    %c0_168 = arith.constant 0 : index
    %216 = vector.load %arg2[%c3_166, %c0_167, %c0_168] : memref<9x128x64xbf16, #tpu.memory_space<vmem>>, vector<1x128x64xbf16>
    %217 = vector.shape_cast %216 : vector<1x128x64xbf16> to vector<128x64xbf16>
    %cst_169 = arith.constant dense<0.000000e+00> : vector<64x64xf32>
    %218 = tpu.matmul %215, %217, %cst_169 {dimension_numbers = #tpu.dot_dimension_numbers<[1], [0], [0], [1], [0, 0, 1, 1], [], []>} : vector<64x128xbf16>, vector<128x64xbf16>, vector<64x64xf32> -> vector<64x64xf32>
    %219 = arith.addf %214, %218 : vector<64x64xf32>
    %c133 = arith.constant 133 : index
    %c0_170 = arith.constant 0 : index
    %220 = vector.load %arg1[%c133, %c0_170] : memref<220x128xbf16, #tpu.memory_space<vmem>>, vector<64x128xbf16>
    %c4_171 = arith.constant 4 : index
    %c0_172 = arith.constant 0 : index
    %c0_173 = arith.constant 0 : index
    %221 = vector.load %arg2[%c4_171, %c0_172, %c0_173] : memref<9x128x64xbf16, #tpu.memory_space<vmem>>, vector<1x128x64xbf16>
    %222 = vector.shape_cast %221 : vector<1x128x64xbf16> to vector<128x64xbf16>
    %cst_174 = arith.constant dense<0.000000e+00> : vector<64x64xf32>
    %223 = tpu.matmul %220, %222, %cst_174 {dimension_numbers = #tpu.dot_dimension_numbers<[1], [0], [0], [1], [0, 0, 1, 1], [], []>} : vector<64x128xbf16>, vector<128x64xbf16>, vector<64x64xf32> -> vector<64x64xf32>
    %224 = arith.addf %219, %223 : vector<64x64xf32>
    %c134 = arith.constant 134 : index
    %c0_175 = arith.constant 0 : index
    %225 = vector.load %arg1[%c134, %c0_175] : memref<220x128xbf16, #tpu.memory_space<vmem>>, vector<64x128xbf16>
    %c5_176 = arith.constant 5 : index
    %c0_177 = arith.constant 0 : index
    %c0_178 = arith.constant 0 : index
    %226 = vector.load %arg2[%c5_176, %c0_177, %c0_178] : memref<9x128x64xbf16, #tpu.memory_space<vmem>>, vector<1x128x64xbf16>
    %227 = vector.shape_cast %226 : vector<1x128x64xbf16> to vector<128x64xbf16>
    %cst_179 = arith.constant dense<0.000000e+00> : vector<64x64xf32>
    %228 = tpu.matmul %225, %227, %cst_179 {dimension_numbers = #tpu.dot_dimension_numbers<[1], [0], [0], [1], [0, 0, 1, 1], [], []>} : vector<64x128xbf16>, vector<128x64xbf16>, vector<64x64xf32> -> vector<64x64xf32>
    %229 = arith.addf %224, %228 : vector<64x64xf32>
    %c154 = arith.constant 154 : index
    %c0_180 = arith.constant 0 : index
    %230 = vector.load %arg1[%c154, %c0_180] : memref<220x128xbf16, #tpu.memory_space<vmem>>, vector<64x128xbf16>
    %c6_181 = arith.constant 6 : index
    %c0_182 = arith.constant 0 : index
    %c0_183 = arith.constant 0 : index
    %231 = vector.load %arg2[%c6_181, %c0_182, %c0_183] : memref<9x128x64xbf16, #tpu.memory_space<vmem>>, vector<1x128x64xbf16>
    %232 = vector.shape_cast %231 : vector<1x128x64xbf16> to vector<128x64xbf16>
    %cst_184 = arith.constant dense<0.000000e+00> : vector<64x64xf32>
    %233 = tpu.matmul %230, %232, %cst_184 {dimension_numbers = #tpu.dot_dimension_numbers<[1], [0], [0], [1], [0, 0, 1, 1], [], []>} : vector<64x128xbf16>, vector<128x64xbf16>, vector<64x64xf32> -> vector<64x64xf32>
    %234 = arith.addf %229, %233 : vector<64x64xf32>
    %c155 = arith.constant 155 : index
    %c0_185 = arith.constant 0 : index
    %235 = vector.load %arg1[%c155, %c0_185] : memref<220x128xbf16, #tpu.memory_space<vmem>>, vector<64x128xbf16>
    %c7_186 = arith.constant 7 : index
    %c0_187 = arith.constant 0 : index
    %c0_188 = arith.constant 0 : index
    %236 = vector.load %arg2[%c7_186, %c0_187, %c0_188] : memref<9x128x64xbf16, #tpu.memory_space<vmem>>, vector<1x128x64xbf16>
    %237 = vector.shape_cast %236 : vector<1x128x64xbf16> to vector<128x64xbf16>
    %cst_189 = arith.constant dense<0.000000e+00> : vector<64x64xf32>
    %238 = tpu.matmul %235, %237, %cst_189 {dimension_numbers = #tpu.dot_dimension_numbers<[1], [0], [0], [1], [0, 0, 1, 1], [], []>} : vector<64x128xbf16>, vector<128x64xbf16>, vector<64x64xf32> -> vector<64x64xf32>
    %239 = arith.addf %234, %238 : vector<64x64xf32>
    %c156 = arith.constant 156 : index
    %c0_190 = arith.constant 0 : index
    %240 = vector.load %arg1[%c156, %c0_190] : memref<220x128xbf16, #tpu.memory_space<vmem>>, vector<64x128xbf16>
    %c8_191 = arith.constant 8 : index
    %c0_192 = arith.constant 0 : index
    %c0_193 = arith.constant 0 : index
    %241 = vector.load %arg2[%c8_191, %c0_192, %c0_193] : memref<9x128x64xbf16, #tpu.memory_space<vmem>>, vector<1x128x64xbf16>
    %242 = vector.shape_cast %241 : vector<1x128x64xbf16> to vector<128x64xbf16>
    %cst_194 = arith.constant dense<0.000000e+00> : vector<64x64xf32>
    %243 = tpu.matmul %240, %242, %cst_194 {dimension_numbers = #tpu.dot_dimension_numbers<[1], [0], [0], [1], [0, 0, 1, 1], [], []>} : vector<64x128xbf16>, vector<128x64xbf16>, vector<64x64xf32> -> vector<64x64xf32>
    %244 = arith.addf %239, %243 : vector<64x64xf32>
    %c0_195 = arith.constant 0 : index
    %c0_196 = arith.constant 0 : index
    %245 = vector.load %arg3[%c0_195, %c0_196] : memref<1x64xf32, #tpu.memory_space<vmem>>, vector<1x64xf32>
    %246 = vector.broadcast %245 : vector<1x64xf32> to vector<64x64xf32>
    %247 = arith.addf %244, %246 : vector<64x64xf32>
    %cst_197 = arith.constant 0.000000e+00 : f32
    %248 = vector.broadcast %cst_197 : f32 to vector<64x64xf32>
    %249 = arith.maximumf %247, %248 : vector<64x64xf32>
    %250 = arith.truncf %249 : vector<64x64xf32> to vector<64x64xbf16>
    %cst_198 = arith.constant 0.000000e+00 : f32
    %251 = vector.broadcast %cst_198 : f32 to vector<18x64xf32>
    %252 = vector.extract_strided_slice %250 {offsets = [0, 0], sizes = [18, 64], strides = [1, 1]} : vector<64x64xbf16> to vector<18x64xbf16>
    %c0_199 = arith.constant 0 : index
    %c0_200 = arith.constant 0 : index
    %c0_201 = arith.constant 0 : index
    %253 = vector.load %arg4[%c0_199, %c0_200, %c0_201] : memref<9x64x64xbf16, #tpu.memory_space<vmem>>, vector<1x64x64xbf16>
    %254 = vector.shape_cast %253 : vector<1x64x64xbf16> to vector<64x64xbf16>
    %cst_202 = arith.constant dense<0.000000e+00> : vector<18x64xf32>
    %255 = tpu.matmul %252, %254, %cst_202 {dimension_numbers = #tpu.dot_dimension_numbers<[1], [0], [0], [1], [0, 0, 1, 1], [], []>} : vector<18x64xbf16>, vector<64x64xbf16>, vector<18x64xf32> -> vector<18x64xf32>
    %256 = arith.addf %251, %255 : vector<18x64xf32>
    %257 = vector.extract_strided_slice %250 {offsets = [1, 0], sizes = [18, 64], strides = [1, 1]} : vector<64x64xbf16> to vector<18x64xbf16>
    %c1_203 = arith.constant 1 : index
    %c0_204 = arith.constant 0 : index
    %c0_205 = arith.constant 0 : index
    %258 = vector.load %arg4[%c1_203, %c0_204, %c0_205] : memref<9x64x64xbf16, #tpu.memory_space<vmem>>, vector<1x64x64xbf16>
    %259 = vector.shape_cast %258 : vector<1x64x64xbf16> to vector<64x64xbf16>
    %cst_206 = arith.constant dense<0.000000e+00> : vector<18x64xf32>
    %260 = tpu.matmul %257, %259, %cst_206 {dimension_numbers = #tpu.dot_dimension_numbers<[1], [0], [0], [1], [0, 0, 1, 1], [], []>} : vector<18x64xbf16>, vector<64x64xbf16>, vector<18x64xf32> -> vector<18x64xf32>
    %261 = arith.addf %256, %260 : vector<18x64xf32>
    %262 = vector.extract_strided_slice %250 {offsets = [2, 0], sizes = [18, 64], strides = [1, 1]} : vector<64x64xbf16> to vector<18x64xbf16>
    %c2_207 = arith.constant 2 : index
    %c0_208 = arith.constant 0 : index
    %c0_209 = arith.constant 0 : index
    %263 = vector.load %arg4[%c2_207, %c0_208, %c0_209] : memref<9x64x64xbf16, #tpu.memory_space<vmem>>, vector<1x64x64xbf16>
    %264 = vector.shape_cast %263 : vector<1x64x64xbf16> to vector<64x64xbf16>
    %cst_210 = arith.constant dense<0.000000e+00> : vector<18x64xf32>
    %265 = tpu.matmul %262, %264, %cst_210 {dimension_numbers = #tpu.dot_dimension_numbers<[1], [0], [0], [1], [0, 0, 1, 1], [], []>} : vector<18x64xbf16>, vector<64x64xbf16>, vector<18x64xf32> -> vector<18x64xf32>
    %266 = arith.addf %261, %265 : vector<18x64xf32>
    %267 = vector.extract_strided_slice %250 {offsets = [22, 0], sizes = [18, 64], strides = [1, 1]} : vector<64x64xbf16> to vector<18x64xbf16>
    %c3_211 = arith.constant 3 : index
    %c0_212 = arith.constant 0 : index
    %c0_213 = arith.constant 0 : index
    %268 = vector.load %arg4[%c3_211, %c0_212, %c0_213] : memref<9x64x64xbf16, #tpu.memory_space<vmem>>, vector<1x64x64xbf16>
    %269 = vector.shape_cast %268 : vector<1x64x64xbf16> to vector<64x64xbf16>
    %cst_214 = arith.constant dense<0.000000e+00> : vector<18x64xf32>
    %270 = tpu.matmul %267, %269, %cst_214 {dimension_numbers = #tpu.dot_dimension_numbers<[1], [0], [0], [1], [0, 0, 1, 1], [], []>} : vector<18x64xbf16>, vector<64x64xbf16>, vector<18x64xf32> -> vector<18x64xf32>
    %271 = arith.addf %266, %270 : vector<18x64xf32>
    %272 = vector.extract_strided_slice %250 {offsets = [23, 0], sizes = [18, 64], strides = [1, 1]} : vector<64x64xbf16> to vector<18x64xbf16>
    %c4_215 = arith.constant 4 : index
    %c0_216 = arith.constant 0 : index
    %c0_217 = arith.constant 0 : index
    %273 = vector.load %arg4[%c4_215, %c0_216, %c0_217] : memref<9x64x64xbf16, #tpu.memory_space<vmem>>, vector<1x64x64xbf16>
    %274 = vector.shape_cast %273 : vector<1x64x64xbf16> to vector<64x64xbf16>
    %cst_218 = arith.constant dense<0.000000e+00> : vector<18x64xf32>
    %275 = tpu.matmul %272, %274, %cst_218 {dimension_numbers = #tpu.dot_dimension_numbers<[1], [0], [0], [1], [0, 0, 1, 1], [], []>} : vector<18x64xbf16>, vector<64x64xbf16>, vector<18x64xf32> -> vector<18x64xf32>
    %276 = arith.addf %271, %275 : vector<18x64xf32>
    %277 = vector.extract_strided_slice %250 {offsets = [24, 0], sizes = [18, 64], strides = [1, 1]} : vector<64x64xbf16> to vector<18x64xbf16>
    %c5_219 = arith.constant 5 : index
    %c0_220 = arith.constant 0 : index
    %c0_221 = arith.constant 0 : index
    %278 = vector.load %arg4[%c5_219, %c0_220, %c0_221] : memref<9x64x64xbf16, #tpu.memory_space<vmem>>, vector<1x64x64xbf16>
    %279 = vector.shape_cast %278 : vector<1x64x64xbf16> to vector<64x64xbf16>
    %cst_222 = arith.constant dense<0.000000e+00> : vector<18x64xf32>
    %280 = tpu.matmul %277, %279, %cst_222 {dimension_numbers = #tpu.dot_dimension_numbers<[1], [0], [0], [1], [0, 0, 1, 1], [], []>} : vector<18x64xbf16>, vector<64x64xbf16>, vector<18x64xf32> -> vector<18x64xf32>
    %281 = arith.addf %276, %280 : vector<18x64xf32>
    %282 = vector.extract_strided_slice %250 {offsets = [44, 0], sizes = [18, 64], strides = [1, 1]} : vector<64x64xbf16> to vector<18x64xbf16>
    %c6_223 = arith.constant 6 : index
    %c0_224 = arith.constant 0 : index
    %c0_225 = arith.constant 0 : index
    %283 = vector.load %arg4[%c6_223, %c0_224, %c0_225] : memref<9x64x64xbf16, #tpu.memory_space<vmem>>, vector<1x64x64xbf16>
    %284 = vector.shape_cast %283 : vector<1x64x64xbf16> to vector<64x64xbf16>
    %cst_226 = arith.constant dense<0.000000e+00> : vector<18x64xf32>
    %285 = tpu.matmul %282, %284, %cst_226 {dimension_numbers = #tpu.dot_dimension_numbers<[1], [0], [0], [1], [0, 0, 1, 1], [], []>} : vector<18x64xbf16>, vector<64x64xbf16>, vector<18x64xf32> -> vector<18x64xf32>
    %286 = arith.addf %281, %285 : vector<18x64xf32>
    %287 = vector.extract_strided_slice %250 {offsets = [45, 0], sizes = [18, 64], strides = [1, 1]} : vector<64x64xbf16> to vector<18x64xbf16>
    %c7_227 = arith.constant 7 : index
    %c0_228 = arith.constant 0 : index
    %c0_229 = arith.constant 0 : index
    %288 = vector.load %arg4[%c7_227, %c0_228, %c0_229] : memref<9x64x64xbf16, #tpu.memory_space<vmem>>, vector<1x64x64xbf16>
    %289 = vector.shape_cast %288 : vector<1x64x64xbf16> to vector<64x64xbf16>
    %cst_230 = arith.constant dense<0.000000e+00> : vector<18x64xf32>
    %290 = tpu.matmul %287, %289, %cst_230 {dimension_numbers = #tpu.dot_dimension_numbers<[1], [0], [0], [1], [0, 0, 1, 1], [], []>} : vector<18x64xbf16>, vector<64x64xbf16>, vector<18x64xf32> -> vector<18x64xf32>
    %291 = arith.addf %286, %290 : vector<18x64xf32>
    %292 = vector.extract_strided_slice %250 {offsets = [46, 0], sizes = [18, 64], strides = [1, 1]} : vector<64x64xbf16> to vector<18x64xbf16>
    %c8_231 = arith.constant 8 : index
    %c0_232 = arith.constant 0 : index
    %c0_233 = arith.constant 0 : index
    %293 = vector.load %arg4[%c8_231, %c0_232, %c0_233] : memref<9x64x64xbf16, #tpu.memory_space<vmem>>, vector<1x64x64xbf16>
    %294 = vector.shape_cast %293 : vector<1x64x64xbf16> to vector<64x64xbf16>
    %cst_234 = arith.constant dense<0.000000e+00> : vector<18x64xf32>
    %295 = tpu.matmul %292, %294, %cst_234 {dimension_numbers = #tpu.dot_dimension_numbers<[1], [0], [0], [1], [0, 0, 1, 1], [], []>} : vector<18x64xbf16>, vector<64x64xbf16>, vector<18x64xf32> -> vector<18x64xf32>
    %296 = arith.addf %291, %295 : vector<18x64xf32>
    %c0_235 = arith.constant 0 : index
    %c0_236 = arith.constant 0 : index
    %297 = vector.load %arg5[%c0_235, %c0_236] : memref<1x64xf32, #tpu.memory_space<vmem>>, vector<1x64xf32>
    %298 = vector.broadcast %297 : vector<1x64xf32> to vector<18x64xf32>
    %299 = arith.addf %296, %298 : vector<18x64xf32>
    %cst_237 = arith.constant 0.000000e+00 : f32
    %300 = vector.broadcast %cst_237 : f32 to vector<18x64xf32>
    %301 = arith.maximumf %299, %300 : vector<18x64xf32>
    %302 = arith.truncf %301 : vector<18x64xf32> to vector<18x64xbf16>
    %cst_238 = arith.constant 0.000000e+00 : f32
    %303 = vector.broadcast %cst_238 : f32 to vector<1x128xf32>
    %c0_239 = arith.constant 0 : index
    %c0_240 = arith.constant 0 : index
    %c0_241 = arith.constant 0 : index
    %304 = vector.load %arg6[%c0_239, %c0_240, %c0_241] : memref<18x64x128xbf16, #tpu.memory_space<vmem>>, vector<1x64x128xbf16>
    %305 = vector.shape_cast %304 : vector<1x64x128xbf16> to vector<64x128xbf16>
    %cst_242 = arith.constant dense<0.000000e+00> : vector<18x128xf32>
    %306 = tpu.matmul %302, %305, %cst_242 {dimension_numbers = #tpu.dot_dimension_numbers<[1], [0], [0], [1], [0, 0, 1, 1], [], []>} : vector<18x64xbf16>, vector<64x128xbf16>, vector<18x128xf32> -> vector<18x128xf32>
    %307 = vector.extract_strided_slice %306 {offsets = [0, 0], sizes = [1, 128], strides = [1, 1]} : vector<18x128xf32> to vector<1x128xf32>
    %308 = arith.addf %303, %307 : vector<1x128xf32>
    %c1_243 = arith.constant 1 : index
    %c0_244 = arith.constant 0 : index
    %c0_245 = arith.constant 0 : index
    %309 = vector.load %arg6[%c1_243, %c0_244, %c0_245] : memref<18x64x128xbf16, #tpu.memory_space<vmem>>, vector<1x64x128xbf16>
    %310 = vector.shape_cast %309 : vector<1x64x128xbf16> to vector<64x128xbf16>
    %cst_246 = arith.constant dense<0.000000e+00> : vector<18x128xf32>
    %311 = tpu.matmul %302, %310, %cst_246 {dimension_numbers = #tpu.dot_dimension_numbers<[1], [0], [0], [1], [0, 0, 1, 1], [], []>} : vector<18x64xbf16>, vector<64x128xbf16>, vector<18x128xf32> -> vector<18x128xf32>
    %312 = vector.extract_strided_slice %311 {offsets = [1, 0], sizes = [1, 128], strides = [1, 1]} : vector<18x128xf32> to vector<1x128xf32>
    %313 = arith.addf %308, %312 : vector<1x128xf32>
    %c2_247 = arith.constant 2 : index
    %c0_248 = arith.constant 0 : index
    %c0_249 = arith.constant 0 : index
    %314 = vector.load %arg6[%c2_247, %c0_248, %c0_249] : memref<18x64x128xbf16, #tpu.memory_space<vmem>>, vector<1x64x128xbf16>
    %315 = vector.shape_cast %314 : vector<1x64x128xbf16> to vector<64x128xbf16>
    %cst_250 = arith.constant dense<0.000000e+00> : vector<18x128xf32>
    %316 = tpu.matmul %302, %315, %cst_250 {dimension_numbers = #tpu.dot_dimension_numbers<[1], [0], [0], [1], [0, 0, 1, 1], [], []>} : vector<18x64xbf16>, vector<64x128xbf16>, vector<18x128xf32> -> vector<18x128xf32>
    %317 = vector.extract_strided_slice %316 {offsets = [2, 0], sizes = [1, 128], strides = [1, 1]} : vector<18x128xf32> to vector<1x128xf32>
    %318 = arith.addf %313, %317 : vector<1x128xf32>
    %c3_251 = arith.constant 3 : index
    %c0_252 = arith.constant 0 : index
    %c0_253 = arith.constant 0 : index
    %319 = vector.load %arg6[%c3_251, %c0_252, %c0_253] : memref<18x64x128xbf16, #tpu.memory_space<vmem>>, vector<1x64x128xbf16>
    %320 = vector.shape_cast %319 : vector<1x64x128xbf16> to vector<64x128xbf16>
    %cst_254 = arith.constant dense<0.000000e+00> : vector<18x128xf32>
    %321 = tpu.matmul %302, %320, %cst_254 {dimension_numbers = #tpu.dot_dimension_numbers<[1], [0], [0], [1], [0, 0, 1, 1], [], []>} : vector<18x64xbf16>, vector<64x128xbf16>, vector<18x128xf32> -> vector<18x128xf32>
    %322 = vector.extract_strided_slice %321 {offsets = [3, 0], sizes = [1, 128], strides = [1, 1]} : vector<18x128xf32> to vector<1x128xf32>
    %323 = arith.addf %318, %322 : vector<1x128xf32>
    %c4_255 = arith.constant 4 : index
    %c0_256 = arith.constant 0 : index
    %c0_257 = arith.constant 0 : index
    %324 = vector.load %arg6[%c4_255, %c0_256, %c0_257] : memref<18x64x128xbf16, #tpu.memory_space<vmem>>, vector<1x64x128xbf16>
    %325 = vector.shape_cast %324 : vector<1x64x128xbf16> to vector<64x128xbf16>
    %cst_258 = arith.constant dense<0.000000e+00> : vector<18x128xf32>
    %326 = tpu.matmul %302, %325, %cst_258 {dimension_numbers = #tpu.dot_dimension_numbers<[1], [0], [0], [1], [0, 0, 1, 1], [], []>} : vector<18x64xbf16>, vector<64x128xbf16>, vector<18x128xf32> -> vector<18x128xf32>
    %327 = vector.extract_strided_slice %326 {offsets = [4, 0], sizes = [1, 128], strides = [1, 1]} : vector<18x128xf32> to vector<1x128xf32>
    %328 = arith.addf %323, %327 : vector<1x128xf32>
    %c5_259 = arith.constant 5 : index
    %c0_260 = arith.constant 0 : index
    %c0_261 = arith.constant 0 : index
    %329 = vector.load %arg6[%c5_259, %c0_260, %c0_261] : memref<18x64x128xbf16, #tpu.memory_space<vmem>>, vector<1x64x128xbf16>
    %330 = vector.shape_cast %329 : vector<1x64x128xbf16> to vector<64x128xbf16>
    %cst_262 = arith.constant dense<0.000000e+00> : vector<18x128xf32>
    %331 = tpu.matmul %302, %330, %cst_262 {dimension_numbers = #tpu.dot_dimension_numbers<[1], [0], [0], [1], [0, 0, 1, 1], [], []>} : vector<18x64xbf16>, vector<64x128xbf16>, vector<18x128xf32> -> vector<18x128xf32>
    %332 = vector.extract_strided_slice %331 {offsets = [5, 0], sizes = [1, 128], strides = [1, 1]} : vector<18x128xf32> to vector<1x128xf32>
    %333 = arith.addf %328, %332 : vector<1x128xf32>
    %c6_263 = arith.constant 6 : index
    %c0_264 = arith.constant 0 : index
    %c0_265 = arith.constant 0 : index
    %334 = vector.load %arg6[%c6_263, %c0_264, %c0_265] : memref<18x64x128xbf16, #tpu.memory_space<vmem>>, vector<1x64x128xbf16>
    %335 = vector.shape_cast %334 : vector<1x64x128xbf16> to vector<64x128xbf16>
    %cst_266 = arith.constant dense<0.000000e+00> : vector<18x128xf32>
    %336 = tpu.matmul %302, %335, %cst_266 {dimension_numbers = #tpu.dot_dimension_numbers<[1], [0], [0], [1], [0, 0, 1, 1], [], []>} : vector<18x64xbf16>, vector<64x128xbf16>, vector<18x128xf32> -> vector<18x128xf32>
    %337 = vector.extract_strided_slice %336 {offsets = [6, 0], sizes = [1, 128], strides = [1, 1]} : vector<18x128xf32> to vector<1x128xf32>
    %338 = arith.addf %333, %337 : vector<1x128xf32>
    %c7_267 = arith.constant 7 : index
    %c0_268 = arith.constant 0 : index
    %c0_269 = arith.constant 0 : index
    %339 = vector.load %arg6[%c7_267, %c0_268, %c0_269] : memref<18x64x128xbf16, #tpu.memory_space<vmem>>, vector<1x64x128xbf16>
    %340 = vector.shape_cast %339 : vector<1x64x128xbf16> to vector<64x128xbf16>
    %cst_270 = arith.constant dense<0.000000e+00> : vector<18x128xf32>
    %341 = tpu.matmul %302, %340, %cst_270 {dimension_numbers = #tpu.dot_dimension_numbers<[1], [0], [0], [1], [0, 0, 1, 1], [], []>} : vector<18x64xbf16>, vector<64x128xbf16>, vector<18x128xf32> -> vector<18x128xf32>
    %342 = vector.extract_strided_slice %341 {offsets = [7, 0], sizes = [1, 128], strides = [1, 1]} : vector<18x128xf32> to vector<1x128xf32>
    %343 = arith.addf %338, %342 : vector<1x128xf32>
    %c8_271 = arith.constant 8 : index
    %c0_272 = arith.constant 0 : index
    %c0_273 = arith.constant 0 : index
    %344 = vector.load %arg6[%c8_271, %c0_272, %c0_273] : memref<18x64x128xbf16, #tpu.memory_space<vmem>>, vector<1x64x128xbf16>
    %345 = vector.shape_cast %344 : vector<1x64x128xbf16> to vector<64x128xbf16>
    %cst_274 = arith.constant dense<0.000000e+00> : vector<18x128xf32>
    %346 = tpu.matmul %302, %345, %cst_274 {dimension_numbers = #tpu.dot_dimension_numbers<[1], [0], [0], [1], [0, 0, 1, 1], [], []>} : vector<18x64xbf16>, vector<64x128xbf16>, vector<18x128xf32> -> vector<18x128xf32>
    %347 = vector.extract_strided_slice %346 {offsets = [8, 0], sizes = [1, 128], strides = [1, 1]} : vector<18x128xf32> to vector<1x128xf32>
    %348 = arith.addf %343, %347 : vector<1x128xf32>
    %c9_275 = arith.constant 9 : index
    %c0_276 = arith.constant 0 : index
    %c0_277 = arith.constant 0 : index
    %349 = vector.load %arg6[%c9_275, %c0_276, %c0_277] : memref<18x64x128xbf16, #tpu.memory_space<vmem>>, vector<1x64x128xbf16>
    %350 = vector.shape_cast %349 : vector<1x64x128xbf16> to vector<64x128xbf16>
    %cst_278 = arith.constant dense<0.000000e+00> : vector<18x128xf32>
    %351 = tpu.matmul %302, %350, %cst_278 {dimension_numbers = #tpu.dot_dimension_numbers<[1], [0], [0], [1], [0, 0, 1, 1], [], []>} : vector<18x64xbf16>, vector<64x128xbf16>, vector<18x128xf32> -> vector<18x128xf32>
    %352 = vector.extract_strided_slice %351 {offsets = [9, 0], sizes = [1, 128], strides = [1, 1]} : vector<18x128xf32> to vector<1x128xf32>
    %353 = arith.addf %348, %352 : vector<1x128xf32>
    %c10_279 = arith.constant 10 : index
    %c0_280 = arith.constant 0 : index
    %c0_281 = arith.constant 0 : index
    %354 = vector.load %arg6[%c10_279, %c0_280, %c0_281] : memref<18x64x128xbf16, #tpu.memory_space<vmem>>, vector<1x64x128xbf16>
    %355 = vector.shape_cast %354 : vector<1x64x128xbf16> to vector<64x128xbf16>
    %cst_282 = arith.constant dense<0.000000e+00> : vector<18x128xf32>
    %356 = tpu.matmul %302, %355, %cst_282 {dimension_numbers = #tpu.dot_dimension_numbers<[1], [0], [0], [1], [0, 0, 1, 1], [], []>} : vector<18x64xbf16>, vector<64x128xbf16>, vector<18x128xf32> -> vector<18x128xf32>
    %357 = vector.extract_strided_slice %356 {offsets = [10, 0], sizes = [1, 128], strides = [1, 1]} : vector<18x128xf32> to vector<1x128xf32>
    %358 = arith.addf %353, %357 : vector<1x128xf32>
    %c11_283 = arith.constant 11 : index
    %c0_284 = arith.constant 0 : index
    %c0_285 = arith.constant 0 : index
    %359 = vector.load %arg6[%c11_283, %c0_284, %c0_285] : memref<18x64x128xbf16, #tpu.memory_space<vmem>>, vector<1x64x128xbf16>
    %360 = vector.shape_cast %359 : vector<1x64x128xbf16> to vector<64x128xbf16>
    %cst_286 = arith.constant dense<0.000000e+00> : vector<18x128xf32>
    %361 = tpu.matmul %302, %360, %cst_286 {dimension_numbers = #tpu.dot_dimension_numbers<[1], [0], [0], [1], [0, 0, 1, 1], [], []>} : vector<18x64xbf16>, vector<64x128xbf16>, vector<18x128xf32> -> vector<18x128xf32>
    %362 = vector.extract_strided_slice %361 {offsets = [11, 0], sizes = [1, 128], strides = [1, 1]} : vector<18x128xf32> to vector<1x128xf32>
    %363 = arith.addf %358, %362 : vector<1x128xf32>
    %c12_287 = arith.constant 12 : index
    %c0_288 = arith.constant 0 : index
    %c0_289 = arith.constant 0 : index
    %364 = vector.load %arg6[%c12_287, %c0_288, %c0_289] : memref<18x64x128xbf16, #tpu.memory_space<vmem>>, vector<1x64x128xbf16>
    %365 = vector.shape_cast %364 : vector<1x64x128xbf16> to vector<64x128xbf16>
    %cst_290 = arith.constant dense<0.000000e+00> : vector<18x128xf32>
    %366 = tpu.matmul %302, %365, %cst_290 {dimension_numbers = #tpu.dot_dimension_numbers<[1], [0], [0], [1], [0, 0, 1, 1], [], []>} : vector<18x64xbf16>, vector<64x128xbf16>, vector<18x128xf32> -> vector<18x128xf32>
    %367 = vector.extract_strided_slice %366 {offsets = [12, 0], sizes = [1, 128], strides = [1, 1]} : vector<18x128xf32> to vector<1x128xf32>
    %368 = arith.addf %363, %367 : vector<1x128xf32>
    %c13_291 = arith.constant 13 : index
    %c0_292 = arith.constant 0 : index
    %c0_293 = arith.constant 0 : index
    %369 = vector.load %arg6[%c13_291, %c0_292, %c0_293] : memref<18x64x128xbf16, #tpu.memory_space<vmem>>, vector<1x64x128xbf16>
    %370 = vector.shape_cast %369 : vector<1x64x128xbf16> to vector<64x128xbf16>
    %cst_294 = arith.constant dense<0.000000e+00> : vector<18x128xf32>
    %371 = tpu.matmul %302, %370, %cst_294 {dimension_numbers = #tpu.dot_dimension_numbers<[1], [0], [0], [1], [0, 0, 1, 1], [], []>} : vector<18x64xbf16>, vector<64x128xbf16>, vector<18x128xf32> -> vector<18x128xf32>
    %372 = vector.extract_strided_slice %371 {offsets = [13, 0], sizes = [1, 128], strides = [1, 1]} : vector<18x128xf32> to vector<1x128xf32>
    %373 = arith.addf %368, %372 : vector<1x128xf32>
    %c14_295 = arith.constant 14 : index
    %c0_296 = arith.constant 0 : index
    %c0_297 = arith.constant 0 : index
    %374 = vector.load %arg6[%c14_295, %c0_296, %c0_297] : memref<18x64x128xbf16, #tpu.memory_space<vmem>>, vector<1x64x128xbf16>
    %375 = vector.shape_cast %374 : vector<1x64x128xbf16> to vector<64x128xbf16>
    %cst_298 = arith.constant dense<0.000000e+00> : vector<18x128xf32>
    %376 = tpu.matmul %302, %375, %cst_298 {dimension_numbers = #tpu.dot_dimension_numbers<[1], [0], [0], [1], [0, 0, 1, 1], [], []>} : vector<18x64xbf16>, vector<64x128xbf16>, vector<18x128xf32> -> vector<18x128xf32>
    %377 = vector.extract_strided_slice %376 {offsets = [14, 0], sizes = [1, 128], strides = [1, 1]} : vector<18x128xf32> to vector<1x128xf32>
    %378 = arith.addf %373, %377 : vector<1x128xf32>
    %c15_299 = arith.constant 15 : index
    %c0_300 = arith.constant 0 : index
    %c0_301 = arith.constant 0 : index
    %379 = vector.load %arg6[%c15_299, %c0_300, %c0_301] : memref<18x64x128xbf16, #tpu.memory_space<vmem>>, vector<1x64x128xbf16>
    %380 = vector.shape_cast %379 : vector<1x64x128xbf16> to vector<64x128xbf16>
    %cst_302 = arith.constant dense<0.000000e+00> : vector<18x128xf32>
    %381 = tpu.matmul %302, %380, %cst_302 {dimension_numbers = #tpu.dot_dimension_numbers<[1], [0], [0], [1], [0, 0, 1, 1], [], []>} : vector<18x64xbf16>, vector<64x128xbf16>, vector<18x128xf32> -> vector<18x128xf32>
    %382 = vector.extract_strided_slice %381 {offsets = [15, 0], sizes = [1, 128], strides = [1, 1]} : vector<18x128xf32> to vector<1x128xf32>
    %383 = arith.addf %378, %382 : vector<1x128xf32>
    %c16_303 = arith.constant 16 : index
    %c0_304 = arith.constant 0 : index
    %c0_305 = arith.constant 0 : index
    %384 = vector.load %arg6[%c16_303, %c0_304, %c0_305] : memref<18x64x128xbf16, #tpu.memory_space<vmem>>, vector<1x64x128xbf16>
    %385 = vector.shape_cast %384 : vector<1x64x128xbf16> to vector<64x128xbf16>
    %cst_306 = arith.constant dense<0.000000e+00> : vector<18x128xf32>
    %386 = tpu.matmul %302, %385, %cst_306 {dimension_numbers = #tpu.dot_dimension_numbers<[1], [0], [0], [1], [0, 0, 1, 1], [], []>} : vector<18x64xbf16>, vector<64x128xbf16>, vector<18x128xf32> -> vector<18x128xf32>
    %387 = vector.extract_strided_slice %386 {offsets = [16, 0], sizes = [1, 128], strides = [1, 1]} : vector<18x128xf32> to vector<1x128xf32>
    %388 = arith.addf %383, %387 : vector<1x128xf32>
    %c17_307 = arith.constant 17 : index
    %c0_308 = arith.constant 0 : index
    %c0_309 = arith.constant 0 : index
    %389 = vector.load %arg6[%c17_307, %c0_308, %c0_309] : memref<18x64x128xbf16, #tpu.memory_space<vmem>>, vector<1x64x128xbf16>
    %390 = vector.shape_cast %389 : vector<1x64x128xbf16> to vector<64x128xbf16>
    %cst_310 = arith.constant dense<0.000000e+00> : vector<18x128xf32>
    %391 = tpu.matmul %302, %390, %cst_310 {dimension_numbers = #tpu.dot_dimension_numbers<[1], [0], [0], [1], [0, 0, 1, 1], [], []>} : vector<18x64xbf16>, vector<64x128xbf16>, vector<18x128xf32> -> vector<18x128xf32>
    %392 = vector.extract_strided_slice %391 {offsets = [17, 0], sizes = [1, 128], strides = [1, 1]} : vector<18x128xf32> to vector<1x128xf32>
    %393 = arith.addf %388, %392 : vector<1x128xf32>
    %c0_311 = arith.constant 0 : index
    %c0_312 = arith.constant 0 : index
    %394 = vector.load %arg7[%c0_311, %c0_312] : memref<1x128xf32, #tpu.memory_space<vmem>>, vector<1x128xf32>
    %395 = arith.addf %393, %394 : vector<1x128xf32>
    %cst_313 = arith.constant 0.000000e+00 : f32
    %396 = vector.broadcast %cst_313 : f32 to vector<1x128xf32>
    %397 = arith.maximumf %395, %396 : vector<1x128xf32>
    %cst_314 = arith.constant 0.000000e+00 : f32
    %398 = vector.broadcast %cst_314 : f32 to vector<1x128xf32>
    %cst_315 = arith.constant 0.000000e+00 : f32
    %399 = vector.broadcast %cst_315 : f32 to vector<1x128xf32>
    %cst_316 = arith.constant 0.000000e+00 : f32
    %400 = vector.broadcast %cst_316 : f32 to vector<1x128xf32>
    %cst_317 = arith.constant 0.000000e+00 : f32
    %401 = vector.broadcast %cst_317 : f32 to vector<1x128xf32>
    %cst_318 = arith.constant 0.000000e+00 : f32
    %402 = vector.broadcast %cst_318 : f32 to vector<1x128xf32>
    %cst_319 = arith.constant 0.000000e+00 : f32
    %403 = vector.broadcast %cst_319 : f32 to vector<1x128xf32>
    %404 = tpu.concatenate %198, %397, %398, %399, %400, %401, %402, %403 in 0 : vector<1x128xf32>, vector<1x128xf32>, vector<1x128xf32>, vector<1x128xf32>, vector<1x128xf32>, vector<1x128xf32>, vector<1x128xf32>, vector<1x128xf32> -> vector<8x128xf32>
    %405 = arith.truncf %404 : vector<8x128xf32> to vector<8x128xbf16>
    %c0_320 = arith.constant 0 : index
    %c0_321 = arith.constant 0 : index
    %406 = vector.load %arg8[%c0_320, %c0_321] : memref<128x128xbf16, #tpu.memory_space<vmem>>, vector<128x128xbf16>
    %cst_322 = arith.constant dense<0.000000e+00> : vector<8x128xf32>
    %407 = tpu.matmul %405, %406, %cst_322 {dimension_numbers = #tpu.dot_dimension_numbers<[1], [0], [0], [1], [0, 0, 1, 1], [], []>} : vector<8x128xbf16>, vector<128x128xbf16>, vector<8x128xf32> -> vector<8x128xf32>
    %c0_323 = arith.constant 0 : index
    %c0_324 = arith.constant 0 : index
    %408 = vector.load %arg9[%c0_323, %c0_324] : memref<1x128xf32, #tpu.memory_space<vmem>>, vector<1x128xf32>
    %409 = vector.broadcast %408 : vector<1x128xf32> to vector<8x128xf32>
    %410 = arith.addf %407, %409 : vector<8x128xf32>
    %cst_325 = arith.constant 0.000000e+00 : f32
    %411 = vector.broadcast %cst_325 : f32 to vector<8x128xf32>
    %412 = arith.maximumf %410, %411 : vector<8x128xf32>
    %413 = arith.truncf %412 : vector<8x128xf32> to vector<8x128xbf16>
    %c0_326 = arith.constant 0 : index
    %c0_327 = arith.constant 0 : index
    %414 = vector.load %arg10[%c0_326, %c0_327] : memref<128x128xbf16, #tpu.memory_space<vmem>>, vector<128x128xbf16>
    %cst_328 = arith.constant dense<0.000000e+00> : vector<8x128xf32>
    %415 = tpu.matmul %413, %414, %cst_328 {dimension_numbers = #tpu.dot_dimension_numbers<[1], [0], [0], [1], [0, 0, 1, 1], [], []>} : vector<8x128xbf16>, vector<128x128xbf16>, vector<8x128xf32> -> vector<8x128xf32>
    %c0_329 = arith.constant 0 : index
    %c0_330 = arith.constant 0 : index
    %416 = vector.load %arg11[%c0_329, %c0_330] : memref<1x128xf32, #tpu.memory_space<vmem>>, vector<1x128xf32>
    %417 = vector.broadcast %416 : vector<1x128xf32> to vector<8x128xf32>
    %418 = arith.addf %415, %417 : vector<8x128xf32>
    %cst_331 = arith.constant 0.000000e+00 : f32
    %419 = vector.broadcast %cst_331 : f32 to vector<8x128xf32>
    %420 = arith.maximumf %418, %419 : vector<8x128xf32>
    %421 = arith.truncf %420 : vector<8x128xf32> to vector<8x128xbf16>
    %c0_332 = arith.constant 0 : index
    %c0_333 = arith.constant 0 : index
    %422 = vector.load %arg12[%c0_332, %c0_333] : memref<128x128xbf16, #tpu.memory_space<vmem>>, vector<128x128xbf16>
    %cst_334 = arith.constant dense<0.000000e+00> : vector<8x128xf32>
    %423 = tpu.matmul %421, %422, %cst_334 {dimension_numbers = #tpu.dot_dimension_numbers<[1], [0], [0], [1], [0, 0, 1, 1], [], []>} : vector<8x128xbf16>, vector<128x128xbf16>, vector<8x128xf32> -> vector<8x128xf32>
    %c0_335 = arith.constant 0 : index
    %c0_336 = arith.constant 0 : index
    %424 = vector.load %arg13[%c0_335, %c0_336] : memref<1x128xf32, #tpu.memory_space<vmem>>, vector<1x128xf32>
    %425 = vector.broadcast %424 : vector<1x128xf32> to vector<8x128xf32>
    %426 = arith.addf %423, %425 : vector<8x128xf32>
    %c0_337 = arith.constant 0 : index
    %c0_338 = arith.constant 0 : index
    %427 = vector.load %arg14[%c0_337, %c0_338] : memref<8x128xf32, #tpu.memory_space<vmem>>, vector<8x128xf32>
    tpu.vector_store %arg14[%c0_337, %c0_338], %426 {strides = array<i32>} : memref<8x128xf32, #tpu.memory_space<vmem>>, vector<8x128xf32>,
    return
  }
  func.func @transform_0(%arg0: i32) -> (i32, i32) {
    %c0_i32 = arith.constant 0 : i32
    %c0_i32_0 = arith.constant 0 : i32
    %c0_i32_1 = arith.constant 0 : i32
    return %c0_i32, %c0_i32_0 : i32, i32
  }
  func.func @transform_1(%arg0: i32) -> (i32, i32, i32) {
    %c0_i32 = arith.constant 0 : i32
    %c0_i32_0 = arith.constant 0 : i32
    %c0_i32_1 = arith.constant 0 : i32
    %c0_i32_2 = arith.constant 0 : i32
    return %c0_i32, %c0_i32_0, %c0_i32_1 : i32, i32, i32
  }
  func.func @transform_2(%arg0: i32) -> (i32, i32) {
    %c0_i32 = arith.constant 0 : i32
    %c0_i32_0 = arith.constant 0 : i32
    %c0_i32_1 = arith.constant 0 : i32
    return %c0_i32, %c0_i32_0 : i32, i32
  }
  func.func @transform_3(%arg0: i32) -> (i32, i32, i32) {
    %c0_i32 = arith.constant 0 : i32
    %c0_i32_0 = arith.constant 0 : i32
    %c0_i32_1 = arith.constant 0 : i32
    %c0_i32_2 = arith.constant 0 : i32
    return %c0_i32, %c0_i32_0, %c0_i32_1 : i32, i32, i32
  }
  func.func @transform_4(%arg0: i32) -> (i32, i32) {
    %c0_i32 = arith.constant 0 : i32
    %c0_i32_0 = arith.constant 0 : i32
    %c0_i32_1 = arith.constant 0 : i32
    return %c0_i32, %c0_i32_0 : i32, i32
  }
  func.func @transform_5(%arg0: i32) -> (i32, i32, i32) {
    %c0_i32 = arith.constant 0 : i32
    %c0_i32_0 = arith.constant 0 : i32
    %c0_i32_1 = arith.constant 0 : i32
    %c0_i32_2 = arith.constant 0 : i32
    return %c0_i32, %c0_i32_0, %c0_i32_1 : i32, i32, i32
  }
  func.func @transform_6(%arg0: i32) -> (i32, i32) {
    %c0_i32 = arith.constant 0 : i32
    %c0_i32_0 = arith.constant 0 : i32
    %c0_i32_1 = arith.constant 0 : i32
    return %c0_i32, %c0_i32_0 : i32, i32
  }
  func.func @transform_7(%arg0: i32) -> (i32, i32) {
    %c0_i32 = arith.constant 0 : i32
    %c0_i32_0 = arith.constant 0 : i32
    %c0_i32_1 = arith.constant 0 : i32
    return %c0_i32, %c0_i32_0 : i32, i32
  }
  func.func @transform_8(%arg0: i32) -> (i32, i32) {
    %c0_i32 = arith.constant 0 : i32
    %c0_i32_0 = arith.constant 0 : i32
    %c0_i32_1 = arith.constant 0 : i32
    return %c0_i32, %c0_i32_0 : i32, i32
  }
  func.func @transform_9(%arg0: i32) -> (i32, i32) {
    %c0_i32 = arith.constant 0 : i32
    %c0_i32_0 = arith.constant 0 : i32
    %c0_i32_1 = arith.constant 0 : i32
    return %c0_i32, %c0_i32_0 : i32, i32
  }
  func.func @transform_10(%arg0: i32) -> (i32, i32) {
    %c0_i32 = arith.constant 0 : i32
    %c0_i32_0 = arith.constant 0 : i32
    %c0_i32_1 = arith.constant 0 : i32
    return %c0_i32, %c0_i32_0 : i32, i32
  }
  func.func @transform_11(%arg0: i32) -> (i32, i32) {
    %c0_i32 = arith.constant 0 : i32
    %c0_i32_0 = arith.constant 0 : i32
    %c0_i32_1 = arith.constant 0 : i32
    return %c0_i32, %c0_i32_0 : i32, i32
  }
  func.func @transform_12(%arg0: i32) -> (i32, i32) {
    %c0_i32 = arith.constant 0 : i32
    %c0_i32_0 = arith.constant 0 : i32
    %c0_i32_1 = arith.constant 0 : i32
    return %c0_i32, %c0_i32_0 : i32, i32
  }
  func.func @transform_13(%arg0: i32) -> (i32, i32) {
    %c0_i32 = arith.constant 0 : i32
    %c0_i32_0 = arith.constant 0 : i32
    %c0_i32_1 = arith.constant 0 : i32
    return %c0_i32, %c0_i32_0 : i32, i32
  }
}

</mosaic_0001>

<bundles_post_ra>
// kernel: pilotnet_forward.4
= control target key start
LH: loop header
LB: loop body
LE: loop exit
PB: predicated region body
PF: predicated region fallthrough
CT: control target
= control target key end

     0   :  { %s3514_s12 = smov 0   ;;  %s4045_s0 = inlined_call_operand.vmem [shape: bf16[6080,75], index: 0, kind: input, shape index: {}]   ;;  %s4046_s1 = inlined_call_operand.vmem [shape: bf16[75,128], index: 1, kind: input, shape index: {}]   ;;  %s4047_s2 = inlined_call_operand.vmem [shape: f32[1,128], index: 2, kind: input, shape index: {}]   ;;  %s4048_s3 = inlined_call_operand.vmem [shape: bf16[6080,128], index: 3, kind: output, shape index: {}]  }
   0x1 LB: > { %s2286_s13 = sadd.s32 4294967295, %s3491_s12   ;;  %p2290_p0 = scmp.ge.s32.totalorder %s3491_s12, 1  ;;  %s3491_s12 = sphi %s3514_s12, %s13_s12  }
   0x2   : > { %p138_p1 = scmp.lt.s32.totalorder %s3491_s12, 5 }
   0x4   : > { %p139_p2 = pnand %p2290_p0, %p138_p1 }
   0x5   : > { %s162_s18 = smul.u32 (!%p139_p2), 190, %s2286_s13 }
   0x6   : > { %142 = sbr.rel (%p139_p2) target bundleno = 552 (0x228), region = 32 }
   0x7   : > { %p163_p3 = scmp.lt.s32.totalorder (!%p139_p2), %s162_s18, 759 }
   0xb   : > { %v2691_v0 = vld [vmem:[%s4046_s1 + $0x20] sm:$0xf]  ;;  %v2889_v1 = vld [vmem:[%s4046_s1 + $0x20] sm:$0x30]  ;;  %vm1169_vm0 = vcmask 1044480   ;;  %vm1170_vm1 = vcmask 1045504  }
   0xc   : > { %v2692_v2 = vor.u32 %v2889_v1, %v2691_v0  ;;  %v3493_v3 = vmov 65535   ;;  %v2888_v7 = vld [vmem:[%s4046_s1 + $0x18] sm:$0xff]  ;;  %v2887_v8 = vld [vmem:[%s4046_s1 + $0x10] sm:$0xff]  ;;  %s4050_s18 = smov (!%p163_p3, %s162_s18), 759  ;;  %v2886_v9 = vld [vmem:[%s4046_s1 + $0x8] sm:$0xff]  ;;  %vm883_vm2 = vcmask 613376  }
   0xd   : > { %v1171_v4 = vsel %vm1169_vm0, 4294967295, %v3493_v3  ;;  %s2291_s25 = sshll.u32 %s4050_s18, 2  ;;  %v2885_v10 = vld [vmem:[%s4046_s1] sm:$0xff] }
   0xe   : > { %v1172_v5 = vsel %vm1170_vm1, %v1171_v4, 0  ;;  %s3548_s30 = scalar_lea.vmem %s4045_s0, %s2291_s25  ;;  %v3621_v49 = vld [vmem:[%s4047_s2] ss:$0 sm:$0xff]  ;;  %s3636_s8 = scalar_lea.vmem %s4048_s3, %s2291_s25 }
   0xf   : > { %v1174_v6 = vand.u32 %v2692_v2, %v1172_v5  ;;  %v2790_v11 = vld [vmem:[%s3548_s30] sm:$0xff]  ;;  %v2791_v15 = vld [vmem:[%s3548_s30 + $0x8] sm:$0xff]  ;;  %v2792_v19 = vld [vmem:[%s3548_s30 + $0x10] sm:$0xff] }
  0x10   : > { %v2814_v12 = vld [vmem:[%s3548_s30 + $0xc0] sm:$0xff]  ;;  %v2815_v16 = vld [vmem:[%s3548_s30 + $0xc8] sm:$0xff]  ;;  %v2816_v20 = vld [vmem:[%s3548_s30 + $0xd0] sm:$0xff] }
  0x11   : > { %1179 = vmatpush.bf16.msra.mxu0 %v1174_v6  ;;  %3459 = vmatpush.bf16.msra.mxu1 %v1174_v6  ;;  %v2838_v13 = vld [vmem:[%s3548_s30 + $0x180] sm:$0xff]  ;;  %v2839_v17 = vld [vmem:[%s3548_s30 + $0x188] sm:$0xff]  ;;  %v2840_v21 = vld [vmem:[%s3548_s30 + $0x190] sm:$0xff] }
  0x12   : > { %3460 = vmatpush.bf16.msra.mxu2 %v1174_v6  ;;  %3461 = vmatpush.bf16.msra.mxu3 %v1174_v6  ;;  %v2862_v14 = vld [vmem:[%s3548_s30 + $0x240] sm:$0xff]  ;;  %v2863_v18 = vld [vmem:[%s3548_s30 + $0x248] sm:$0xff]  ;;  %v2864_v22 = vld [vmem:[%s3548_s30 + $0x250] sm:$0xff] }
  0x13   : > { %v2793_v23 = vld [vmem:[%s3548_s30 + $0x18] sm:$0xff]  ;;  %v2794_v27 = vld [vmem:[%s3548_s30 + $0x20] sm:$0xff]  ;;  %v2795_v31 = vld [vmem:[%s3548_s30 + $0x28] sm:$0xff] }
  0x14   : > { %v2817_v24 = vld [vmem:[%s3548_s30 + $0xd8] sm:$0xff]  ;;  %v2818_v28 = vld [vmem:[%s3548_s30 + $0xe0] sm:$0xff]  ;;  %v2819_v32 = vld [vmem:[%s3548_s30 + $0xe8] sm:$0xff] }
  0x15   : > { %1180 = vmatpush.bf16.msra.mxu0 %v2888_v7  ;;  %3462 = vmatpush.bf16.msra.mxu1 %v2888_v7  ;;  %v2841_v25 = vld [vmem:[%s3548_s30 + $0x198] sm:$0xff]  ;;  %v2842_v29 = vld [vmem:[%s3548_s30 + $0x1a0] sm:$0xff]  ;;  %v2843_v33 = vld [vmem:[%s3548_s30 + $0x1a8] sm:$0xff] }
  0x16   : > { %3463 = vmatpush.bf16.msra.mxu2 %v2888_v7  ;;  %3464 = vmatpush.bf16.msra.mxu3 %v2888_v7  ;;  %v2865_v26 = vld [vmem:[%s3548_s30 + $0x258] sm:$0xff]  ;;  %v2866_v30 = vld [vmem:[%s3548_s30 + $0x260] sm:$0xff]  ;;  %v2867_v34 = vld [vmem:[%s3548_s30 + $0x268] sm:$0xff] }
  0x17   : > { %v2796_v35 = vld [vmem:[%s3548_s30 + $0x30] sm:$0xff]  ;;  %v2797_v39 = vld [vmem:[%s3548_s30 + $0x38] sm:$0xff]  ;;  %v2798_v43 = vld [vmem:[%s3548_s30 + $0x40] sm:$0xff] }
  0x18   : > { %v2820_v36 = vld [vmem:[%s3548_s30 + $0xf0] sm:$0xff]  ;;  %v2821_v40 = vld [vmem:[%s3548_s30 + $0xf8] sm:$0xff]  ;;  %v2822_v44 = vld [vmem:[%s3548_s30 + $0x100] sm:$0xff] }
  0x19   : > { %1181 = vmatpush.bf16.msra.mxu0 %v2887_v8  ;;  %3465 = vmatpush.bf16.msra.mxu1 %v2887_v8  ;;  %v2844_v37 = vld [vmem:[%s3548_s30 + $0x1b0] sm:$0xff]  ;;  %v2845_v41 = vld [vmem:[%s3548_s30 + $0x1b8] sm:$0xff]  ;;  %v2846_v47 = vld [vmem:[%s3548_s30 + $0x1c0] sm:$0xff] }
  0x1a   : > { %3466 = vmatpush.bf16.msra.mxu2 %v2887_v8  ;;  %3467 = vmatpush.bf16.msra.mxu3 %v2887_v8  ;;  %v2868_v38 = vld [vmem:[%s3548_s30 + $0x270] sm:$0xff]  ;;  %v2869_v42 = vld [vmem:[%s3548_s30 + $0x278] sm:$0xff]  ;;  %v2870_v48 = vld [vmem:[%s3548_s30 + $0x280] sm:$0xff] }
  0x1b   : > { %v2799_v3 = vld [vmem:[%s3548_s30 + $0x48] sm:$0xff] }
  0x1c   : > { %v2823_v4 = vld [vmem:[%s3548_s30 + $0x108] sm:$0xff] }
  0x1d   : > { %1182 = vmatpush.bf16.msra.mxu0 %v2886_v9  ;;  %3468 = vmatpush.bf16.msra.mxu1 %v2886_v9 }
  0x1e   : > { %3469 = vmatpush.bf16.msra.mxu2 %v2886_v9  ;;  %3470 = vmatpush.bf16.msra.mxu3 %v2886_v9 }
  0x21   : > { %1183 = vmatpush.bf16.msra.mxu0 %v2885_v10  ;;  %3471 = vmatpush.bf16.msra.mxu1 %v2885_v10 }
  0x22   : > { %3472 = vmatpush.bf16.msra.mxu2 %v2885_v10  ;;  %3473 = vmatpush.bf16.msra.mxu3 %v2885_v10  ;;  %v2847_v10 = vld [vmem:[%s3548_s30 + $0x1c8] sm:$0xff] }
  0x24   : > { %2693 = vmatmul.msk.bf16.vlgmr.msra.gmra.mxu0 %vm883_vm2, %v2790_v11  ;;  %2717 = vmatmul.msk.bf16.vlgmr.msra.gmra.mxu1 %vm883_vm2, %v2814_v12  ;;  %v2871_v12 = vld [vmem:[%s3548_s30 + $0x288] sm:$0xff] }
  0x25   : > { %2741 = vmatmul.msk.bf16.vlgmr.msra.gmra.mxu2 %vm883_vm2, %v2838_v13  ;;  %2765 = vmatmul.msk.bf16.vlgmr.msra.gmra.mxu3 %vm883_vm2, %v2862_v14 }
  0x34   : > { %2694 = vmatmul.msk.bf16.gmra.mxu0 %vm883_vm2, %v2791_v15  ;;  %2718 = vmatmul.msk.bf16.gmra.mxu1 %vm883_vm2, %v2815_v16 }
  0x35   : > { %2742 = vmatmul.msk.bf16.gmra.mxu2 %vm883_vm2, %v2839_v17  ;;  %2766 = vmatmul.msk.bf16.gmra.mxu3 %vm883_vm2, %v2863_v18 }
  0x44   : > { %2695 = vmatmul.msk.bf16.gmra.mxu0 %vm883_vm2, %v2792_v19  ;;  %2719 = vmatmul.msk.bf16.gmra.mxu1 %vm883_vm2, %v2816_v20 }
  0x45   : > { %2743 = vmatmul.msk.bf16.gmra.mxu2 %vm883_vm2, %v2840_v21  ;;  %2767 = vmatmul.msk.bf16.gmra.mxu3 %vm883_vm2, %v2864_v22 }
  0x54   : > { %2696 = vmatmul.msk.bf16.gmra.mxu0 %vm883_vm2, %v2793_v23  ;;  %2720 = vmatmul.msk.bf16.gmra.mxu1 %vm883_vm2, %v2817_v24 }
  0x55   : > { %2744 = vmatmul.msk.bf16.gmra.mxu2 %vm883_vm2, %v2841_v25  ;;  %2768 = vmatmul.msk.bf16.gmra.mxu3 %vm883_vm2, %v2865_v26 }
  0x64   : > { %2697 = vmatmul.msk.bf16.gmra.mxu0 %vm883_vm2, %v2794_v27  ;;  %2721 = vmatmul.msk.bf16.gmra.mxu1 %vm883_vm2, %v2818_v28 }
  0x65   : > { %2745 = vmatmul.msk.bf16.gmra.mxu2 %vm883_vm2, %v2842_v29  ;;  %2769 = vmatmul.msk.bf16.gmra.mxu3 %vm883_vm2, %v2866_v30 }
  0x74   : > { %2698 = vmatmul.msk.bf16.gmra.mxu0 %vm883_vm2, %v2795_v31  ;;  %2722 = vmatmul.msk.bf16.gmra.mxu1 %vm883_vm2, %v2819_v32 }
  0x75   : > { %2746 = vmatmul.msk.bf16.gmra.mxu2 %vm883_vm2, %v2843_v33  ;;  %2770 = vmatmul.msk.bf16.gmra.mxu3 %vm883_vm2, %v2867_v34 }
  0x84   : > { %2699 = vmatmul.msk.bf16.gmra.mxu0 %vm883_vm2, %v2796_v35  ;;  %2723 = vmatmul.msk.bf16.gmra.mxu1 %vm883_vm2, %v2820_v36  ;;  %v2800_v35 = vld [vmem:[%s3548_s30 + $0x50] sm:$0xff] }
  0x85   : > { %2747 = vmatmul.msk.bf16.gmra.mxu2 %vm883_vm2, %v2844_v37  ;;  %2771 = vmatmul.msk.bf16.gmra.mxu3 %vm883_vm2, %v2868_v38  ;;  %v2824_v36 = vld [vmem:[%s3548_s30 + $0x110] sm:$0xff] }
  0x94   : > { %2700 = vmatmul.msk.bf16.gmra.mxu0 %vm883_vm2, %v2797_v39  ;;  %2724 = vmatmul.msk.bf16.gmra.mxu1 %vm883_vm2, %v2821_v40 }
  0x95   : > { %2748 = vmatmul.msk.bf16.gmra.mxu2 %vm883_vm2, %v2845_v41  ;;  %2772 = vmatmul.msk.bf16.gmra.mxu3 %vm883_vm2, %v2869_v42  ;;  %v2848_v42 = vld [vmem:[%s3548_s30 + $0x1d0] sm:$0xff] }
  0xa1   : > { %v1185_v45 = vpop.f32.mrf.mxu0  ;;  %v1305_v46 = vpop.f32.mrf.mxu1 }
  0xa2   : > { %v1186_v50 = vadd.f32 %v3621_v49, %v1185_v45  ;;  %v1306_v51 = vadd.f32 %v3621_v49, %v1305_v46 }
  0xa4   : > { %2701 = vmatmul.msk.bf16.gmra.mxu0 %vm883_vm2, %v2798_v43  ;;  %2725 = vmatmul.msk.bf16.gmra.mxu1 %vm883_vm2, %v2822_v44  ;;  %v1660_v58 = vmax.f32 %v1186_v50, 0.0  ;;  %v1708_v59 = vmax.f32 %v1306_v51, 0.0  ;;  %v2872_v44 = vld [vmem:[%s3548_s30 + $0x290] sm:$0xff] }
  0xa5   : > { %2749 = vmatmul.msk.bf16.gmra.mxu2 %vm883_vm2, %v2846_v47  ;;  %2773 = vmatmul.msk.bf16.gmra.mxu3 %vm883_vm2, %v2870_v48 }
  0xa8   : > { %v1425_v52 = vpop.f32.mrf.mxu2  ;;  %v1545_v53 = vpop.f32.mrf.mxu3 }
  0xa9   : > { %v1187_v54 = vpop.f32.mrf.mxu0  ;;  %v1307_v55 = vpop.f32.mrf.mxu1  ;;  %v1546_v62 = vadd.f32 %v3621_v49, %v1545_v53  ;;  %v1426_v1 = vadd.f32 %v3621_v49, %v1425_v52 }
  0xaa   : > { %v1188_v56 = vadd.f32 %v3621_v49, %v1187_v54  ;;  %v1308_v57 = vadd.f32 %v3621_v49, %v1307_v55 }
  0xab   : > { %v1804_v7 = vmax.f32 %v1546_v62, 0.0  ;;  %v1756_v13 = vmax.f32 %v1426_v1, 0.0 }
  0xac   : > { %v1661_v60 = vmax.f32 %v1188_v56, 0.0  ;;  %v1709_v61 = vmax.f32 %v1308_v57, 0.0 }
  0xae   : > { %v2893_v63 = vpack.c.bf16 %v1661_v60, %v1660_v58  ;;  %v3013_v0 = vpack.c.bf16 %v1709_v61, %v1708_v59 }
  0xb0   : > { %2894 = vst [vmem:[%s3636_s8] sm:$0xff] %v2893_v63   ;;  %v1427_v2 = vpop.f32.mrf.mxu2  ;;  %v1547_v5 = vpop.f32.mrf.mxu3 }
  0xb1   : > { %3388 = vst [vmem:[%s3636_s8 + $0xc0] sm:$0xff] %v3013_v0   ;;  %v1428_v6 = vadd.f32 %v3621_v49, %v1427_v2  ;;  %v1190_v8 = vpop.f32.mrf.mxu0  ;;  %v1310_v9 = vpop.f32.mrf.mxu1  ;;  %v1548_v11 = vadd.f32 %v3621_v49, %v1547_v5  ;;  %v2825_v5 = vld [vmem:[%s3548_s30 + $0x118] sm:$0xff] }
  0xb2   : > { %v1191_v18 = vadd.f32 %v3621_v49, %v1190_v8  ;;  %v1311_v19 = vadd.f32 %v3621_v49, %v1310_v9 }
  0xb3   : > { %v1757_v14 = vmax.f32 %v1428_v6, 0.0  ;;  %v1805_v15 = vmax.f32 %v1548_v11, 0.0  ;;  %v2849_v11 = vld [vmem:[%s3548_s30 + $0x1d8] sm:$0xff] }
  0xb4   : > { %2702 = vmatmul.msk.bf16.gmra.mxu0 %vm883_vm2, %v2799_v3  ;;  %2726 = vmatmul.msk.bf16.gmra.mxu1 %vm883_vm2, %v2823_v4  ;;  %v1662_v26 = vmax.f32 %v1191_v18, 0.0  ;;  %v1710_v27 = vmax.f32 %v1311_v19, 0.0  ;;  %v2801_v4 = vld [vmem:[%s3548_s30 + $0x58] sm:$0xff] }
  0xb5   : > { %v3133_v16 = vpack.c.bf16 %v1757_v14, %v1756_v13  ;;  %2750 = vmatmul.msk.bf16.gmra.mxu2 %vm883_vm2, %v2847_v10  ;;  %v3253_v17 = vpack.c.bf16 %v1805_v15, %v1804_v7  ;;  %2774 = vmatmul.msk.bf16.gmra.mxu3 %vm883_vm2, %v2871_v12  ;;  %v2873_v13 = vld [vmem:[%s3548_s30 + $0x298] sm:$0xff] }
  0xb7   : > { %3412 = vst [vmem:[%s3636_s8 + $0x180] sm:$0xff] %v3133_v16  }
  0xb8   : > { %v1430_v20 = vpop.f32.mrf.mxu2  ;;  %3436 = vst [vmem:[%s3636_s8 + $0x240] sm:$0xff] %v3253_v17   ;;  %v1550_v21 = vpop.f32.mrf.mxu3 }
  0xb9   : > { %v1192_v22 = vpop.f32.mrf.mxu0  ;;  %v1312_v23 = vpop.f32.mrf.mxu1  ;;  %v1551_v30 = vadd.f32 %v3621_v49, %v1550_v21  ;;  %v1431_v33 = vadd.f32 %v3621_v49, %v1430_v20 }
  0xba   : > { %v1193_v24 = vadd.f32 %v3621_v49, %v1192_v22  ;;  %v1313_v25 = vadd.f32 %v3621_v49, %v1312_v23 }
  0xbb   : > { %v1806_v39 = vmax.f32 %v1551_v30, 0.0  ;;  %v1758_v45 = vmax.f32 %v1431_v33, 0.0 }
  0xbc   : > { %v1663_v28 = vmax.f32 %v1193_v24, 0.0  ;;  %v1711_v29 = vmax.f32 %v1313_v25, 0.0 }
  0xbe   : > { %v2898_v31 = vpack.c.bf16 %v1663_v28, %v1662_v26  ;;  %v3018_v32 = vpack.c.bf16 %v1711_v29, %v1710_v27 }
  0xc0   : > { %3365 = vst [vmem:[%s3636_s8 + $0x8] sm:$0xff] %v2898_v31   ;;  %v1432_v34 = vpop.f32.mrf.mxu2  ;;  %v1552_v37 = vpop.f32.mrf.mxu3 }
  0xc1   : > { %3389 = vst [vmem:[%s3636_s8 + $0xc8] sm:$0xff] %v3018_v32   ;;  %v1433_v38 = vadd.f32 %v3621_v49, %v1432_v34  ;;  %v1195_v40 = vpop.f32.mrf.mxu0  ;;  %v1315_v41 = vpop.f32.mrf.mxu1  ;;  %v1553_v43 = vadd.f32 %v3621_v49, %v1552_v37  ;;  %v2826_v37 = vld [vmem:[%s3548_s30 + $0x120] sm:$0xff] }
  0xc2   : > { %v1196_v51 = vadd.f32 %v3621_v49, %v1195_v40  ;;  %v1316_v52 = vadd.f32 %v3621_v49, %v1315_v41 }
  0xc3   : > { %v1759_v46 = vmax.f32 %v1433_v38, 0.0  ;;  %v1807_v47 = vmax.f32 %v1553_v43, 0.0  ;;  %v2850_v43 = vld [vmem:[%s3548_s30 + $0x1e0] sm:$0xff] }
  0xc4   : > { %2703 = vmatmul.msk.bf16.gmra.mxu0 %vm883_vm2, %v2800_v35  ;;  %2727 = vmatmul.msk.bf16.gmra.mxu1 %vm883_vm2, %v2824_v36  ;;  %v1664_v59 = vmax.f32 %v1196_v51, 0.0  ;;  %v1712_v60 = vmax.f32 %v1316_v52, 0.0  ;;  %v2802_v36 = vld [vmem:[%s3548_s30 + $0x60] sm:$0xff] }
  0xc5   : > { %v3138_v48 = vpack.c.bf16 %v1759_v46, %v1758_v45  ;;  %2751 = vmatmul.msk.bf16.gmra.mxu2 %vm883_vm2, %v2848_v42  ;;  %v3258_v50 = vpack.c.bf16 %v1807_v47, %v1806_v39  ;;  %2775 = vmatmul.msk.bf16.gmra.mxu3 %vm883_vm2, %v2872_v44  ;;  %v2874_v45 = vld [vmem:[%s3548_s30 + $0x2a0] sm:$0xff] }
  0xc7   : > { %3413 = vst [vmem:[%s3636_s8 + $0x188] sm:$0xff] %v3138_v48  }
  0xc8   : > { %v1435_v53 = vpop.f32.mrf.mxu2  ;;  %3437 = vst [vmem:[%s3636_s8 + $0x248] sm:$0xff] %v3258_v50   ;;  %v1555_v54 = vpop.f32.mrf.mxu3 }
  0xc9   : > { %v1197_v55 = vpop.f32.mrf.mxu0  ;;  %v1317_v56 = vpop.f32.mrf.mxu1  ;;  %v1556_v63 = vadd.f32 %v3621_v49, %v1555_v54  ;;  %v1436_v2 = vadd.f32 %v3621_v49, %v1435_v53 }
  0xca   : > { %v1198_v57 = vadd.f32 %v3621_v49, %v1197_v55  ;;  %v1318_v58 = vadd.f32 %v3621_v49, %v1317_v56 }
  0xcb   : > { %v1808_v8 = vmax.f32 %v1556_v63, 0.0  ;;  %v1760_v14 = vmax.f32 %v1436_v2, 0.0 }
  0xcc   : > { %v1665_v61 = vmax.f32 %v1198_v57, 0.0  ;;  %v1713_v62 = vmax.f32 %v1318_v58, 0.0 }
  0xce   : > { %v2903_v0 = vpack.c.bf16 %v1665_v61, %v1664_v59  ;;  %v3023_v1 = vpack.c.bf16 %v1713_v62, %v1712_v60 }
  0xd0   : > { %3366 = vst [vmem:[%s3636_s8 + $0x10] sm:$0xff] %v2903_v0   ;;  %v1437_v3 = vpop.f32.mrf.mxu2  ;;  %v1557_v6 = vpop.f32.mrf.mxu3 }
  0xd1   : > { %3390 = vst [vmem:[%s3636_s8 + $0xd0] sm:$0xff] %v3023_v1   ;;  %v1438_v7 = vadd.f32 %v3621_v49, %v1437_v3  ;;  %v1200_v9 = vpop.f32.mrf.mxu0  ;;  %v1320_v10 = vpop.f32.mrf.mxu1  ;;  %v1558_v12 = vadd.f32 %v3621_v49, %v1557_v6  ;;  %v2827_v6 = vld [vmem:[%s3548_s30 + $0x128] sm:$0xff] }
  0xd2   : > { %v1201_v19 = vadd.f32 %v3621_v49, %v1200_v9  ;;  %v1321_v20 = vadd.f32 %v3621_v49, %v1320_v10 }
  0xd3   : > { %v1761_v15 = vmax.f32 %v1438_v7, 0.0  ;;  %v1809_v16 = vmax.f32 %v1558_v12, 0.0  ;;  %v2851_v12 = vld [vmem:[%s3548_s30 + $0x1e8] sm:$0xff] }
  0xd4   : > { %2704 = vmatmul.msk.bf16.gmra.mxu0 %vm883_vm2, %v2801_v4  ;;  %2728 = vmatmul.msk.bf16.gmra.mxu1 %vm883_vm2, %v2825_v5  ;;  %v1666_v27 = vmax.f32 %v1201_v19, 0.0  ;;  %v1714_v28 = vmax.f32 %v1321_v20, 0.0  ;;  %v2803_v5 = vld [vmem:[%s3548_s30 + $0x68] sm:$0xff] }
  0xd5   : > { %v3143_v17 = vpack.c.bf16 %v1761_v15, %v1760_v14  ;;  %2752 = vmatmul.msk.bf16.gmra.mxu2 %vm883_vm2, %v2849_v11  ;;  %v3263_v18 = vpack.c.bf16 %v1809_v16, %v1808_v8  ;;  %2776 = vmatmul.msk.bf16.gmra.mxu3 %vm883_vm2, %v2873_v13  ;;  %v2875_v14 = vld [vmem:[%s3548_s30 + $0x2a8] sm:$0xff] }
  0xd7   : > { %3414 = vst [vmem:[%s3636_s8 + $0x190] sm:$0xff] %v3143_v17  }
  0xd8   : > { %v1440_v21 = vpop.f32.mrf.mxu2  ;;  %3438 = vst [vmem:[%s3636_s8 + $0x250] sm:$0xff] %v3263_v18   ;;  %v1560_v22 = vpop.f32.mrf.mxu3 }
  0xd9   : > { %v1202_v23 = vpop.f32.mrf.mxu0  ;;  %v1322_v24 = vpop.f32.mrf.mxu1  ;;  %v1561_v31 = vadd.f32 %v3621_v49, %v1560_v22  ;;  %v1441_v34 = vadd.f32 %v3621_v49, %v1440_v21 }
  0xda   : > { %v1203_v25 = vadd.f32 %v3621_v49, %v1202_v23  ;;  %v1323_v26 = vadd.f32 %v3621_v49, %v1322_v24 }
  0xdb   : > { %v1810_v40 = vmax.f32 %v1561_v31, 0.0  ;;  %v1762_v46 = vmax.f32 %v1441_v34, 0.0 }
  0xdc   : > { %v1667_v29 = vmax.f32 %v1203_v25, 0.0  ;;  %v1715_v30 = vmax.f32 %v1323_v26, 0.0 }
  0xde   : > { %v2908_v32 = vpack.c.bf16 %v1667_v29, %v1666_v27  ;;  %v3028_v33 = vpack.c.bf16 %v1715_v30, %v1714_v28 }
  0xe0   : > { %3367 = vst [vmem:[%s3636_s8 + $0x18] sm:$0xff] %v2908_v32   ;;  %v1442_v35 = vpop.f32.mrf.mxu2  ;;  %v1562_v38 = vpop.f32.mrf.mxu3 }
  0xe1   : > { %3391 = vst [vmem:[%s3636_s8 + $0xd8] sm:$0xff] %v3028_v33   ;;  %v1443_v39 = vadd.f32 %v3621_v49, %v1442_v35  ;;  %v1205_v41 = vpop.f32.mrf.mxu0  ;;  %v1325_v42 = vpop.f32.mrf.mxu1  ;;  %v1563_v44 = vadd.f32 %v3621_v49, %v1562_v38  ;;  %v2828_v38 = vld [vmem:[%s3548_s30 + $0x130] sm:$0xff] }
  0xe2   : > { %v1206_v52 = vadd.f32 %v3621_v49, %v1205_v41  ;;  %v1326_v53 = vadd.f32 %v3621_v49, %v1325_v42 }
  0xe3   : > { %v1763_v47 = vmax.f32 %v1443_v39, 0.0  ;;  %v1811_v48 = vmax.f32 %v1563_v44, 0.0  ;;  %v2852_v44 = vld [vmem:[%s3548_s30 + $0x1f0] sm:$0xff] }
  0xe4   : > { %2705 = vmatmul.msk.bf16.gmra.mxu0 %vm883_vm2, %v2802_v36  ;;  %2729 = vmatmul.msk.bf16.gmra.mxu1 %vm883_vm2, %v2826_v37  ;;  %v1668_v60 = vmax.f32 %v1206_v52, 0.0  ;;  %v1716_v61 = vmax.f32 %v1326_v53, 0.0  ;;  %v2804_v37 = vld [vmem:[%s3548_s30 + $0x70] sm:$0xff] }
  0xe5   : > { %v3148_v50 = vpack.c.bf16 %v1763_v47, %v1762_v46  ;;  %2753 = vmatmul.msk.bf16.gmra.mxu2 %vm883_vm2, %v2850_v43  ;;  %v3268_v51 = vpack.c.bf16 %v1811_v48, %v1810_v40  ;;  %2777 = vmatmul.msk.bf16.gmra.mxu3 %vm883_vm2, %v2874_v45  ;;  %v2876_v46 = vld [vmem:[%s3548_s30 + $0x2b0] sm:$0xff] }
  0xe7   : > { %3415 = vst [vmem:[%s3636_s8 + $0x198] sm:$0xff] %v3148_v50  }
  0xe8   : > { %v1445_v54 = vpop.f32.mrf.mxu2  ;;  %3439 = vst [vmem:[%s3636_s8 + $0x258] sm:$0xff] %v3268_v51   ;;  %v1565_v55 = vpop.f32.mrf.mxu3 }
  0xe9   : > { %v1207_v56 = vpop.f32.mrf.mxu0  ;;  %v1327_v57 = vpop.f32.mrf.mxu1  ;;  %v1566_v0 = vadd.f32 %v3621_v49, %v1565_v55  ;;  %v1446_v3 = vadd.f32 %v3621_v49, %v1445_v54 }
  0xea   : > { %v1208_v58 = vadd.f32 %v3621_v49, %v1207_v56  ;;  %v1328_v59 = vadd.f32 %v3621_v49, %v1327_v57 }
  0xeb   : > { %v1812_v9 = vmax.f32 %v1566_v0, 0.0  ;;  %v1764_v15 = vmax.f32 %v1446_v3, 0.0 }
  0xec   : > { %v1669_v62 = vmax.f32 %v1208_v58, 0.0  ;;  %v1717_v63 = vmax.f32 %v1328_v59, 0.0 }
  0xee   : > { %v2913_v1 = vpack.c.bf16 %v1669_v62, %v1668_v60  ;;  %v3033_v2 = vpack.c.bf16 %v1717_v63, %v1716_v61 }
  0xf0   : > { %3368 = vst [vmem:[%s3636_s8 + $0x20] sm:$0xff] %v2913_v1   ;;  %v1447_v4 = vpop.f32.mrf.mxu2  ;;  %v1567_v7 = vpop.f32.mrf.mxu3 }
  0xf1   : > { %3392 = vst [vmem:[%s3636_s8 + $0xe0] sm:$0xff] %v3033_v2   ;;  %v1448_v8 = vadd.f32 %v3621_v49, %v1447_v4  ;;  %v1210_v10 = vpop.f32.mrf.mxu0  ;;  %v1330_v11 = vpop.f32.mrf.mxu1  ;;  %v1568_v13 = vadd.f32 %v3621_v49, %v1567_v7  ;;  %v2829_v7 = vld [vmem:[%s3548_s30 + $0x138] sm:$0xff] }
  0xf2   : > { %v1211_v20 = vadd.f32 %v3621_v49, %v1210_v10  ;;  %v1331_v21 = vadd.f32 %v3621_v49, %v1330_v11 }
  0xf3   : > { %v1765_v16 = vmax.f32 %v1448_v8, 0.0  ;;  %v1813_v17 = vmax.f32 %v1568_v13, 0.0  ;;  %v2853_v13 = vld [vmem:[%s3548_s30 + $0x1f8] sm:$0xff] }
  0xf4   : > { %2706 = vmatmul.msk.bf16.gmra.mxu0 %vm883_vm2, %v2803_v5  ;;  %2730 = vmatmul.msk.bf16.gmra.mxu1 %vm883_vm2, %v2827_v6  ;;  %v1670_v28 = vmax.f32 %v1211_v20, 0.0  ;;  %v1718_v29 = vmax.f32 %v1331_v21, 0.0  ;;  %v2805_v6 = vld [vmem:[%s3548_s30 + $0x78] sm:$0xff] }
  0xf5   : > { %v3153_v18 = vpack.c.bf16 %v1765_v16, %v1764_v15  ;;  %2754 = vmatmul.msk.bf16.gmra.mxu2 %vm883_vm2, %v2851_v12  ;;  %v3273_v19 = vpack.c.bf16 %v1813_v17, %v1812_v9  ;;  %2778 = vmatmul.msk.bf16.gmra.mxu3 %vm883_vm2, %v2875_v14  ;;  %v2877_v15 = vld [vmem:[%s3548_s30 + $0x2b8] sm:$0xff] }
  0xf7   : > { %3416 = vst [vmem:[%s3636_s8 + $0x1a0] sm:$0xff] %v3153_v18  }
  0xf8   : > { %v1450_v22 = vpop.f32.mrf.mxu2  ;;  %3440 = vst [vmem:[%s3636_s8 + $0x260] sm:$0xff] %v3273_v19   ;;  %v1570_v23 = vpop.f32.mrf.mxu3 }
  0xf9   : > { %v1212_v24 = vpop.f32.mrf.mxu0  ;;  %v1332_v25 = vpop.f32.mrf.mxu1  ;;  %v1571_v32 = vadd.f32 %v3621_v49, %v1570_v23  ;;  %v1451_v35 = vadd.f32 %v3621_v49, %v1450_v22 }
  0xfa   : > { %v1213_v26 = vadd.f32 %v3621_v49, %v1212_v24  ;;  %v1333_v27 = vadd.f32 %v3621_v49, %v1332_v25 }
  0xfb   : > { %v1814_v41 = vmax.f32 %v1571_v32, 0.0  ;;  %v1766_v47 = vmax.f32 %v1451_v35, 0.0 }
  0xfc   : > { %v1671_v30 = vmax.f32 %v1213_v26, 0.0  ;;  %v1719_v31 = vmax.f32 %v1333_v27, 0.0 }
  0xfe   : > { %v2918_v33 = vpack.c.bf16 %v1671_v30, %v1670_v28  ;;  %v3038_v34 = vpack.c.bf16 %v1719_v31, %v1718_v29 }
 0x100   : > { %3369 = vst [vmem:[%s3636_s8 + $0x28] sm:$0xff] %v2918_v33   ;;  %v1452_v36 = vpop.f32.mrf.mxu2  ;;  %v1572_v39 = vpop.f32.mrf.mxu3 }
 0x101   : > { %3393 = vst [vmem:[%s3636_s8 + $0xe8] sm:$0xff] %v3038_v34   ;;  %v1453_v40 = vadd.f32 %v3621_v49, %v1452_v36  ;;  %v1215_v42 = vpop.f32.mrf.mxu0  ;;  %v1335_v43 = vpop.f32.mrf.mxu1  ;;  %v1573_v45 = vadd.f32 %v3621_v49, %v1572_v39  ;;  %v2830_v39 = vld [vmem:[%s3548_s30 + $0x140] sm:$0xff] }
 0x102   : > { %v1216_v53 = vadd.f32 %v3621_v49, %v1215_v42  ;;  %v1336_v54 = vadd.f32 %v3621_v49, %v1335_v43 }
 0x103   : > { %v1767_v48 = vmax.f32 %v1453_v40, 0.0  ;;  %v1815_v50 = vmax.f32 %v1573_v45, 0.0  ;;  %v2854_v45 = vld [vmem:[%s3548_s30 + $0x200] sm:$0xff] }
 0x104   : > { %2707 = vmatmul.msk.bf16.gmra.mxu0 %vm883_vm2, %v2804_v37  ;;  %2731 = vmatmul.msk.bf16.gmra.mxu1 %vm883_vm2, %v2828_v38  ;;  %v1672_v61 = vmax.f32 %v1216_v53, 0.0  ;;  %v1720_v62 = vmax.f32 %v1336_v54, 0.0  ;;  %v2806_v38 = vld [vmem:[%s3548_s30 + $0x80] sm:$0xff] }
 0x105   : > { %v3158_v51 = vpack.c.bf16 %v1767_v48, %v1766_v47  ;;  %2755 = vmatmul.msk.bf16.gmra.mxu2 %vm883_vm2, %v2852_v44  ;;  %v3278_v52 = vpack.c.bf16 %v1815_v50, %v1814_v41  ;;  %2779 = vmatmul.msk.bf16.gmra.mxu3 %vm883_vm2, %v2876_v46  ;;  %v2878_v47 = vld [vmem:[%s3548_s30 + $0x2c0] sm:$0xff] }
 0x107   : > { %3417 = vst [vmem:[%s3636_s8 + $0x1a8] sm:$0xff] %v3158_v51  }
 0x108   : > { %v1455_v55 = vpop.f32.mrf.mxu2  ;;  %3441 = vst [vmem:[%s3636_s8 + $0x268] sm:$0xff] %v3278_v52   ;;  %v1575_v56 = vpop.f32.mrf.mxu3 }
 0x109   : > { %v1217_v57 = vpop.f32.mrf.mxu0  ;;  %v1337_v58 = vpop.f32.mrf.mxu1  ;;  %v1576_v1 = vadd.f32 %v3621_v49, %v1575_v56  ;;  %v1456_v4 = vadd.f32 %v3621_v49, %v1455_v55 }
 0x10a   : > { %v1218_v59 = vadd.f32 %v3621_v49, %v1217_v57  ;;  %v1338_v60 = vadd.f32 %v3621_v49, %v1337_v58 }
 0x10b   : > { %v1816_v10 = vmax.f32 %v1576_v1, 0.0  ;;  %v1768_v16 = vmax.f32 %v1456_v4, 0.0 }
 0x10c   : > { %v1673_v63 = vmax.f32 %v1218_v59, 0.0  ;;  %v1721_v0 = vmax.f32 %v1338_v60, 0.0 }
 0x10e   : > { %v2923_v2 = vpack.c.bf16 %v1673_v63, %v1672_v61  ;;  %v3043_v3 = vpack.c.bf16 %v1721_v0, %v1720_v62 }
 0x110   : > { %3370 = vst [vmem:[%s3636_s8 + $0x30] sm:$0xff] %v2923_v2   ;;  %v1457_v5 = vpop.f32.mrf.mxu2  ;;  %v1577_v8 = vpop.f32.mrf.mxu3 }
 0x111   : > { %3394 = vst [vmem:[%s3636_s8 + $0xf0] sm:$0xff] %v3043_v3   ;;  %v1458_v9 = vadd.f32 %v3621_v49, %v1457_v5  ;;  %v1220_v11 = vpop.f32.mrf.mxu0  ;;  %v1340_v12 = vpop.f32.mrf.mxu1  ;;  %v1578_v14 = vadd.f32 %v3621_v49, %v1577_v8  ;;  %v2831_v8 = vld [vmem:[%s3548_s30 + $0x148] sm:$0xff] }
 0x112   : > { %v1221_v21 = vadd.f32 %v3621_v49, %v1220_v11  ;;  %v1341_v22 = vadd.f32 %v3621_v49, %v1340_v12 }
 0x113   : > { %v1769_v17 = vmax.f32 %v1458_v9, 0.0  ;;  %v1817_v18 = vmax.f32 %v1578_v14, 0.0  ;;  %v2855_v14 = vld [vmem:[%s3548_s30 + $0x208] sm:$0xff] }
 0x114   : > { %2708 = vmatmul.msk.bf16.gmra.mxu0 %vm883_vm2, %v2805_v6  ;;  %2732 = vmatmul.msk.bf16.gmra.mxu1 %vm883_vm2, %v2829_v7  ;;  %v1674_v29 = vmax.f32 %v1221_v21, 0.0  ;;  %v1722_v30 = vmax.f32 %v1341_v22, 0.0  ;;  %v2807_v7 = vld [vmem:[%s3548_s30 + $0x88] sm:$0xff] }
 0x115   : > { %v3163_v19 = vpack.c.bf16 %v1769_v17, %v1768_v16  ;;  %2756 = vmatmul.msk.bf16.gmra.mxu2 %vm883_vm2, %v2853_v13  ;;  %v3283_v20 = vpack.c.bf16 %v1817_v18, %v1816_v10  ;;  %2780 = vmatmul.msk.bf16.gmra.mxu3 %vm883_vm2, %v2877_v15  ;;  %v2879_v16 = vld [vmem:[%s3548_s30 + $0x2c8] sm:$0xff] }
 0x117   : > { %3418 = vst [vmem:[%s3636_s8 + $0x1b0] sm:$0xff] %v3163_v19  }
 0x118   : > { %v1460_v23 = vpop.f32.mrf.mxu2  ;;  %3442 = vst [vmem:[%s3636_s8 + $0x270] sm:$0xff] %v3283_v20   ;;  %v1580_v24 = vpop.f32.mrf.mxu3 }
 0x119   : > { %v1222_v25 = vpop.f32.mrf.mxu0  ;;  %v1342_v26 = vpop.f32.mrf.mxu1  ;;  %v1581_v33 = vadd.f32 %v3621_v49, %v1580_v24  ;;  %v1461_v36 = vadd.f32 %v3621_v49, %v1460_v23 }
 0x11a   : > { %v1223_v27 = vadd.f32 %v3621_v49, %v1222_v25  ;;  %v1343_v28 = vadd.f32 %v3621_v49, %v1342_v26 }
 0x11b   : > { %v1818_v42 = vmax.f32 %v1581_v33, 0.0  ;;  %v1770_v48 = vmax.f32 %v1461_v36, 0.0 }
 0x11c   : > { %v1675_v31 = vmax.f32 %v1223_v27, 0.0  ;;  %v1723_v32 = vmax.f32 %v1343_v28, 0.0 }
 0x11e   : > { %v2928_v34 = vpack.c.bf16 %v1675_v31, %v1674_v29  ;;  %v3048_v35 = vpack.c.bf16 %v1723_v32, %v1722_v30 }
 0x120   : > { %3371 = vst [vmem:[%s3636_s8 + $0x38] sm:$0xff] %v2928_v34   ;;  %v1462_v37 = vpop.f32.mrf.mxu2  ;;  %v1582_v40 = vpop.f32.mrf.mxu3 }
 0x121   : > { %3395 = vst [vmem:[%s3636_s8 + $0xf8] sm:$0xff] %v3048_v35   ;;  %v1463_v41 = vadd.f32 %v3621_v49, %v1462_v37  ;;  %v1225_v43 = vpop.f32.mrf.mxu0  ;;  %v1345_v44 = vpop.f32.mrf.mxu1  ;;  %v1583_v46 = vadd.f32 %v3621_v49, %v1582_v40  ;;  %v2832_v40 = vld [vmem:[%s3548_s30 + $0x150] sm:$0xff] }
 0x122   : > { %v1226_v54 = vadd.f32 %v3621_v49, %v1225_v43  ;;  %v1346_v55 = vadd.f32 %v3621_v49, %v1345_v44 }
 0x123   : > { %v1771_v50 = vmax.f32 %v1463_v41, 0.0  ;;  %v1819_v51 = vmax.f32 %v1583_v46, 0.0  ;;  %v2856_v46 = vld [vmem:[%s3548_s30 + $0x210] sm:$0xff] }
 0x124   : > { %2709 = vmatmul.msk.bf16.gmra.mxu0 %vm883_vm2, %v2806_v38  ;;  %2733 = vmatmul.msk.bf16.gmra.mxu1 %vm883_vm2, %v2830_v39  ;;  %v1676_v62 = vmax.f32 %v1226_v54, 0.0  ;;  %v1724_v63 = vmax.f32 %v1346_v55, 0.0  ;;  %v2808_v39 = vld [vmem:[%s3548_s30 + $0x90] sm:$0xff] }
 0x125   : > { %v3168_v52 = vpack.c.bf16 %v1771_v50, %v1770_v48  ;;  %2757 = vmatmul.msk.bf16.gmra.mxu2 %vm883_vm2, %v2854_v45  ;;  %v3288_v53 = vpack.c.bf16 %v1819_v51, %v1818_v42  ;;  %2781 = vmatmul.msk.bf16.gmra.mxu3 %vm883_vm2, %v2878_v47  ;;  %v2880_v48 = vld [vmem:[%s3548_s30 + $0x2d0] sm:$0xff] }
 0x127   : > { %3419 = vst [vmem:[%s3636_s8 + $0x1b8] sm:$0xff] %v3168_v52  }
 0x128   : > { %v1465_v56 = vpop.f32.mrf.mxu2  ;;  %3443 = vst [vmem:[%s3636_s8 + $0x278] sm:$0xff] %v3288_v53   ;;  %v1585_v57 = vpop.f32.mrf.mxu3 }
 0x129   : > { %v1227_v58 = vpop.f32.mrf.mxu0  ;;  %v1347_v59 = vpop.f32.mrf.mxu1  ;;  %v1586_v2 = vadd.f32 %v3621_v49, %v1585_v57  ;;  %v1466_v5 = vadd.f32 %v3621_v49, %v1465_v56 }
 0x12a   : > { %v1228_v60 = vadd.f32 %v3621_v49, %v1227_v58  ;;  %v1348_v61 = vadd.f32 %v3621_v49, %v1347_v59 }
 0x12b   : > { %v1820_v11 = vmax.f32 %v1586_v2, 0.0  ;;  %v1772_v17 = vmax.f32 %v1466_v5, 0.0 }
 0x12c   : > { %v1677_v0 = vmax.f32 %v1228_v60, 0.0  ;;  %v1725_v1 = vmax.f32 %v1348_v61, 0.0 }
 0x12e   : > { %v2933_v3 = vpack.c.bf16 %v1677_v0, %v1676_v62  ;;  %v3053_v4 = vpack.c.bf16 %v1725_v1, %v1724_v63 }
 0x130   : > { %3372 = vst [vmem:[%s3636_s8 + $0x40] sm:$0xff] %v2933_v3   ;;  %v1467_v6 = vpop.f32.mrf.mxu2  ;;  %v1587_v9 = vpop.f32.mrf.mxu3 }
 0x131   : > { %3396 = vst [vmem:[%s3636_s8 + $0x100] sm:$0xff] %v3053_v4   ;;  %v1468_v10 = vadd.f32 %v3621_v49, %v1467_v6  ;;  %v1230_v12 = vpop.f32.mrf.mxu0  ;;  %v1350_v13 = vpop.f32.mrf.mxu1  ;;  %v1588_v15 = vadd.f32 %v3621_v49, %v1587_v9  ;;  %v2833_v9 = vld [vmem:[%s3548_s30 + $0x158] sm:$0xff] }
 0x132   : > { %v1231_v22 = vadd.f32 %v3621_v49, %v1230_v12  ;;  %v1351_v23 = vadd.f32 %v3621_v49, %v1350_v13 }
 0x133   : > { %v1773_v18 = vmax.f32 %v1468_v10, 0.0  ;;  %v1821_v19 = vmax.f32 %v1588_v15, 0.0  ;;  %v2857_v15 = vld [vmem:[%s3548_s30 + $0x218] sm:$0xff] }
 0x134   : > { %2710 = vmatmul.msk.bf16.gmra.mxu0 %vm883_vm2, %v2807_v7  ;;  %2734 = vmatmul.msk.bf16.gmra.mxu1 %vm883_vm2, %v2831_v8  ;;  %v1678_v30 = vmax.f32 %v1231_v22, 0.0  ;;  %v1726_v31 = vmax.f32 %v1351_v23, 0.0  ;;  %v2809_v8 = vld [vmem:[%s3548_s30 + $0x98] sm:$0xff] }
 0x135   : > { %v3173_v20 = vpack.c.bf16 %v1773_v18, %v1772_v17  ;;  %2758 = vmatmul.msk.bf16.gmra.mxu2 %vm883_vm2, %v2855_v14  ;;  %v3293_v21 = vpack.c.bf16 %v1821_v19, %v1820_v11  ;;  %2782 = vmatmul.msk.bf16.gmra.mxu3 %vm883_vm2, %v2879_v16  ;;  %v2881_v17 = vld [vmem:[%s3548_s30 + $0x2d8] sm:$0xff] }
 0x137   : > { %3420 = vst [vmem:[%s3636_s8 + $0x1c0] sm:$0xff] %v3173_v20  }
 0x138   : > { %v1470_v24 = vpop.f32.mrf.mxu2  ;;  %3444 = vst [vmem:[%s3636_s8 + $0x280] sm:$0xff] %v3293_v21   ;;  %v1590_v25 = vpop.f32.mrf.mxu3 }
 0x139   : > { %v1232_v26 = vpop.f32.mrf.mxu0  ;;  %v1352_v27 = vpop.f32.mrf.mxu1  ;;  %v1591_v34 = vadd.f32 %v3621_v49, %v1590_v25  ;;  %v1471_v37 = vadd.f32 %v3621_v49, %v1470_v24 }
 0x13a   : > { %v1233_v28 = vadd.f32 %v3621_v49, %v1232_v26  ;;  %v1353_v29 = vadd.f32 %v3621_v49, %v1352_v27 }
 0x13b   : > { %v1822_v43 = vmax.f32 %v1591_v34, 0.0  ;;  %v1774_v50 = vmax.f32 %v1471_v37, 0.0 }
 0x13c   : > { %v1679_v32 = vmax.f32 %v1233_v28, 0.0  ;;  %v1727_v33 = vmax.f32 %v1353_v29, 0.0 }
 0x13e   : > { %v2938_v35 = vpack.c.bf16 %v1679_v32, %v1678_v30  ;;  %v3058_v36 = vpack.c.bf16 %v1727_v33, %v1726_v31 }
 0x140   : > { %3373 = vst [vmem:[%s3636_s8 + $0x48] sm:$0xff] %v2938_v35   ;;  %v1472_v38 = vpop.f32.mrf.mxu2  ;;  %v1592_v41 = vpop.f32.mrf.mxu3 }
 0x141   : > { %3397 = vst [vmem:[%s3636_s8 + $0x108] sm:$0xff] %v3058_v36   ;;  %v1473_v42 = vadd.f32 %v3621_v49, %v1472_v38  ;;  %v1235_v44 = vpop.f32.mrf.mxu0  ;;  %v1355_v45 = vpop.f32.mrf.mxu1  ;;  %v1593_v47 = vadd.f32 %v3621_v49, %v1592_v41  ;;  %v2834_v41 = vld [vmem:[%s3548_s30 + $0x160] sm:$0xff] }
 0x142   : > { %v1236_v55 = vadd.f32 %v3621_v49, %v1235_v44  ;;  %v1356_v56 = vadd.f32 %v3621_v49, %v1355_v45 }
 0x143   : > { %v1775_v51 = vmax.f32 %v1473_v42, 0.0  ;;  %v1823_v52 = vmax.f32 %v1593_v47, 0.0  ;;  %v2858_v47 = vld [vmem:[%s3548_s30 + $0x220] sm:$0xff] }
 0x144   : > { %2711 = vmatmul.msk.bf16.gmra.mxu0 %vm883_vm2, %v2808_v39  ;;  %2735 = vmatmul.msk.bf16.gmra.mxu1 %vm883_vm2, %v2832_v40  ;;  %v1680_v63 = vmax.f32 %v1236_v55, 0.0  ;;  %v1728_v0 = vmax.f32 %v1356_v56, 0.0  ;;  %v2810_v40 = vld [vmem:[%s3548_s30 + $0xa0] sm:$0xff] }
 0x145   : > { %v3178_v53 = vpack.c.bf16 %v1775_v51, %v1774_v50  ;;  %2759 = vmatmul.msk.bf16.gmra.mxu2 %vm883_vm2, %v2856_v46  ;;  %v3298_v54 = vpack.c.bf16 %v1823_v52, %v1822_v43  ;;  %2783 = vmatmul.msk.bf16.gmra.mxu3 %vm883_vm2, %v2880_v48  ;;  %v2882_v50 = vld [vmem:[%s3548_s30 + $0x2e0] sm:$0xff] }
 0x147   : > { %3421 = vst [vmem:[%s3636_s8 + $0x1c8] sm:$0xff] %v3178_v53  }
 0x148   : > { %v1475_v57 = vpop.f32.mrf.mxu2  ;;  %3445 = vst [vmem:[%s3636_s8 + $0x288] sm:$0xff] %v3298_v54   ;;  %v1595_v58 = vpop.f32.mrf.mxu3 }
 0x149   : > { %v1237_v59 = vpop.f32.mrf.mxu0  ;;  %v1357_v60 = vpop.f32.mrf.mxu1  ;;  %v1596_v3 = vadd.f32 %v3621_v49, %v1595_v58  ;;  %v1476_v6 = vadd.f32 %v3621_v49, %v1475_v57 }
 0x14a   : > { %v1238_v61 = vadd.f32 %v3621_v49, %v1237_v59  ;;  %v1358_v62 = vadd.f32 %v3621_v49, %v1357_v60 }
 0x14b   : > { %v1824_v12 = vmax.f32 %v1596_v3, 0.0  ;;  %v1776_v18 = vmax.f32 %v1476_v6, 0.0 }
 0x14c   : > { %v1681_v1 = vmax.f32 %v1238_v61, 0.0  ;;  %v1729_v2 = vmax.f32 %v1358_v62, 0.0 }
 0x14e   : > { %v2943_v4 = vpack.c.bf16 %v1681_v1, %v1680_v63  ;;  %v3063_v5 = vpack.c.bf16 %v1729_v2, %v1728_v0 }
 0x150   : > { %3374 = vst [vmem:[%s3636_s8 + $0x50] sm:$0xff] %v2943_v4   ;;  %v1477_v7 = vpop.f32.mrf.mxu2  ;;  %v1597_v10 = vpop.f32.mrf.mxu3 }
 0x151   : > { %3398 = vst [vmem:[%s3636_s8 + $0x110] sm:$0xff] %v3063_v5   ;;  %v1478_v11 = vadd.f32 %v3621_v49, %v1477_v7  ;;  %v1240_v13 = vpop.f32.mrf.mxu0  ;;  %v1360_v14 = vpop.f32.mrf.mxu1  ;;  %v1598_v16 = vadd.f32 %v3621_v49, %v1597_v10  ;;  %v2835_v10 = vld [vmem:[%s3548_s30 + $0x168] sm:$0xff] }
 0x152   : > { %v1241_v23 = vadd.f32 %v3621_v49, %v1240_v13  ;;  %v1361_v24 = vadd.f32 %v3621_v49, %v1360_v14 }
 0x153   : > { %v1777_v19 = vmax.f32 %v1478_v11, 0.0  ;;  %v1825_v20 = vmax.f32 %v1598_v16, 0.0  ;;  %v2859_v16 = vld [vmem:[%s3548_s30 + $0x228] sm:$0xff] }
 0x154   : > { %2712 = vmatmul.msk.bf16.gmra.mxu0 %vm883_vm2, %v2809_v8  ;;  %2736 = vmatmul.msk.bf16.gmra.mxu1 %vm883_vm2, %v2833_v9  ;;  %v1682_v31 = vmax.f32 %v1241_v23, 0.0  ;;  %v1730_v32 = vmax.f32 %v1361_v24, 0.0  ;;  %v2811_v9 = vld [vmem:[%s3548_s30 + $0xa8] sm:$0xff] }
 0x155   : > { %v3183_v21 = vpack.c.bf16 %v1777_v19, %v1776_v18  ;;  %2760 = vmatmul.msk.bf16.gmra.mxu2 %vm883_vm2, %v2857_v15  ;;  %v3303_v22 = vpack.c.bf16 %v1825_v20, %v1824_v12  ;;  %2784 = vmatmul.msk.bf16.gmra.mxu3 %vm883_vm2, %v2881_v17  ;;  %v3889_v17 = vld [vmem:[%s4047_s2] ss:$0 sm:$0xff]  ;;  %v2883_v19 = vld [vmem:[%s3548_s30 + $0x2e8] sm:$0xff] }
 0x157   : > { %3422 = vst [vmem:[%s3636_s8 + $0x1d0] sm:$0xff] %v3183_v21  }
 0x158   : > { %v1480_v25 = vpop.f32.mrf.mxu2  ;;  %3446 = vst [vmem:[%s3636_s8 + $0x290] sm:$0xff] %v3303_v22   ;;  %v1600_v26 = vpop.f32.mrf.mxu3 }
 0x159   : > { %v1242_v27 = vpop.f32.mrf.mxu0  ;;  %v1362_v28 = vpop.f32.mrf.mxu1  ;;  %v1601_v35 = vadd.f32 %v3621_v49, %v1600_v26  ;;  %v1481_v38 = vadd.f32 %v3621_v49, %v1480_v25 }
 0x15a   : > { %v1243_v29 = vadd.f32 %v3621_v49, %v1242_v27  ;;  %v1363_v30 = vadd.f32 %v3621_v49, %v1362_v28 }
 0x15b   : > { %v1826_v44 = vmax.f32 %v1601_v35, 0.0  ;;  %v1778_v51 = vmax.f32 %v1481_v38, 0.0 }
 0x15c   : > { %v1683_v33 = vmax.f32 %v1243_v29, 0.0  ;;  %v1731_v34 = vmax.f32 %v1363_v30, 0.0 }
 0x15e   : > { %v2948_v36 = vpack.c.bf16 %v1683_v33, %v1682_v31  ;;  %v3068_v37 = vpack.c.bf16 %v1731_v34, %v1730_v32 }
 0x160   : > { %3375 = vst [vmem:[%s3636_s8 + $0x58] sm:$0xff] %v2948_v36   ;;  %v1482_v39 = vpop.f32.mrf.mxu2  ;;  %v1602_v42 = vpop.f32.mrf.mxu3 }
 0x161   : > { %3399 = vst [vmem:[%s3636_s8 + $0x118] sm:$0xff] %v3068_v37   ;;  %v1483_v43 = vadd.f32 %v3621_v49, %v1482_v39  ;;  %v1245_v45 = vpop.f32.mrf.mxu0  ;;  %v1365_v46 = vpop.f32.mrf.mxu1  ;;  %v1603_v48 = vadd.f32 %v3621_v49, %v1602_v42  ;;  %v2836_v42 = vld [vmem:[%s3548_s30 + $0x170] sm:$0xff] }
 0x162   : > { %v1246_v56 = vadd.f32 %v3621_v49, %v1245_v45  ;;  %v1366_v57 = vadd.f32 %v3621_v49, %v1365_v46 }
 0x163   : > { %v1779_v52 = vmax.f32 %v1483_v43, 0.0  ;;  %v1827_v53 = vmax.f32 %v1603_v48, 0.0  ;;  %v2860_v48 = vld [vmem:[%s3548_s30 + $0x230] sm:$0xff] }
 0x164   : > { %2713 = vmatmul.msk.bf16.gmra.mxu0 %vm883_vm2, %v2810_v40  ;;  %2737 = vmatmul.msk.bf16.gmra.mxu1 %vm883_vm2, %v2834_v41  ;;  %v1684_v0 = vmax.f32 %v1246_v56, 0.0  ;;  %v1732_v1 = vmax.f32 %v1366_v57, 0.0  ;;  %v2812_v41 = vld [vmem:[%s3548_s30 + $0xb0] sm:$0xff] }
 0x165   : > { %v3188_v54 = vpack.c.bf16 %v1779_v52, %v1778_v51  ;;  %2761 = vmatmul.msk.bf16.gmra.mxu2 %vm883_vm2, %v2858_v47  ;;  %v3308_v55 = vpack.c.bf16 %v1827_v53, %v1826_v44  ;;  %2785 = vmatmul.msk.bf16.gmra.mxu3 %vm883_vm2, %v2882_v50  ;;  %v2884_v51 = vld [vmem:[%s3548_s30 + $0x2f0] sm:$0xff] }
 0x167   : > { %3423 = vst [vmem:[%s3636_s8 + $0x1d8] sm:$0xff] %v3188_v54  }
 0x168   : > { %v1485_v58 = vpop.f32.mrf.mxu2  ;;  %3447 = vst [vmem:[%s3636_s8 + $0x298] sm:$0xff] %v3308_v55   ;;  %v1605_v59 = vpop.f32.mrf.mxu3 }
 0x169   : > { %v1247_v60 = vpop.f32.mrf.mxu0  ;;  %v1367_v61 = vpop.f32.mrf.mxu1  ;;  %v1606_v4 = vadd.f32 %v3621_v49, %v1605_v59  ;;  %v1486_v7 = vadd.f32 %v3621_v49, %v1485_v58 }
 0x16a   : > { %v1248_v62 = vadd.f32 %v3621_v49, %v1247_v60  ;;  %v1368_v63 = vadd.f32 %v3621_v49, %v1367_v61 }
 0x16b   : > { %v1828_v13 = vmax.f32 %v1606_v4, 0.0  ;;  %v1780_v20 = vmax.f32 %v1486_v7, 0.0 }
 0x16c   : > { %v1685_v2 = vmax.f32 %v1248_v62, 0.0  ;;  %v1733_v3 = vmax.f32 %v1368_v63, 0.0 }
 0x16e   : > { %v2953_v5 = vpack.c.bf16 %v1685_v2, %v1684_v0  ;;  %v3073_v6 = vpack.c.bf16 %v1733_v3, %v1732_v1 }
 0x170   : > { %3376 = vst [vmem:[%s3636_s8 + $0x60] sm:$0xff] %v2953_v5   ;;  %v1487_v8 = vpop.f32.mrf.mxu2  ;;  %v1607_v11 = vpop.f32.mrf.mxu3 }
 0x171   : > { %3400 = vst [vmem:[%s3636_s8 + $0x120] sm:$0xff] %v3073_v6   ;;  %v1488_v12 = vadd.f32 %v3621_v49, %v1487_v8  ;;  %v1250_v14 = vpop.f32.mrf.mxu0  ;;  %v1370_v15 = vpop.f32.mrf.mxu1  ;;  %v1608_v18 = vadd.f32 %v3889_v17, %v1607_v11  ;;  %v2837_v11 = vld [vmem:[%s3548_s30 + $0x178] sm:$0xff] }
 0x172   : > { %v1251_v24 = vadd.f32 %v3889_v17, %v1250_v14  ;;  %v1371_v25 = vadd.f32 %v3889_v17, %v1370_v15 }
 0x173   : > { %v1781_v21 = vmax.f32 %v1488_v12, 0.0  ;;  %v1829_v22 = vmax.f32 %v1608_v18, 0.0  ;;  %v2861_v18 = vld [vmem:[%s3548_s30 + $0x238] sm:$0xff] }
 0x174   : > { %2714 = vmatmul.msk.bf16.gmra.mxu0 %vm883_vm2, %v2811_v9  ;;  %2738 = vmatmul.msk.bf16.gmra.mxu1 %vm883_vm2, %v2835_v10  ;;  %v1686_v32 = vmax.f32 %v1251_v24, 0.0  ;;  %v1734_v33 = vmax.f32 %v1371_v25, 0.0  ;;  %v2813_v10 = vld [vmem:[%s3548_s30 + $0xb8] sm:$0xff] }
 0x175   : > { %v3193_v49 = vpack.c.bf16 %v1781_v21, %v1780_v20  ;;  %2762 = vmatmul.msk.bf16.gmra.mxu2 %vm883_vm2, %v2859_v16  ;;  %v3313_v23 = vpack.c.bf16 %v1829_v22, %v1828_v13  ;;  %2786 = vmatmul.msk.bf16.gmra.mxu3 %vm883_vm2, %v2883_v19 }
 0x177   : > { %3424 = vst [vmem:[%s3636_s8 + $0x1e0] sm:$0xff] %v3193_v49  }
 0x178   : > { %v1490_v26 = vpop.f32.mrf.mxu2  ;;  %3448 = vst [vmem:[%s3636_s8 + $0x2a0] sm:$0xff] %v3313_v23   ;;  %v1610_v27 = vpop.f32.mrf.mxu3 }
 0x179   : > { %v1252_v28 = vpop.f32.mrf.mxu0  ;;  %v1372_v29 = vpop.f32.mrf.mxu1  ;;  %v1611_v36 = vadd.f32 %v3889_v17, %v1610_v27  ;;  %v1491_v39 = vadd.f32 %v3889_v17, %v1490_v26 }
 0x17a   : > { %v1253_v30 = vadd.f32 %v3889_v17, %v1252_v28  ;;  %v1373_v31 = vadd.f32 %v3889_v17, %v1372_v29 }
 0x17b   : > { %v1830_v45 = vmax.f32 %v1611_v36, 0.0  ;;  %v1782_v52 = vmax.f32 %v1491_v39, 0.0 }
 0x17c   : > { %v1687_v34 = vmax.f32 %v1253_v30, 0.0  ;;  %v1735_v35 = vmax.f32 %v1373_v31, 0.0 }
 0x17e   : > { %v2958_v37 = vpack.c.bf16 %v1687_v34, %v1686_v32  ;;  %v3078_v38 = vpack.c.bf16 %v1735_v35, %v1734_v33 }
 0x180   : > { %3377 = vst [vmem:[%s3636_s8 + $0x68] sm:$0xff] %v2958_v37   ;;  %v1492_v40 = vpop.f32.mrf.mxu2  ;;  %v1612_v43 = vpop.f32.mrf.mxu3 }
 0x181   : > { %3401 = vst [vmem:[%s3636_s8 + $0x128] sm:$0xff] %v3078_v38   ;;  %v1493_v44 = vadd.f32 %v3889_v17, %v1492_v40  ;;  %v1255_v46 = vpop.f32.mrf.mxu0  ;;  %v1375_v47 = vpop.f32.mrf.mxu1  ;;  %v1613_v50 = vadd.f32 %v3889_v17, %v1612_v43 }
 0x182   : > { %v1256_v57 = vadd.f32 %v3889_v17, %v1255_v46  ;;  %v1376_v58 = vadd.f32 %v3889_v17, %v1375_v47 }
 0x183   : > { %v1783_v53 = vmax.f32 %v1493_v44, 0.0  ;;  %v1831_v54 = vmax.f32 %v1613_v50, 0.0 }
 0x184   : > { %2715 = vmatmul.msk.bf16.gmra.mxu0 %vm883_vm2, %v2812_v41  ;;  %2739 = vmatmul.msk.bf16.gmra.mxu1 %vm883_vm2, %v2836_v42  ;;  %v1688_v1 = vmax.f32 %v1256_v57, 0.0  ;;  %v1736_v2 = vmax.f32 %v1376_v58, 0.0 }
 0x185   : > { %v3198_v55 = vpack.c.bf16 %v1783_v53, %v1782_v52  ;;  %2763 = vmatmul.msk.bf16.gmra.mxu2 %vm883_vm2, %v2860_v48  ;;  %v3318_v56 = vpack.c.bf16 %v1831_v54, %v1830_v45  ;;  %2787 = vmatmul.msk.bf16.gmra.mxu3 %vm883_vm2, %v2884_v51 }
 0x187   : > { %3425 = vst [vmem:[%s3636_s8 + $0x1e8] sm:$0xff] %v3198_v55  }
 0x188   : > { %v1495_v59 = vpop.f32.mrf.mxu2  ;;  %3449 = vst [vmem:[%s3636_s8 + $0x2a8] sm:$0xff] %v3318_v56   ;;  %v1615_v60 = vpop.f32.mrf.mxu3 }
 0x189   : > { %v1257_v61 = vpop.f32.mrf.mxu0  ;;  %v1377_v62 = vpop.f32.mrf.mxu1  ;;  %v1616_v5 = vadd.f32 %v3889_v17, %v1615_v60  ;;  %v1496_v8 = vadd.f32 %v3889_v17, %v1495_v59 }
 0x18a   : > { %v1258_v63 = vadd.f32 %v3889_v17, %v1257_v61  ;;  %v1378_v0 = vadd.f32 %v3889_v17, %v1377_v62 }
 0x18b   : > { %v1832_v14 = vmax.f32 %v1616_v5, 0.0  ;;  %v1784_v20 = vmax.f32 %v1496_v8, 0.0 }
 0x18c   : > { %v1689_v3 = vmax.f32 %v1258_v63, 0.0  ;;  %v1737_v4 = vmax.f32 %v1378_v0, 0.0 }
 0x18e   : > { %v2963_v6 = vpack.c.bf16 %v1689_v3, %v1688_v1  ;;  %v3083_v7 = vpack.c.bf16 %v1737_v4, %v1736_v2 }
 0x190   : > { %3378 = vst [vmem:[%s3636_s8 + $0x70] sm:$0xff] %v2963_v6   ;;  %v1497_v9 = vpop.f32.mrf.mxu2  ;;  %v1617_v12 = vpop.f32.mrf.mxu3 }
 0x191   : > { %3402 = vst [vmem:[%s3636_s8 + $0x130] sm:$0xff] %v3083_v7   ;;  %v1498_v13 = vadd.f32 %v3889_v17, %v1497_v9  ;;  %v1260_v15 = vpop.f32.mrf.mxu0  ;;  %v1380_v16 = vpop.f32.mrf.mxu1  ;;  %v1618_v19 = vadd.f32 %v3889_v17, %v1617_v12 }
 0x192   : > { %v1261_v24 = vadd.f32 %v3889_v17, %v1260_v15  ;;  %v1381_v25 = vadd.f32 %v3889_v17, %v1380_v16 }
 0x193   : > { %v1785_v21 = vmax.f32 %v1498_v13, 0.0  ;;  %v1833_v22 = vmax.f32 %v1618_v19, 0.0 }
 0x194   : > { %2716 = vmatmul.msk.bf16.gmra.mxu0 %vm883_vm2, %v2813_v10  ;;  %2740 = vmatmul.msk.bf16.gmra.mxu1 %vm883_vm2, %v2837_v11  ;;  %v1690_v32 = vmax.f32 %v1261_v24, 0.0  ;;  %v1738_v33 = vmax.f32 %v1381_v25, 0.0 }
 0x195   : > { %v3203_v49 = vpack.c.bf16 %v1785_v21, %v1784_v20  ;;  %2764 = vmatmul.msk.bf16.gmra.mxu2 %vm883_vm2, %v2861_v18  ;;  %v3323_v23 = vpack.c.bf16 %v1833_v22, %v1832_v14 }
 0x197   : > { %3426 = vst [vmem:[%s3636_s8 + $0x1f0] sm:$0xff] %v3203_v49  }
 0x198   : > { %v1500_v26 = vpop.f32.mrf.mxu2  ;;  %3450 = vst [vmem:[%s3636_s8 + $0x2b0] sm:$0xff] %v3323_v23   ;;  %v1620_v27 = vpop.f32.mrf.mxu3 }
 0x199   : > { %v1262_v28 = vpop.f32.mrf.mxu0  ;;  %v1382_v29 = vpop.f32.mrf.mxu1  ;;  %v1621_v36 = vadd.f32 %v3889_v17, %v1620_v27  ;;  %v1501_v39 = vadd.f32 %v3889_v17, %v1500_v26 }
 0x19a   : > { %v1263_v30 = vadd.f32 %v3889_v17, %v1262_v28  ;;  %v1383_v31 = vadd.f32 %v3889_v17, %v1382_v29 }
 0x19b   : > { %v1834_v43 = vmax.f32 %v1621_v36, 0.0  ;;  %v1786_v47 = vmax.f32 %v1501_v39, 0.0 }
 0x19c   : > { %v1691_v34 = vmax.f32 %v1263_v30, 0.0  ;;  %v1739_v35 = vmax.f32 %v1383_v31, 0.0 }
 0x19e   : > { %v2968_v37 = vpack.c.bf16 %v1691_v34, %v1690_v32  ;;  %v3088_v38 = vpack.c.bf16 %v1739_v35, %v1738_v33 }
 0x1a0   : > { %3379 = vst [vmem:[%s3636_s8 + $0x78] sm:$0xff] %v2968_v37   ;;  %v1502_v40 = vpop.f32.mrf.mxu2  ;;  %v1622_v41 = vpop.f32.mrf.mxu3 }
 0x1a1   : > { %3403 = vst [vmem:[%s3636_s8 + $0x138] sm:$0xff] %v3088_v38   ;;  %v1503_v42 = vadd.f32 %v3889_v17, %v1502_v40  ;;  %v1265_v44 = vpop.f32.mrf.mxu0  ;;  %v1385_v45 = vpop.f32.mrf.mxu1  ;;  %v1623_v46 = vadd.f32 %v3889_v17, %v1622_v41 }
 0x1a2   : > { %v1266_v53 = vadd.f32 %v3889_v17, %v1265_v44  ;;  %v1386_v54 = vadd.f32 %v3889_v17, %v1385_v45 }
 0x1a3   : > { %v1787_v48 = vmax.f32 %v1503_v42, 0.0  ;;  %v1835_v50 = vmax.f32 %v1623_v46, 0.0 }
 0x1a4   : > { %v1692_v61 = vmax.f32 %v1266_v53, 0.0  ;;  %v1740_v62 = vmax.f32 %v1386_v54, 0.0 }
 0x1a5   : > { %v3208_v51 = vpack.c.bf16 %v1787_v48, %v1786_v47  ;;  %v3328_v52 = vpack.c.bf16 %v1835_v50, %v1834_v43 }
 0x1a7   : > { %3427 = vst [vmem:[%s3636_s8 + $0x1f8] sm:$0xff] %v3208_v51  }
 0x1a8   : > { %v1505_v55 = vpop.f32.mrf.mxu2  ;;  %3451 = vst [vmem:[%s3636_s8 + $0x2b8] sm:$0xff] %v3328_v52   ;;  %v1625_v56 = vpop.f32.mrf.mxu3 }
 0x1a9   : > { %v1267_v57 = vpop.f32.mrf.mxu0  ;;  %v1387_v58 = vpop.f32.mrf.mxu1  ;;  %v1626_v1 = vadd.f32 %v3889_v17, %v1625_v56  ;;  %v1506_v4 = vadd.f32 %v3889_v17, %v1505_v55 }
 0x1aa   : > { %v1268_v59 = vadd.f32 %v3889_v17, %v1267_v57  ;;  %v1388_v60 = vadd.f32 %v3889_v17, %v1387_v58 }
 0x1ab   : > { %v1836_v8 = vmax.f32 %v1626_v1, 0.0  ;;  %v1788_v12 = vmax.f32 %v1506_v4, 0.0 }
 0x1ac   : > { %v1693_v63 = vmax.f32 %v1268_v59, 0.0  ;;  %v1741_v0 = vmax.f32 %v1388_v60, 0.0 }
 0x1ae   : > { %v2973_v2 = vpack.c.bf16 %v1693_v63, %v1692_v61  ;;  %v3093_v3 = vpack.c.bf16 %v1741_v0, %v1740_v62 }
 0x1b0   : > { %3380 = vst [vmem:[%s3636_s8 + $0x80] sm:$0xff] %v2973_v2   ;;  %v1507_v5 = vpop.f32.mrf.mxu2  ;;  %v1627_v6 = vpop.f32.mrf.mxu3 }
 0x1b1   : > { %3404 = vst [vmem:[%s3636_s8 + $0x140] sm:$0xff] %v3093_v3   ;;  %v1508_v7 = vadd.f32 %v3889_v17, %v1507_v5  ;;  %v1270_v9 = vpop.f32.mrf.mxu0  ;;  %v1390_v10 = vpop.f32.mrf.mxu1  ;;  %v1628_v11 = vadd.f32 %v3889_v17, %v1627_v6 }
 0x1b2   : > { %v1271_v18 = vadd.f32 %v3889_v17, %v1270_v9  ;;  %v1391_v19 = vadd.f32 %v3889_v17, %v1390_v10 }
 0x1b3   : > { %v1789_v13 = vmax.f32 %v1508_v7, 0.0  ;;  %v1837_v14 = vmax.f32 %v1628_v11, 0.0 }
 0x1b4   : > { %v1694_v25 = vmax.f32 %v1271_v18, 0.0  ;;  %v1742_v26 = vmax.f32 %v1391_v19, 0.0 }
 0x1b5   : > { %v3213_v15 = vpack.c.bf16 %v1789_v13, %v1788_v12  ;;  %v3333_v16 = vpack.c.bf16 %v1837_v14, %v1836_v8 }
 0x1b7   : > { %3428 = vst [vmem:[%s3636_s8 + $0x200] sm:$0xff] %v3213_v15  }
 0x1b8   : > { %v1510_v20 = vpop.f32.mrf.mxu2  ;;  %3452 = vst [vmem:[%s3636_s8 + $0x2c0] sm:$0xff] %v3333_v16   ;;  %v1630_v21 = vpop.f32.mrf.mxu3 }
 0x1b9   : > { %v1272_v22 = vpop.f32.mrf.mxu0  ;;  %v1392_v49 = vpop.f32.mrf.mxu1  ;;  %v1631_v29 = vadd.f32 %v3889_v17, %v1630_v21  ;;  %v1511_v32 = vadd.f32 %v3889_v17, %v1510_v20 }
 0x1ba   : > { %v1273_v23 = vadd.f32 %v3889_v17, %v1272_v22  ;;  %v1393_v24 = vadd.f32 %v3889_v17, %v1392_v49 }
 0x1bb   : > { %v1838_v36 = vmax.f32 %v1631_v29, 0.0  ;;  %v1790_v40 = vmax.f32 %v1511_v32, 0.0 }
 0x1bc   : > { %v1695_v27 = vmax.f32 %v1273_v23, 0.0  ;;  %v1743_v28 = vmax.f32 %v1393_v24, 0.0 }
 0x1be   : > { %v2978_v30 = vpack.c.bf16 %v1695_v27, %v1694_v25  ;;  %v3098_v31 = vpack.c.bf16 %v1743_v28, %v1742_v26 }
 0x1c0   : > { %3381 = vst [vmem:[%s3636_s8 + $0x88] sm:$0xff] %v2978_v30   ;;  %v1512_v33 = vpop.f32.mrf.mxu2  ;;  %v1632_v34 = vpop.f32.mrf.mxu3 }
 0x1c1   : > { %3405 = vst [vmem:[%s3636_s8 + $0x148] sm:$0xff] %v3098_v31   ;;  %v1513_v35 = vadd.f32 %v3889_v17, %v1512_v33  ;;  %v1275_v37 = vpop.f32.mrf.mxu0  ;;  %v1395_v38 = vpop.f32.mrf.mxu1  ;;  %v1633_v39 = vadd.f32 %v3889_v17, %v1632_v34 }
 0x1c2   : > { %v1276_v45 = vadd.f32 %v3889_v17, %v1275_v37  ;;  %v1396_v46 = vadd.f32 %v3889_v17, %v1395_v38 }
 0x1c3   : > { %v1791_v41 = vmax.f32 %v1513_v35, 0.0  ;;  %v1839_v42 = vmax.f32 %v1633_v39, 0.0 }
 0x1c4   : > { %v1696_v54 = vmax.f32 %v1276_v45, 0.0  ;;  %v1744_v55 = vmax.f32 %v1396_v46, 0.0 }
 0x1c5   : > { %v3218_v43 = vpack.c.bf16 %v1791_v41, %v1790_v40  ;;  %v3338_v44 = vpack.c.bf16 %v1839_v42, %v1838_v36 }
 0x1c7   : > { %3429 = vst [vmem:[%s3636_s8 + $0x208] sm:$0xff] %v3218_v43  }
 0x1c8   : > { %v1515_v47 = vpop.f32.mrf.mxu2  ;;  %3453 = vst [vmem:[%s3636_s8 + $0x2c8] sm:$0xff] %v3338_v44   ;;  %v1635_v48 = vpop.f32.mrf.mxu3 }
 0x1c9   : > { %v1277_v50 = vpop.f32.mrf.mxu0  ;;  %v1397_v51 = vpop.f32.mrf.mxu1  ;;  %v1636_v58 = vadd.f32 %v3889_v17, %v1635_v48  ;;  %v1516_v61 = vadd.f32 %v3889_v17, %v1515_v47 }
 0x1ca   : > { %v1278_v52 = vadd.f32 %v3889_v17, %v1277_v50  ;;  %v1398_v53 = vadd.f32 %v3889_v17, %v1397_v51 }
 0x1cb   : > { %v1840_v1 = vmax.f32 %v1636_v58, 0.0  ;;  %v1792_v5 = vmax.f32 %v1516_v61, 0.0 }
 0x1cc   : > { %v1697_v56 = vmax.f32 %v1278_v52, 0.0  ;;  %v1745_v57 = vmax.f32 %v1398_v53, 0.0 }
 0x1ce   : > { %v2983_v59 = vpack.c.bf16 %v1697_v56, %v1696_v54  ;;  %v3103_v60 = vpack.c.bf16 %v1745_v57, %v1744_v55 }
 0x1d0   : > { %3382 = vst [vmem:[%s3636_s8 + $0x90] sm:$0xff] %v2983_v59   ;;  %v1517_v62 = vpop.f32.mrf.mxu2  ;;  %v1637_v63 = vpop.f32.mrf.mxu3 }
 0x1d1   : > { %3406 = vst [vmem:[%s3636_s8 + $0x150] sm:$0xff] %v3103_v60   ;;  %v1518_v0 = vadd.f32 %v3889_v17, %v1517_v62  ;;  %v1280_v2 = vpop.f32.mrf.mxu0  ;;  %v1400_v3 = vpop.f32.mrf.mxu1  ;;  %v1638_v4 = vadd.f32 %v3889_v17, %v1637_v63 }
 0x1d2   : > { %v1281_v10 = vadd.f32 %v3889_v17, %v1280_v2  ;;  %v1401_v11 = vadd.f32 %v3889_v17, %v1400_v3 }
 0x1d3   : > { %v1793_v6 = vmax.f32 %v1518_v0, 0.0  ;;  %v1841_v7 = vmax.f32 %v1638_v4, 0.0 }
 0x1d4   : > { %v1698_v19 = vmax.f32 %v1281_v10, 0.0  ;;  %v1746_v20 = vmax.f32 %v1401_v11, 0.0 }
 0x1d5   : > { %v3223_v8 = vpack.c.bf16 %v1793_v6, %v1792_v5  ;;  %v3343_v9 = vpack.c.bf16 %v1841_v7, %v1840_v1 }
 0x1d7   : > { %3430 = vst [vmem:[%s3636_s8 + $0x210] sm:$0xff] %v3223_v8  }
 0x1d8   : > { %v1520_v12 = vpop.f32.mrf.mxu2  ;;  %3454 = vst [vmem:[%s3636_s8 + $0x2d0] sm:$0xff] %v3343_v9   ;;  %v1640_v13 = vpop.f32.mrf.mxu3 }
 0x1d9   : > { %v1282_v14 = vpop.f32.mrf.mxu0  ;;  %v1402_v15 = vpop.f32.mrf.mxu1  ;;  %v1641_v49 = vadd.f32 %v3889_v17, %v1640_v13  ;;  %v1521_v25 = vadd.f32 %v3889_v17, %v1520_v12 }
 0x1da   : > { %v1283_v16 = vadd.f32 %v3889_v17, %v1282_v14  ;;  %v1403_v18 = vadd.f32 %v3889_v17, %v1402_v15 }
 0x1db   : > { %v1842_v29 = vmax.f32 %v1641_v49, 0.0  ;;  %v1794_v33 = vmax.f32 %v1521_v25, 0.0 }
 0x1dc   : > { %v1699_v21 = vmax.f32 %v1283_v16, 0.0  ;;  %v1747_v22 = vmax.f32 %v1403_v18, 0.0 }
 0x1de   : > { %v2988_v23 = vpack.c.bf16 %v1699_v21, %v1698_v19  ;;  %v3108_v24 = vpack.c.bf16 %v1747_v22, %v1746_v20 }
 0x1e0   : > { %3383 = vst [vmem:[%s3636_s8 + $0x98] sm:$0xff] %v2988_v23   ;;  %v1522_v26 = vpop.f32.mrf.mxu2  ;;  %v1642_v27 = vpop.f32.mrf.mxu3 }
 0x1e1   : > { %3407 = vst [vmem:[%s3636_s8 + $0x158] sm:$0xff] %v3108_v24   ;;  %v1523_v28 = vadd.f32 %v3889_v17, %v1522_v26  ;;  %v1285_v30 = vpop.f32.mrf.mxu0  ;;  %v1405_v31 = vpop.f32.mrf.mxu1  ;;  %v1643_v32 = vadd.f32 %v3889_v17, %v1642_v27 }
 0x1e2   : > { %v1286_v38 = vadd.f32 %v3889_v17, %v1285_v30  ;;  %v1406_v39 = vadd.f32 %v3889_v17, %v1405_v31 }
 0x1e3   : > { %v1795_v34 = vmax.f32 %v1523_v28, 0.0  ;;  %v1843_v35 = vmax.f32 %v1643_v32, 0.0 }
 0x1e4   : > { %v1700_v46 = vmax.f32 %v1286_v38, 0.0  ;;  %v1748_v47 = vmax.f32 %v1406_v39, 0.0 }
 0x1e5   : > { %v3228_v36 = vpack.c.bf16 %v1795_v34, %v1794_v33  ;;  %v3348_v37 = vpack.c.bf16 %v1843_v35, %v1842_v29 }
 0x1e7   : > { %3431 = vst [vmem:[%s3636_s8 + $0x218] sm:$0xff] %v3228_v36  }
 0x1e8   : > { %v1525_v40 = vpop.f32.mrf.mxu2  ;;  %3455 = vst [vmem:[%s3636_s8 + $0x2d8] sm:$0xff] %v3348_v37   ;;  %v1645_v41 = vpop.f32.mrf.mxu3 }
 0x1e9   : > { %v1287_v42 = vpop.f32.mrf.mxu0  ;;  %v1407_v43 = vpop.f32.mrf.mxu1  ;;  %v1646_v51 = vadd.f32 %v3889_v17, %v1645_v41  ;;  %v1526_v54 = vadd.f32 %v3889_v17, %v1525_v40 }
 0x1ea   : > { %v1288_v44 = vadd.f32 %v3889_v17, %v1287_v42  ;;  %v1408_v45 = vadd.f32 %v3889_v17, %v1407_v43 }
 0x1eb   : > { %v1844_v58 = vmax.f32 %v1646_v51, 0.0  ;;  %v1796_v62 = vmax.f32 %v1526_v54, 0.0 }
 0x1ec   : > { %v1701_v48 = vmax.f32 %v1288_v44, 0.0  ;;  %v1749_v50 = vmax.f32 %v1408_v45, 0.0 }
 0x1ee   : > { %v2993_v52 = vpack.c.bf16 %v1701_v48, %v1700_v46  ;;  %v3113_v53 = vpack.c.bf16 %v1749_v50, %v1748_v47 }
 0x1f0   : > { %3384 = vst [vmem:[%s3636_s8 + $0xa0] sm:$0xff] %v2993_v52   ;;  %v1527_v55 = vpop.f32.mrf.mxu2  ;;  %v1647_v56 = vpop.f32.mrf.mxu3 }
 0x1f1   : > { %3408 = vst [vmem:[%s3636_s8 + $0x160] sm:$0xff] %v3113_v53   ;;  %v1528_v57 = vadd.f32 %v3889_v17, %v1527_v55  ;;  %v1290_v59 = vpop.f32.mrf.mxu0  ;;  %v1410_v60 = vpop.f32.mrf.mxu1  ;;  %v1648_v61 = vadd.f32 %v3889_v17, %v1647_v56 }
 0x1f2   : > { %v1291_v3 = vadd.f32 %v3889_v17, %v1290_v59  ;;  %v1411_v4 = vadd.f32 %v3889_v17, %v1410_v60 }
 0x1f3   : > { %v1797_v63 = vmax.f32 %v1528_v57, 0.0  ;;  %v1845_v0 = vmax.f32 %v1648_v61, 0.0 }
 0x1f4   : > { %v1702_v11 = vmax.f32 %v1291_v3, 0.0  ;;  %v1750_v12 = vmax.f32 %v1411_v4, 0.0 }
 0x1f5   : > { %v3233_v1 = vpack.c.bf16 %v1797_v63, %v1796_v62  ;;  %v3353_v2 = vpack.c.bf16 %v1845_v0, %v1844_v58 }
 0x1f7   : > { %3432 = vst [vmem:[%s3636_s8 + $0x220] sm:$0xff] %v3233_v1  }
 0x1f8   : > { %v1530_v5 = vpop.f32.mrf.mxu2  ;;  %3456 = vst [vmem:[%s3636_s8 + $0x2e0] sm:$0xff] %v3353_v2   ;;  %v1650_v6 = vpop.f32.mrf.mxu3 }
 0x1f9   : > { %v1292_v7 = vpop.f32.mrf.mxu0  ;;  %v1412_v8 = vpop.f32.mrf.mxu1  ;;  %v1651_v15 = vadd.f32 %v3889_v17, %v1650_v6  ;;  %v1531_v19 = vadd.f32 %v3889_v17, %v1530_v5 }
 0x1fa   : > { %v1293_v9 = vadd.f32 %v3889_v17, %v1292_v7  ;;  %v1413_v10 = vadd.f32 %v3889_v17, %v1412_v8 }
 0x1fb   : > { %v1846_v49 = vmax.f32 %v1651_v15, 0.0  ;;  %v1798_v26 = vmax.f32 %v1531_v19, 0.0 }
 0x1fc   : > { %v1703_v13 = vmax.f32 %v1293_v9, 0.0  ;;  %v1751_v14 = vmax.f32 %v1413_v10, 0.0 }
 0x1fe   : > { %v2998_v16 = vpack.c.bf16 %v1703_v13, %v1702_v11  ;;  %v3118_v18 = vpack.c.bf16 %v1751_v14, %v1750_v12 }
 0x200   : > { %3385 = vst [vmem:[%s3636_s8 + $0xa8] sm:$0xff] %v2998_v16   ;;  %v1532_v20 = vpop.f32.mrf.mxu2  ;;  %v1652_v21 = vpop.f32.mrf.mxu3 }
 0x201   : > { %3409 = vst [vmem:[%s3636_s8 + $0x168] sm:$0xff] %v3118_v18   ;;  %v1533_v22 = vadd.f32 %v3889_v17, %v1532_v20  ;;  %v1295_v23 = vpop.f32.mrf.mxu0  ;;  %v1415_v24 = vpop.f32.mrf.mxu1  ;;  %v1653_v25 = vadd.f32 %v3889_v17, %v1652_v21 }
 0x202   : > { %v1296_v31 = vadd.f32 %v3889_v17, %v1295_v23  ;;  %v1416_v32 = vadd.f32 %v3889_v17, %v1415_v24 }
 0x203   : > { %v1799_v27 = vmax.f32 %v1533_v22, 0.0  ;;  %v1847_v28 = vmax.f32 %v1653_v25, 0.0 }
 0x204   : > { %v1704_v39 = vmax.f32 %v1296_v31, 0.0  ;;  %v1752_v40 = vmax.f32 %v1416_v32, 0.0 }
 0x205   : > { %v3238_v29 = vpack.c.bf16 %v1799_v27, %v1798_v26  ;;  %v3358_v30 = vpack.c.bf16 %v1847_v28, %v1846_v49 }
 0x207   : > { %3433 = vst [vmem:[%s3636_s8 + $0x228] sm:$0xff] %v3238_v29  }
 0x208   : > { %v1535_v33 = vpop.f32.mrf.mxu2  ;;  %3457 = vst [vmem:[%s3636_s8 + $0x2e8] sm:$0xff] %v3358_v30   ;;  %v1655_v34 = vpop.f32.mrf.mxu3 }
 0x209   : > { %v1297_v35 = vpop.f32.mrf.mxu0  ;;  %v1417_v36 = vpop.f32.mrf.mxu1  ;;  %v1656_v43 = vadd.f32 %v3889_v17, %v1655_v34  ;;  %v1536_v46 = vadd.f32 %v3889_v17, %v1535_v33 }
 0x20a   : > { %v1298_v37 = vadd.f32 %v3889_v17, %v1297_v35  ;;  %v1418_v38 = vadd.f32 %v3889_v17, %v1417_v36 }
 0x20b   : > { %v1848_v51 = vmax.f32 %v1656_v43, 0.0  ;;  %v1800_v55 = vmax.f32 %v1536_v46, 0.0 }
 0x20c   : > { %v1705_v41 = vmax.f32 %v1298_v37, 0.0  ;;  %v1753_v42 = vmax.f32 %v1418_v38, 0.0 }
 0x20e   : > { %v3003_v44 = vpack.c.bf16 %v1705_v41, %v1704_v39  ;;  %v3123_v45 = vpack.c.bf16 %v1753_v42, %v1752_v40 }
 0x210   : > { %3386 = vst [vmem:[%s3636_s8 + $0xb0] sm:$0xff] %v3003_v44   ;;  %v1537_v47 = vpop.f32.mrf.mxu2  ;;  %v1657_v48 = vpop.f32.mrf.mxu3 }
 0x211   : > { %3410 = vst [vmem:[%s3636_s8 + $0x170] sm:$0xff] %v3123_v45   ;;  %v1538_v50 = vadd.f32 %v3889_v17, %v1537_v47  ;;  %v1300_v52 = vpop.f32.mrf.mxu0  ;;  %v1420_v53 = vpop.f32.mrf.mxu1  ;;  %v1658_v54 = vadd.f32 %v3889_v17, %v1657_v48 }
 0x212   : > { %v1301_v60 = vadd.f32 %v3889_v17, %v1300_v52  ;;  %v1421_v61 = vadd.f32 %v3889_v17, %v1420_v53 }
 0x213   : > { %v1801_v56 = vmax.f32 %v1538_v50, 0.0  ;;  %v1849_v57 = vmax.f32 %v1658_v54, 0.0 }
 0x214   : > { %v1706_v3 = vmax.f32 %v1301_v60, 0.0  ;;  %v1754_v4 = vmax.f32 %v1421_v61, 0.0 }
 0x215   : > { %v3243_v58 = vpack.c.bf16 %v1801_v56, %v1800_v55  ;;  %v3363_v59 = vpack.c.bf16 %v1849_v57, %v1848_v51 }
 0x217   : > { %3434 = vst [vmem:[%s3636_s8 + $0x230] sm:$0xff] %v3243_v58  }
 0x218   : > { %v1540_v62 = vpop.f32.mrf.mxu2  ;;  %3458 = vst [vmem:[%s3636_s8 + $0x2f0] sm:$0xff] %v3363_v59  }
 0x219   : > { %v1302_v63 = vpop.f32.mrf.mxu0  ;;  %v1422_v0 = vpop.f32.mrf.mxu1  ;;  %v1541_v9 = vadd.f32 %v3889_v17, %v1540_v62 }
 0x21a   : > { %v1303_v1 = vadd.f32 %v3889_v17, %v1302_v63  ;;  %v1423_v2 = vadd.f32 %v3889_v17, %v1422_v0 }
 0x21b   : > { %v1802_v12 = vmax.f32 %v1541_v9, 0.0 }
 0x21c   : > { %v1707_v5 = vmax.f32 %v1303_v1, 0.0  ;;  %v1755_v6 = vmax.f32 %v1423_v2, 0.0 }
 0x21e   : > { %v3008_v7 = vpack.c.bf16 %v1707_v5, %v1706_v3  ;;  %v3128_v8 = vpack.c.bf16 %v1755_v6, %v1754_v4 }
 0x220   : > { %3387 = vst [vmem:[%s3636_s8 + $0xb8] sm:$0xff] %v3008_v7   ;;  %v1542_v10 = vpop.f32.mrf.mxu2 }
 0x221   : > { %3411 = vst [vmem:[%s3636_s8 + $0x178] sm:$0xff] %v3128_v8   ;;  %v1543_v11 = vadd.f32 %v3889_v17, %v1542_v10 }
 0x223   : > { %v1803_v13 = vmax.f32 %v1543_v11, 0.0 }
 0x225   : > { %v3248_v14 = vpack.c.bf16 %v1803_v13, %v1802_v12 }
 0x227   : > { %3435 = vst [vmem:[%s3636_s8 + $0x238] sm:$0xff] %v3248_v14  }
 0x228 PF: > { %s13_s12 = sadd.s32 1, %s3491_s12  }
 0x229   : > { %p10_p4 = scmp.ge.s32.totalorder %s13_s12, 6  }
 0x22b   :  { %12 = sbr.rel (!%p10_p4) target bundleno = 1 (0x1), region = 62 }

// kernel: pilotnet_forward.5
= control target key start
LH: loop header
LB: loop body
LE: loop exit
PB: predicated region body
PF: predicated region fallthrough
CT: control target
= control target key end

     0   :  { %s2151_s12 = smov 0   ;;  %s2590_s0 = inlined_call_operand.vmem [shape: bf16[1512,600], index: 0, kind: input, shape index: {}]   ;;  %s2591_s1 = inlined_call_operand.vmem [shape: bf16[600,128], index: 1, kind: input, shape index: {}]   ;;  %s2592_s2 = inlined_call_operand.vmem [shape: f32[1,128], index: 2, kind: input, shape index: {}]   ;;  %s2593_s3 = inlined_call_operand.vmem [shape: bf16[1512,128], index: 3, kind: output, shape index: {}]  }
   0x1 LB: > { %s1479_s13 = sadd.s32 4294967295, %s2129_s12   ;;  %p1483_p0 = scmp.ge.s32.totalorder %s2129_s12, 1  ;;  %s2129_s12 = sphi %s2151_s12, %s13_s12  }
   0x2   : > { %p139_p1 = scmp.lt.s32.totalorder %s2129_s12, 8 }
   0x4   : > { %p140_p2 = pnand %p1483_p0, %p139_p1 }
   0x5   : > { %s164_s20 = smul.u32 (!%p140_p2), 27, %s1479_s13 }
   0x6   : > { %143 = sbr.rel (%p140_p2) target bundleno = 459 (0x1cb), region = 32 }
   0x7   : > { %p165_p3 = scmp.lt.s32.totalorder (!%p140_p2), %s164_s20, 188 }
   0xb   : > { %v1982_v0 = vld [vmem:[%s2591_s1 + $0x38] sm:$0xff]  ;;  %v1981_v1 = vld [vmem:[%s2591_s1 + $0x30] sm:$0xff]  ;;  %v1980_v2 = vld [vmem:[%s2591_s1 + $0x28] sm:$0xff]  ;;  %s2595_s20 = smov (!%p165_p3, %s164_s20), 188  ;;  %vm948_vm0 = vcmask 1043456   ;;  %vm905_vm1 = vcmask 719872  }
   0xc   : > { %952 = vmatpush.bf16.msra.mxu0 %v1982_v0  ;;  %2089 = vmatpush.bf16.msra.mxu1 %v1982_v0  ;;  %v1979_v3 = vld [vmem:[%s2591_s1 + $0x20] sm:$0xff]  ;;  %v1978_v4 = vld [vmem:[%s2591_s1 + $0x18] sm:$0xff]  ;;  %v1977_v5 = vld [vmem:[%s2591_s1 + $0x10] sm:$0xff]  ;;  %s2113_s27 = smul.u32 20, %s2595_s20  ;;  %s1485_s24 = sshll.u32 %s2595_s20, 2 }
   0xd   : > { %2091 = vmatpush.bf16.msra.mxu3 %v1982_v0  ;;  %2090 = vmatpush.bf16.msra.mxu2 %v1982_v0  ;;  %v333_v6 = vld [vmem:[%s2591_s1 + $0x128] sm:$0xf]  ;;  %v1975_v9 = vld [vmem:[%s2591_s1] sm:$0xff]  ;;  %v1990_v17 = vld [vmem:[%s2591_s1 + $0x78] sm:$0xff]  ;;  %s2499_s20 = scalar_lea.vmem %s2593_s3, %s1485_s24 }
   0xe   : > { %v829_v7 = vunpack.c.l.b16 %v333_v6  ;;  %v1976_v8 = vld [vmem:[%s2591_s1 + $0x8] sm:$0xff]  ;;  %s2189_s7 = scalar_lea.vmem %s2590_s0, %s2113_s27  ;;  %v2006_v18 = vld [vmem:[%s2591_s1 + $0xf8] sm:$0xff]  ;;  %v1989_v25 = vld [vmem:[%s2591_s1 + $0x70] sm:$0xff] }
   0xf   : > { %v1488_v10 = vld [vmem:[%s2189_s7] sm:$0xf]  ;;  %v1912_v12 = vld [vmem:[%s2189_s7 + $0x10] sm:$0xf0]  ;;  %v1688_v15 = vld [vmem:[%s2189_s7 + $0x190] sm:$0xf] }
  0x10   : > { %953 = vmatpush.bf16.msra.mxu0 %v1981_v1  ;;  %2092 = vmatpush.bf16.msra.mxu1 %v1981_v1  ;;  %v867_v11 = vpack.c.b16 %v829_v7, %v829_v7  ;;  %v1568_v13 = vld [vmem:[%s2189_s7 + $0xa0] sm:$0xf]  ;;  %v1932_v14 = vld [vmem:[%s2189_s7 + $0xb0] sm:$0xf0]  ;;  %v1962_v16 = vld [vmem:[%s2189_s7 + $0x1a0] sm:$0xf0]  ;;  %v1489_v19 = vor.u32 %v1912_v12, %v1488_v10 }
  0x11   : > { %2094 = vmatpush.bf16.msra.mxu3 %v1981_v1  ;;  %2093 = vmatpush.bf16.msra.mxu2 %v1981_v1  ;;  %v1569_v20 = vor.u32 %v1932_v14, %v1568_v13  ;;  %v1689_v22 = vor.u32 %v1962_v16, %v1688_v15  ;;  %v1648_v23 = vld [vmem:[%s2189_s7 + $0x140] sm:$0xf]  ;;  %v1952_v24 = vld [vmem:[%s2189_s7 + $0x150] sm:$0xf0]  ;;  %v1998_v26 = vld [vmem:[%s2591_s1 + $0xb8] sm:$0xff] }
  0x12   : > { %v950_v21 = vsel %vm948_vm0, %v867_v11, 0  ;;  %v2005_v27 = vld [vmem:[%s2591_s1 + $0xf0] sm:$0xff]  ;;  %v2011_v28 = vld [vmem:[%s2591_s1 + $0x120] sm:$0xff]  ;;  %v1649_v29 = vor.u32 %v1952_v24, %v1648_v23  ;;  %v1988_v30 = vld [vmem:[%s2591_s1 + $0x68] sm:$0xff] }
  0x13   : > { %v1997_v31 = vld [vmem:[%s2591_s1 + $0xb0] sm:$0xff]  ;;  %v2004_v32 = vld [vmem:[%s2591_s1 + $0xe8] sm:$0xff]  ;;  %v2010_v33 = vld [vmem:[%s2591_s1 + $0x118] sm:$0xff] }
  0x14   : > { %954 = vmatpush.bf16.msra.mxu0 %v1980_v2  ;;  %2095 = vmatpush.bf16.msra.mxu1 %v1980_v2  ;;  %v1987_v34 = vld [vmem:[%s2591_s1 + $0x60] sm:$0xff]  ;;  %v1996_v35 = vld [vmem:[%s2591_s1 + $0xa8] sm:$0xff]  ;;  %v2009_v37 = vld [vmem:[%s2591_s1 + $0x110] sm:$0xff] }
  0x15   : > { %2097 = vmatpush.bf16.msra.mxu3 %v1980_v2  ;;  %2096 = vmatpush.bf16.msra.mxu2 %v1980_v2  ;;  %v2003_v36 = vld [vmem:[%s2591_s1 + $0xe0] sm:$0xff]  ;;  %v1508_v38 = vld [vmem:[%s2189_s7 + $0x28] sm:$0xf]  ;;  %v1917_v39 = vld [vmem:[%s2189_s7 + $0x38] sm:$0xf0] }
  0x16   : > { %v1588_v40 = vld [vmem:[%s2189_s7 + $0xc8] sm:$0xf]  ;;  %v1937_v41 = vld [vmem:[%s2189_s7 + $0xd8] sm:$0xf0]  ;;  %v1708_v42 = vld [vmem:[%s2189_s7 + $0x1b8] sm:$0xf]  ;;  %v1509_v47 = vor.u32 %v1917_v39, %v1508_v38 }
  0x17   : > { %v1967_v43 = vld [vmem:[%s2189_s7 + $0x1c8] sm:$0xf0]  ;;  %v1986_v44 = vld [vmem:[%s2591_s1 + $0x58] sm:$0xff]  ;;  %v1995_v45 = vld [vmem:[%s2591_s1 + $0xa0] sm:$0xff]  ;;  %v1589_v48 = vor.u32 %v1937_v41, %v1588_v40 }
  0x18   : > { %955 = vmatpush.bf16.msra.mxu0 %v1979_v3  ;;  %2098 = vmatpush.bf16.msra.mxu1 %v1979_v3  ;;  %v2002_v46 = vld [vmem:[%s2591_s1 + $0xd8] sm:$0xff]  ;;  %v1709_v49 = vor.u32 %v1967_v43, %v1708_v42  ;;  %v1668_v50 = vld [vmem:[%s2189_s7 + $0x168] sm:$0xf]  ;;  %v1985_v53 = vld [vmem:[%s2591_s1 + $0x50] sm:$0xff] }
  0x19   : > { %2100 = vmatpush.bf16.msra.mxu3 %v1979_v3  ;;  %2099 = vmatpush.bf16.msra.mxu2 %v1979_v3  ;;  %v1957_v51 = vld [vmem:[%s2189_s7 + $0x178] sm:$0xf0]  ;;  %v2001_v54 = vld [vmem:[%s2591_s1 + $0xd0] sm:$0xff]  ;;  %v2008_v56 = vld [vmem:[%s2591_s1 + $0x108] sm:$0xff] }
  0x1a   : > { %v1994_v52 = vld [vmem:[%s2591_s1 + $0x98] sm:$0xff]  ;;  %v1669_v55 = vor.u32 %v1957_v51, %v1668_v50  ;;  %v1993_v57 = vld [vmem:[%s2591_s1 + $0x90] sm:$0xff]  ;;  %v1984_v58 = vld [vmem:[%s2591_s1 + $0x48] sm:$0xff] }
  0x1b   : > { %v2000_v59 = vld [vmem:[%s2591_s1 + $0xc8] sm:$0xff]  ;;  %v2007_v60 = vld [vmem:[%s2591_s1 + $0x100] sm:$0xff]  ;;  %v1528_v0 = vld [vmem:[%s2189_s7 + $0x50] sm:$0xf] }
  0x1c   : > { %956 = vmatpush.bf16.msra.mxu0 %v1978_v4  ;;  %2101 = vmatpush.bf16.msra.mxu1 %v1978_v4  ;;  %v1992_v61 = vld [vmem:[%s2591_s1 + $0x88] sm:$0xff]  ;;  %v1983_v62 = vld [vmem:[%s2591_s1 + $0x40] sm:$0xff]  ;;  %v1608_v2 = vld [vmem:[%s2189_s7 + $0xf0] sm:$0xf] }
  0x1d   : > { %2103 = vmatpush.bf16.msra.mxu3 %v1978_v4  ;;  %2102 = vmatpush.bf16.msra.mxu2 %v1978_v4  ;;  %v1999_v63 = vld [vmem:[%s2591_s1 + $0xc0] sm:$0xff]  ;;  %v1496_v10 = vld [vmem:[%s2189_s7 + $0x8] sm:$0xf]  ;;  %v1913_v11 = vld [vmem:[%s2189_s7 + $0x18] sm:$0xf0] }
  0x1e   : > { %v1922_v1 = vld [vmem:[%s2189_s7 + $0x60] sm:$0xf0]  ;;  %v1728_v4 = vld [vmem:[%s2189_s7 + $0x1e0] sm:$0xf]  ;;  %v1497_v12 = vor.u32 %v1913_v11, %v1496_v10  ;;  %v2306_v13 = vld [vmem:[%s2189_s7 + $0x208] sm:$0xff] }
  0x1f   : > { %v1942_v3 = vld [vmem:[%s2189_s7 + $0x100] sm:$0xf0]  ;;  %v1529_v7 = vor.u32 %v1922_v1, %v1528_v0  ;;  %v1548_v14 = vld [vmem:[%s2189_s7 + $0x78] sm:$0xf]  ;;  %v1927_v15 = vld [vmem:[%s2189_s7 + $0x88] sm:$0xf0] }
  0x20   : > { %957 = vmatpush.bf16.msra.mxu0 %v1977_v5  ;;  %2104 = vmatpush.bf16.msra.mxu1 %v1977_v5  ;;  %v1991_v6 = vld [vmem:[%s2591_s1 + $0x80] sm:$0xff]  ;;  %v1628_v16 = vld [vmem:[%s2189_s7 + $0x118] sm:$0xf]  ;;  %v1919_v40 = vld [vmem:[%s2189_s7 + $0x48] sm:$0xf0] }
  0x21   : > { %2106 = vmatpush.bf16.msra.mxu3 %v1977_v5  ;;  %2105 = vmatpush.bf16.msra.mxu2 %v1977_v5  ;;  %v1972_v5 = vld [vmem:[%s2189_s7 + $0x1f0] sm:$0xf0]  ;;  %v1918_v23 = vld [vmem:[%s2189_s7 + $0x40] sm:$0xf0]  ;;  %v1510_v38 = vld [vmem:[%s2189_s7 + $0x3c] sm:$0xf0] }
  0x22   : > { %v1524_v39 = vld [vmem:[%s2189_s7 + $0x38] sm:$0xf]  ;;  %v1916_v41 = vld [vmem:[%s2189_s7 + $0x34] sm:$0xf]  ;;  %v1518_v42 = vld [vmem:[%s2189_s7 + $0x44] sm:$0xf0] }
  0x23   : > { %v1530_v50 = vld [vmem:[%s2189_s7 + $0x64] sm:$0xf0]  ;;  %v1544_v51 = vld [vmem:[%s2189_s7 + $0x60] sm:$0xf]  ;;  %v1929_v0 = vld [vmem:[%s2189_s7 + $0x98] sm:$0xf0] }
  0x24   : > { %958 = vmatpush.bf16.msra.mxu0 %v1976_v8  ;;  %2107 = vmatpush.bf16.msra.mxu1 %v1976_v8  ;;  %v1926_v1 = vld [vmem:[%s2189_s7 + $0x84] sm:$0xf]  ;;  %v1570_v10 = vld [vmem:[%s2189_s7 + $0xb4] sm:$0xf0]  ;;  %v1584_v11 = vld [vmem:[%s2189_s7 + $0xb0] sm:$0xf] }
  0x25   : > { %2109 = vmatpush.bf16.msra.mxu3 %v1976_v8  ;;  %2108 = vmatpush.bf16.msra.mxu2 %v1976_v8  ;;  %v1609_v8 = vor.u32 %v1942_v3, %v1608_v2  ;;  %v1558_v2 = vld [vmem:[%s2189_s7 + $0x94] sm:$0xf0] }
  0x28   : > { %959 = vmatpush.bf16.msra.mxu0 %v1975_v9  ;;  %2110 = vmatpush.bf16.msra.mxu1 %v1975_v9 }
  0x29   : > { %2112 = vmatpush.bf16.msra.mxu3 %v1975_v9  ;;  %2111 = vmatpush.bf16.msra.mxu2 %v1975_v9  ;;  %v1729_v9 = vor.u32 %v1972_v5, %v1728_v4  ;;  %v1561_v5 = vor.u32 %v1926_v1, %v1558_v2 }
  0x2b   : > { %960 = vmatmul.bf16.vlgmr.msra.gmra.mxu0 %v1489_v19  ;;  %980 = vmatmul.bf16.vlgmr.msra.gmra.mxu1 %v1569_v20  ;;  %v1549_v19 = vor.u32 %v1927_v15, %v1548_v14  ;;  %v2358_v14 = vld [vmem:[%s2592_s2] ss:$0 sm:$0xff]  ;;  %v1931_v15 = vld [vmem:[%s2189_s7 + $0xac] sm:$0xf] }
  0x2c   : > { %1030 = vmatpush.bf16.msrb.mxu1 %v1990_v17  ;;  %1266 = vmatpush.bf16.msrb.mxu0 %v950_v21  ;;  %v1947_v17 = vld [vmem:[%s2189_s7 + $0x128] sm:$0xf0] }
  0x2d   : > { %1186 = vmatpush.bf16.msrb.mxu3 %v2006_v18  ;;  %1108 = vmatpush.bf16.msrb.mxu2 %v1998_v26  ;;  %v549_v18 = vunpack.c.l.b16 %v2306_v13  ;;  %v1629_v20 = vor.u32 %v1947_v17, %v1628_v16  ;;  %v1490_v26 = vld [vmem:[%s2189_s7 + $0x14] sm:$0xf0]  ;;  %v1578_v16 = vld [vmem:[%s2189_s7 + $0xbc] sm:$0xf0] }
  0x2e   : > { %1010 = vmatmul.bf16.vlgmr.msra.gmra.mxu3 %v1689_v22  ;;  %1000 = vmatmul.bf16.vlgmr.msra.gmra.mxu2 %v1649_v29  ;;  %v1516_v22 = vld [vmem:[%s2189_s7 + $0x30] sm:$0xf]  ;;  %v1911_v29 = vld [vmem:[%s2189_s7 + $0xc] sm:$0xf] }
  0x2f   : > { %v619_v21 = vpack.c.b16 %v549_v18, %v549_v18  ;;  %v1517_v24 = vor.u32 %v1918_v23, %v1516_v22  ;;  %v1616_v22 = vld [vmem:[%s2189_s7 + $0xf8] sm:$0xf]  ;;  %v1943_v23 = vld [vmem:[%s2189_s7 + $0x108] sm:$0xf0] }
  0x30   : > { %1031 = vmatpush.bf16.msrb.mxu1 %v1989_v25  ;;  %1267 = vmatpush.bf16.msrb.mxu0 %v2011_v28  ;;  %v1910_v25 = vld [vmem:[%s2189_s7 + $0x4] sm:$0xf] }
  0x31   : > { %1187 = vmatpush.bf16.msrb.mxu3 %v2005_v27  ;;  %1109 = vmatpush.bf16.msrb.mxu2 %v1997_v31  ;;  %v1504_v27 = vld [vmem:[%s2189_s7 + $0x10] sm:$0xf]  ;;  %v1914_v28 = vld [vmem:[%s2189_s7 + $0x20] sm:$0xf0]  ;;  %v1493_v31 = vor.u32 %v1910_v25, %v1490_v26  ;;  %v1617_v25 = vor.u32 %v1943_v23, %v1616_v22  ;;  %v1945_v23 = vld [vmem:[%s2189_s7 + $0x11c] sm:$0xf] }
  0x34   : > { %1032 = vmatpush.bf16.msrb.mxu1 %v1988_v30  ;;  %1268 = vmatpush.bf16.msrb.mxu0 %v2010_v33  ;;  %v1498_v30 = vld [vmem:[%s2189_s7 + $0x1c] sm:$0xf0] }
  0x35   : > { %1188 = vmatpush.bf16.msrb.mxu3 %v2004_v32  ;;  %1110 = vmatpush.bf16.msrb.mxu2 %v1996_v35  ;;  %v1505_v32 = vor.u32 %v1914_v28, %v1504_v27  ;;  %v1501_v33 = vor.u32 %v1911_v29, %v1498_v30  ;;  %v1923_v35 = vld [vmem:[%s2189_s7 + $0x68] sm:$0xf0] }
  0x38   : > { %1033 = vmatpush.bf16.msrb.mxu1 %v1987_v34  ;;  %1269 = vmatpush.bf16.msrb.mxu0 %v2009_v37  ;;  %v1536_v34 = vld [vmem:[%s2189_s7 + $0x58] sm:$0xf]  ;;  %v1915_v37 = vld [vmem:[%s2189_s7 + $0x2c] sm:$0xf] }
  0x39   : > { %1189 = vmatpush.bf16.msrb.mxu3 %v2003_v36  ;;  %1111 = vmatpush.bf16.msrb.mxu2 %v1995_v45  ;;  %v1537_v36 = vor.u32 %v1923_v35, %v1536_v34  ;;  %v1513_v43 = vor.u32 %v1915_v37, %v1510_v38  ;;  %v1521_v45 = vor.u32 %v1916_v41, %v1518_v42  ;;  %v1590_v34 = vld [vmem:[%s2189_s7 + $0xdc] sm:$0xf0]  ;;  %v1604_v35 = vld [vmem:[%s2189_s7 + $0xd8] sm:$0xf]  ;;  %v1936_v37 = vld [vmem:[%s2189_s7 + $0xd4] sm:$0xf] }
  0x3a   : > { %v1598_v38 = vld [vmem:[%s2189_s7 + $0xe4] sm:$0xf0] }
  0x3b   : > { %965 = vmatmul.bf16.gmra.mxu0 %v1509_v47  ;;  %985 = vmatmul.bf16.gmra.mxu1 %v1589_v48  ;;  %v1928_v47 = vld [vmem:[%s2189_s7 + $0x90] sm:$0xf0] }
  0x3c   : > { %1034 = vmatpush.bf16.msrb.mxu1 %v1986_v44  ;;  %1270 = vmatpush.bf16.msrb.mxu0 %v2008_v56  ;;  %v1525_v44 = vor.u32 %v1919_v40, %v1524_v39 }
  0x3d   : > { %1190 = vmatpush.bf16.msrb.mxu3 %v2002_v46  ;;  %1112 = vmatpush.bf16.msrb.mxu2 %v1994_v52  ;;  %v1556_v46 = vld [vmem:[%s2189_s7 + $0x80] sm:$0xf]  ;;  %v1924_v52 = vld [vmem:[%s2189_s7 + $0x70] sm:$0xf0] }
  0x3e   : > { %1015 = vmatmul.bf16.gmra.mxu3 %v1709_v49  ;;  %1005 = vmatmul.bf16.gmra.mxu2 %v1669_v55  ;;  %v1557_v48 = vor.u32 %v1928_v47, %v1556_v46  ;;  %v1920_v49 = vld [vmem:[%s2189_s7 + $0x54] sm:$0xf]  ;;  %v1545_v56 = vor.u32 %v1924_v52, %v1544_v51  ;;  %v1636_v46 = vld [vmem:[%s2189_s7 + $0x120] sm:$0xf] }
  0x3f   : > { %v1533_v55 = vor.u32 %v1920_v49, %v1530_v50  ;;  %v1948_v47 = vld [vmem:[%s2189_s7 + $0x130] sm:$0xf0] }
  0x40   : > { %1035 = vmatpush.bf16.msrb.mxu1 %v1985_v53  ;;  %1271 = vmatpush.bf16.msrb.mxu0 %v2007_v60  ;;  %v1921_v53 = vld [vmem:[%s2189_s7 + $0x5c] sm:$0xf]  ;;  %v1637_v51 = vor.u32 %v1948_v47, %v1636_v46 }
  0x41   : > { %1191 = vmatpush.bf16.msrb.mxu3 %v2001_v54  ;;  %1113 = vmatpush.bf16.msrb.mxu2 %v1993_v57  ;;  %v1538_v54 = vld [vmem:[%s2189_s7 + $0x6c] sm:$0xf0] }
  0x42   : > { %v1541_v57 = vor.u32 %v1921_v53, %v1538_v54 }
  0x44   : > { %1036 = vmatpush.bf16.msrb.mxu1 %v1984_v58  ;;  %v1576_v58 = vld [vmem:[%s2189_s7 + $0xa8] sm:$0xf] }
  0x45   : > { %1192 = vmatpush.bf16.msrb.mxu3 %v2000_v59  ;;  %1114 = vmatpush.bf16.msrb.mxu2 %v1992_v61  ;;  %v1933_v59 = vld [vmem:[%s2189_s7 + $0xb8] sm:$0xf0] }
  0x46   : > { %v1577_v60 = vor.u32 %v1933_v59, %v1576_v58  ;;  %v1925_v61 = vld [vmem:[%s2189_s7 + $0x7c] sm:$0xf]  ;;  %v1940_v58 = vld [vmem:[%s2189_s7 + $0xf4] sm:$0xf] }
  0x48   : > { %1037 = vmatpush.bf16.msrb.mxu1 %v1983_v62  ;;  %v1550_v62 = vld [vmem:[%s2189_s7 + $0x8c] sm:$0xf0] }
  0x49   : > { %1193 = vmatpush.bf16.msrb.mxu3 %v1999_v63  ;;  %1115 = vmatpush.bf16.msrb.mxu2 %v1991_v6  ;;  %v1564_v63 = vld [vmem:[%s2189_s7 + $0x88] sm:$0xf]  ;;  %v1553_v3 = vor.u32 %v1925_v61, %v1550_v62  ;;  %v1596_v6 = vld [vmem:[%s2189_s7 + $0xd0] sm:$0xf]  ;;  %v1624_v61 = vld [vmem:[%s2189_s7 + $0x100] sm:$0xf] }
  0x4a   : > { %v1565_v4 = vor.u32 %v1929_v0, %v1564_v63  ;;  %v1944_v62 = vld [vmem:[%s2189_s7 + $0x110] sm:$0xf0]  ;;  %v1941_v63 = vld [vmem:[%s2189_s7 + $0xfc] sm:$0xf]  ;;  %v1618_v0 = vld [vmem:[%s2189_s7 + $0x10c] sm:$0xf0] }
  0x4b   : > { %970 = vmatmul.bf16.gmra.mxu0 %v1529_v7  ;;  %990 = vmatmul.bf16.gmra.mxu1 %v1609_v8  ;;  %v1938_v7 = vld [vmem:[%s2189_s7 + $0xe0] sm:$0xf0] }
  0x4c   : > { %v1597_v8 = vor.u32 %v1938_v7, %v1596_v6  ;;  %v1621_v7 = vor.u32 %v1941_v63, %v1618_v0  ;;  %v1954_v63 = vld [vmem:[%s2189_s7 + $0x160] sm:$0xf0]  ;;  %v1951_v0 = vld [vmem:[%s2189_s7 + $0x14c] sm:$0xf] }
  0x4e   : > { %1020 = vmatmul.bf16.gmra.mxu3 %v1729_v9  ;;  %1116 = vmatmul.bf16.vlgmr.msrb.gmra.mxu2 %v1497_v12  ;;  %v1930_v9 = vld [vmem:[%s2189_s7 + $0xa4] sm:$0xf] }
  0x4f   : > { %v1934_v12 = vld [vmem:[%s2189_s7 + $0xc0] sm:$0xf0]  ;;  %v1573_v17 = vor.u32 %v1930_v9, %v1570_v10  ;;  %v1953_v9 = vld [vmem:[%s2189_s7 + $0x158] sm:$0xf0] }
  0x50   : > { %v1585_v18 = vor.u32 %v1934_v12, %v1584_v11 }
  0x5b   : > { %975 = vmatmul.bf16.gmra.mxu0 %v1549_v19  ;;  %995 = vmatmul.bf16.gmra.mxu1 %v1629_v20 }
  0x5e   : > { %1025 = vmatmul.bf16.gmra.mxu3 %v619_v21  ;;  %1121 = vmatmul.bf16.gmra.mxu2 %v1517_v24  ;;  %v1581_v21 = vor.u32 %v1931_v15, %v1578_v16 }
  0x6b   : > { %1038 = vmatmul.bf16.vlgmr.msrb.gmra.mxu1 %v1493_v31  ;;  %1894 = vmatmul.msk.bf16.vlgmr.msrb.gmra.mxu0 %vm905_vm1, %v1505_v32  ;;  %v1935_v32 = vld [vmem:[%s2189_s7 + $0xcc] sm:$0xf] }
  0x6c   : > { %v1593_v40 = vor.u32 %v1935_v32, %v1590_v34  ;;  %v1638_v32 = vld [vmem:[%s2189_s7 + $0x134] sm:$0xf0] }
  0x6e   : > { %1194 = vmatmul.bf16.vlgmr.msrb.gmra.mxu3 %v1501_v33  ;;  %1126 = vmatmul.bf16.gmra.mxu2 %v1537_v36  ;;  %v1939_v36 = vld [vmem:[%s2189_s7 + $0xe8] sm:$0xf0] }
  0x6f   : > { %v1605_v41 = vor.u32 %v1939_v36, %v1604_v35 }
  0x7b   : > { %1043 = vmatmul.bf16.gmra.mxu1 %v1513_v43  ;;  %1895 = vmatmul.msk.bf16.gmra.mxu0 %vm905_vm1, %v1525_v44 }
  0x7e   : > { %1199 = vmatmul.bf16.gmra.mxu3 %v1521_v45  ;;  %1131 = vmatmul.bf16.gmra.mxu2 %v1557_v48  ;;  %v1601_v45 = vor.u32 %v1936_v37, %v1598_v38 }
  0x8b   : > { %1048 = vmatmul.bf16.gmra.mxu1 %v1533_v55  ;;  %1896 = vmatmul.msk.bf16.gmra.mxu0 %vm905_vm1, %v1545_v56 }
  0x8e   : > { %1204 = vmatmul.bf16.gmra.mxu3 %v1541_v57  ;;  %1136 = vmatmul.bf16.gmra.mxu2 %v1577_v60  ;;  %v1610_v60 = vld [vmem:[%s2189_s7 + $0x104] sm:$0xf0] }
  0x8f   : > { %v1613_v2 = vor.u32 %v1940_v58, %v1610_v60  ;;  %v1950_v60 = vld [vmem:[%s2189_s7 + $0x144] sm:$0xf] }
  0x9b   : > { %1053 = vmatmul.bf16.gmra.mxu1 %v1553_v3  ;;  %1897 = vmatmul.msk.bf16.gmra.mxu0 %vm905_vm1, %v1565_v4  ;;  %v1625_v3 = vor.u32 %v1944_v62, %v1624_v61  ;;  %v1650_v61 = vld [vmem:[%s2189_s7 + $0x154] sm:$0xf0]  ;;  %v1664_v62 = vld [vmem:[%s2189_s7 + $0x150] sm:$0xf] }
  0x9e   : > { %1209 = vmatmul.bf16.gmra.mxu3 %v1561_v5  ;;  %1141 = vmatmul.bf16.gmra.mxu2 %v1597_v8  ;;  %v1656_v8 = vld [vmem:[%s2189_s7 + $0x148] sm:$0xf] }
  0x9f   : > { %v1657_v15 = vor.u32 %v1953_v9, %v1656_v8 }
  0xa8   : > { %v2362_v19 = vpop.f32.mrf.mxu0  ;;  %v981_v20 = vpop.f32.mrf.mxu1 }
  0xa9   : > { %v2367_v24 = vadd.f32 %v2358_v14, %v981_v20 }
  0xab   : > { %1058 = vmatmul.bf16.gmra.mxu1 %v1573_v17  ;;  %1898 = vmatmul.msk.bf16.gmra.mxu0 %vm905_vm1, %v1585_v18 }
  0xae   : > { %1214 = vmatmul.bf16.gmra.mxu3 %v1581_v21  ;;  %1146 = vmatmul.bf16.gmra.mxu2 %v1617_v25  ;;  %v1630_v25 = vld [vmem:[%s2189_s7 + $0x12c] sm:$0xf0] }
  0xaf   : > { %v1633_v35 = vor.u32 %v1945_v23, %v1630_v25  ;;  %v962_v23 = vadd.f32 %v2358_v14, %v2362_v19  ;;  %v1670_v19 = vld [vmem:[%s2189_s7 + $0x17c] sm:$0xf0] }
  0xb0   : > { %v2373_v28 = vpop.f32.mrf.mxu0  ;;  %v983_v29 = vpop.f32.mrf.mxu1 }
  0xb1   : > { %v1011_v26 = vpop.f32.mrf.mxu3  ;;  %v2376_v30 = vadd.f32 %v2358_v14, %v983_v29  ;;  %v1001_v31 = vpop.f32.mrf.mxu2  ;;  %v1949_v29 = vld [vmem:[%s2189_s7 + $0x138] sm:$0xf0] }
  0xb2   : > { %v2371_v27 = vadd.f32 %v2358_v14, %v1011_v26  ;;  %v2380_v33 = vadd.f32 %v2358_v14, %v1001_v31  ;;  %v1644_v26 = vld [vmem:[%s2189_s7 + $0x128] sm:$0xf]  ;;  %v1946_v31 = vld [vmem:[%s2189_s7 + $0x124] sm:$0xf] }
  0xb3   : > { %v1645_v36 = vor.u32 %v1949_v29, %v1644_v26  ;;  %v964_v29 = vadd.f32 %v2358_v14, %v2373_v28 }
  0xb8   : > { %v2390_v43 = vpop.f32.mrf.mxu0  ;;  %v986_v44 = vpop.f32.mrf.mxu1 }
  0xb9   : > { %v1013_v39 = vpop.f32.mrf.mxu3  ;;  %v2395_v48 = vadd.f32 %v2358_v14, %v986_v44  ;;  %v1003_v49 = vpop.f32.mrf.mxu2  ;;  %v1958_v44 = vld [vmem:[%s2189_s7 + $0x180] sm:$0xf0] }
  0xba   : > { %v2388_v42 = vadd.f32 %v2358_v14, %v1013_v39  ;;  %v2399_v50 = vadd.f32 %v2358_v14, %v1003_v49 }
  0xbb   : > { %1063 = vmatmul.bf16.gmra.mxu1 %v1593_v40  ;;  %1899 = vmatmul.msk.bf16.gmra.mxu0 %vm905_vm1, %v1605_v41  ;;  %v1641_v40 = vor.u32 %v1946_v31, %v1638_v32  ;;  %v1676_v41 = vld [vmem:[%s2189_s7 + $0x170] sm:$0xf] }
  0xbc   : > { %v1677_v47 = vor.u32 %v1958_v44, %v1676_v41  ;;  %v1684_v41 = vld [vmem:[%s2189_s7 + $0x178] sm:$0xf]  ;;  %v1959_v44 = vld [vmem:[%s2189_s7 + $0x188] sm:$0xf0] }
  0xbd   : > { %v1685_v28 = vor.u32 %v1959_v44, %v1684_v41  ;;  %v1961_v41 = vld [vmem:[%s2189_s7 + $0x19c] sm:$0xf]  ;;  %v1698_v44 = vld [vmem:[%s2189_s7 + $0x1ac] sm:$0xf0] }
  0xbe   : > { %1219 = vmatmul.bf16.gmra.mxu3 %v1601_v45  ;;  %1151 = vmatmul.bf16.gmra.mxu2 %v1637_v51 }
  0xc0   : > { %v2404_v54 = vpop.f32.mrf.mxu0  ;;  %v988_v55 = vpop.f32.mrf.mxu1 }
  0xc1   : > { %v1016_v52 = vpop.f32.mrf.mxu3  ;;  %v2407_v56 = vadd.f32 %v2358_v14, %v988_v55  ;;  %v1006_v57 = vpop.f32.mrf.mxu2 }
  0xc2   : > { %v2402_v53 = vadd.f32 %v2358_v14, %v1016_v52  ;;  %v2411_v59 = vadd.f32 %v2358_v14, %v1006_v57 }
  0xc8   : > { %v2421_v5 = vpop.f32.mrf.mxu0  ;;  %v991_v6 = vpop.f32.mrf.mxu1 }
  0xc9   : > { %v1018_v1 = vpop.f32.mrf.mxu3  ;;  %v2426_v10 = vadd.f32 %v2358_v14, %v991_v6  ;;  %v1008_v11 = vpop.f32.mrf.mxu2  ;;  %v1665_v6 = vor.u32 %v1954_v63, %v1664_v62 }
  0xca   : > { %v2419_v4 = vadd.f32 %v2358_v14, %v1018_v1  ;;  %v2430_v12 = vadd.f32 %v2358_v14, %v1008_v11  ;;  %v1658_v1 = vld [vmem:[%s2189_s7 + $0x15c] sm:$0xf0]  ;;  %v1696_v11 = vld [vmem:[%s2189_s7 + $0x198] sm:$0xf] }
  0xcb   : > { %1068 = vmatmul.bf16.gmra.mxu1 %v1613_v2  ;;  %1900 = vmatmul.msk.bf16.gmra.mxu0 %vm905_vm1, %v1625_v3  ;;  %v1653_v3 = vor.u32 %v1950_v60, %v1650_v61  ;;  %v1661_v9 = vor.u32 %v1951_v0, %v1658_v1 }
  0xce   : > { %1224 = vmatmul.bf16.gmra.mxu3 %v1621_v7  ;;  %1156 = vmatmul.bf16.gmra.mxu2 %v1657_v15  ;;  %v1963_v15 = vld [vmem:[%s2189_s7 + $0x1a8] sm:$0xf0] }
  0xd0   : > { %v2435_v18 = vpop.f32.mrf.mxu0  ;;  %v993_v20 = vpop.f32.mrf.mxu1 }
  0xd1   : > { %v1021_v16 = vpop.f32.mrf.mxu3  ;;  %v2438_v21 = vadd.f32 %v2358_v14, %v993_v20  ;;  %v1117_v22 = vpop.f32.mrf.mxu2  ;;  %v1697_v20 = vor.u32 %v1963_v15, %v1696_v11 }
  0xd2   : > { %v2433_v17 = vadd.f32 %v2358_v14, %v1021_v16 }
  0xd8   : > { %v2449_v38 = vpop.f32.mrf.mxu0  ;;  %v996_v39 = vpop.f32.mrf.mxu1 }
  0xd9   : > { %v1023_v34 = vpop.f32.mrf.mxu3  ;;  %v2454_v45 = vadd.f32 %v2358_v14, %v996_v39  ;;  %v1119_v46 = vpop.f32.mrf.mxu2  ;;  %v1955_v39 = vld [vmem:[%s2189_s7 + $0x16c] sm:$0xf] }
  0xda   : > { %v2447_v37 = vadd.f32 %v2358_v14, %v1023_v34  ;;  %v1673_v61 = vor.u32 %v1955_v39, %v1670_v19  ;;  %v1690_v39 = vld [vmem:[%s2189_s7 + $0x1a4] sm:$0xf0]  ;;  %v1964_v19 = vld [vmem:[%s2189_s7 + $0x1b0] sm:$0xf0] }
  0xdb   : > { %1073 = vmatmul.bf16.gmra.mxu1 %v1633_v35  ;;  %1901 = vmatmul.msk.bf16.gmra.mxu0 %vm905_vm1, %v1645_v36 }
  0xde   : > { %1229 = vmatmul.bf16.gmra.mxu3 %v1641_v40  ;;  %1161 = vmatmul.bf16.gmra.mxu2 %v1677_v47  ;;  %v1956_v47 = vld [vmem:[%s2189_s7 + $0x174] sm:$0xf] }
  0xe0   : > { %v2460_v52 = vpop.f32.mrf.mxu0  ;;  %v998_v55 = vpop.f32.mrf.mxu1 }
  0xe1   : > { %v1026_v49 = vpop.f32.mrf.mxu3  ;;  %v2463_v57 = vadd.f32 %v2358_v14, %v998_v55  ;;  %v2465_v58 = vpop.f32.mrf.mxu2 }
  0xe2   : > { %v2458_v51 = vadd.f32 %v2358_v14, %v1026_v49  ;;  %v1678_v49 = vld [vmem:[%s2189_s7 + $0x184] sm:$0xf0] }
  0xe3   : > { %v1681_v1 = vor.u32 %v1956_v47, %v1678_v49 }
  0xe8   : > { %v1039_v7 = vpop.f32.mrf.mxu1  ;;  %v1273_v8 = vpop.f32.mrf.mxu0 }
  0xe9   : > { %v1028_v2 = vpop.f32.mrf.mxu3  ;;  %v1124_v16 = vpop.f32.mrf.mxu2  ;;  %v1040_v25 = vadd.f32 %v1039_v7, %v962_v23 }
  0xea   : > { %v1716_v2 = vld [vmem:[%s2189_s7 + $0x1c0] sm:$0xf] }
  0xeb   : > { %1078 = vmatmul.bf16.gmra.mxu1 %v1653_v3  ;;  %1902 = vmatmul.msk.bf16.gmra.mxu0 %vm905_vm1, %v1665_v6  ;;  %v1118_v34 = vadd.f32 %v1117_v22, %v1040_v25  ;;  %v1968_v3 = vld [vmem:[%s2189_s7 + $0x1d0] sm:$0xf0] }
  0xee   : > { %1234 = vmatmul.bf16.gmra.mxu3 %v1661_v9  ;;  %1166 = vmatmul.bf16.gmra.mxu2 %v1697_v20  ;;  %v1717_v9 = vor.u32 %v1968_v3, %v1716_v2 }
  0xf0   : > { %v1041_v31 = vpop.f32.mrf.mxu1  ;;  %v1275_v32 = vpop.f32.mrf.mxu0 }
  0xf1   : > { %v1195_v26 = vpop.f32.mrf.mxu3  ;;  %v1042_v35 = vadd.f32 %v1041_v31, %v964_v29  ;;  %v2480_v36 = vpop.f32.mrf.mxu2 }
  0xf2   : > { %v1196_v40 = vadd.f32 %v1195_v26, %v1118_v34  ;;  %v1960_v34 = vld [vmem:[%s2189_s7 + $0x194] sm:$0xf] }
  0xf3   : > { %v1120_v55 = vadd.f32 %v1119_v46, %v1042_v35  ;;  %v967_v46 = vadd.f32 %v2358_v14, %v2390_v43  ;;  %v969_v43 = vadd.f32 %v2358_v14, %v2404_v54  ;;  %v1693_v54 = vor.u32 %v1960_v34, %v1690_v39  ;;  %v1969_v34 = vld [vmem:[%s2189_s7 + $0x1d8] sm:$0xf0]  ;;  %v1966_v39 = vld [vmem:[%s2189_s7 + $0x1c4] sm:$0xf] }
  0xf4   : > { %v1274_v62 = vadd.f32 %v1273_v8, %v1196_v40  ;;  %v1704_v40 = vld [vmem:[%s2189_s7 + $0x1a0] sm:$0xf] }
  0xf6   : > { %v1342_v11 = vmax.f32 %v1274_v62, 0.0  ;;  %v1701_v62 = vor.u32 %v1961_v41, %v1698_v44 }
  0xf8   : > { %v1044_v22 = vpop.f32.mrf.mxu1  ;;  %v1278_v0 = vpop.f32.mrf.mxu0 }
  0xf9   : > { %v1197_v60 = vpop.f32.mrf.mxu3  ;;  %v2491_v7 = vpop.f32.mrf.mxu2  ;;  %v1045_v20 = vadd.f32 %v1044_v22, %v967_v46  ;;  %v1973_v22 = vld [vmem:[%s2189_s7 + $0x1f8] sm:$0xf0] }
  0xfa   : > { %v1198_v63 = vadd.f32 %v1197_v60, %v1120_v55  ;;  %v1705_v55 = vor.u32 %v1964_v19, %v1704_v40  ;;  %v1718_v40 = vld [vmem:[%s2189_s7 + $0x1d4] sm:$0xf0] }
  0xfb   : > { %1083 = vmatmul.bf16.gmra.mxu1 %v1673_v61  ;;  %1903 = vmatmul.msk.bf16.gmra.mxu0 %vm905_vm1, %v1685_v28  ;;  %v1123_v29 = vadd.f32 %v2465_v58, %v1045_v20 }
  0xfc   : > { %v1276_v6 = vadd.f32 %v1275_v32, %v1198_v63  ;;  %v1736_v63 = vld [vmem:[%s2189_s7 + $0x1e8] sm:$0xf] }
  0xfd   : > { %v1737_v3 = vor.u32 %v1973_v22, %v1736_v63 }
  0xfe   : > { %v1343_v8 = vmax.f32 %v1276_v6, 0.0  ;;  %1239 = vmatmul.bf16.gmra.mxu3 %v1681_v1  ;;  %1171 = vmatmul.bf16.gmra.mxu2 %v1717_v9 }
 0x100   : > { %v2015_v15 = vpack.c.bf16 %v1343_v8, %v1342_v11  ;;  %v1046_v25 = vpop.f32.mrf.mxu1  ;;  %v1280_v26 = vpop.f32.mrf.mxu0  ;;  %v974_v8 = vadd.f32 %v2358_v14, %v2435_v18 }
 0x101   : > { %v1200_v23 = vpop.f32.mrf.mxu3  ;;  %v1047_v31 = vadd.f32 %v1046_v25, %v969_v43  ;;  %v2505_v32 = vpop.f32.mrf.mxu2  ;;  %v1965_v25 = vld [vmem:[%s2189_s7 + $0x1bc] sm:$0xf] }
 0x102   : > { %2016 = vst [vmem:[%s2499_s20] sm:$0xff] %v2015_v15   ;;  %v1201_v35 = vadd.f32 %v1200_v23, %v1123_v29 }
 0x103   : > { %v1125_v47 = vadd.f32 %v1124_v16, %v1047_v31  ;;  %v972_v16 = vadd.f32 %v2358_v14, %v2421_v5  ;;  %v1724_v31 = vld [vmem:[%s2189_s7 + $0x1c8] sm:$0xf] }
 0x104   : > { %v1279_v60 = vadd.f32 %v1278_v0, %v1201_v35  ;;  %v2531_v35 = vld [vmem:[%s2189_s7 + $0x210] sm:$0xff]  ;;  %v1725_v44 = vor.u32 %v1969_v34, %v1724_v31 }
 0x106   : > { %v1344_v0 = vmax.f32 %v1279_v60, 0.0  ;;  %v1721_v60 = vor.u32 %v1966_v39, %v1718_v40 }
 0x108   : > { %v1049_v28 = vpop.f32.mrf.mxu1  ;;  %v1283_v58 = vpop.f32.mrf.mxu0 }
 0x109   : > { %v1202_v49 = vpop.f32.mrf.mxu3  ;;  %v2515_v2 = vpop.f32.mrf.mxu2  ;;  %v1050_v46 = vadd.f32 %v1049_v28, %v972_v16  ;;  %v979_v16 = vadd.f32 %v2358_v14, %v2460_v52 }
 0x10a   : > { %v1203_v61 = vadd.f32 %v1202_v49, %v1125_v47  ;;  %v551_v47 = vunpack.c.l.b16 %v2531_v35 }
 0x10b   : > { %1088 = vmatmul.bf16.gmra.mxu1 %v1693_v54  ;;  %1904 = vmatmul.msk.bf16.gmra.mxu0 %vm905_vm1, %v1705_v55  ;;  %v1128_v5 = vadd.f32 %v2480_v36, %v1050_v46 }
 0x10c   : > { %v1281_v1 = vadd.f32 %v1280_v26, %v1203_v61  ;;  %v1710_v26 = vld [vmem:[%s2189_s7 + $0x1cc] sm:$0xf0] }
 0x10d   : > { %v1713_v41 = vor.u32 %v1965_v25, %v1710_v26  ;;  %v1738_v25 = vld [vmem:[%s2189_s7 + $0x1fc] sm:$0xf0] }
 0x10e   : > { %v1345_v6 = vmax.f32 %v1281_v1, 0.0  ;;  %1244 = vmatmul.bf16.gmra.mxu3 %v1701_v62  ;;  %1176 = vmatmul.bf16.gmra.mxu2 %v1737_v3  ;;  %v621_v62 = vpack.c.b16 %v551_v47, %v551_v47 }
 0x110   : > { %v2020_v9 = vpack.c.bf16 %v1345_v6, %v1344_v0  ;;  %v1051_v15 = vpop.f32.mrf.mxu1  ;;  %v1285_v20 = vpop.f32.mrf.mxu0 }
 0x111   : > { %v1205_v11 = vpop.f32.mrf.mxu3  ;;  %v1052_v23 = vadd.f32 %v1051_v15, %v974_v8  ;;  %v2524_v43 = vpop.f32.mrf.mxu2  ;;  %v1730_v15 = vld [vmem:[%s2189_s7 + $0x1f4] sm:$0xf0] }
 0x112   : > { %2077 = vst [vmem:[%s2499_s20 + $0x8] sm:$0xff] %v2020_v9   ;;  %v1206_v29 = vadd.f32 %v1205_v11, %v1128_v5  ;;  %v1970_v11 = vld [vmem:[%s2189_s7 + $0x1e4] sm:$0xf] }
 0x113   : > { %v1130_v19 = vadd.f32 %v2491_v7, %v1052_v23  ;;  %v977_v7 = vadd.f32 %v2358_v14, %v2449_v38  ;;  %v1974_v5 = vld [vmem:[%s2189_s7 + $0x200] sm:$0xf0]  ;;  %v1971_v23 = vld [vmem:[%s2189_s7 + $0x1ec] sm:$0xf]  ;;  %v1733_v31 = vor.u32 %v1970_v11, %v1730_v15 }
 0x114   : > { %v1284_v36 = vadd.f32 %v1283_v58, %v1206_v29  ;;  %v1741_v40 = vor.u32 %v1971_v23, %v1738_v25 }
 0x116   : > { %v1346_v63 = vmax.f32 %v1284_v36, 0.0 }
 0x118   : > { %v1054_v54 = vpop.f32.mrf.mxu1  ;;  %v1288_v55 = vpop.f32.mrf.mxu0 }
 0x119   : > { %v1207_v18 = vpop.f32.mrf.mxu3  ;;  %v1139_v28 = vpop.f32.mrf.mxu2  ;;  %v1055_v1 = vadd.f32 %v1054_v54, %v977_v7  ;;  %v550_v7 = vunpack.c.h.b16 %v2306_v13 }
 0x11a   : > { %v1208_v49 = vadd.f32 %v1207_v18, %v1130_v19 }
 0x11b   : > { %1093 = vmatmul.bf16.gmra.mxu1 %v1713_v41  ;;  %1905 = vmatmul.msk.bf16.gmra.mxu0 %vm905_vm1, %v1725_v44  ;;  %v1133_v38 = vadd.f32 %v2505_v32, %v1055_v1 }
 0x11c   : > { %v1286_v61 = vadd.f32 %v1285_v20, %v1208_v49  ;;  %v1744_v20 = vld [vmem:[%s2189_s7 + $0x1f0] sm:$0xf] }
 0x11d   : > { %v1745_v34 = vor.u32 %v1974_v5, %v1744_v20 }
 0x11e   : > { %v1347_v22 = vmax.f32 %v1286_v61, 0.0  ;;  %1249 = vmatmul.bf16.gmra.mxu3 %v1721_v60  ;;  %1181 = vmatmul.bf16.gmra.mxu2 %v621_v62 }
 0x120   : > { %v2025_v58 = vpack.c.bf16 %v1347_v22, %v1346_v63  ;;  %v1056_v0 = vpop.f32.mrf.mxu1  ;;  %v1290_v6 = vpop.f32.mrf.mxu0 }
 0x121   : > { %v1210_v3 = vpop.f32.mrf.mxu3  ;;  %v1057_v9 = vadd.f32 %v1056_v0, %v979_v16  ;;  %v1142_v46 = vpop.f32.mrf.mxu2  ;;  %v620_v16 = vpack.c.b16 %v550_v7, %v550_v7 }
 0x122   : > { %2078 = vst [vmem:[%s2499_s20 + $0x10] sm:$0xff] %v2025_v58   ;;  %v1211_v8 = vadd.f32 %v1210_v3, %v1133_v38  ;;  %v552_v58 = vunpack.c.h.b16 %v2531_v35 }
 0x123   : > { %v1135_v26 = vadd.f32 %v2515_v2, %v1057_v9 }
 0x124   : > { %v1289_v14 = vadd.f32 %v1288_v55, %v1211_v8  ;;  %v258_v55 = vld [vmem:[%s2189_s7 + $0x218] sm:$0xf]  ;;  %v622_v11 = vpack.c.b16 %v552_v58, %v552_v58 }
 0x125   : > { %v553_v63 = vunpack.c.l.b16 %v258_v55 }
 0x126   : > { %v1348_v41 = vmax.f32 %v1289_v14, 0.0 }
 0x128   : > { %v1059_v39 = vpop.f32.mrf.mxu1  ;;  %v1293_v32 = vpop.f32.mrf.mxu0 }
 0x129   : > { %v1212_v29 = vpop.f32.mrf.mxu3  ;;  %v1144_v18 = vpop.f32.mrf.mxu2  ;;  %v1060_v2 = vadd.f32 %v1059_v39, %v2367_v24  ;;  %v623_v24 = vpack.c.b16 %v553_v63, %v553_v63 }
 0x12a   : > { %v1213_v52 = vadd.f32 %v1212_v29, %v1135_v26 }
 0x12b   : > { %1098 = vmatmul.bf16.gmra.mxu1 %v1733_v31  ;;  %1906 = vmatmul.msk.bf16.gmra.mxu0 %vm905_vm1, %v1745_v34  ;;  %v1138_v60 = vadd.f32 %v2524_v43, %v1060_v2 }
 0x12c   : > { %v1291_v19 = vadd.f32 %v1290_v6, %v1213_v52 }
 0x12e   : > { %v1349_v44 = vmax.f32 %v1291_v19, 0.0  ;;  %1254 = vmatmul.bf16.gmra.mxu3 %v1741_v40 }
 0x130   : > { %v2030_v47 = vpack.c.bf16 %v1349_v44, %v1348_v41  ;;  %v1061_v49 = vpop.f32.mrf.mxu1  ;;  %v1295_v54 = vpop.f32.mrf.mxu0 }
 0x131   : > { %v1215_v36 = vpop.f32.mrf.mxu3  ;;  %v1062_v61 = vadd.f32 %v1061_v49, %v2376_v30  ;;  %v1147_v62 = vpop.f32.mrf.mxu2 }
 0x132   : > { %2079 = vst [vmem:[%s2499_s20 + $0x18] sm:$0xff] %v2030_v47   ;;  %v1216_v22 = vadd.f32 %v1215_v36, %v1138_v60 }
 0x133   : > { %v1140_v1 = vadd.f32 %v1139_v28, %v1062_v61 }
 0x134   : > { %v1294_v0 = vadd.f32 %v1293_v32, %v1216_v22 }
 0x136   : > { %v1350_v13 = vmax.f32 %v1294_v0, 0.0 }
 0x138   : > { %v1064_v38 = vpop.f32.mrf.mxu1  ;;  %v1298_v9 = vpop.f32.mrf.mxu0 }
 0x139   : > { %v1217_v3 = vpop.f32.mrf.mxu3  ;;  %v1149_v8 = vpop.f32.mrf.mxu2  ;;  %v1065_v35 = vadd.f32 %v1064_v38, %v2395_v48 }
 0x13a   : > { %v1218_v6 = vadd.f32 %v1217_v3, %v1140_v1 }
 0x13b   : > { %1103 = vmatmul.bf16.gmra.mxu1 %v620_v16  ;;  %1907 = vmatmul.msk.bf16.gmra.mxu0 %vm905_vm1, %v623_v24  ;;  %v1143_v23 = vadd.f32 %v1142_v46, %v1065_v35 }
 0x13c   : > { %v1296_v43 = vadd.f32 %v1295_v54, %v1218_v6 }
 0x13e   : > { %v1351_v30 = vmax.f32 %v1296_v43, 0.0  ;;  %1259 = vmatmul.bf16.gmra.mxu3 %v622_v11 }
 0x140   : > { %v2035_v15 = vpack.c.bf16 %v1351_v30, %v1350_v13  ;;  %v1066_v20 = vpop.f32.mrf.mxu1  ;;  %v1300_v5 = vpop.f32.mrf.mxu0 }
 0x141   : > { %v1220_v28 = vpop.f32.mrf.mxu3  ;;  %v1067_v25 = vadd.f32 %v1066_v20, %v2407_v56  ;;  %v1152_v26 = vpop.f32.mrf.mxu2 }
 0x142   : > { %2080 = vst [vmem:[%s2499_s20 + $0x20] sm:$0xff] %v2035_v15   ;;  %v1221_v29 = vadd.f32 %v1220_v28, %v1143_v23 }
 0x143   : > { %v1145_v31 = vadd.f32 %v1144_v18, %v1067_v25 }
 0x144   : > { %v1299_v14 = vadd.f32 %v1298_v9, %v1221_v29 }
 0x146   : > { %v1352_v41 = vmax.f32 %v1299_v14, 0.0 }
 0x148   : > { %v1069_v39 = vpop.f32.mrf.mxu1  ;;  %v1303_v32 = vpop.f32.mrf.mxu0 }
 0x149   : > { %v1222_v34 = vpop.f32.mrf.mxu3  ;;  %v1154_v19 = vpop.f32.mrf.mxu2  ;;  %v1070_v47 = vadd.f32 %v1069_v39, %v2426_v10 }
 0x14a   : > { %v1223_v52 = vadd.f32 %v1222_v34, %v1145_v31 }
 0x14b   : > { %v1148_v36 = vadd.f32 %v1147_v62, %v1070_v47 }
 0x14c   : > { %v1301_v40 = vadd.f32 %v1300_v5, %v1223_v52 }
 0x14e   : > { %v1353_v48 = vmax.f32 %v1301_v40, 0.0 }
 0x150   : > { %v2040_v44 = vpack.c.bf16 %v1353_v48, %v1352_v41  ;;  %v1071_v46 = vpop.f32.mrf.mxu1  ;;  %v1305_v56 = vpop.f32.mrf.mxu0 }
 0x151   : > { %v1225_v2 = vpop.f32.mrf.mxu3  ;;  %v1072_v49 = vadd.f32 %v1071_v46, %v2438_v21  ;;  %v1157_v18 = vpop.f32.mrf.mxu2 }
 0x152   : > { %2081 = vst [vmem:[%s2499_s20 + $0x28] sm:$0xff] %v2040_v44   ;;  %v1226_v54 = vadd.f32 %v1225_v2, %v1148_v36 }
 0x153   : > { %v1150_v55 = vadd.f32 %v1149_v8, %v1072_v49 }
 0x154   : > { %v1304_v61 = vadd.f32 %v1303_v32, %v1226_v54 }
 0x156   : > { %v1354_v3 = vmax.f32 %v1304_v61, 0.0 }
 0x158   : > { %v1074_v63 = vpop.f32.mrf.mxu1  ;;  %v1308_v22 = vpop.f32.mrf.mxu0 }
 0x159   : > { %v1227_v60 = vpop.f32.mrf.mxu3  ;;  %v1159_v1 = vpop.f32.mrf.mxu2  ;;  %v1075_v24 = vadd.f32 %v1074_v63, %v2454_v45 }
 0x15a   : > { %v1228_v7 = vadd.f32 %v1227_v60, %v1150_v55 }
 0x15b   : > { %v1153_v6 = vadd.f32 %v1152_v26, %v1075_v24 }
 0x15c   : > { %v1306_v58 = vadd.f32 %v1305_v56, %v1228_v7 }
 0x15e   : > { %v1355_v10 = vmax.f32 %v1306_v58, 0.0 }
 0x160   : > { %v2045_v16 = vpack.c.bf16 %v1355_v10, %v1354_v3  ;;  %v1076_v62 = vpop.f32.mrf.mxu1  ;;  %v1310_v21 = vpop.f32.mrf.mxu0 }
 0x161   : > { %v1230_v0 = vpop.f32.mrf.mxu3  ;;  %v1077_v38 = vadd.f32 %v1076_v62, %v2463_v57  ;;  %v1162_v9 = vpop.f32.mrf.mxu2 }
 0x162   : > { %2082 = vst [vmem:[%s2499_s20 + $0x30] sm:$0xff] %v2045_v16   ;;  %v1231_v11 = vadd.f32 %v1230_v0, %v1153_v6 }
 0x163   : > { %v1155_v43 = vadd.f32 %v1154_v19, %v1077_v38 }
 0x164   : > { %v1309_v13 = vadd.f32 %v1308_v22, %v1231_v11 }
 0x166   : > { %v1356_v5 = vmax.f32 %v1309_v13, 0.0 }
 0x168   : > { %v1079_v15 = vpop.f32.mrf.mxu1  ;;  %v1313_v35 = vpop.f32.mrf.mxu0 }
 0x169   : > { %v1232_v8 = vpop.f32.mrf.mxu3  ;;  %v1164_v20 = vpop.f32.mrf.mxu2  ;;  %v1080_v25 = vadd.f32 %v1079_v15, %v2380_v33 }
 0x16a   : > { %v1233_v30 = vadd.f32 %v1232_v8, %v1155_v43 }
 0x16b   : > { %v1158_v31 = vadd.f32 %v1157_v18, %v1080_v25 }
 0x16c   : > { %v1311_v28 = vadd.f32 %v1310_v21, %v1233_v30 }
 0x16e   : > { %v1357_v45 = vmax.f32 %v1311_v28, 0.0 }
 0x170   : > { %v2050_v23 = vpack.c.bf16 %v1357_v45, %v1356_v5  ;;  %v1081_v26 = vpop.f32.mrf.mxu1  ;;  %v1315_v57 = vpop.f32.mrf.mxu0 }
 0x171   : > { %v1235_v29 = vpop.f32.mrf.mxu3  ;;  %v1082_v34 = vadd.f32 %v1081_v26, %v2399_v50  ;;  %v1167_v14 = vpop.f32.mrf.mxu2 }
 0x172   : > { %2083 = vst [vmem:[%s2499_s20 + $0x38] sm:$0xff] %v2050_v23   ;;  %v1236_v52 = vadd.f32 %v1235_v29, %v1158_v31 }
 0x173   : > { %v1160_v39 = vadd.f32 %v1159_v1, %v1082_v34 }
 0x174   : > { %v1314_v40 = vadd.f32 %v1313_v35, %v1236_v52 }
 0x176   : > { %v1358_v2 = vmax.f32 %v1314_v40, 0.0 }
 0x178   : > { %v1084_v41 = vpop.f32.mrf.mxu1  ;;  %v1318_v48 = vpop.f32.mrf.mxu0 }
 0x179   : > { %v1237_v32 = vpop.f32.mrf.mxu3  ;;  %v1169_v47 = vpop.f32.mrf.mxu2  ;;  %v1085_v56 = vadd.f32 %v1084_v41, %v2411_v59 }
 0x17a   : > { %v1238_v19 = vadd.f32 %v1237_v32, %v1160_v39 }
 0x17b   : > { %v1163_v18 = vadd.f32 %v1162_v9, %v1085_v56 }
 0x17c   : > { %v1316_v44 = vadd.f32 %v1315_v57, %v1238_v19 }
 0x17e   : > { %v1359_v33 = vmax.f32 %v1316_v44, 0.0 }
 0x180   : > { %v2055_v46 = vpack.c.bf16 %v1359_v33, %v1358_v2  ;;  %v1086_v49 = vpop.f32.mrf.mxu1  ;;  %v1320_v50 = vpop.f32.mrf.mxu0 }
 0x181   : > { %v1240_v36 = vpop.f32.mrf.mxu3  ;;  %v1087_v54 = vadd.f32 %v1086_v49, %v2430_v12  ;;  %v1172_v55 = vpop.f32.mrf.mxu2 }
 0x182   : > { %2084 = vst [vmem:[%s2499_s20 + $0x40] sm:$0xff] %v2055_v46   ;;  %v1241_v60 = vadd.f32 %v1240_v36, %v1163_v18 }
 0x183   : > { %v1165_v61 = vadd.f32 %v1164_v20, %v1087_v54 }
 0x184   : > { %v1319_v63 = vadd.f32 %v1318_v48, %v1241_v60 }
 0x186   : > { %v1360_v16 = vmax.f32 %v1319_v63, 0.0 }
 0x188   : > { %v1089_v58 = vpop.f32.mrf.mxu1  ;;  %v1323_v1 = vpop.f32.mrf.mxu0 }
 0x189   : > { %v1242_v7 = vpop.f32.mrf.mxu3  ;;  %v1174_v10 = vpop.f32.mrf.mxu2  ;;  %v1090_v0 = vadd.f32 %v1089_v58, %v2371_v27 }
 0x18a   : > { %v1243_v22 = vadd.f32 %v1242_v7, %v1165_v61 }
 0x18b   : > { %v1168_v6 = vadd.f32 %v1167_v14, %v1090_v0 }
 0x18c   : > { %v1321_v3 = vadd.f32 %v1320_v50, %v1243_v22 }
 0x18e   : > { %v1361_v59 = vmax.f32 %v1321_v3, 0.0 }
 0x190   : > { %v2060_v24 = vpack.c.bf16 %v1361_v59, %v1360_v16  ;;  %v1091_v21 = vpop.f32.mrf.mxu1  ;;  %v1325_v12 = vpop.f32.mrf.mxu0 }
 0x191   : > { %v1245_v62 = vpop.f32.mrf.mxu3  ;;  %v1092_v38 = vadd.f32 %v1091_v21, %v2388_v42  ;;  %v1177_v9 = vpop.f32.mrf.mxu2 }
 0x192   : > { %2085 = vst [vmem:[%s2499_s20 + $0x48] sm:$0xff] %v2060_v24   ;;  %v1246_v11 = vadd.f32 %v1245_v62, %v1168_v6 }
 0x193   : > { %v1170_v43 = vadd.f32 %v1169_v47, %v1092_v38 }
 0x194   : > { %v1324_v13 = vadd.f32 %v1323_v1, %v1246_v11 }
 0x196   : > { %v1362_v5 = vmax.f32 %v1324_v13, 0.0 }
 0x198   : > { %v1094_v15 = vpop.f32.mrf.mxu1  ;;  %v1328_v35 = vpop.f32.mrf.mxu0 }
 0x199   : > { %v1247_v8 = vpop.f32.mrf.mxu3  ;;  %v1179_v20 = vpop.f32.mrf.mxu2  ;;  %v1095_v23 = vadd.f32 %v1094_v15, %v2402_v53 }
 0x19a   : > { %v1248_v30 = vadd.f32 %v1247_v8, %v1170_v43 }
 0x19b   : > { %v1173_v26 = vadd.f32 %v1172_v55, %v1095_v23 }
 0x19c   : > { %v1326_v28 = vadd.f32 %v1325_v12, %v1248_v30 }
 0x19e   : > { %v1363_v27 = vmax.f32 %v1326_v28, 0.0 }
 0x1a0   : > { %v2065_v45 = vpack.c.bf16 %v1363_v27, %v1362_v5  ;;  %v1096_v29 = vpop.f32.mrf.mxu1  ;;  %v1330_v42 = vpop.f32.mrf.mxu0 }
 0x1a1   : > { %v1250_v25 = vpop.f32.mrf.mxu3  ;;  %v1097_v57 = vadd.f32 %v1096_v29, %v2419_v4  ;;  %v1182_v31 = vpop.f32.mrf.mxu2 }
 0x1a2   : > { %2086 = vst [vmem:[%s2499_s20 + $0x50] sm:$0xff] %v2065_v45   ;;  %v1251_v34 = vadd.f32 %v1250_v25, %v1173_v26 }
 0x1a3   : > { %v1175_v14 = vadd.f32 %v1174_v10, %v1097_v57 }
 0x1a4   : > { %v1329_v39 = vadd.f32 %v1328_v35, %v1251_v34 }
 0x1a6   : > { %v1364_v44 = vmax.f32 %v1329_v39, 0.0 }
 0x1a8   : > { %v1099_v40 = vpop.f32.mrf.mxu1  ;;  %v1333_v19 = vpop.f32.mrf.mxu0 }
 0x1a9   : > { %v1252_v52 = vpop.f32.mrf.mxu3  ;;  %v1184_v48 = vpop.f32.mrf.mxu2  ;;  %v1100_v2 = vadd.f32 %v1099_v40, %v2433_v17 }
 0x1aa   : > { %v1253_v32 = vadd.f32 %v1252_v52, %v1175_v14 }
 0x1ab   : > { %v1178_v56 = vadd.f32 %v1177_v9, %v1100_v2 }
 0x1ac   : > { %v1331_v41 = vadd.f32 %v1330_v42, %v1253_v32 }
 0x1ae   : > { %v1365_v53 = vmax.f32 %v1331_v41, 0.0 }
 0x1b0   : > { %v2070_v47 = vpack.c.bf16 %v1365_v53, %v1364_v44  ;;  %v1101_v46 = vpop.f32.mrf.mxu1  ;;  %v1335_v4 = vpop.f32.mrf.mxu0 }
 0x1b1   : > { %v1255_v33 = vpop.f32.mrf.mxu3  ;;  %v1102_v36 = vadd.f32 %v1101_v46, %v2447_v37 }
 0x1b2   : > { %2087 = vst [vmem:[%s2499_s20 + $0x58] sm:$0xff] %v2070_v47   ;;  %v1256_v49 = vadd.f32 %v1255_v33, %v1178_v56 }
 0x1b3   : > { %v1180_v50 = vadd.f32 %v1179_v20, %v1102_v36 }
 0x1b4   : > { %v1334_v54 = vadd.f32 %v1333_v19, %v1256_v49 }
 0x1b6   : > { %v1366_v17 = vmax.f32 %v1334_v54, 0.0 }
 0x1b8   : > { %v1104_v60 = vpop.f32.mrf.mxu1  ;;  %v1338_v61 = vpop.f32.mrf.mxu0 }
 0x1b9   : > { %v1257_v18 = vpop.f32.mrf.mxu3  ;;  %v1105_v63 = vadd.f32 %v1104_v60, %v2458_v51 }
 0x1ba   : > { %v1258_v55 = vadd.f32 %v1257_v18, %v1180_v50 }
 0x1bb   : > { %v1183_v1 = vadd.f32 %v1182_v31, %v1105_v63 }
 0x1bc   : > { %v1336_v7 = vadd.f32 %v1335_v4, %v1258_v55 }
 0x1be   : > { %v1367_v22 = vmax.f32 %v1336_v7, 0.0 }
 0x1c0   : > { %v2075_v58 = vpack.c.bf16 %v1367_v22, %v1366_v17  ;;  %v1106_v16 = vpop.f32.mrf.mxu1  ;;  %v1340_v37 = vpop.f32.mrf.mxu0 }
 0x1c1   : > { %v1260_v3 = vpop.f32.mrf.mxu3 }
 0x1c2   : > { %2088 = vst [vmem:[%s2499_s20 + $0x60] sm:$0xff] %v2075_v58   ;;  %v1261_v10 = vadd.f32 %v1260_v3, %v1183_v1 }
 0x1c4   : > { %v1339_v59 = vadd.f32 %v1338_v61, %v1261_v10 }
 0x1c6   : > { %v1368_v24 = vmax.f32 %v1339_v59, 0.0 }
 0x1c8   : > { %v1395_v0 = vpack.c.bf16 %v1368_v24, %v1368_v24 }
 0x1c9   : > { %v1262_v62 = vpop.f32.mrf.mxu3 }
 0x1ca   : > { %1422 = vst [vmem:[%s2499_s20 + $0x68] sm:$0xf] %v1395_v0 }
 0x1cb PF: > { %s13_s12 = sadd.s32 1, %s2129_s12  }
 0x1cc   : > { %p10_p4 = scmp.ge.s32.totalorder %s13_s12, 9  }
 0x1ce   :  { %12 = sbr.rel (!%p10_p4) target bundleno = 1 (0x1), region = 62 }

// kernel: pilotnet_forward.6
= control target key start
LH: loop header
LB: loop body
LE: loop exit
PB: predicated region body
PF: predicated region fallthrough
CT: control target
= control target key end

     0   :  { %s2381_s12 = smov 0   ;;  %s2816_s0 = inlined_call_operand.vmem [shape: bf16[288,900], index: 0, kind: input, shape index: {}]   ;;  %s2817_s1 = inlined_call_operand.vmem [shape: bf16[900,128], index: 1, kind: input, shape index: {}]   ;;  %s2818_s2 = inlined_call_operand.vmem [shape: f32[1,128], index: 2, kind: input, shape index: {}]   ;;  %s2819_s3 = inlined_call_operand.vmem [shape: bf16[288,128], index: 3, kind: output, shape index: {}]  }
   0x1 LB: > { %s1631_s13 = sadd.s32 4294967295, %s2359_s12   ;;  %p1635_p0 = scmp.ge.s32.totalorder %s2359_s12, 1  ;;  %s2359_s12 = sphi %s2381_s12, %s13_s12  }
   0x2   : > { %p139_p1 = scmp.lt.s32.totalorder %s2359_s12, 3 }
   0x4   : > { %p140_p2 = pnand %p1635_p0, %p139_p1 }
   0x5   : > { %s164_s11 = smul.u32 (!%p140_p2), 18, %s1631_s13 }
   0x6   : > { %143 = sbr.rel (%p140_p2) target bundleno = 466 (0x1d2), region = 32 }
   0x7   : > { %p165_p3 = scmp.lt.s32.totalorder (!%p140_p2), %s164_s11, 35 }
   0xb   : > { %v2242_v0 = vld [vmem:[%s2817_s1 + $0x38] sm:$0xff]  ;;  %v2241_v4 = vld [vmem:[%s2817_s1 + $0x30] sm:$0xff]  ;;  %v2240_v8 = vld [vmem:[%s2817_s1 + $0x28] sm:$0xff]  ;;  %s2821_s11 = smov (!%p165_p3, %s164_s11), 35  ;;  %vm1085_vm0 = vcmask 1041408   ;;  %vm1057_vm1 = vcmask 31744  }
   0xc   : > { %v2250_v1 = vld [vmem:[%s2817_s1 + $0x78] sm:$0xff]  ;;  %1089 = vmatpush.bf16.msra.mxu0 %v2242_v0  ;;  %v2249_v5 = vld [vmem:[%s2817_s1 + $0x70] sm:$0xff]  ;;  %v2248_v9 = vld [vmem:[%s2817_s1 + $0x68] sm:$0xff]  ;;  %s2162_s10 = sshll.u32 %s2821_s11, 5 }
   0xd   : > { %v2258_v2 = vld [vmem:[%s2817_s1 + $0xb8] sm:$0xff]  ;;  %1143 = vmatpush.bf16.msra.mxu1 %v2250_v1  ;;  %v2257_v6 = vld [vmem:[%s2817_s1 + $0xb0] sm:$0xff]  ;;  %v2256_v10 = vld [vmem:[%s2817_s1 + $0xa8] sm:$0xff]  ;;  %s2476_s13 = scalar_lea.vmem %s2816_s0, %s2162_s10 }
   0xe   : > { %v2266_v3 = vld [vmem:[%s2817_s1 + $0xf8] sm:$0xff]  ;;  %1197 = vmatpush.bf16.msra.mxu2 %v2258_v2  ;;  %v2265_v7 = vld [vmem:[%s2817_s1 + $0xf0] sm:$0xff]  ;;  %v2264_v11 = vld [vmem:[%s2817_s1 + $0xe8] sm:$0xff] }
   0xf   : > { %1251 = vmatpush.bf16.msra.mxu3 %v2266_v3  ;;  %v2239_v12 = vld [vmem:[%s2817_s1 + $0x20] sm:$0xff]  ;;  %v2238_v16 = vld [vmem:[%s2817_s1 + $0x18] sm:$0xff]  ;;  %v2237_v20 = vld [vmem:[%s2817_s1 + $0x10] sm:$0xff] }
  0x10   : > { %1090 = vmatpush.bf16.msra.mxu0 %v2241_v4  ;;  %v2247_v13 = vld [vmem:[%s2817_s1 + $0x60] sm:$0xff]  ;;  %v2246_v17 = vld [vmem:[%s2817_s1 + $0x58] sm:$0xff]  ;;  %v2245_v21 = vld [vmem:[%s2817_s1 + $0x50] sm:$0xff] }
  0x11   : > { %1144 = vmatpush.bf16.msra.mxu1 %v2249_v5  ;;  %v2255_v14 = vld [vmem:[%s2817_s1 + $0xa0] sm:$0xff]  ;;  %v2254_v18 = vld [vmem:[%s2817_s1 + $0x98] sm:$0xff]  ;;  %v2253_v22 = vld [vmem:[%s2817_s1 + $0x90] sm:$0xff] }
  0x12   : > { %1198 = vmatpush.bf16.msra.mxu2 %v2257_v6  ;;  %v2263_v15 = vld [vmem:[%s2817_s1 + $0xe0] sm:$0xff]  ;;  %v2262_v19 = vld [vmem:[%s2817_s1 + $0xd8] sm:$0xff]  ;;  %v2261_v23 = vld [vmem:[%s2817_s1 + $0xd0] sm:$0xff] }
  0x13   : > { %1252 = vmatpush.bf16.msra.mxu3 %v2265_v7  ;;  %v362_v24 = vld [vmem:[%s2817_s1 + $0x1c0] sm:$0x3]  ;;  %v2236_v25 = vld [vmem:[%s2817_s1 + $0x8] sm:$0xff]  ;;  %v2163_v36 = vld [vmem:[%s2476_s13 + $0x4] sm:$0xf] }
  0x14   : > { %1091 = vmatpush.bf16.msra.mxu0 %v2240_v8  ;;  %v2244_v26 = vld [vmem:[%s2817_s1 + $0x48] sm:$0xff]  ;;  %v2235_v29 = vld [vmem:[%s2817_s1] sm:$0xff]  ;;  %v943_v31 = vunpack.c.l.b16 %v362_v24  ;;  %v2290_v42 = vld [vmem:[%s2817_s1 + $0x1b8] sm:$0xff] }
  0x15   : > { %1145 = vmatpush.bf16.msra.mxu1 %v2248_v9  ;;  %v2252_v27 = vld [vmem:[%s2817_s1 + $0x88] sm:$0xff]  ;;  %v2243_v30 = vld [vmem:[%s2817_s1 + $0x40] sm:$0xff]  ;;  %v2274_v43 = vld [vmem:[%s2817_s1 + $0x138] sm:$0xff] }
  0x16   : > { %1199 = vmatpush.bf16.msra.mxu2 %v2256_v10  ;;  %v2260_v28 = vld [vmem:[%s2817_s1 + $0xc8] sm:$0xff]  ;;  %v2251_v32 = vld [vmem:[%s2817_s1 + $0x80] sm:$0xff]  ;;  %v1000_v44 = vpack.c.b16 %v943_v31, %v943_v31  ;;  %v2282_v49 = vld [vmem:[%s2817_s1 + $0x178] sm:$0xff] }
  0x17   : > { %1253 = vmatpush.bf16.msra.mxu3 %v2264_v11  ;;  %v2259_v33 = vld [vmem:[%s2817_s1 + $0xc0] sm:$0xff]  ;;  %v1649_v38 = vld [vmem:[%s2476_s13 + $0x8] sm:$0xf]  ;;  %v2164_v40 = vld [vmem:[%s2476_s13 + $0xc] sm:$0xf] }
  0x18   : > { %1092 = vmatpush.bf16.msra.mxu0 %v2239_v12  ;;  %v1641_v34 = vld [vmem:[%s2476_s13] sm:$0xf]  ;;  %v1643_v37 = vld [vmem:[%s2476_s13 + $0x20] sm:$0xf0]  ;;  %v2168_v39 = vld [vmem:[%s2476_s13 + $0x24] sm:$0xf0] }
  0x19   : > { %1146 = vmatpush.bf16.msra.mxu1 %v2247_v13  ;;  %v2167_v35 = vld [vmem:[%s2476_s13 + $0x1c] sm:$0xf0]  ;;  %v1651_v41 = vld [vmem:[%s2476_s13 + $0x28] sm:$0xf0]  ;;  %v1646_v46 = vor.u32 %v2163_v36, %v1643_v37  ;;  %v1650_v47 = vor.u32 %v2168_v39, %v1649_v38  ;;  %v1087_v50 = vsel %vm1085_vm0, %v1000_v44, 0  ;;  %v2289_v51 = vld [vmem:[%s2817_s1 + $0x1b0] sm:$0xff] }
  0x1a   : > { %1200 = vmatpush.bf16.msra.mxu2 %v2255_v14  ;;  %v1642_v45 = vor.u32 %v2167_v35, %v1641_v34  ;;  %v1654_v48 = vor.u32 %v2164_v40, %v1651_v41  ;;  %v2273_v52 = vld [vmem:[%s2817_s1 + $0x130] sm:$0xff]  ;;  %v2288_v54 = vld [vmem:[%s2817_s1 + $0x1a8] sm:$0xff]  ;;  %v1673_v57 = vld [vmem:[%s2476_s13 + $0x40] sm:$0xf] }
  0x1b   : > { %1254 = vmatpush.bf16.msra.mxu3 %v2263_v15  ;;  %v2281_v53 = vld [vmem:[%s2817_s1 + $0x170] sm:$0xff]  ;;  %v2272_v55 = vld [vmem:[%s2817_s1 + $0x128] sm:$0xff]  ;;  %v2175_v58 = vld [vmem:[%s2476_s13 + $0x5c] sm:$0xf0] }
  0x1c   : > { %1093 = vmatpush.bf16.msra.mxu0 %v2238_v16  ;;  %v2280_v56 = vld [vmem:[%s2817_s1 + $0x168] sm:$0xff]  ;;  %v2171_v59 = vld [vmem:[%s2476_s13 + $0x44] sm:$0xf]  ;;  %v1674_v1 = vor.u32 %v2175_v58, %v1673_v57  ;;  %v1705_v8 = vld [vmem:[%s2476_s13 + $0x80] sm:$0xf] }
  0x1d   : > { %1147 = vmatpush.bf16.msra.mxu1 %v2246_v17  ;;  %v1675_v60 = vld [vmem:[%s2476_s13 + $0x60] sm:$0xf0]  ;;  %v1681_v61 = vld [vmem:[%s2476_s13 + $0x48] sm:$0xf]  ;;  %v2172_v63 = vld [vmem:[%s2476_s13 + $0x4c] sm:$0xf] }
  0x1e   : > { %1201 = vmatpush.bf16.msra.mxu2 %v2254_v18  ;;  %v2176_v62 = vld [vmem:[%s2476_s13 + $0x64] sm:$0xf0]  ;;  %v1683_v0 = vld [vmem:[%s2476_s13 + $0x68] sm:$0xf0]  ;;  %v1678_v2 = vor.u32 %v2171_v59, %v1675_v60  ;;  %v2287_v5 = vld [vmem:[%s2817_s1 + $0x1a0] sm:$0xff] }
  0x1f   : > { %1255 = vmatpush.bf16.msra.mxu3 %v2262_v19  ;;  %v1682_v3 = vor.u32 %v2176_v62, %v1681_v61  ;;  %v1686_v4 = vor.u32 %v2172_v63, %v1683_v0  ;;  %v2271_v6 = vld [vmem:[%s2817_s1 + $0x120] sm:$0xff]  ;;  %v1713_v12 = vld [vmem:[%s2476_s13 + $0x88] sm:$0xf]  ;;  %v2180_v14 = vld [vmem:[%s2476_s13 + $0x8c] sm:$0xf] }
  0x20   : > { %1094 = vmatpush.bf16.msra.mxu0 %v2237_v20  ;;  %v2279_v7 = vld [vmem:[%s2817_s1 + $0x160] sm:$0xff]  ;;  %v2184_v13 = vld [vmem:[%s2476_s13 + $0xa4] sm:$0xf0]  ;;  %v1715_v15 = vld [vmem:[%s2476_s13 + $0xa8] sm:$0xf0] }
  0x21   : > { %1148 = vmatpush.bf16.msra.mxu1 %v2245_v21  ;;  %v2183_v9 = vld [vmem:[%s2476_s13 + $0x9c] sm:$0xf0]  ;;  %v2179_v10 = vld [vmem:[%s2476_s13 + $0x84] sm:$0xf]  ;;  %v1714_v18 = vor.u32 %v2184_v13, %v1713_v12  ;;  %v1718_v19 = vor.u32 %v2180_v14, %v1715_v15  ;;  %v2286_v20 = vld [vmem:[%s2817_s1 + $0x198] sm:$0xff] }
  0x22   : > { %1202 = vmatpush.bf16.msra.mxu2 %v2253_v22  ;;  %v1707_v11 = vld [vmem:[%s2476_s13 + $0xa0] sm:$0xf0]  ;;  %v1706_v16 = vor.u32 %v2183_v9, %v1705_v8  ;;  %v2270_v21 = vld [vmem:[%s2817_s1 + $0x118] sm:$0xff]  ;;  %v2191_v24 = vld [vmem:[%s2476_s13 + $0xdc] sm:$0xf0] }
  0x23   : > { %1256 = vmatpush.bf16.msra.mxu3 %v2261_v23  ;;  %v1710_v17 = vor.u32 %v2179_v10, %v1707_v11  ;;  %v2278_v22 = vld [vmem:[%s2817_s1 + $0x158] sm:$0xff]  ;;  %v1737_v23 = vld [vmem:[%s2476_s13 + $0xc0] sm:$0xf]  ;;  %v2285_v35 = vld [vmem:[%s2817_s1 + $0x190] sm:$0xff] }
  0x24   : > { %1095 = vmatpush.bf16.msra.mxu0 %v2236_v25  ;;  %v2187_v25 = vld [vmem:[%s2476_s13 + $0xc4] sm:$0xf]  ;;  %v1738_v31 = vor.u32 %v2191_v24, %v1737_v23  ;;  %v2269_v36 = vld [vmem:[%s2817_s1 + $0x110] sm:$0xff]  ;;  %v1769_v38 = vld [vmem:[%s2476_s13 + $0x100] sm:$0xf] }
  0x25   : > { %1149 = vmatpush.bf16.msra.mxu1 %v2244_v26  ;;  %v1739_v26 = vld [vmem:[%s2476_s13 + $0xe0] sm:$0xf0]  ;;  %v2277_v37 = vld [vmem:[%s2817_s1 + $0x150] sm:$0xff]  ;;  %v2199_v39 = vld [vmem:[%s2476_s13 + $0x11c] sm:$0xf0] }
  0x26   : > { %1203 = vmatpush.bf16.msra.mxu2 %v2252_v27  ;;  %v1745_v27 = vld [vmem:[%s2476_s13 + $0xc8] sm:$0xf]  ;;  %v2195_v40 = vld [vmem:[%s2476_s13 + $0x104] sm:$0xf]  ;;  %v2196_v44 = vld [vmem:[%s2476_s13 + $0x10c] sm:$0xf] }
  0x27   : > { %1257 = vmatpush.bf16.msra.mxu3 %v2260_v28  ;;  %v2192_v28 = vld [vmem:[%s2476_s13 + $0xe4] sm:$0xf0]  ;;  %v1771_v41 = vld [vmem:[%s2476_s13 + $0x120] sm:$0xf0]  ;;  %v2204_v58 = vld [vmem:[%s2476_s13 + $0x14c] sm:$0xf] }
  0x28   : > { %1096 = vmatpush.bf16.msra.mxu0 %v2235_v29  ;;  %v2188_v29 = vld [vmem:[%s2476_s13 + $0xcc] sm:$0xf]  ;;  %v2208_v57 = vld [vmem:[%s2476_s13 + $0x164] sm:$0xf0]  ;;  %v2283_v13 = vld [vmem:[%s2817_s1 + $0x180] sm:$0xff] }
  0x29   : > { %1150 = vmatpush.bf16.msra.mxu1 %v2243_v30  ;;  %v1747_v30 = vld [vmem:[%s2476_s13 + $0xe8] sm:$0xf0]  ;;  %v2267_v14 = vld [vmem:[%s2817_s1 + $0x100] sm:$0xff] }
  0x2a   : > { %1204 = vmatpush.bf16.msra.mxu2 %v2251_v32  ;;  %v1742_v32 = vor.u32 %v2187_v25, %v1739_v26  ;;  %v1750_v34 = vor.u32 %v2188_v29, %v1747_v30  ;;  %v1811_v59 = vld [vmem:[%s2476_s13 + $0x168] sm:$0xf0]  ;;  %v2275_v15 = vld [vmem:[%s2817_s1 + $0x140] sm:$0xff] }
  0x2b   : > { %1258 = vmatpush.bf16.msra.mxu3 %v2259_v33  ;;  %1097 = vmatmul.bf16.vlgmr.msra.gmra.mxu0 %v1642_v45  ;;  %v1746_v33 = vor.u32 %v2192_v28, %v1745_v27  ;;  %v1779_v45 = vld [vmem:[%s2476_s13 + $0x128] sm:$0xf0]  ;;  %v1814_v63 = vor.u32 %v2204_v58, %v1811_v59  ;;  %v2635_v28 = vld [vmem:[%s2818_s2] ss:$0 sm:$0xff]  ;;  %v2170_v58 = vld [vmem:[%s2476_s13 + $0x34] sm:$0xf0] }
  0x2c   : > { %1305 = vmatpush.bf16.msrb.mxu0 %v2274_v43  ;;  %1151 = vmatmul.bf16.vlgmr.msra.gmra.mxu1 %v1646_v46  ;;  %v2200_v43 = vld [vmem:[%s2476_s13 + $0x124] sm:$0xf0]  ;;  %v1770_v46 = vor.u32 %v2199_v39, %v1769_v38  ;;  %v1843_v8 = vld [vmem:[%s2476_s13 + $0x1a8] sm:$0xf0]  ;;  %v1897_v29 = vld [vmem:[%s2476_s13 + $0x200] sm:$0xf] }
  0x2d   : > { %1205 = vmatmul.bf16.vlgmr.msra.gmra.mxu2 %v1650_v47  ;;  %1359 = vmatpush.bf16.msrb.mxu1 %v2282_v49  ;;  %v1774_v47 = vor.u32 %v2195_v40, %v1771_v41  ;;  %v1782_v49 = vor.u32 %v2196_v44, %v1779_v45  ;;  %v2276_v0 = vld [vmem:[%s2817_s1 + $0x148] sm:$0xff]  ;;  %v2231_v30 = vld [vmem:[%s2476_s13 + $0x21c] sm:$0xf0]  ;;  %v2166_v59 = vld [vmem:[%s2476_s13 + $0x1c] sm:$0xf] }
  0x2e   : > { %1413 = vmatpush.bf16.msrb.mxu2 %v2290_v42  ;;  %1259 = vmatmul.bf16.vlgmr.msra.gmra.mxu3 %v1654_v48  ;;  %v1777_v42 = vld [vmem:[%s2476_s13 + $0x108] sm:$0xf]  ;;  %v1875_v23 = vld [vmem:[%s2476_s13 + $0x1e8] sm:$0xf0] }
  0x2f   : > { %1474 = vmatpush.bf16.msrb.mxu3 %v1087_v50  ;;  %v1778_v48 = vor.u32 %v2200_v43, %v1777_v42  ;;  %v2284_v50 = vld [vmem:[%s2817_s1 + $0x188] sm:$0xff] }
  0x30   : > { %1306 = vmatpush.bf16.msrb.mxu0 %v2273_v52  ;;  %v1801_v52 = vld [vmem:[%s2476_s13 + $0x140] sm:$0xf] }
  0x31   : > { %1360 = vmatpush.bf16.msrb.mxu1 %v2281_v53  ;;  %v2207_v53 = vld [vmem:[%s2476_s13 + $0x15c] sm:$0xf0] }
  0x32   : > { %1414 = vmatpush.bf16.msrb.mxu2 %v2289_v51  ;;  %v2268_v51 = vld [vmem:[%s2817_s1 + $0x108] sm:$0xff]  ;;  %v1802_v60 = vor.u32 %v2207_v53, %v1801_v52  ;;  %v1657_v53 = vld [vmem:[%s2476_s13 + $0x10] sm:$0xf] }
  0x34   : > { %1307 = vmatpush.bf16.msrb.mxu0 %v2272_v55  ;;  %v1803_v55 = vld [vmem:[%s2476_s13 + $0x160] sm:$0xf0] }
  0x35   : > { %1361 = vmatpush.bf16.msrb.mxu1 %v2280_v56  ;;  %v1809_v56 = vld [vmem:[%s2476_s13 + $0x148] sm:$0xf] }
  0x36   : > { %1415 = vmatpush.bf16.msrb.mxu2 %v2288_v54  ;;  %v2203_v54 = vld [vmem:[%s2476_s13 + $0x144] sm:$0xf]  ;;  %v1810_v62 = vor.u32 %v2208_v57, %v1809_v56  ;;  %v1659_v56 = vld [vmem:[%s2476_s13 + $0x30] sm:$0xf0]  ;;  %v1665_v57 = vld [vmem:[%s2476_s13 + $0x18] sm:$0xf] }
  0x37   : > { %v1806_v61 = vor.u32 %v2203_v54, %v1803_v55  ;;  %v2169_v54 = vld [vmem:[%s2476_s13 + $0x2c] sm:$0xf0]  ;;  %v2165_v55 = vld [vmem:[%s2476_s13 + $0x14] sm:$0xf] }
  0x38   : > { %1308 = vmatpush.bf16.msrb.mxu0 %v2271_v6  ;;  %v2216_v6 = vld [vmem:[%s2476_s13 + $0x1a4] sm:$0xf0] }
  0x39   : > { %1362 = vmatpush.bf16.msrb.mxu1 %v2279_v7  ;;  %v2212_v7 = vld [vmem:[%s2476_s13 + $0x18c] sm:$0xf] }
  0x3a   : > { %1416 = vmatpush.bf16.msrb.mxu2 %v2287_v5  ;;  %v1841_v5 = vld [vmem:[%s2476_s13 + $0x188] sm:$0xf]  ;;  %v1846_v12 = vor.u32 %v2212_v7, %v1843_v8 }
  0x3b   : > { %1102 = vmatmul.bf16.gmra.mxu0 %v1674_v1  ;;  %v1833_v1 = vld [vmem:[%s2476_s13 + $0x180] sm:$0xf]  ;;  %v1842_v11 = vor.u32 %v2216_v6, %v1841_v5 }
  0x3c   : > { %1156 = vmatmul.bf16.gmra.mxu1 %v1678_v2  ;;  %1309 = vmatpush.bf16.msrb.mxu0 %v2270_v21  ;;  %v2215_v2 = vld [vmem:[%s2476_s13 + $0x19c] sm:$0xf0]  ;;  %v2224_v21 = vld [vmem:[%s2476_s13 + $0x1e4] sm:$0xf0] }
  0x3d   : > { %1210 = vmatmul.bf16.gmra.mxu2 %v1682_v3  ;;  %1363 = vmatpush.bf16.msrb.mxu1 %v2278_v22  ;;  %v2211_v3 = vld [vmem:[%s2476_s13 + $0x184] sm:$0xf]  ;;  %v1834_v9 = vor.u32 %v2215_v2, %v1833_v1  ;;  %v2220_v22 = vld [vmem:[%s2476_s13 + $0x1cc] sm:$0xf] }
  0x3e   : > { %1264 = vmatmul.bf16.gmra.mxu3 %v1686_v4  ;;  %1417 = vmatpush.bf16.msrb.mxu2 %v2286_v20  ;;  %v1835_v4 = vld [vmem:[%s2476_s13 + $0x1a0] sm:$0xf0]  ;;  %v1873_v20 = vld [vmem:[%s2476_s13 + $0x1c8] sm:$0xf]  ;;  %v1878_v27 = vor.u32 %v2220_v22, %v1875_v23  ;;  %v2178_v22 = vld [vmem:[%s2476_s13 + $0x74] sm:$0xf0] }
  0x3f   : > { %v1838_v10 = vor.u32 %v2211_v3, %v1835_v4  ;;  %v1874_v26 = vor.u32 %v2224_v21, %v1873_v20  ;;  %v1666_v4 = vor.u32 %v2170_v58, %v1665_v57  ;;  %v1691_v20 = vld [vmem:[%s2476_s13 + $0x70] sm:$0xf0]  ;;  %v1697_v21 = vld [vmem:[%s2476_s13 + $0x58] sm:$0xf]  ;;  %v2174_v23 = vld [vmem:[%s2476_s13 + $0x5c] sm:$0xf] }
  0x40   : > { %1310 = vmatpush.bf16.msrb.mxu0 %v2269_v36  ;;  %v1907_v36 = vld [vmem:[%s2476_s13 + $0x228] sm:$0xf0] }
  0x41   : > { %1364 = vmatpush.bf16.msrb.mxu1 %v2277_v37  ;;  %v1898_v37 = vor.u32 %v2231_v30, %v1897_v29 }
  0x42   : > { %1418 = vmatpush.bf16.msrb.mxu2 %v2285_v35  ;;  %v2228_v35 = vld [vmem:[%s2476_s13 + $0x20c] sm:$0xf] }
  0x43   : > { %v1910_v42 = vor.u32 %v2228_v35, %v1907_v36 }
  0x44   : > { %1311 = vmatpush.bf16.msrb.mxu0 %v2268_v51 }
  0x45   : > { %1365 = vmatpush.bf16.msrb.mxu1 %v2276_v0  ;;  %v1662_v0 = vor.u32 %v2165_v55, %v1659_v56 }
  0x46   : > { %1419 = vmatpush.bf16.msrb.mxu2 %v2284_v50 }
  0x48   : > { %1312 = vmatpush.bf16.msrb.mxu0 %v2267_v14 }
  0x49   : > { %1366 = vmatpush.bf16.msrb.mxu1 %v2275_v15 }
  0x4a   : > { %1420 = vmatpush.bf16.msrb.mxu2 %v2283_v13 }
  0x4b   : > { %1107 = vmatmul.bf16.gmra.mxu0 %v1706_v16  ;;  %v1865_v16 = vld [vmem:[%s2476_s13 + $0x1c0] sm:$0xf] }
  0x4c   : > { %1161 = vmatmul.bf16.gmra.mxu1 %v1710_v17  ;;  %v2223_v17 = vld [vmem:[%s2476_s13 + $0x1dc] sm:$0xf0] }
  0x4d   : > { %1215 = vmatmul.bf16.gmra.mxu2 %v1714_v18  ;;  %v2219_v18 = vld [vmem:[%s2476_s13 + $0x1c4] sm:$0xf]  ;;  %v1866_v24 = vor.u32 %v2223_v17, %v1865_v16  ;;  %v1689_v17 = vld [vmem:[%s2476_s13 + $0x50] sm:$0xf] }
  0x4e   : > { %1269 = vmatmul.bf16.gmra.mxu3 %v1718_v19  ;;  %v1867_v19 = vld [vmem:[%s2476_s13 + $0x1e0] sm:$0xf0] }
  0x4f   : > { %v1870_v25 = vor.u32 %v2219_v18, %v1867_v19  ;;  %v2177_v18 = vld [vmem:[%s2476_s13 + $0x6c] sm:$0xf0]  ;;  %v2173_v19 = vld [vmem:[%s2476_s13 + $0x54] sm:$0xf] }
  0x50   : > { %v1694_v29 = vor.u32 %v2173_v19, %v1691_v20  ;;  %v2190_v19 = vld [vmem:[%s2476_s13 + $0xdc] sm:$0xf] }
  0x51   : > { %v1763_v20 = vld [vmem:[%s2476_s13 + $0xf8] sm:$0xf0] }
  0x5b   : > { %1112 = vmatmul.bf16.gmra.mxu0 %v1738_v31  ;;  %v2227_v31 = vld [vmem:[%s2476_s13 + $0x204] sm:$0xf] }
  0x5c   : > { %1166 = vmatmul.bf16.gmra.mxu1 %v1742_v32  ;;  %v1899_v32 = vld [vmem:[%s2476_s13 + $0x220] sm:$0xf0] }
  0x5d   : > { %1220 = vmatmul.bf16.gmra.mxu2 %v1746_v33  ;;  %v1905_v33 = vld [vmem:[%s2476_s13 + $0x208] sm:$0xf]  ;;  %v1902_v38 = vor.u32 %v2227_v31, %v1899_v32 }
  0x5e   : > { %1274 = vmatmul.bf16.gmra.mxu3 %v1750_v34  ;;  %v2232_v34 = vld [vmem:[%s2476_s13 + $0x224] sm:$0xf0] }
  0x5f   : > { %v1906_v41 = vor.u32 %v2232_v34, %v1905_v33  ;;  %v1698_v33 = vor.u32 %v2178_v22, %v1697_v21 }
  0x6b   : > { %1117 = vmatmul.bf16.gmra.mxu0 %v1770_v46 }
  0x6c   : > { %1171 = vmatmul.bf16.gmra.mxu1 %v1774_v47 }
  0x6d   : > { %1225 = vmatmul.bf16.gmra.mxu2 %v1778_v48 }
  0x6e   : > { %1279 = vmatmul.bf16.gmra.mxu3 %v1782_v49 }
  0x7b   : > { %1122 = vmatmul.bf16.gmra.mxu0 %v1802_v60  ;;  %v1667_v60 = vld [vmem:[%s2476_s13 + $0x38] sm:$0xf0] }
  0x7c   : > { %1176 = vmatmul.bf16.gmra.mxu1 %v1806_v61  ;;  %v1670_v5 = vor.u32 %v2166_v59, %v1667_v60 }
  0x7d   : > { %1230 = vmatmul.bf16.gmra.mxu2 %v1810_v62 }
  0x7e   : > { %1284 = vmatmul.bf16.gmra.mxu3 %v1814_v63  ;;  %v1658_v63 = vor.u32 %v2169_v54, %v1657_v53  ;;  %v2182_v53 = vld [vmem:[%s2476_s13 + $0x9c] sm:$0xf] }
  0x7f   : > { %v1731_v54 = vld [vmem:[%s2476_s13 + $0xb8] sm:$0xf0] }
  0x8b   : > { %1127 = vmatmul.bf16.gmra.mxu0 %v1834_v9 }
  0x8c   : > { %1181 = vmatmul.bf16.gmra.mxu1 %v1838_v10 }
  0x8d   : > { %1235 = vmatmul.bf16.gmra.mxu2 %v1842_v11 }
  0x8e   : > { %1289 = vmatmul.bf16.gmra.mxu3 %v1846_v12 }
  0x9b   : > { %1132 = vmatmul.bf16.gmra.mxu0 %v1866_v24  ;;  %v1699_v24 = vld [vmem:[%s2476_s13 + $0x78] sm:$0xf0] }
  0x9c   : > { %1186 = vmatmul.bf16.gmra.mxu1 %v1870_v25  ;;  %v1702_v34 = vor.u32 %v2174_v23, %v1699_v24 }
  0x9d   : > { %1240 = vmatmul.bf16.gmra.mxu2 %v1874_v26 }
  0x9e   : > { %1294 = vmatmul.bf16.gmra.mxu3 %v1878_v27  ;;  %v1690_v27 = vor.u32 %v2177_v18, %v1689_v17  ;;  %v1761_v17 = vld [vmem:[%s2476_s13 + $0xd8] sm:$0xf] }
  0x9f   : > { %v2194_v18 = vld [vmem:[%s2476_s13 + $0xf4] sm:$0xf0] }
  0xa8   : > { %v1098_v39 = vpop.f32.mrf.mxu0 }
  0xa9   : > { %v1152_v40 = vpop.f32.mrf.mxu1  ;;  %v1099_v43 = vadd.f32 %v2635_v28, %v1098_v39 }
  0xab   : > { %v1153_v44 = vadd.f32 %v1152_v40, %v1099_v43  ;;  %1137 = vmatmul.bf16.gmra.mxu0 %v1898_v37 }
  0xac   : > { %1191 = vmatmul.bf16.gmra.mxu1 %v1902_v38 }
  0xad   : > { %1245 = vmatmul.bf16.gmra.mxu2 %v1906_v41 }
  0xae   : > { %1299 = vmatmul.bf16.gmra.mxu3 %v1910_v42 }
  0xb0   : > { %v1206_v45 = vpop.f32.mrf.mxu2  ;;  %v1100_v48 = vpop.f32.mrf.mxu0 }
  0xb1   : > { %v1260_v46 = vpop.f32.mrf.mxu3  ;;  %v1207_v47 = vadd.f32 %v1206_v45, %v1153_v44  ;;  %v1154_v49 = vpop.f32.mrf.mxu1  ;;  %v1101_v50 = vadd.f32 %v2635_v28, %v1100_v48  ;;  %v2181_v48 = vld [vmem:[%s2476_s13 + $0x94] sm:$0xf] }
  0xb3   : > { %v2647_v51 = vadd.f32 %v1260_v46, %v1207_v47  ;;  %v1155_v52 = vadd.f32 %v1154_v49, %v1101_v50  ;;  %v1721_v46 = vld [vmem:[%s2476_s13 + $0x90] sm:$0xf]  ;;  %v1723_v49 = vld [vmem:[%s2476_s13 + $0xb0] sm:$0xf0]  ;;  %v1729_v50 = vld [vmem:[%s2476_s13 + $0x98] sm:$0xf] }
  0xb4   : > { %v2185_v47 = vld [vmem:[%s2476_s13 + $0xac] sm:$0xf0]  ;;  %v1726_v58 = vor.u32 %v2181_v48, %v1723_v49  ;;  %v1793_v48 = vld [vmem:[%s2476_s13 + $0x118] sm:$0xf] }
  0xb5   : > { %v1722_v57 = vor.u32 %v2185_v47, %v1721_v46  ;;  %v2197_v46 = vld [vmem:[%s2476_s13 + $0x114] sm:$0xf]  ;;  %v2202_v49 = vld [vmem:[%s2476_s13 + $0x134] sm:$0xf0] }
  0xb6   : > { %v1787_v47 = vld [vmem:[%s2476_s13 + $0x130] sm:$0xf0] }
  0xb8   : > { %v1208_v61 = vpop.f32.mrf.mxu2  ;;  %v1103_v2 = vpop.f32.mrf.mxu0 }
  0xb9   : > { %v1262_v62 = vpop.f32.mrf.mxu3  ;;  %v1209_v1 = vadd.f32 %v1208_v61, %v1155_v52  ;;  %v1157_v3 = vpop.f32.mrf.mxu1  ;;  %v1104_v6 = vadd.f32 %v2635_v28, %v1103_v2  ;;  %v2186_v52 = vld [vmem:[%s2476_s13 + $0xb4] sm:$0xf0] }
  0xbb   : > { %v2658_v7 = vadd.f32 %v1262_v62, %v1209_v1  ;;  %v1158_v8 = vadd.f32 %v1157_v3, %v1104_v6  ;;  %1313 = vmatmul.bf16.vlgmr.msrb.gmra.mxu0 %v1658_v63  ;;  %v1730_v62 = vor.u32 %v2186_v52, %v1729_v50  ;;  %v1734_v63 = vor.u32 %v2182_v53, %v1731_v54  ;;  %v2198_v50 = vld [vmem:[%s2476_s13 + $0x11c] sm:$0xf] }
  0xbc   : > { %1367 = vmatmul.bf16.vlgmr.msrb.gmra.mxu1 %v1662_v0  ;;  %v1795_v52 = vld [vmem:[%s2476_s13 + $0x138] sm:$0xf0] }
  0xbd   : > { %1421 = vmatmul.bf16.vlgmr.msrb.gmra.mxu2 %v1666_v4 }
  0xbe   : > { %2151 = vmatmul.msk.bf16.vlgmr.msrb.gmra.mxu3 %vm1057_vm1, %v1670_v5 }
  0xc0   : > { %v1211_v9 = vpop.f32.mrf.mxu2  ;;  %v1105_v12 = vpop.f32.mrf.mxu0 }
  0xc1   : > { %v1265_v10 = vpop.f32.mrf.mxu3  ;;  %v1212_v11 = vadd.f32 %v1211_v9, %v1158_v8  ;;  %v1159_v13 = vpop.f32.mrf.mxu1  ;;  %v1106_v14 = vadd.f32 %v2635_v28, %v1105_v12  ;;  %v1753_v12 = vld [vmem:[%s2476_s13 + $0xd0] sm:$0xf] }
  0xc3   : > { %v2662_v15 = vadd.f32 %v1265_v10, %v1212_v11  ;;  %v1160_v16 = vadd.f32 %v1159_v13, %v1106_v14  ;;  %v2193_v13 = vld [vmem:[%s2476_s13 + $0xec] sm:$0xf0]  ;;  %v2189_v14 = vld [vmem:[%s2476_s13 + $0xd4] sm:$0xf] }
  0xc4   : > { %v1754_v23 = vor.u32 %v2193_v13, %v1753_v12  ;;  %v1817_v12 = vld [vmem:[%s2476_s13 + $0x150] sm:$0xf] }
  0xc5   : > { %v2209_v13 = vld [vmem:[%s2476_s13 + $0x16c] sm:$0xf0] }
  0xc8   : > { %v1213_v25 = vpop.f32.mrf.mxu2  ;;  %v1108_v31 = vpop.f32.mrf.mxu0 }
  0xc9   : > { %v1267_v26 = vpop.f32.mrf.mxu3  ;;  %v1214_v30 = vadd.f32 %v1213_v25, %v1160_v16  ;;  %v1162_v32 = vpop.f32.mrf.mxu1  ;;  %v1109_v35 = vadd.f32 %v2635_v28, %v1108_v31  ;;  %v1755_v16 = vld [vmem:[%s2476_s13 + $0xf0] sm:$0xf0] }
  0xca   : > { %v1758_v24 = vor.u32 %v2189_v14, %v1755_v16  ;;  %v2205_v14 = vld [vmem:[%s2476_s13 + $0x154] sm:$0xf] }
  0xcb   : > { %v2673_v36 = vadd.f32 %v1267_v26, %v1214_v30  ;;  %v1163_v37 = vadd.f32 %v1162_v32, %v1109_v35  ;;  %1318 = vmatmul.bf16.gmra.mxu0 %v1690_v27  ;;  %v1766_v30 = vor.u32 %v2190_v19, %v1763_v20  ;;  %v1819_v16 = vld [vmem:[%s2476_s13 + $0x170] sm:$0xf0]  ;;  %v2206_v19 = vld [vmem:[%s2476_s13 + $0x15c] sm:$0xf] }
  0xcc   : > { %1372 = vmatmul.bf16.gmra.mxu1 %v1694_v29  ;;  %v1762_v29 = vor.u32 %v2194_v18, %v1761_v17  ;;  %v1825_v17 = vld [vmem:[%s2476_s13 + $0x158] sm:$0xf]  ;;  %v1827_v20 = vld [vmem:[%s2476_s13 + $0x178] sm:$0xf0] }
  0xcd   : > { %1426 = vmatmul.bf16.gmra.mxu2 %v1698_v33  ;;  %v2210_v18 = vld [vmem:[%s2476_s13 + $0x174] sm:$0xf0] }
  0xce   : > { %2152 = vmatmul.msk.bf16.gmra.mxu3 %vm1057_vm1, %v1702_v34 }
  0xd0   : > { %v1216_v38 = vpop.f32.mrf.mxu2  ;;  %v1110_v41 = vpop.f32.mrf.mxu0 }
  0xd1   : > { %v1270_v39 = vpop.f32.mrf.mxu3  ;;  %v1217_v40 = vadd.f32 %v1216_v38, %v1163_v37  ;;  %v1164_v42 = vpop.f32.mrf.mxu1  ;;  %v1111_v43 = vadd.f32 %v2635_v28, %v1110_v41 }
  0xd3   : > { %v2677_v44 = vadd.f32 %v1270_v39, %v1217_v40  ;;  %v1165_v45 = vadd.f32 %v1164_v42, %v1111_v43  ;;  %v1785_v43 = vld [vmem:[%s2476_s13 + $0x110] sm:$0xf] }
  0xd8   : > { %v1218_v55 = vpop.f32.mrf.mxu2  ;;  %v1113_v60 = vpop.f32.mrf.mxu0 }
  0xd9   : > { %v1272_v56 = vpop.f32.mrf.mxu3  ;;  %v1219_v59 = vadd.f32 %v1218_v55, %v1165_v45  ;;  %v1167_v61 = vpop.f32.mrf.mxu1  ;;  %v1114_v0 = vadd.f32 %v2635_v28, %v1113_v60  ;;  %v2201_v45 = vld [vmem:[%s2476_s13 + $0x12c] sm:$0xf0]  ;;  %v1794_v60 = vor.u32 %v2202_v49, %v1793_v48  ;;  %v2213_v48 = vld [vmem:[%s2476_s13 + $0x194] sm:$0xf] }
  0xda   : > { %v1786_v55 = vor.u32 %v2201_v45, %v1785_v43  ;;  %v1851_v49 = vld [vmem:[%s2476_s13 + $0x1b0] sm:$0xf0] }
  0xdb   : > { %v2688_v1 = vadd.f32 %v1272_v56, %v1219_v59  ;;  %v1168_v2 = vadd.f32 %v1167_v61, %v1114_v0  ;;  %1323 = vmatmul.bf16.gmra.mxu0 %v1722_v57  ;;  %v1790_v56 = vor.u32 %v2197_v46, %v1787_v47  ;;  %v1798_v61 = vor.u32 %v2198_v50, %v1795_v52  ;;  %v1849_v46 = vld [vmem:[%s2476_s13 + $0x190] sm:$0xf]  ;;  %v1857_v50 = vld [vmem:[%s2476_s13 + $0x198] sm:$0xf] }
  0xdc   : > { %1377 = vmatmul.bf16.gmra.mxu1 %v1726_v58  ;;  %v2217_v47 = vld [vmem:[%s2476_s13 + $0x1ac] sm:$0xf0]  ;;  %v2218_v52 = vld [vmem:[%s2476_s13 + $0x1b4] sm:$0xf0] }
  0xdd   : > { %1431 = vmatmul.bf16.gmra.mxu2 %v1730_v62 }
  0xde   : > { %2153 = vmatmul.msk.bf16.gmra.mxu3 %vm1057_vm1, %v1734_v63 }
  0xe0   : > { %v1221_v3 = vpop.f32.mrf.mxu2  ;;  %v1115_v6 = vpop.f32.mrf.mxu0 }
  0xe1   : > { %v1275_v4 = vpop.f32.mrf.mxu3  ;;  %v1222_v5 = vadd.f32 %v1221_v3, %v1168_v2  ;;  %v1169_v8 = vpop.f32.mrf.mxu1  ;;  %v1116_v9 = vadd.f32 %v2635_v28, %v1115_v6 }
  0xe3   : > { %v2692_v10 = vadd.f32 %v1275_v4, %v1222_v5  ;;  %v1170_v11 = vadd.f32 %v1169_v8, %v1116_v9 }
  0xe8   : > { %v1223_v21 = vpop.f32.mrf.mxu2  ;;  %v1118_v26 = vpop.f32.mrf.mxu0 }
  0xe9   : > { %v1277_v22 = vpop.f32.mrf.mxu3  ;;  %v1224_v25 = vadd.f32 %v1223_v21, %v1170_v11  ;;  %v1172_v27 = vpop.f32.mrf.mxu1  ;;  %v1119_v31 = vadd.f32 %v2635_v28, %v1118_v26 }
  0xeb   : > { %v2703_v32 = vadd.f32 %v1277_v22, %v1224_v25  ;;  %v1173_v33 = vadd.f32 %v1172_v27, %v1119_v31  ;;  %1328 = vmatmul.bf16.gmra.mxu0 %v1754_v23  ;;  %v1818_v23 = vor.u32 %v2209_v13, %v1817_v12 }
  0xec   : > { %1382 = vmatmul.bf16.gmra.mxu1 %v1758_v24  ;;  %v1822_v24 = vor.u32 %v2205_v14, %v1819_v16 }
  0xed   : > { %1436 = vmatmul.bf16.gmra.mxu2 %v1762_v29  ;;  %v1826_v29 = vor.u32 %v2210_v18, %v1825_v17  ;;  %v1881_v17 = vld [vmem:[%s2476_s13 + $0x1d0] sm:$0xf] }
  0xee   : > { %2154 = vmatmul.msk.bf16.gmra.mxu3 %vm1057_vm1, %v1766_v30  ;;  %v1830_v30 = vor.u32 %v2206_v19, %v1827_v20  ;;  %v2225_v18 = vld [vmem:[%s2476_s13 + $0x1ec] sm:$0xf0]  ;;  %v2221_v19 = vld [vmem:[%s2476_s13 + $0x1d4] sm:$0xf] }
  0xef   : > { %v1883_v20 = vld [vmem:[%s2476_s13 + $0x1f0] sm:$0xf0] }
  0xf0   : > { %v1226_v34 = vpop.f32.mrf.mxu2  ;;  %v1120_v38 = vpop.f32.mrf.mxu0 }
  0xf1   : > { %v1280_v35 = vpop.f32.mrf.mxu3  ;;  %v1227_v37 = vadd.f32 %v1226_v34, %v1173_v33  ;;  %v1174_v39 = vpop.f32.mrf.mxu1  ;;  %v1121_v40 = vadd.f32 %v2635_v28, %v1120_v38 }
  0xf3   : > { %v2707_v41 = vadd.f32 %v1280_v35, %v1227_v37  ;;  %v1175_v42 = vadd.f32 %v1174_v39, %v1121_v40 }
  0xf8   : > { %v1228_v53 = vpop.f32.mrf.mxu2  ;;  %v1123_v58 = vpop.f32.mrf.mxu0 }
  0xf9   : > { %v1282_v54 = vpop.f32.mrf.mxu3  ;;  %v1229_v57 = vadd.f32 %v1228_v53, %v1175_v42  ;;  %v1177_v59 = vpop.f32.mrf.mxu1  ;;  %v1124_v62 = vadd.f32 %v2635_v28, %v1123_v58  ;;  %v2214_v53 = vld [vmem:[%s2476_s13 + $0x19c] sm:$0xf]  ;;  %v1854_v58 = vor.u32 %v2213_v48, %v1851_v49 }
  0xfb   : > { %v2718_v63 = vadd.f32 %v1282_v54, %v1229_v57  ;;  %v1178_v0 = vadd.f32 %v1177_v59, %v1124_v62  ;;  %1333 = vmatmul.bf16.gmra.mxu0 %v1786_v55  ;;  %v1859_v54 = vld [vmem:[%s2476_s13 + $0x1b8] sm:$0xf0]  ;;  %v1850_v57 = vor.u32 %v2217_v47, %v1849_v46  ;;  %v1858_v62 = vor.u32 %v2218_v52, %v1857_v50 }
  0xfc   : > { %1387 = vmatmul.bf16.gmra.mxu1 %v1790_v56 }
  0xfd   : > { %1441 = vmatmul.bf16.gmra.mxu2 %v1794_v60 }
  0xfe   : > { %2155 = vmatmul.msk.bf16.gmra.mxu3 %vm1057_vm1, %v1798_v61 }
 0x100   : > { %v1231_v2 = vpop.f32.mrf.mxu2  ;;  %v1125_v5 = vpop.f32.mrf.mxu0 }
 0x101   : > { %v1285_v3 = vpop.f32.mrf.mxu3  ;;  %v1232_v4 = vadd.f32 %v1231_v2, %v1178_v0  ;;  %v1179_v6 = vpop.f32.mrf.mxu1  ;;  %v1126_v8 = vadd.f32 %v2635_v28, %v1125_v5  ;;  %v1862_v0 = vor.u32 %v2214_v53, %v1859_v54  ;;  %v1913_v53 = vld [vmem:[%s2476_s13 + $0x210] sm:$0xf] }
 0x102   : > { %v2233_v54 = vld [vmem:[%s2476_s13 + $0x22c] sm:$0xf0] }
 0x103   : > { %v2722_v9 = vadd.f32 %v1285_v3, %v1232_v4  ;;  %v1180_v11 = vadd.f32 %v1179_v6, %v1126_v8 }
 0x108   : > { %v1233_v21 = vpop.f32.mrf.mxu2  ;;  %v1128_v26 = vpop.f32.mrf.mxu0 }
 0x109   : > { %v1287_v22 = vpop.f32.mrf.mxu3  ;;  %v1234_v25 = vadd.f32 %v1233_v21, %v1180_v11  ;;  %v1182_v27 = vpop.f32.mrf.mxu1  ;;  %v1129_v31 = vadd.f32 %v2635_v28, %v1128_v26  ;;  %v1889_v21 = vld [vmem:[%s2476_s13 + $0x1d8] sm:$0xf] }
 0x10b   : > { %v2733_v33 = vadd.f32 %v1287_v22, %v1234_v25  ;;  %v1183_v34 = vadd.f32 %v1182_v27, %v1129_v31  ;;  %1338 = vmatmul.bf16.gmra.mxu0 %v1818_v23  ;;  %v2226_v22 = vld [vmem:[%s2476_s13 + $0x1f4] sm:$0xf0]  ;;  %v2222_v23 = vld [vmem:[%s2476_s13 + $0x1dc] sm:$0xf]  ;;  %v1882_v27 = vor.u32 %v2225_v18, %v1881_v17 }
 0x10c   : > { %1392 = vmatmul.bf16.gmra.mxu1 %v1822_v24  ;;  %v1891_v24 = vld [vmem:[%s2476_s13 + $0x1f8] sm:$0xf0] }
 0x10d   : > { %1446 = vmatmul.bf16.gmra.mxu2 %v1826_v29  ;;  %v1886_v29 = vor.u32 %v2221_v19, %v1883_v20 }
 0x10e   : > { %2156 = vmatmul.msk.bf16.gmra.mxu3 %vm1057_vm1, %v1830_v30 }
 0x110   : > { %v1236_v35 = vpop.f32.mrf.mxu2  ;;  %v1130_v39 = vpop.f32.mrf.mxu0 }
 0x111   : > { %v1290_v37 = vpop.f32.mrf.mxu3  ;;  %v1237_v38 = vadd.f32 %v1236_v35, %v1183_v34  ;;  %v1184_v40 = vpop.f32.mrf.mxu1  ;;  %v1131_v42 = vadd.f32 %v2635_v28, %v1130_v39  ;;  %v1890_v35 = vor.u32 %v2226_v22, %v1889_v21 }
 0x113   : > { %v2737_v43 = vadd.f32 %v1290_v37, %v1237_v38  ;;  %v1185_v45 = vadd.f32 %v1184_v40, %v1131_v42  ;;  %v1894_v37 = vor.u32 %v2222_v23, %v1891_v24 }
 0x118   : > { %v1238_v55 = vpop.f32.mrf.mxu2  ;;  %v1133_v60 = vpop.f32.mrf.mxu0 }
 0x119   : > { %v1292_v56 = vpop.f32.mrf.mxu3  ;;  %v1239_v59 = vadd.f32 %v1238_v55, %v1185_v45  ;;  %v1187_v61 = vpop.f32.mrf.mxu1  ;;  %v1134_v2 = vadd.f32 %v2635_v28, %v1133_v60  ;;  %v2229_v55 = vld [vmem:[%s2476_s13 + $0x214] sm:$0xf]  ;;  %v1923_v60 = vld [vmem:[%s2476_s13 + $0x238] sm:$0xf0] }
 0x11b   : > { %v2748_v3 = vadd.f32 %v1292_v56, %v1239_v59  ;;  %v1188_v4 = vadd.f32 %v1187_v61, %v1134_v2  ;;  %1343 = vmatmul.bf16.gmra.mxu0 %v1850_v57  ;;  %v1915_v56 = vld [vmem:[%s2476_s13 + $0x230] sm:$0xf0]  ;;  %v1921_v57 = vld [vmem:[%s2476_s13 + $0x218] sm:$0xf]  ;;  %v2230_v59 = vld [vmem:[%s2476_s13 + $0x21c] sm:$0xf] }
 0x11c   : > { %1397 = vmatmul.bf16.gmra.mxu1 %v1854_v58  ;;  %v2234_v58 = vld [vmem:[%s2476_s13 + $0x234] sm:$0xf0]  ;;  %v1918_v2 = vor.u32 %v2229_v55, %v1915_v56  ;;  %s1638_s13 = sshll.u32 %s2821_s11, 2 }
 0x11d   : > { %1451 = vmatmul.bf16.gmra.mxu2 %v1858_v62  ;;  %s2786_s14 = scalar_lea.vmem %s2819_s3, %s1638_s13 }
 0x11e   : > { %2157 = vmatmul.msk.bf16.gmra.mxu3 %vm1057_vm1, %v1862_v0  ;;  %v1914_v0 = vor.u32 %v2233_v54, %v1913_v53 }
 0x120   : > { %v1241_v5 = vpop.f32.mrf.mxu2  ;;  %v1135_v11 = vpop.f32.mrf.mxu0 }
 0x121   : > { %v1295_v6 = vpop.f32.mrf.mxu3  ;;  %v1242_v8 = vadd.f32 %v1241_v5, %v1188_v4  ;;  %v1189_v12 = vpop.f32.mrf.mxu1  ;;  %v1136_v13 = vadd.f32 %v2635_v28, %v1135_v11 }
 0x123   : > { %v2752_v14 = vadd.f32 %v1295_v6, %v1242_v8  ;;  %v1190_v16 = vadd.f32 %v1189_v12, %v1136_v13  ;;  %v1922_v8 = vor.u32 %v2234_v58, %v1921_v57 }
 0x128   : > { %v1243_v25 = vpop.f32.mrf.mxu2  ;;  %v1138_v31 = vpop.f32.mrf.mxu0 }
 0x129   : > { %v1297_v26 = vpop.f32.mrf.mxu3  ;;  %v1244_v30 = vadd.f32 %v1243_v25, %v1190_v16  ;;  %v1192_v34 = vpop.f32.mrf.mxu1  ;;  %v1139_v38 = vadd.f32 %v2635_v28, %v1138_v31 }
 0x12b   : > { %v2763_v39 = vadd.f32 %v1297_v26, %v1244_v30  ;;  %v1193_v40 = vadd.f32 %v1192_v34, %v1139_v38  ;;  %1348 = vmatmul.bf16.gmra.mxu0 %v1882_v27 }
 0x12c   : > { %1402 = vmatmul.bf16.gmra.mxu1 %v1886_v29 }
 0x12d   : > { %1456 = vmatmul.bf16.gmra.mxu2 %v1890_v35 }
 0x12e   : > { %2158 = vmatmul.msk.bf16.gmra.mxu3 %vm1057_vm1, %v1894_v37 }
 0x130   : > { %v1246_v42 = vpop.f32.mrf.mxu2  ;;  %v1140_v47 = vpop.f32.mrf.mxu0 }
 0x131   : > { %v1300_v45 = vpop.f32.mrf.mxu3  ;;  %v1247_v46 = vadd.f32 %v1246_v42, %v1193_v40  ;;  %v1194_v48 = vpop.f32.mrf.mxu1  ;;  %v1141_v49 = vadd.f32 %v2635_v28, %v1140_v47  ;;  %v1926_v28 = vor.u32 %v2230_v59, %v1923_v60 }
 0x133   : > { %v2767_v50 = vadd.f32 %v1300_v45, %v1247_v46  ;;  %v1195_v52 = vadd.f32 %v1194_v48, %v1141_v49 }
 0x138   : > { %v1248_v61 = vpop.f32.mrf.mxu2  ;;  %v1314_v5 = vpop.f32.mrf.mxu0 }
 0x139   : > { %v1302_v62 = vpop.f32.mrf.mxu3  ;;  %v1249_v4 = vadd.f32 %v1248_v61, %v1195_v52  ;;  %v1368_v6 = vpop.f32.mrf.mxu1  ;;  %v1315_v12 = vadd.f32 %v1314_v5, %v2647_v51 }
 0x13b   : > { %v2777_v11 = vadd.f32 %v1302_v62, %v1249_v4  ;;  %1353 = vmatmul.bf16.gmra.mxu0 %v1914_v0  ;;  %v1369_v19 = vadd.f32 %v1368_v6, %v1315_v12 }
 0x13c   : > { %1407 = vmatmul.bf16.gmra.mxu1 %v1918_v2 }
 0x13d   : > { %1461 = vmatmul.bf16.gmra.mxu2 %v1922_v8 }
 0x13e   : > { %2159 = vmatmul.msk.bf16.gmra.mxu3 %vm1057_vm1, %v1926_v28 }
 0x140   : > { %v1422_v13 = vpop.f32.mrf.mxu2  ;;  %v1316_v17 = vpop.f32.mrf.mxu0 }
 0x141   : > { %v1476_v16 = vpop.f32.mrf.mxu3  ;;  %v1370_v18 = vpop.f32.mrf.mxu1  ;;  %v1317_v20 = vadd.f32 %v1316_v17, %v2658_v7  ;;  %v1423_v21 = vadd.f32 %v1422_v13, %v1369_v19 }
 0x143   : > { %v1371_v22 = vadd.f32 %v1370_v18, %v1317_v20  ;;  %v1477_v25 = vadd.f32 %v1476_v16, %v1423_v21 }
 0x145   : > { %v1521_v31 = vmax.f32 %v1477_v25, 0.0 }
 0x148   : > { %v1424_v23 = vpop.f32.mrf.mxu2  ;;  %v1319_v27 = vpop.f32.mrf.mxu0 }
 0x149   : > { %v1478_v24 = vpop.f32.mrf.mxu3  ;;  %v1425_v26 = vadd.f32 %v1424_v23, %v1371_v22  ;;  %v1373_v29 = vpop.f32.mrf.mxu1  ;;  %v1320_v7 = vadd.f32 %v1319_v27, %v2662_v15 }
 0x14b   : > { %v1479_v30 = vadd.f32 %v1478_v24, %v1425_v26  ;;  %v1374_v42 = vadd.f32 %v1373_v29, %v1320_v7 }
 0x14d   : > { %v1522_v34 = vmax.f32 %v1479_v30, 0.0 }
 0x14f   : > { %v2294_v51 = vpack.c.bf16 %v1522_v34, %v1521_v31 }
 0x150   : > { %v1427_v35 = vpop.f32.mrf.mxu2  ;;  %v1321_v38 = vpop.f32.mrf.mxu0 }
 0x151   : > { %v1481_v37 = vpop.f32.mrf.mxu3  ;;  %2295 = vst [vmem:[%s2786_s14] sm:$0xff] %v2294_v51   ;;  %v1375_v40 = vpop.f32.mrf.mxu1  ;;  %v1322_v45 = vadd.f32 %v1321_v38, %v2673_v36  ;;  %v1428_v46 = vadd.f32 %v1427_v35, %v1374_v42 }
 0x153   : > { %v1376_v47 = vadd.f32 %v1375_v40, %v1322_v45  ;;  %v1482_v52 = vadd.f32 %v1481_v37, %v1428_v46 }
 0x155   : > { %v1523_v57 = vmax.f32 %v1482_v52, 0.0 }
 0x158   : > { %v1429_v48 = vpop.f32.mrf.mxu2  ;;  %v1324_v54 = vpop.f32.mrf.mxu0 }
 0x159   : > { %v1483_v49 = vpop.f32.mrf.mxu3  ;;  %v1430_v53 = vadd.f32 %v1429_v48, %v1376_v47  ;;  %v1378_v55 = vpop.f32.mrf.mxu1  ;;  %v1325_v59 = vadd.f32 %v1324_v54, %v2677_v44 }
 0x15b   : > { %v1484_v56 = vadd.f32 %v1483_v49, %v1430_v53  ;;  %v1379_v0 = vadd.f32 %v1378_v55, %v1325_v59 }
 0x15d   : > { %v1524_v15 = vmax.f32 %v1484_v56, 0.0 }
 0x15f   : > { %v2299_v58 = vpack.c.bf16 %v1524_v15, %v1523_v57 }
 0x160   : > { %v1432_v60 = vpop.f32.mrf.mxu2  ;;  %v1326_v62 = vpop.f32.mrf.mxu0 }
 0x161   : > { %v1486_v61 = vpop.f32.mrf.mxu3  ;;  %2336 = vst [vmem:[%s2786_s14 + $0x8] sm:$0xff] %v2299_v58   ;;  %v1380_v36 = vpop.f32.mrf.mxu1  ;;  %v1327_v2 = vadd.f32 %v1326_v62, %v2688_v1  ;;  %v1433_v4 = vadd.f32 %v1432_v60, %v1379_v0 }
 0x163   : > { %v1381_v5 = vadd.f32 %v1380_v36, %v1327_v2  ;;  %v1487_v28 = vadd.f32 %v1486_v61, %v1433_v4 }
 0x165   : > { %v1525_v18 = vmax.f32 %v1487_v28, 0.0 }
 0x168   : > { %v1434_v6 = vpop.f32.mrf.mxu2  ;;  %v1329_v13 = vpop.f32.mrf.mxu0 }
 0x169   : > { %v1488_v8 = vpop.f32.mrf.mxu3  ;;  %v1435_v12 = vadd.f32 %v1434_v6, %v1381_v5  ;;  %v1383_v16 = vpop.f32.mrf.mxu1  ;;  %v1330_v20 = vadd.f32 %v1329_v13, %v2692_v10 }
 0x16b   : > { %v1489_v17 = vadd.f32 %v1488_v8, %v1435_v12  ;;  %v1384_v24 = vadd.f32 %v1383_v16, %v1330_v20 }
 0x16d   : > { %v1526_v44 = vmax.f32 %v1489_v17, 0.0 }
 0x16f   : > { %v2304_v19 = vpack.c.bf16 %v1526_v44, %v1525_v18 }
 0x170   : > { %v1437_v21 = vpop.f32.mrf.mxu2  ;;  %v1331_v23 = vpop.f32.mrf.mxu0 }
 0x171   : > { %v1491_v22 = vpop.f32.mrf.mxu3  ;;  %2337 = vst [vmem:[%s2786_s14 + $0x10] sm:$0xff] %v2304_v19   ;;  %v1385_v1 = vpop.f32.mrf.mxu1  ;;  %v1332_v25 = vadd.f32 %v1331_v23, %v2703_v32  ;;  %v1438_v26 = vadd.f32 %v1437_v21, %v1384_v24 }
 0x173   : > { %v1386_v27 = vadd.f32 %v1385_v1, %v1332_v25  ;;  %v1492_v31 = vadd.f32 %v1491_v22, %v1438_v26 }
 0x175   : > { %v1527_v37 = vmax.f32 %v1492_v31, 0.0 }
 0x178   : > { %v1439_v29 = vpop.f32.mrf.mxu2  ;;  %v1334_v51 = vpop.f32.mrf.mxu0 }
 0x179   : > { %v1493_v30 = vpop.f32.mrf.mxu3  ;;  %v1440_v34 = vadd.f32 %v1439_v29, %v1386_v27  ;;  %v1388_v7 = vpop.f32.mrf.mxu1  ;;  %v1335_v40 = vadd.f32 %v1334_v51, %v2707_v41 }
 0x17b   : > { %v1494_v35 = vadd.f32 %v1493_v30, %v1440_v34  ;;  %v1389_v47 = vadd.f32 %v1388_v7, %v1335_v40 }
 0x17d   : > { %v1528_v10 = vmax.f32 %v1494_v35, 0.0 }
 0x17f   : > { %v2309_v38 = vpack.c.bf16 %v1528_v10, %v1527_v37 }
 0x180   : > { %v1442_v42 = vpop.f32.mrf.mxu2  ;;  %v1336_v46 = vpop.f32.mrf.mxu0 }
 0x181   : > { %v1496_v45 = vpop.f32.mrf.mxu3  ;;  %2338 = vst [vmem:[%s2786_s14 + $0x18] sm:$0xff] %v2309_v38   ;;  %v1390_v32 = vpop.f32.mrf.mxu1  ;;  %v1337_v48 = vadd.f32 %v1336_v46, %v2718_v63  ;;  %v1443_v49 = vadd.f32 %v1442_v42, %v1389_v47 }
 0x183   : > { %v1391_v52 = vadd.f32 %v1390_v32, %v1337_v48  ;;  %v1497_v55 = vadd.f32 %v1496_v45, %v1443_v49 }
 0x185   : > { %v1529_v59 = vmax.f32 %v1497_v55, 0.0 }
 0x188   : > { %v1444_v53 = vpop.f32.mrf.mxu2  ;;  %v1339_v57 = vpop.f32.mrf.mxu0 }
 0x189   : > { %v1498_v54 = vpop.f32.mrf.mxu3  ;;  %v1445_v56 = vadd.f32 %v1444_v53, %v1391_v52  ;;  %v1393_v15 = vpop.f32.mrf.mxu1  ;;  %v1340_v61 = vadd.f32 %v1339_v57, %v2722_v9 }
 0x18b   : > { %v1499_v58 = vadd.f32 %v1498_v54, %v1445_v56  ;;  %v1394_v2 = vadd.f32 %v1393_v15, %v1340_v61 }
 0x18d   : > { %v1530_v41 = vmax.f32 %v1499_v58, 0.0 }
 0x18f   : > { %v2314_v60 = vpack.c.bf16 %v1530_v41, %v1529_v59 }
 0x190   : > { %v1447_v62 = vpop.f32.mrf.mxu2  ;;  %v1341_v0 = vpop.f32.mrf.mxu0 }
 0x191   : > { %v1501_v36 = vpop.f32.mrf.mxu3  ;;  %2339 = vst [vmem:[%s2786_s14 + $0x20] sm:$0xff] %v2314_v60   ;;  %v1395_v63 = vpop.f32.mrf.mxu1  ;;  %v1342_v4 = vadd.f32 %v1341_v0, %v2733_v33  ;;  %v1448_v5 = vadd.f32 %v1447_v62, %v1394_v2 }
 0x193   : > { %v1396_v6 = vadd.f32 %v1395_v63, %v1342_v4  ;;  %v1502_v12 = vadd.f32 %v1501_v36, %v1448_v5 }
 0x195   : > { %v1531_v44 = vmax.f32 %v1502_v12, 0.0 }
 0x198   : > { %v1449_v8 = vpop.f32.mrf.mxu2  ;;  %v1344_v16 = vpop.f32.mrf.mxu0 }
 0x199   : > { %v1503_v28 = vpop.f32.mrf.mxu3  ;;  %v1450_v13 = vadd.f32 %v1449_v8, %v1396_v6  ;;  %v1398_v17 = vpop.f32.mrf.mxu1  ;;  %v1345_v20 = vadd.f32 %v1344_v16, %v2737_v43 }
 0x19b   : > { %v1504_v18 = vadd.f32 %v1503_v28, %v1450_v13  ;;  %v1399_v1 = vadd.f32 %v1398_v17, %v1345_v20 }
 0x19d   : > { %v1532_v9 = vmax.f32 %v1504_v18, 0.0 }
 0x19f   : > { %v2319_v19 = vpack.c.bf16 %v1532_v9, %v1531_v44 }
 0x1a0   : > { %v1452_v21 = vpop.f32.mrf.mxu2  ;;  %v1346_v23 = vpop.f32.mrf.mxu0 }
 0x1a1   : > { %v1506_v22 = vpop.f32.mrf.mxu3  ;;  %2340 = vst [vmem:[%s2786_s14 + $0x28] sm:$0xff] %v2319_v19   ;;  %v1400_v33 = vpop.f32.mrf.mxu1  ;;  %v1347_v24 = vadd.f32 %v1346_v23, %v2748_v3  ;;  %v1453_v25 = vadd.f32 %v1452_v21, %v1399_v1 }
 0x1a3   : > { %v1401_v26 = vadd.f32 %v1400_v33, %v1347_v24  ;;  %v1507_v30 = vadd.f32 %v1506_v22, %v1453_v25 }
 0x1a5   : > { %v1533_v35 = vmax.f32 %v1507_v30, 0.0 }
 0x1a8   : > { %v1454_v27 = vpop.f32.mrf.mxu2  ;;  %v1349_v34 = vpop.f32.mrf.mxu0 }
 0x1a9   : > { %v1508_v29 = vpop.f32.mrf.mxu3  ;;  %v1455_v31 = vadd.f32 %v1454_v27, %v1401_v26  ;;  %v1403_v51 = vpop.f32.mrf.mxu1  ;;  %v1350_v10 = vadd.f32 %v1349_v34, %v2752_v14 }
 0x1ab   : > { %v1509_v7 = vadd.f32 %v1508_v29, %v1455_v31  ;;  %v1404_v45 = vadd.f32 %v1403_v51, %v1350_v10 }
 0x1ad   : > { %v1534_v43 = vmax.f32 %v1509_v7, 0.0 }
 0x1af   : > { %v2324_v37 = vpack.c.bf16 %v1534_v43, %v1533_v35 }
 0x1b0   : > { %v1457_v38 = vpop.f32.mrf.mxu2  ;;  %v1351_v42 = vpop.f32.mrf.mxu0 }
 0x1b1   : > { %v1511_v40 = vpop.f32.mrf.mxu3  ;;  %2341 = vst [vmem:[%s2786_s14 + $0x30] sm:$0xff] %v2324_v37   ;;  %v1405_v3 = vpop.f32.mrf.mxu1  ;;  %v1352_v46 = vadd.f32 %v1351_v42, %v2763_v39  ;;  %v1458_v32 = vadd.f32 %v1457_v38, %v1404_v45 }
 0x1b3   : > { %v1406_v47 = vadd.f32 %v1405_v3, %v1352_v46  ;;  %v1512_v52 = vadd.f32 %v1511_v40, %v1458_v32 }
 0x1b5   : > { %v1535_v57 = vmax.f32 %v1512_v52, 0.0 }
 0x1b8   : > { %v1459_v48 = vpop.f32.mrf.mxu2  ;;  %v1354_v54 = vpop.f32.mrf.mxu0 }
 0x1b9   : > { %v1513_v49 = vpop.f32.mrf.mxu3  ;;  %v1460_v53 = vadd.f32 %v1459_v48, %v1406_v47  ;;  %v1408_v56 = vpop.f32.mrf.mxu1  ;;  %v1355_v58 = vadd.f32 %v1354_v54, %v2767_v50 }
 0x1bb   : > { %v1514_v55 = vadd.f32 %v1513_v49, %v1460_v53  ;;  %v1409_v60 = vadd.f32 %v1408_v56, %v1355_v58 }
 0x1bd   : > { %v1536_v14 = vmax.f32 %v1514_v55, 0.0 }
 0x1bf   : > { %v2329_v15 = vpack.c.bf16 %v1536_v14, %v1535_v57 }
 0x1c0   : > { %v1462_v59 = vpop.f32.mrf.mxu2  ;;  %v1356_v39 = vpop.f32.mrf.mxu0 }
 0x1c1   : > { %v1516_v41 = vpop.f32.mrf.mxu3  ;;  %2342 = vst [vmem:[%s2786_s14 + $0x38] sm:$0xff] %v2329_v15   ;;  %v1357_v61 = vadd.f32 %v1356_v39, %v2777_v11  ;;  %v1463_v62 = vadd.f32 %v1462_v59, %v1409_v60  ;;  %v1410_v36 = vpop.f32.mrf.mxu1 }
 0x1c3   : > { %v1411_v0 = vadd.f32 %v1410_v36, %v1357_v61  ;;  %v1517_v2 = vadd.f32 %v1516_v41, %v1463_v62 }
 0x1c5   : > { %v1537_v8 = vmax.f32 %v1517_v2, 0.0 }
 0x1c8   : > { %v1464_v63 = vpop.f32.mrf.mxu2 }
 0x1c9   : > { %v1465_v4 = vadd.f32 %v1464_v63, %v1411_v0  ;;  %v1518_v5 = vpop.f32.mrf.mxu3 }
 0x1cb   : > { %v1519_v6 = vadd.f32 %v1518_v5, %v1465_v4 }
 0x1cd   : > { %v1538_v28 = vmax.f32 %v1519_v6, 0.0 }
 0x1cf   : > { %v2334_v12 = vpack.c.bf16 %v1538_v28, %v1537_v8 }
 0x1d1   : > { %2343 = vst [vmem:[%s2786_s14 + $0x40] sm:$0xff] %v2334_v12  }
 0x1d2 PF: > { %s13_s12 = sadd.s32 1, %s2359_s12  }
 0x1d3   : > { %p10_p4 = scmp.ge.s32.totalorder %s13_s12, 4  }
 0x1d5   :  { %12 = sbr.rel (!%p10_p4) target bundleno = 1 (0x1), region = 62 }

// kernel: pilotnet_forward.7
= control target key start
LH: loop header
LB: loop body
LE: loop exit
PB: predicated region body
PF: predicated region fallthrough
CT: control target
= control target key end

     0   :  { %vm110_vm0 = vsmask.f32 7424  ;;  %vm330_vm1 = vcmask 1046528   ;;  %vm478_vm2 = vcmask 1044480   ;;  %vm598_vm3 = vsmask.f32 4352  ;;  %s8414_s1 = inlined_call_operand.vmem [shape: bf16[9,128,64], index: 1, kind: input, shape index: {}]   ;;  %s8415_s0 = inlined_call_operand.vmem [shape: bf16[220,128], index: 0, kind: input, shape index: {}]   ;;  %s8416_s2 = inlined_call_operand.vmem [shape: f32[1,64], index: 2, kind: input, shape index: {}]   ;;  %s8417_s3 = inlined_call_operand.vmem [shape: bf16[9,64,64], index: 3, kind: input, shape index: {}]   ;;  %s8418_s4 = inlined_call_operand.vmem [shape: f32[1,64], index: 4, kind: input, shape index: {}]   ;;  %s8419_s5 = inlined_call_operand.vmem [shape: bf16[18,64,128], index: 5, kind: input, shape index: {}]   ;;  %s8420_s8 = inlined_call_operand.vmem [shape: f32[1,128], index: 8, kind: input, shape index: {}]   ;;  %s8421_s7 = inlined_call_operand.vmem [shape: bf16[128,128], index: 7, kind: input, shape index: {}]   ;;  %s8422_s9 = inlined_call_operand.vmem [shape: bf16[128,128], index: 9, kind: input, shape index: {}]   ;;  %s8423_s6 = inlined_call_operand.vmem [shape: f32[1,128], index: 6, kind: input, shape index: {}]   ;;  %s8424_s10 = inlined_call_operand.vmem [shape: f32[1,128], index: 10, kind: input, shape index: {}]   ;;  %s8425_s11 = inlined_call_operand.vmem [shape: bf16[128,128], index: 11, kind: input, shape index: {}]   ;;  %s8426_s12 = inlined_call_operand.vmem [shape: f32[1,128], index: 12, kind: input, shape index: {}]   ;;  %s8427_s13 = inlined_call_operand.vmem [shape: f32[8,128], index: 13, kind: output, shape index: {}]  }
   0x1   :  { %v5829_v0 = vld [vmem:[%s8414_s1 + $0x78] sm:$0xff]  ;;  %v5828_v4 = vld [vmem:[%s8414_s1 + $0x70] sm:$0xff]  ;;  %v5827_v8 = vld [vmem:[%s8414_s1 + $0x68] sm:$0xff]  ;;  %vm891_vm4 = vcmask 1045504   ;;  %vm1011_vm5 = vsmask.f32 5376 }
   0x2   :  { %v5821_v1 = vld [vmem:[%s8414_s1 + $0x38] sm:$0xff]  ;;  %199 = vmatpush.bf16.msra.mxu0 %v5829_v0  ;;  %v5820_v5 = vld [vmem:[%s8414_s1 + $0x30] sm:$0xff]  ;;  %v5819_v9 = vld [vmem:[%s8414_s1 + $0x28] sm:$0xff]  ;;  %vm1356_vm6 = vcmask 523264   ;;  %vm3386_vm7 = vsmask.f32 6400 }
   0x3   :  { %v5837_v2 = vld [vmem:[%s8414_s1 + $0xb8] sm:$0xff]  ;;  %280 = vmatpush.bf16.msra.mxu1 %v5821_v1  ;;  %v5836_v6 = vld [vmem:[%s8414_s1 + $0xb0] sm:$0xff]  ;;  %v5835_v10 = vld [vmem:[%s8414_s1 + $0xa8] sm:$0xff]  ;;  %vm4241_vm8 = vcmask 1040384   ;;  %vm4243_vm9 = vcmask 1041408   ;;  %vm4245_vm10 = vcmask 1042432  }
   0x4   :  { %v5845_v3 = vld [vmem:[%s8414_s1 + $0xf8] sm:$0xff]  ;;  %392 = vmatpush.bf16.msra.mxu2 %v5837_v2  ;;  %v5844_v7 = vld [vmem:[%s8414_s1 + $0xf0] sm:$0xff]  ;;  %v5843_v11 = vld [vmem:[%s8414_s1 + $0xe8] sm:$0xff]  ;;  %vm4247_vm11 = vcmask 1043456  }
   0x5   :  { %540 = vmatpush.bf16.msra.mxu3 %v5845_v3  ;;  %v5826_v12 = vld [vmem:[%s8414_s1 + $0x60] sm:$0xff]  ;;  %v5825_v16 = vld [vmem:[%s8414_s1 + $0x58] sm:$0xff]  ;;  %v429_v21 = vld [vmem:[%s8415_s0 + $0x8] sm:$0x8] }
   0x6   :  { %200 = vmatpush.bf16.msra.mxu0 %v5828_v4  ;;  %v5818_v13 = vld [vmem:[%s8414_s1 + $0x20] sm:$0xff]  ;;  %v5817_v17 = vld [vmem:[%s8414_s1 + $0x18] sm:$0xff]  ;;  %v6443_v22 = vld [vmem:[%s8415_s0 + $0xc] sm:$0xf]  ;;  %v464_v29 = vunpack.c.l.b16 %v429_v21 }
   0x7   :  { %281 = vmatpush.bf16.msra.mxu1 %v5820_v5  ;;  %v5834_v14 = vld [vmem:[%s8414_s1 + $0xa0] sm:$0xff]  ;;  %v5833_v18 = vld [vmem:[%s8414_s1 + $0x98] sm:$0xff]  ;;  %v5824_v23 = vld [vmem:[%s8414_s1 + $0x50] sm:$0xff]  ;;  %v465_v30 = vunpack.c.l.b16 %v6443_v22 }
   0x8   :  { %393 = vmatpush.bf16.msra.mxu2 %v5836_v6  ;;  %v5842_v15 = vld [vmem:[%s8414_s1 + $0xe0] sm:$0xff]  ;;  %v5841_v19 = vld [vmem:[%s8414_s1 + $0xd8] sm:$0xff]  ;;  %v5816_v24 = vld [vmem:[%s8414_s1 + $0x10] sm:$0xff] }
   0x9   :  { %541 = vmatpush.bf16.msra.mxu3 %v5844_v7  ;;  %v6028_v20 = vld [vmem:[%s8415_s0] sm:$0xff]   ;;  %v6454_v25 = vld [vmem:[%s8415_s0 + $0x8] sm:$0xff]  ;;  %v5832_v27 = vld [vmem:[%s8414_s1 + $0x90] sm:$0xff]  ;;  %v6484_v41 = vpack.c.b16 %v465_v30, %v464_v29 }
   0xa   :  { %201 = vmatpush.bf16.msra.mxu0 %v5827_v8  ;;  %v114_v26 = vshll.u32 %v6028_v20, 16  ;;  %v5840_v28 = vld [vmem:[%s8414_s1 + $0xd0] sm:$0xff]  ;;  %v6059_v31 = vld [vmem:[%s8415_s0] sm:$0xf0]  ;;  %v6060_v32 = vld [vmem:[%s8415_s0] sm:$0xe] }
   0xb   :  { %282 = vmatpush.bf16.msra.mxu1 %v5819_v9  ;;  %v5823_v33 = vld [vmem:[%s8414_s1 + $0x48] sm:$0xff]  ;;  %v112_v35 = vshrl.u32 %v6028_v20, 16  ;;  %v119_v37 = vshll.u32 %v6454_v25, 16  ;;  %v6061_v40 = vor.u32 %v6060_v32, %v6059_v31  ;;  %v6489_v42 = vld [vmem:[%s8415_s0 + $0x10] sm:$0xff]   ;;  %v5822_v43 = vld [vmem:[%s8414_s1 + $0x40] sm:$0xff]  ;;  %v332_v50 = vrot.slane %v6454_v25, 1 }
   0xc   :  { %394 = vmatpush.bf16.msra.mxu2 %v5835_v10  ;;  %v5815_v34 = vld [vmem:[%s8414_s1 + $0x8] sm:$0xff]  ;;  %v116_v36 = vrot.slane %v114_v26, 1  ;;  %v5814_v44 = vld [vmem:[%s8414_s1] sm:$0xff]  ;;  %v479_v51 = vrot.slane %v6484_v41, 3  ;;  %v480_v52 = vrot.slane %v6489_v42, 3  ;;  %v5853_v53 = vld [vmem:[%s8414_s1 + $0x138] sm:$0xff] }
   0xd   :  { %542 = vmatpush.bf16.msra.mxu3 %v5843_v11  ;;  %v5831_v38 = vld [vmem:[%s8414_s1 + $0x88] sm:$0xff]  ;;  %v121_v46 = vrot.slane %v119_v37, 1  ;;  %v5830_v47 = vld [vmem:[%s8414_s1 + $0x80] sm:$0xff]  ;;  %v331_v49 = vrot.slane %v6061_v40, 1  ;;  %v5852_v57 = vld [vmem:[%s8414_s1 + $0x130] sm:$0xff]  ;;  %v123_v2 = vshrl.u32 %v6454_v25, 16 }
   0xe   :  { %202 = vmatpush.bf16.msra.mxu0 %v5826_v12  ;;  %v5839_v39 = vld [vmem:[%s8414_s1 + $0xc8] sm:$0xff]  ;;  %v117_v45 = vor.u32 %v116_v36, %v112_v35  ;;  %v5838_v48 = vld [vmem:[%s8414_s1 + $0xc0] sm:$0xff]  ;;  %v481_v56 = vsel %vm478_vm2, %v479_v51, %v480_v52  ;;  %v5872_v58 = vld [vmem:[%s8414_s1 + $0x1b8] sm:$0xff] }
   0xf   :  { %283 = vmatpush.bf16.msra.mxu1 %v5818_v13  ;;  %v333_v55 = vsel %vm330_vm1, %v331_v49, %v332_v50  ;;  %v6521_v59 = vld [vmem:[%s8415_s0 + $0x10] sm:$0xff]  ;;  %v5861_v60 = vld [vmem:[%s8414_s1 + $0x178] sm:$0xff]  ;;  %v5851_v63 = vld [vmem:[%s8414_s1 + $0x128] sm:$0xff]  ;;  %v125_v9 = vor.u32 %v123_v2, %v121_v46 }
  0x10   :  { %395 = vmatpush.bf16.msra.mxu2 %v5834_v14  ;;  %v122_v54 = vsel %vm110_vm0, %v117_v45, %v121_v46  ;;  %v5880_v61 = vld [vmem:[%s8414_s1 + $0x1f8] sm:$0xff]  ;;  %v5871_v62 = vld [vmem:[%s8414_s1 + $0x1b0] sm:$0xff]  ;;  %v127_v3 = vshll.u32 %v6521_v59, 16  ;;  %v5870_v4 = vld [vmem:[%s8414_s1 + $0x1a8] sm:$0xff]  ;;  %v334_v11 = vrot.slane %v6521_v59, 1  ;;  %v131_v29 = vshrl.u32 %v6521_v59, 16 }
  0x11   :  { %543 = vmatpush.bf16.msra.mxu3 %v5842_v15  ;;  %v5860_v0 = vld [vmem:[%s8414_s1 + $0x170] sm:$0xff]  ;;  %v6549_v5 = vld [vmem:[%s8415_s0 + $0x18] sm:$0xff]   ;;  %v5850_v6 = vld [vmem:[%s8414_s1 + $0x120] sm:$0xff] }
  0x12   :  { %203 = vmatpush.bf16.msra.mxu0 %v5825_v16  ;;  %v5879_v1 = vld [vmem:[%s8414_s1 + $0x1f0] sm:$0xff]  ;;  %v5859_v7 = vld [vmem:[%s8414_s1 + $0x168] sm:$0xff]  ;;  %v129_v10 = vrot.slane %v127_v3, 1  ;;  %v482_v12 = vrot.slane %v6549_v5, 3  ;;  %v5869_v13 = vld [vmem:[%s8414_s1 + $0x1a0] sm:$0xff]  ;;  %v620_v22 = vshll.u32 %v6549_v5, 16 }
  0x13   :  { %284 = vmatpush.bf16.msra.mxu1 %v5817_v17  ;;  %v5878_v8 = vld [vmem:[%s8414_s1 + $0x1e8] sm:$0xff]  ;;  %v5849_v14 = vld [vmem:[%s8414_s1 + $0x118] sm:$0xff]  ;;  %v5858_v15 = vld [vmem:[%s8414_s1 + $0x160] sm:$0xff]  ;;  %v335_v17 = vsel %vm330_vm1, %v332_v50, %v334_v11 }
  0x14   :  { %396 = vmatpush.bf16.msra.mxu2 %v5833_v18  ;;  %v130_v16 = vsel %vm110_vm0, %v125_v9, %v129_v10  ;;  %v483_v18 = vsel %vm478_vm2, %v480_v52, %v482_v12  ;;  %v5868_v21 = vld [vmem:[%s8414_s1 + $0x198] sm:$0xff]  ;;  %v5867_v26 = vld [vmem:[%s8414_s1 + $0x190] sm:$0xff]  ;;  %v5846_v35 = vld [vmem:[%s8414_s1 + $0x100] sm:$0xff]  ;;  %v133_v37 = vor.u32 %v131_v29, %v129_v10  ;;  %v600_v10 = vshrl.u32 %v6484_v41, 16 }
  0x15   :  { %544 = vmatpush.bf16.msra.mxu3 %v5841_v19  ;;  %v5877_v19 = vld [vmem:[%s8414_s1 + $0x1e0] sm:$0xff]  ;;  %v5875_v32 = vld [vmem:[%s8414_s1 + $0x1d0] sm:$0xff]  ;;  %v5855_v36 = vld [vmem:[%s8414_s1 + $0x148] sm:$0xff] }
  0x16   :  { %204 = vmatpush.bf16.msra.mxu0 %v5824_v23  ;;  %v6587_v23 = vld [vmem:[%s8415_s0 + $0x18] sm:$0xff]  ;;  %v5865_v45 = vld [vmem:[%s8414_s1 + $0x180] sm:$0xff]  ;;  %v437_v52 = vld [vmem:[%s8415_s0 + $0x28] sm:$0x7] }
  0x17   :  { %285 = vmatpush.bf16.msra.mxu1 %v5816_v24  ;;  %v5857_v24 = vld [vmem:[%s8414_s1 + $0x158] sm:$0xff]  ;;  %v135_v31 = vshll.u32 %v6587_v23, 16  ;;  %v5854_v46 = vld [vmem:[%s8414_s1 + $0x140] sm:$0xff]  ;;  %vm5744_vm12 = vmpackc.low %vm330_vm1, %vm330_vm1 }
  0x18   :  { %397 = vmatpush.bf16.msra.mxu2 %v5832_v27  ;;  %v5847_v27 = vld [vmem:[%s8414_s1 + $0x108] sm:$0xff]  ;;  %v5873_v51 = vld [vmem:[%s8414_s1 + $0x1c0] sm:$0xff] }
  0x19   :  { %545 = vmatpush.bf16.msra.mxu3 %v5840_v28  ;;  %v5856_v28 = vld [vmem:[%s8414_s1 + $0x150] sm:$0xff] }
  0x1a   :  { %205 = vmatpush.bf16.msra.mxu0 %v5823_v33  ;;  %v5866_v33 = vld [vmem:[%s8414_s1 + $0x188] sm:$0xff] }
  0x1b   :  { %286 = vmatpush.bf16.msra.mxu1 %v5815_v34  ;;  %v6615_v34 = vld [vmem:[%s8415_s0 + $0x20] sm:$0xff]  }
  0x1c   :  { %398 = vmatpush.bf16.msra.mxu2 %v5831_v38  ;;  %v137_v38 = vrot.slane %v135_v31, 1  ;;  %v484_v40 = vrot.slane %v6615_v34, 3 }
  0x1d   :  { %546 = vmatpush.bf16.msra.mxu3 %v5839_v39  ;;  %v336_v39 = vrot.slane %v6587_v23, 1 }
  0x1e   :  { %206 = vmatpush.bf16.msra.mxu0 %v5822_v43  ;;  %v69_v43 = vld [vmem:[%s8415_s0 + $0x20] sm:$0x1]  ;;  %v485_v50 = vsel %vm478_vm2, %v482_v12, %v484_v40  ;;  %v608_v12 = vshrl.u32 %v6489_v42, 16 }
  0x1f   :  { %287 = vmatpush.bf16.msra.mxu1 %v5814_v44  ;;  %v5874_v44 = vld [vmem:[%s8414_s1 + $0x1c8] sm:$0xff]  ;;  %v337_v49 = vsel %vm330_vm1, %v334_v11, %v336_v39  ;;  %v603_v11 = vshll.u32 %v6484_v41, 16  ;;  %v602_v41 = vrot.slane %v600_v10, 3 }
  0x20   :  { %399 = vmatpush.bf16.msra.mxu2 %v5830_v47  ;;  %v138_v47 = vsel %vm110_vm0, %v133_v37, %v137_v38 }
  0x21   :  { %547 = vmatpush.bf16.msra.mxu3 %v5838_v48  ;;  %207 = vmatmul.bf16.vlgmr.msra.gmra.mxu0 %v122_v54  ;;  %v104_v48 = vunpack.c.l.b16 %v69_v43  ;;  %v5888_v54 = vld [vmem:[%s8414_s1 + $0x238] sm:$0xff]  ;;  %v617_v43 = vshrl.u32 %v6549_v5, 16 }
  0x22   :  { %695 = vmatpush.bf16.msrb.mxu0 %v5853_v53  ;;  %288 = vmatmul.bf16.vlgmr.msra.gmra.mxu1 %v6028_v20  ;;  %v5848_v20 = vld [vmem:[%s8414_s1 + $0x110] sm:$0xff] }
  0x23   :  { %400 = vmatmul.bf16.vlgmr.msra.gmra.mxu2 %v333_v55  ;;  %805 = vmatpush.bf16.msrb.mxu1 %v5861_v60  ;;  %v109_v53 = vpack.c.b16 %v104_v48, %v104_v48  ;;  %v472_v55 = vunpack.c.l.b16 %v437_v52  ;;  %v622_v48 = vrot.slane %v620_v22, 4  ;;  %v1145_v22 = vld [vmem:[%s8415_s0 + $0x14] sm:$0x8] }
  0x24   :  { %548 = vmatmul.bf16.vlgmr.msra.gmra.mxu3 %v481_v56  ;;  %953 = vmatpush.bf16.msrb.mxu2 %v5872_v58  ;;  %v5887_v56 = vld [vmem:[%s8414_s1 + $0x230] sm:$0xff] }
  0x25   :  { %1108 = vmatpush.bf16.msrb.mxu3 %v5880_v61  ;;  %v143_v58 = vshll.u32 %v109_v53, 16  ;;  %v477_v60 = vpack.c.b16 %v472_v55, %v472_v55  ;;  %v6660_v61 = vld [vmem:[%s8415_s0 + $0x18] sm:$0xf] }
  0x26   :  { %696 = vmatpush.bf16.msrb.mxu0 %v5852_v57  ;;  %v139_v57 = vshrl.u32 %v6587_v23, 16  ;;  %v878_v3 = vunpack.c.l.b16 %v6660_v61 }
  0x27   :  { %806 = vmatpush.bf16.msrb.mxu1 %v5860_v0  ;;  %v338_v0 = vrot.slane %v109_v53, 1  ;;  %v6081_v53 = vld [vmem:[%s8415_s0 + $0x14] sm:$0xff]  }
  0x28   :  { %954 = vmatpush.bf16.msrb.mxu2 %v5871_v62  ;;  %v141_v62 = vor.u32 %v139_v57, %v137_v38  ;;  %v6718_v57 = vld [vmem:[%s8415_s0 + $0x2c] sm:$0xff] }
  0x29   :  { %1109 = vmatpush.bf16.msrb.mxu3 %v5879_v1  ;;  %v486_v1 = vrot.slane %v477_v60, 3  ;;  %v629_v60 = vshll.u32 %v6615_v34, 16 }
  0x2a   :  { %697 = vmatpush.bf16.msrb.mxu0 %v5851_v63  ;;  %v145_v63 = vrot.slane %v143_v58, 1  ;;  %v626_v58 = vshrl.u32 %v6615_v34, 16 }
  0x2b   :  { %807 = vmatpush.bf16.msrb.mxu1 %v5859_v7  ;;  %v487_v7 = vsel %vm478_vm2, %v484_v40, %v486_v1 }
  0x2c   :  { %955 = vmatpush.bf16.msrb.mxu2 %v5870_v4  ;;  %v146_v4 = vsel %vm110_vm0, %v141_v62, %v145_v63  ;;  %v1039_v62 = vshrl.u32 %v6718_v57, 16  ;;  %v1042_v63 = vshll.u32 %v6718_v57, 16  ;;  %v628_v1 = vrot.slane %v626_v58, 3 }
  0x2d   :  { %1110 = vmatpush.bf16.msrb.mxu3 %v5878_v8  ;;  %v6669_v8 = vld [vmem:[%s8415_s0 + $0x1c] sm:$0xff] }
  0x2e   :  { %698 = vmatpush.bf16.msrb.mxu0 %v5850_v6  ;;  %v339_v6 = vsel %vm330_vm1, %v336_v39, %v338_v0  ;;  %v5881_v0 = vld [vmem:[%s8414_s1 + $0x200] sm:$0xff] }
  0x2f   :  { %808 = vmatpush.bf16.msrb.mxu1 %v5858_v15 }
  0x30   :  { %956 = vmatpush.bf16.msrb.mxu2 %v5869_v13  ;;  %v611_v13 = vshll.u32 %v6489_v42, 16 }
  0x31   :  { %212 = vmatmul.bf16.gmra.mxu0 %v130_v16  ;;  %1111 = vmatpush.bf16.msrb.mxu3 %v5877_v19  ;;  %v5885_v19 = vld [vmem:[%s8414_s1 + $0x220] sm:$0xff] }
  0x32   :  { %699 = vmatpush.bf16.msrb.mxu0 %v5849_v14  ;;  %293 = vmatmul.bf16.gmra.mxu1 %v6454_v25  ;;  %v5876_v25 = vld [vmem:[%s8414_s1 + $0x1d8] sm:$0xff]  ;;  %v5886_v14 = vld [vmem:[%s8414_s1 + $0x228] sm:$0xff] }
  0x33   :  { %405 = vmatmul.bf16.gmra.mxu2 %v335_v17  ;;  %809 = vmatpush.bf16.msrb.mxu1 %v5857_v24  ;;  %v1021_v17 = vshrl.u32 %v6669_v8, 16 }
  0x34   :  { %553 = vmatmul.bf16.gmra.mxu3 %v483_v18  ;;  %957 = vmatpush.bf16.msrb.mxu2 %v5868_v21  ;;  %v1024_v18 = vshll.u32 %v6669_v8, 16  ;;  %v610_v21 = vrot.slane %v608_v12, 3  ;;  %v897_v12 = vrot.slane %v6718_v57, 2 }
  0x35   :  { %1112 = vmatpush.bf16.msrb.mxu3 %v5876_v25 }
  0x36   :  { %700 = vmatpush.bf16.msrb.mxu0 %v5848_v20  ;;  %v605_v20 = vrot.slane %v603_v11, 4 }
  0x37   :  { %810 = vmatpush.bf16.msrb.mxu1 %v5856_v28  ;;  %v6033_v28 = vunpack.c.l.b16 %v6489_v42  ;;  %v6696_v42 = vld [vmem:[%s8415_s0 + $0x24] sm:$0xff] }
  0x38   :  { %958 = vmatpush.bf16.msrb.mxu2 %v5867_v26  ;;  %v1023_v26 = vrot.slane %v1021_v17, 2  ;;  %v606_v29 = vor.u32 %v605_v20, %v602_v41  ;;  %v850_v20 = vld [vmem:[%s8415_s0 + $0x34] sm:$0x3] }
  0x39   :  { %1113 = vmatpush.bf16.msrb.mxu3 %v5875_v32  ;;  %v749_v37 = vpack.c.b16 %v6033_v28, %v465_v30  ;;  %v5884_v30 = vld [vmem:[%s8414_s1 + $0x218] sm:$0xff] }
  0x3a   :  { %701 = vmatpush.bf16.msrb.mxu0 %v5847_v27  ;;  %v1026_v27 = vrot.slane %v1024_v18, 3 }
  0x3b   :  { %811 = vmatpush.bf16.msrb.mxu1 %v5855_v36 }
  0x3c   :  { %959 = vmatpush.bf16.msrb.mxu2 %v5866_v33  ;;  %v893_v33 = vrot.slane %v6669_v8, 2  ;;  %v1027_v36 = vor.u32 %v1026_v27, %v1023_v26 }
  0x3d   :  { %1114 = vmatpush.bf16.msrb.mxu3 %v5874_v44  ;;  %v1030_v44 = vshrl.u32 %v6696_v42, 16 }
  0x3e   :  { %702 = vmatpush.bf16.msrb.mxu0 %v5846_v35 }
  0x3f   :  { %812 = vmatpush.bf16.msrb.mxu1 %v5854_v46  ;;  %v5883_v46 = vld [vmem:[%s8414_s1 + $0x210] sm:$0xff] }
  0x40   :  { %960 = vmatpush.bf16.msrb.mxu2 %v5865_v45  ;;  %v1033_v45 = vshll.u32 %v6696_v42, 16 }
  0x41   :  { %217 = vmatmul.bf16.gmra.mxu0 %v138_v47  ;;  %1115 = vmatpush.bf16.msrb.mxu3 %v5873_v51  ;;  %v619_v47 = vrot.slane %v617_v43, 3  ;;  %v895_v51 = vrot.slane %v6696_v42, 2 }
  0x42   :  { %298 = vmatmul.bf16.gmra.mxu1 %v6521_v59  ;;  %1227 = vmatpush.bf16.msra.mxu0 %v5888_v54  ;;  %v842_v59 = vld [vmem:[%s8415_s0 + $0x14] sm:$0xc] }
  0x43   :  { %410 = vmatmul.bf16.gmra.mxu2 %v337_v49  ;;  %v877_v2 = vunpack.c.l.b16 %v842_v59  ;;  %v1032_v49 = vrot.slane %v1030_v44, 2  ;;  %v623_v5 = vor.u32 %v622_v48, %v619_v47  ;;  %v896_v55 = vsel %vm891_vm4, %v893_v33, %v895_v51  ;;  %v5882_v59 = vld [vmem:[%s8414_s1 + $0x208] sm:$0xff] }
  0x44   :  { %558 = vmatmul.bf16.gmra.mxu3 %v485_v50  ;;  %6102 = vmatpush.bf16.msra.mxu2 %v5888_v54  ;;  %v1035_v50 = vrot.slane %v1033_v45, 3  ;;  %v898_v18 = vsel %vm891_vm4, %v895_v51, %v897_v12  ;;  %v1167_v45 = vrot.slane %v6669_v8, 3 }
  0x45   :  { %v886_v9 = vpack.c.b16 %v878_v3, %v877_v2  ;;  %v631_v2 = vrot.slane %v629_v60, 4 }
  0x46   :  { %1228 = vmatpush.bf16.msra.mxu0 %v5887_v56  ;;  %v1036_v52 = vor.u32 %v1035_v50, %v1032_v49 }
  0x47   :  { %v1013_v15 = vshrl.u32 %v886_v9, 16  ;;  %v1016_v16 = vshll.u32 %v886_v9, 16  ;;  %v892_v32 = vrot.slane %v886_v9, 2  ;;  %v990_v9 = vld [vmem:[%s8415_s0 + $0x34] sm:$0x7]  ;;  %v632_v10 = vor.u32 %v631_v2, %v628_v1 }
  0x48   :  { %6103 = vmatpush.bf16.msra.mxu2 %v5887_v56  ;;  %v1037_v56 = vsel %vm1011_vm5, %v1027_v36, %v1036_v52 }
  0x49   :  { %v1015_v24 = vrot.slane %v1013_v15, 2  ;;  %v1018_v25 = vrot.slane %v1016_v16, 3  ;;  %v894_v39 = vsel %vm891_vm4, %v892_v32, %v893_v33  ;;  %v6082_v15 = vld [vmem:[%s8415_s0 + $0x1c] sm:$0xff]   ;;  %v633_v16 = vsel %vm598_vm3, %v623_v5, %v632_v10 }
  0x4a   :  { %1229 = vmatpush.bf16.msra.mxu0 %v5886_v14  ;;  %v6042_v33 = vunpack.c.h.b16 %v6615_v34 }
  0x4b   :  { %v1019_v35 = vor.u32 %v1018_v25, %v1015_v24  ;;  %v885_v24 = vunpack.c.l.b16 %v850_v20 }
  0x4c   :  { %6104 = vmatpush.bf16.msra.mxu2 %v5886_v14  ;;  %v1009_v14 = vunpack.c.l.b16 %v990_v9 }
  0x4d   :  { %v1028_v40 = vsel %vm1011_vm5, %v1019_v35, %v1027_v36 }
  0x4e   :  { %1230 = vmatpush.bf16.msra.mxu0 %v5885_v19  ;;  %v1010_v41 = vpack.c.b16 %v1009_v14, %v1009_v14 }
  0x50   :  { %6105 = vmatpush.bf16.msra.mxu2 %v5885_v19  ;;  %v1048_v25 = vshrl.u32 %v1010_v41, 16  ;;  %v1051_v26 = vshll.u32 %v1010_v41, 16  ;;  %v1173_v47 = vrot.slane %v1010_v41, 3 }
  0x51   :  { %222 = vmatmul.bf16.gmra.mxu0 %v146_v4  ;;  %v1041_v4 = vrot.slane %v1039_v62, 2 }
  0x52   :  { %303 = vmatmul.bf16.gmra.mxu1 %v6587_v23  ;;  %v613_v23 = vrot.slane %v611_v13, 4  ;;  %1231 = vmatpush.bf16.msra.mxu0 %v5884_v30  ;;  %v1053_v32 = vrot.slane %v1051_v26, 3 }
  0x53   :  { %415 = vmatmul.bf16.gmra.mxu2 %v339_v6  ;;  %v1044_v6 = vrot.slane %v1042_v63, 3 }
  0x54   :  { %563 = vmatmul.bf16.gmra.mxu3 %v487_v7  ;;  %v614_v31 = vor.u32 %v613_v23, %v610_v21  ;;  %6106 = vmatpush.bf16.msra.mxu2 %v5884_v30  ;;  %v577_v7 = vld [vmem:[%s8415_s0 + $0x28] sm:$0xf]  ;;  %v1164_v30 = vunpack.c.l.b16 %v1145_v22 }
  0x55   :  { %v596_v11 = vunpack.c.l.b16 %v577_v7  ;;  %v1045_v13 = vor.u32 %v1044_v6, %v1041_v4 }
  0x56   :  { %v615_v38 = vsel %vm598_vm3, %v606_v29, %v614_v31  ;;  %1232 = vmatpush.bf16.msra.mxu0 %v5883_v46  ;;  %v624_v54 = vsel %vm598_vm3, %v614_v31, %v623_v5  ;;  %v890_v29 = vpack.c.b16 %v885_v24, %v885_v24  ;;  %v1050_v31 = vrot.slane %v1048_v25, 2 }
  0x57   :  { %v597_v17 = vpack.c.b16 %v596_v11, %v596_v11  ;;  %v1046_v19 = vsel %vm1011_vm5, %v1036_v52, %v1045_v13  ;;  %v1165_v34 = vpack.c.b16 %v878_v3, %v1164_v30  ;;  %v5895_v30 = vld [vmem:[%s8417_s3 + $0x30] sm:$0xff] }
  0x58   :  { %6107 = vmatpush.bf16.msra.mxu2 %v5883_v46  ;;  %v899_v36 = vrot.slane %v890_v29, 2  ;;  %v1171_v46 = vrot.slane %v6718_v57, 3 }
  0x59   :  { %v635_v21 = vshrl.u32 %v597_v17, 16  ;;  %v638_v23 = vshll.u32 %v597_v17, 16  ;;  %v1166_v44 = vrot.slane %v1165_v34, 3 }
  0x5a   :  { %1233 = vmatpush.bf16.msra.mxu0 %v5882_v59  ;;  %v1174_v51 = vsel %vm478_vm2, %v1171_v46, %v1173_v47 }
  0x5b   :  { %v637_v27 = vrot.slane %v635_v21, 3  ;;  %v640_v28 = vrot.slane %v638_v23, 4  ;;  %v1168_v50 = vsel %vm478_vm2, %v1166_v44, %v1167_v45 }
  0x5c   :  { %6108 = vmatpush.bf16.msra.mxu2 %v5882_v59 }
  0x5d   :  { %v641_v35 = vor.u32 %v640_v28, %v637_v27 }
  0x5e   :  { %1234 = vmatpush.bf16.msra.mxu0 %v5881_v0 }
  0x60   :  { %6109 = vmatpush.bf16.msra.mxu2 %v5881_v0 }
  0x61   :  { %703 = vmatmul.bf16.vlgmr.msrb.gmra.mxu0 %v615_v38  ;;  %v752_v38 = vpack.c.b16 %v596_v11, %v6042_v33 }
  0x62   :  { %813 = vmatmul.bf16.vlgmr.msrb.gmra.mxu1 %v749_v37  ;;  %v1054_v37 = vor.u32 %v1053_v32, %v1050_v31 }
  0x63   :  { %961 = vmatmul.bf16.vlgmr.msrb.gmra.mxu2 %v894_v39  ;;  %v642_v39 = vsel %vm598_vm3, %v632_v10, %v641_v35  ;;  %v5896_v35 = vld [vmem:[%s8417_s3 + $0x38] sm:$0xff] }
  0x64   :  { %1116 = vmatmul.bf16.vlgmr.msrb.gmra.mxu3 %v1028_v40  ;;  %v900_v40 = vsel %vm891_vm4, %v897_v12, %v899_v36  ;;  %v1055_v43 = vsel %vm1011_vm5, %v1045_v13, %v1054_v37  ;;  %1367 = vmatpush.bf16.msra.mxu1 %v5896_v35 }
  0x68   :  { %1368 = vmatpush.bf16.msra.mxu1 %v5895_v30  ;;  %v5908_v30 = vld [vmem:[%s8417_s3 + $0x98] sm:$0xff] }
  0x71   :  { %708 = vmatmul.bf16.gmra.mxu0 %v624_v54 }
  0x72   :  { %818 = vmatmul.bf16.gmra.mxu1 %v6081_v53 }
  0x73   :  { %966 = vmatmul.bf16.gmra.mxu2 %v896_v55  ;;  %v1169_v55 = vrot.slane %v6696_v42, 3 }
  0x74   :  { %1121 = vmatmul.bf16.gmra.mxu3 %v1037_v56 }
  0x75   :  { %v1170_v59 = vsel %vm478_vm2, %v1167_v45, %v1169_v55  ;;  %v1172_v11 = vsel %vm478_vm2, %v1169_v55, %v1171_v46  ;;  %v5900_v46 = vld [vmem:[%s8417_s3 + $0x58] sm:$0xff]  ;;  %v5894_v55 = vld [vmem:[%s8417_s3 + $0x28] sm:$0xff] }
  0x76   :  { %1473 = vmatpush.bf16.msra.mxu3 %v5900_v46  ;;  %1369 = vmatpush.bf16.msra.mxu1 %v5894_v55 }
  0x81   :  { %713 = vmatmul.bf16.gmra.mxu0 %v633_v16 }
  0x82   :  { %823 = vmatmul.bf16.gmra.mxu1 %v6082_v15 }
  0x83   :  { %971 = vmatmul.bf16.gmra.mxu2 %v898_v18 }
  0x84   :  { %1126 = vmatmul.bf16.gmra.mxu3 %v1046_v19 }
  0x91   :  { %718 = vmatmul.bf16.gmra.mxu0 %v642_v39 }
  0x92   :  { %828 = vmatmul.bf16.gmra.mxu1 %v752_v38 }
  0x93   :  { %976 = vmatmul.bf16.gmra.mxu2 %v900_v40 }
  0x94   :  { %1131 = vmatmul.bf16.gmra.mxu3 %v1055_v43 }
  0x9e   :  { %v208_v48 = vpop.f32.mrf.mxu0 }
  0x9f   :  { %v289_v49 = vpop.f32.mrf.mxu1 }
  0xa0   :  { %v290_v5 = vadd.f32 %v289_v49, %v208_v48 }
  0xa1   :  { %1235 = vmatmul.bf16.vlgmr.msra.gmra.mxu0 %v1168_v50 }
  0xa3   :  { %1250 = vmatmul.bf16.vlgmr.msra.gmra.mxu2 %v1174_v51 }
  0xa6   :  { %v401_v52 = vpop.f32.mrf.mxu2  ;;  %v6759_v61 = vpop.f32.mrf.mxu0 }
  0xa7   :  { %v549_v53 = vpop.f32.mrf.mxu3  ;;  %v421_v54 = vadd.f32 %v401_v52, %v290_v5  ;;  %v6761_v3 = vpop.f32.mrf.mxu1  ;;  %v5892_v52 = vld [vmem:[%s8417_s3 + $0x18] sm:$0xff] }
  0xa8   :  { %1413 = vmatpush.bf16.msrb.mxu2 %v5892_v52 }
  0xa9   :  { %v569_v8 = vadd.f32 %v549_v53, %v421_v54 }
  0xae   :  { %v6764_v56 = vpop.f32.mrf.mxu2  ;;  %v213_v58 = vpop.f32.mrf.mxu0 }
  0xaf   :  { %v6766_v57 = vpop.f32.mrf.mxu3  ;;  %v294_v60 = vpop.f32.mrf.mxu1 }
  0xb0   :  { %v295_v62 = vadd.f32 %v294_v60, %v213_v58  ;;  %v5891_v58 = vld [vmem:[%s8417_s3 + $0x10] sm:$0xff]  ;;  %v5890_v60 = vld [vmem:[%s8417_s3 + $0x8] sm:$0xff] }
  0xb1   :  { %1240 = vmatmul.bf16.gmra.mxu0 %v1170_v59  ;;  %1414 = vmatpush.bf16.msrb.mxu2 %v5891_v58 }
  0xb5   :  { %1415 = vmatpush.bf16.msrb.mxu2 %v5890_v60 }
  0xb6   :  { %v406_v63 = vpop.f32.mrf.mxu2  ;;  %v6769_v2 = vpop.f32.mrf.mxu0 }
  0xb7   :  { %v554_v0 = vpop.f32.mrf.mxu3  ;;  %v423_v1 = vadd.f32 %v406_v63, %v295_v62  ;;  %v6771_v4 = vpop.f32.mrf.mxu1 }
  0xb9   :  { %v6773_v6 = vadd.f32 %v554_v0, %v423_v1  ;;  %v5889_v0 = vld [vmem:[%s8417_s3] sm:$0xff] }
  0xba   :  { %1416 = vmatpush.bf16.msrb.mxu2 %v5889_v0 }
  0xbe   :  { %v6775_v42 = vpop.f32.mrf.mxu2  ;;  %v218_v9 = vpop.f32.mrf.mxu0  ;;  %1622 = vmatpush.bf16.msra.mxu2 %v5908_v30 }
  0xbf   :  { %v6777_v7 = vpop.f32.mrf.mxu3  ;;  %v299_v10 = vpop.f32.mrf.mxu1 }
  0xc0   :  { %v300_v12 = vadd.f32 %v299_v10, %v218_v9  ;;  %v5899_v9 = vld [vmem:[%s8417_s3 + $0x50] sm:$0xff]  ;;  %v292_v10 = vadd.f32 %v6761_v3, %v6759_v61  ;;  %v5897_v61 = vld [vmem:[%s8417_s3 + $0x40] sm:$0xff] }
  0xc1   :  { %1245 = vmatmul.bf16.gmra.mxu0 %v1172_v11  ;;  %1474 = vmatpush.bf16.msra.mxu3 %v5899_v9 }
  0xc2   :  { %v422_v11 = vadd.f32 %v6764_v56, %v292_v10 }
  0xc6   :  { %v411_v13 = vpop.f32.mrf.mxu2  ;;  %v6780_v16 = vpop.f32.mrf.mxu0 }
  0xc7   :  { %v559_v14 = vpop.f32.mrf.mxu3  ;;  %v425_v15 = vadd.f32 %v411_v13, %v300_v12  ;;  %v6782_v17 = vpop.f32.mrf.mxu1  ;;  %v5898_v13 = vld [vmem:[%s8417_s3 + $0x48] sm:$0xff] }
  0xc8   :  { %1475 = vmatpush.bf16.msra.mxu3 %v5898_v13 }
  0xc9   :  { %v573_v18 = vadd.f32 %v559_v14, %v425_v15 }
  0xcc   :  { %1476 = vmatpush.bf16.msra.mxu3 %v5897_v61 }
  0xce   :  { %v6784_v19 = vpop.f32.mrf.mxu2  ;;  %v223_v20 = vpop.f32.mrf.mxu0 }
  0xcf   :  { %v6786_v41 = vpop.f32.mrf.mxu3  ;;  %v304_v21 = vpop.f32.mrf.mxu1 }
  0xd0   :  { %v305_v23 = vadd.f32 %v304_v21, %v223_v20 }
  0xd6   :  { %v416_v24 = vpop.f32.mrf.mxu2  ;;  %v6788_v27 = vpop.f32.mrf.mxu0 }
  0xd7   :  { %v564_v25 = vpop.f32.mrf.mxu3  ;;  %v427_v26 = vadd.f32 %v416_v24, %v305_v23  ;;  %v6794_v33 = vpop.f32.mrf.mxu1  ;;  %v5893_v23 = vld [vmem:[%s8417_s3 + $0x20] sm:$0xff] }
  0xd8   :  { %1370 = vmatpush.bf16.msra.mxu1 %v5893_v23 }
  0xd9   :  { %v6790_v28 = vadd.f32 %v564_v25, %v427_v26 }
  0xde   :  { %v6792_v29 = vpop.f32.mrf.mxu2  ;;  %v704_v31 = vpop.f32.mrf.mxu0 }
  0xdf   :  { %v724_v32 = vadd.f32 %v704_v31, %v569_v8  ;;  %v6799_v36 = vpop.f32.mrf.mxu3  ;;  %v814_v39 = vpop.f32.mrf.mxu1  ;;  %v6871_v31 = vld [vmem:[%s8416_s2] ss:$0 sm:$0xff] }
  0xe1   :  { %v834_v14 = vadd.f32 %v814_v39, %v724_v32 }
  0xe6   :  { %v962_v37 = vpop.f32.mrf.mxu2  ;;  %v706_v38 = vpop.f32.mrf.mxu0 }
  0xe7   :  { %v1117_v22 = vpop.f32.mrf.mxu3  ;;  %v816_v34 = vpop.f32.mrf.mxu1  ;;  %v982_v20 = vadd.f32 %v962_v37, %v834_v14  ;;  %v297_v37 = vadd.f32 %v6771_v4, %v6769_v2  ;;  %v5916_v2 = vld [vmem:[%s8417_s3 + $0xd8] sm:$0xff] }
  0xe8   :  { %1753 = vmatpush.bf16.msrb.mxu0 %v5916_v2  ;;  %v5912_v14 = vld [vmem:[%s8417_s3 + $0xb8] sm:$0xff] }
  0xe9   :  { %v1137_v24 = vadd.f32 %v1117_v22, %v982_v20  ;;  %1684 = vmatpush.bf16.msrb.mxu3 %v5912_v14 }
  0xee   :  { %v964_v40 = vpop.f32.mrf.mxu2  ;;  %v709_v43 = vpop.f32.mrf.mxu0 }
  0xef   :  { %v1119_v47 = vpop.f32.mrf.mxu3  ;;  %v819_v48 = vpop.f32.mrf.mxu1 }
  0xf6   :  { %v6804_v44 = vpop.f32.mrf.mxu2  ;;  %v6806_v45 = vpop.f32.mrf.mxu0 }
  0xf7   :  { %v6815_v51 = vpop.f32.mrf.mxu3  ;;  %v6824_v8 = vpop.f32.mrf.mxu1 }
  0xfe   :  { %v6811_v49 = vpop.f32.mrf.mxu2  ;;  %v714_v50 = vpop.f32.mrf.mxu0 }
  0xff   :  { %v6813_v5 = vadd.f32 %v714_v50, %v573_v18  ;;  %v6835_v59 = vpop.f32.mrf.mxu3  ;;  %v6844_v1 = vpop.f32.mrf.mxu1  ;;  %v570_v18 = vadd.f32 %v6766_v57, %v422_v11 }
 0x101   :  { %v725_v3 = vadd.f32 %v706_v38, %v570_v18  ;;  %v726_v38 = vadd.f32 %v709_v43, %v6773_v6  ;;  %v5914_v18 = vld [vmem:[%s8417_s3 + $0xc8] sm:$0xff] }
 0x103   :  { %v835_v26 = vadd.f32 %v816_v34, %v725_v3  ;;  %v424_v34 = vadd.f32 %v6775_v42, %v297_v37  ;;  %v836_v4 = vadd.f32 %v819_v48, %v726_v38 }
 0x105   :  { %v983_v32 = vadd.f32 %v964_v40, %v835_v26  ;;  %v307_v40 = vadd.f32 %v6794_v33, %v6788_v27  ;;  %v572_v42 = vadd.f32 %v6777_v7, %v424_v34  ;;  %v5915_v27 = vld [vmem:[%s8417_s3 + $0xd0] sm:$0xff] }
 0x106   :  { %v6820_v53 = vpop.f32.mrf.mxu2  ;;  %v6822_v54 = vpop.f32.mrf.mxu0  ;;  %v5907_v7 = vld [vmem:[%s8417_s3 + $0x90] sm:$0xff]  ;;  %1754 = vmatpush.bf16.msrb.mxu0 %v5915_v27 }
 0x107   :  { %v6855_v15 = vpop.f32.mrf.mxu3  ;;  %v6863_v56 = vpop.f32.mrf.mxu1  ;;  %v1138_v46 = vadd.f32 %v1119_v47, %v983_v32  ;;  %v428_v55 = vadd.f32 %v6792_v29, %v307_v40  ;;  %v984_v47 = vadd.f32 %v6804_v44, %v836_v4  ;;  %v727_v33 = vadd.f32 %v6806_v45, %v572_v42  ;;  %v5904_v29 = vld [vmem:[%s8417_s3 + $0x78] sm:$0xff]  ;;  %1623 = vmatpush.bf16.msra.mxu2 %v5907_v7  ;;  %v5913_v32 = vld [vmem:[%s8417_s3 + $0xc0] sm:$0xff]  ;;  %v5910_v40 = vld [vmem:[%s8417_s3 + $0xa8] sm:$0xff] }
 0x108   :  { %1542 = vmatpush.bf16.msrb.mxu1 %v5904_v29 }
 0x109   :  { %v576_v44 = vadd.f32 %v6799_v36, %v428_v55  ;;  %v1139_v9 = vadd.f32 %v6815_v51, %v984_v47  ;;  %v837_v36 = vadd.f32 %v6824_v8, %v727_v33  ;;  %v5906_v8 = vld [vmem:[%s8417_s3 + $0x88] sm:$0xff] }
 0x10a   :  { %1755 = vmatpush.bf16.msrb.mxu0 %v5914_v18 }
 0x10b   :  { %1624 = vmatpush.bf16.msra.mxu2 %v5906_v8 }
 0x10e   :  { %v6837_v62 = vpop.f32.mrf.mxu0  ;;  %v6839_v63 = vpop.f32.mrf.mxu2  ;;  %1756 = vmatpush.bf16.msrb.mxu0 %v5913_v32 }
 0x10f   :  { %v6873_v35 = vpop.f32.mrf.mxu3  ;;  %v6883_v50 = vpop.f32.mrf.mxu1 }
 0x116   :  { %v721_v12 = vpop.f32.mrf.mxu0  ;;  %v6858_v21 = vpop.f32.mrf.mxu2 }
 0x117   :  { %v6898_v60 = vpop.f32.mrf.mxu3  ;;  %v731_v11 = vadd.f32 %v721_v12, %v576_v44  ;;  %v831_v20 = vpop.f32.mrf.mxu1  ;;  %v985_v12 = vadd.f32 %v6811_v49, %v837_v36  ;;  %v730_v49 = vadd.f32 %v6837_v62, %v6790_v28 }
 0x119   :  { %v841_v26 = vadd.f32 %v831_v20, %v731_v11  ;;  %v1140_v30 = vadd.f32 %v6835_v59, %v985_v12 }
 0x11e   :  { %v1236_v25 = vpop.f32.mrf.mxu0  ;;  %v979_v39 = vpop.f32.mrf.mxu2 }
 0x11f   :  { %v1256_v57 = vadd.f32 %v1236_v25, %v1137_v24  ;;  %v302_v25 = vadd.f32 %v6782_v17, %v6780_v16  ;;  %v5903_v16 = vld [vmem:[%s8417_s3 + $0x70] sm:$0xff]  ;;  %v989_v38 = vadd.f32 %v979_v39, %v841_v26  ;;  %v1134_v34 = vpop.f32.mrf.mxu3 }
 0x120   :  { %1543 = vmatpush.bf16.msrb.mxu1 %v5903_v16 }
 0x121   :  { %v1268_v22 = vadd.f32 %v6871_v31, %v1256_v57  ;;  %v5911_v57 = vld [vmem:[%s8417_s3 + $0xb0] sm:$0xff]  ;;  %v426_v17 = vadd.f32 %v6784_v19, %v302_v25  ;;  %v838_v19 = vadd.f32 %v6844_v1, %v6813_v5  ;;  %v1144_v55 = vadd.f32 %v1134_v34, %v989_v38 }
 0x122   :  { %1685 = vmatpush.bf16.msrb.mxu3 %v5911_v57 }
 0x123   :  { %v1276_v6 = vmax.f32 %v1268_v22, 0.0  ;;  %v5905_v22 = vld [vmem:[%s8417_s3 + $0x80] sm:$0xff] }
 0x124   :  { %1625 = vmatpush.bf16.msra.mxu2 %v5905_v22 }
 0x125   :  { %v1284_v48 = vpack.c.bf16 %v1276_v6, %v1276_v6  ;;  %v574_v6 = vadd.f32 %v6786_v41, %v426_v17 }
 0x126   :  { %v1238_v52 = vpop.f32.mrf.mxu0  ;;  %v6908_v10 = vpop.f32.mrf.mxu2  ;;  %1686 = vmatpush.bf16.msrb.mxu3 %v5910_v40 }
 0x127   :  { %v1257_v43 = vadd.f32 %v1238_v52, %v1138_v46  ;;  %v1312_v61 = vunpack.c.l.b16 %v1284_v48  ;;  %v5902_v46 = vld [vmem:[%s8417_s3 + $0x68] sm:$0xff]  ;;  %v840_v52 = vadd.f32 %v6883_v50, %v730_v49  ;;  %v5901_v50 = vld [vmem:[%s8417_s3 + $0x60] sm:$0xff] }
 0x128   :  { %1544 = vmatpush.bf16.msrb.mxu1 %v5902_v46 }
 0x129   :  { %v1269_v58 = vadd.f32 %v6871_v31, %v1257_v43  ;;  %v986_v43 = vadd.f32 %v6820_v53, %v838_v19  ;;  %v988_v42 = vadd.f32 %v6858_v21, %v840_v52  ;;  %v5909_v53 = vld [vmem:[%s8417_s3 + $0xa0] sm:$0xff]  ;;  %v5924_v21 = vld [vmem:[%s8417_s3 + $0x118] sm:$0xff] }
 0x12a   :  { %1687 = vmatpush.bf16.msrb.mxu3 %v5909_v53 }
 0x12b   :  { %v1277_v0 = vmax.f32 %v1269_v58, 0.0  ;;  %v729_v58 = vadd.f32 %v6822_v54, %v574_v6  ;;  %v1141_v7 = vadd.f32 %v6855_v15, %v986_v43  ;;  %v1143_v54 = vadd.f32 %v6898_v60, %v988_v42  ;;  %v5920_v60 = vld [vmem:[%s8417_s3 + $0xf8] sm:$0xff]  ;;  %v5921_v6 = vld [vmem:[%s8417_s3 + $0x100] sm:$0xff] }
 0x12c   :  { %1545 = vmatpush.bf16.msrb.mxu1 %v5901_v50 }
 0x12d   :  { %v1285_v45 = vpack.c.bf16 %v1277_v0, %v1277_v0  ;;  %v839_v11 = vadd.f32 %v6863_v56, %v729_v58  ;;  %v1262_v18 = vadd.f32 %v6908_v10, %v1143_v54  ;;  %v5923_v56 = vld [vmem:[%s8417_s3 + $0x110] sm:$0xff] }
 0x12e   :  { %v1241_v13 = vpop.f32.mrf.mxu0  ;;  %v1253_v59 = vpop.f32.mrf.mxu2 }
 0x12f   :  { %v1313_v51 = vunpack.c.l.b16 %v1285_v45  ;;  %v1258_v3 = vadd.f32 %v1241_v13, %v1139_v9  ;;  %v1263_v41 = vadd.f32 %v1253_v59, %v1144_v55 }
 0x131   :  { %v1315_v23 = vpack.c.b16 %v1313_v51, %v1312_v61  ;;  %v1270_v24 = vadd.f32 %v6871_v31, %v1258_v3  ;;  %v1275_v13 = vadd.f32 %v6871_v31, %v1263_v41  ;;  %v987_v61 = vadd.f32 %v6839_v63, %v839_v11  ;;  %v5919_v63 = vld [vmem:[%s8417_s3 + $0xf0] sm:$0xff] }
 0x132   :  { %v1274_v3 = vadd.f32 %v6871_v31, %v1262_v18 }
 0x133   :  { %v1278_v37 = vmax.f32 %v1270_v24, 0.0  ;;  %4990 = vmatmul.msk.bf16.vlgmr.msrb.gmra.mxu2 %vm1356_vm6, %v1315_v23  ;;  %v1320_v62 = vshll.u32 %v1315_v23, 16  ;;  %v1436_v27 = vrot.slane %v1315_v23, 1  ;;  %v1318_v0 = vshrl.u32 %v1315_v23, 16 }
 0x134   :  { %1893 = vmatpush.bf16.msrb.mxu2 %v5924_v21  ;;  %v1283_v10 = vmax.f32 %v1275_v13, 0.0  ;;  %v1142_v24 = vadd.f32 %v6873_v35, %v987_v61  ;;  %v1282_v57 = vmax.f32 %v1274_v3, 0.0  ;;  %v5922_v35 = vld [vmem:[%s8417_s3 + $0x108] sm:$0xff] }
 0x135   :  { %v1286_v28 = vpack.c.bf16 %v1278_v37, %v1278_v37  ;;  %v1322_v47 = vrot.slane %v1320_v62, 1 }
 0x136   :  { %v1243_v39 = vpop.f32.mrf.mxu0  ;;  %v1291_v26 = vpack.c.bf16 %v1283_v10, %v1283_v10  ;;  %v1290_v22 = vpack.c.bf16 %v1282_v57, %v1282_v57 }
 0x137   :  { %v1314_v2 = vunpack.c.l.b16 %v1286_v28  ;;  %v1259_v4 = vadd.f32 %v1243_v39, %v1140_v30  ;;  %v1323_v9 = vor.u32 %v1322_v47, %v1318_v0 }
 0x138   :  { %1894 = vmatpush.bf16.msrb.mxu2 %v5923_v56  ;;  %v1713_v38 = vunpack.c.l.b16 %v1291_v26  ;;  %v1712_v52 = vunpack.c.l.b16 %v1290_v22  ;;  %v5928_v22 = vld [vmem:[%s8419_s5 + $0x18] sm:$0xff] }
 0x139   :  { %v6953_v5 = vpack.c.b16 %v1314_v2, %v1314_v2  ;;  %v1271_v1 = vadd.f32 %v6871_v31, %v1259_v4  ;;  %v5918_v4 = vld [vmem:[%s8417_s3 + $0xe8] sm:$0xff] }
 0x13a   :  { %v1715_v39 = vpack.c.b16 %v1713_v38, %v1713_v38 }
 0x13b   :  { %v1279_v33 = vmax.f32 %v1271_v1, 0.0  ;;  %v1437_v48 = vrot.slane %v6953_v5, 1  ;;  %v1325_v29 = vshll.u32 %v6953_v5, 16  ;;  %v1329_v62 = vshrl.u32 %v6953_v5, 16  ;;  %v5917_v1 = vld [vmem:[%s8417_s3 + $0xe0] sm:$0xff] }
 0x13c   :  { %1895 = vmatpush.bf16.msrb.mxu2 %v5922_v35  ;;  %v1717_v42 = vrot.slane %v1715_v39, 2  ;;  %v1857_v13 = vrot.slane %v1715_v39, 3 }
 0x13d   :  { %v1438_v44 = vsel %vm330_vm1, %v1436_v27, %v1437_v48  ;;  %v1327_v45 = vrot.slane %v1325_v29, 1  ;;  %v6975_v36 = vpack.c.bf16 %v1279_v33, %v1279_v33 }
 0x13e   :  { %v1246_v14 = vpop.f32.mrf.mxu0  ;;  %5016 = vmatmul.msk.bf16.vlgmr.msra.gmra.mxu3 %vm1356_vm6, %v1438_v44 }
 0x13f   :  { %v1260_v15 = vadd.f32 %v1246_v14, %v1141_v7  ;;  %v1328_v20 = vsel %vm110_vm0, %v1323_v9, %v1327_v45  ;;  %v1501_v12 = vunpack.c.l.b16 %v6975_v36  ;;  %v1788_v9 = vshrl.u32 %v1715_v39, 16  ;;  %1964 = vmatpush.bf16.msra.mxu3 %v5928_v22 }
 0x140   :  { %4972 = vmatmul.msk.bf16.vlgmr.msra.gmra.mxu1 %vm1356_vm6, %v1328_v20  ;;  %1896 = vmatpush.bf16.msrb.mxu2 %v5921_v6 }
 0x141   :  { %v1272_v51 = vadd.f32 %v6871_v31, %v1260_v15  ;;  %1830 = vmatpush.bf16.msra.mxu1 %v5920_v60  ;;  %v1503_v32 = vpack.c.b16 %v1501_v12, %v1314_v2  ;;  %v1790_v36 = vrot.slane %v1788_v9, 2 }
 0x143   :  { %v1280_v23 = vmax.f32 %v1272_v51, 0.0  ;;  %4991 = vmatmul.msk.bf16.gmra.mxu2 %vm1356_vm6, %v6953_v5  ;;  %v1505_v28 = vrot.slane %v1503_v32, 3  ;;  %v1572_v40 = vshrl.u32 %v1503_v32, 16  ;;  %v1575_v59 = vshll.u32 %v1503_v32, 16 }
 0x145   :  { %v1288_v25 = vpack.c.bf16 %v1280_v23, %v1280_v23  ;;  %1831 = vmatpush.bf16.msra.mxu1 %v5919_v63  ;;  %v1574_v5 = vrot.slane %v1572_v40, 3  ;;  %v1577_v41 = vrot.slane %v1575_v59, 4  ;;  %v5936_v63 = vld [vmem:[%s8419_s5 + $0x58] sm:$0xff]  ;;  %v5926_v59 = vld [vmem:[%s8419_s5 + $0x8] sm:$0xff] }
 0x146   :  { %v1248_v8 = vpop.f32.mrf.mxu0 }
 0x147   :  { %v1502_v49 = vunpack.c.l.b16 %v1288_v25  ;;  %v1261_v37 = vadd.f32 %v1248_v8, %v1142_v24  ;;  %v1578_v33 = vor.u32 %v1577_v41, %v1574_v5  ;;  %v5929_v5 = vld [vmem:[%s8419_s5 + $0x20] sm:$0xff] }
 0x149   :  { %v1504_v16 = vpack.c.b16 %v1502_v49, %v1502_v49  ;;  %v1273_v17 = vadd.f32 %v6871_v31, %v1261_v37  ;;  %v1331_v31 = vor.u32 %v1329_v62, %v1327_v45  ;;  %1832 = vmatpush.bf16.msra.mxu1 %v5918_v4  ;;  %v1648_v29 = vpack.c.b16 %v1502_v49, %v1501_v12  ;;  %v5935_v37 = vld [vmem:[%s8419_s5 + $0x50] sm:$0xff]  ;;  %v5938_v4 = vld [vmem:[%s8419_s5 + $0x68] sm:$0xff] }
 0x14a   :  { %v1791_v45 = vshll.u32 %v1715_v39, 16  ;;  %v5931_v39 = vld [vmem:[%s8419_s5 + $0x30] sm:$0xff] }
 0x14b   :  { %v1506_v30 = vrot.slane %v1504_v16, 3  ;;  %v1281_v34 = vmax.f32 %v1273_v17, 0.0 }
 0x14c   :  { %v1793_v15 = vrot.slane %v1791_v45, 3 }
 0x14d   :  { %v1289_v46 = vpack.c.bf16 %v1281_v34, %v1281_v34  ;;  %v1507_v19 = vsel %vm478_vm2, %v1505_v28, %v1506_v30  ;;  %1833 = vmatpush.bf16.msra.mxu1 %v5917_v1  ;;  %v5940_v28 = vld [vmem:[%s8419_s5 + $0x78] sm:$0xff] }
 0x14e   :  { %5017 = vmatmul.msk.bf16.gmra.mxu3 %vm1356_vm6, %v1437_v48  ;;  %v1794_v56 = vor.u32 %v1793_v15, %v1790_v36 }
 0x14f   :  { %v1569_v2 = vunpack.c.l.b16 %v1289_v46  ;;  %v5934_v46 = vld [vmem:[%s8419_s5 + $0x48] sm:$0xff] }
 0x150   :  { %4973 = vmatmul.msk.bf16.gmra.mxu1 %vm1356_vm6, %v1331_v31 }
 0x151   :  { %v1570_v43 = vpack.c.b16 %v1569_v2, %v1502_v49  ;;  %v1714_v55 = vpack.c.b16 %v1712_v52, %v1569_v2  ;;  %v1649_v7 = vpack.c.b16 %v1569_v2, %v1569_v2  ;;  %v5939_v52 = vld [vmem:[%s8419_s5 + $0x70] sm:$0xff]  ;;  %v5930_v2 = vld [vmem:[%s8419_s5 + $0x28] sm:$0xff] }
 0x153   :  { %v1580_v47 = vshrl.u32 %v1570_v43, 16  ;;  %v1583_v50 = vshll.u32 %v1570_v43, 16  ;;  %v1716_v58 = vrot.slane %v1714_v55, 2  ;;  %v1780_v54 = vshrl.u32 %v1714_v55, 16 }
 0x154   :  { %v1783_v44 = vshll.u32 %v1714_v55, 16  ;;  %v1856_v11 = vrot.slane %v1714_v55, 3  ;;  %v5933_v55 = vld [vmem:[%s8419_s5 + $0x40] sm:$0xff] }
 0x155   :  { %v1718_v27 = vsel %vm891_vm4, %v1716_v58, %v1717_v42  ;;  %v1582_v53 = vrot.slane %v1580_v47, 3  ;;  %v1585_v21 = vrot.slane %v1583_v50, 4  ;;  %v1782_v14 = vrot.slane %v1780_v54, 2  ;;  %v5937_v50 = vld [vmem:[%s8419_s5 + $0x60] sm:$0xff] }
 0x156   :  { %5120 = vmatmul.msk.bf16.vlgmr.msrb.gmra.mxu0 %vm1356_vm6, %v1718_v27  ;;  %v1785_v18 = vrot.slane %v1783_v44, 3  ;;  %v1858_v20 = vsel %vm478_vm2, %v1856_v11, %v1857_v13  ;;  %v5951_v44 = vld [vmem:[%s8419_s5 + $0xd0] sm:$0xff] }
 0x157   :  { %v1586_v48 = vor.u32 %v1585_v21, %v1582_v53 }
 0x158   :  { %v1786_v60 = vor.u32 %v1785_v18, %v1782_v14 }
 0x159   :  { %v1587_v0 = vsel %vm598_vm3, %v1578_v33, %v1586_v48 }
 0x15a   :  { %5068 = vmatmul.msk.bf16.vlgmr.msra.gmra.mxu2 %vm1356_vm6, %v1587_v0  ;;  %v1795_v61 = vsel %vm1011_vm5, %v1786_v60, %v1794_v56 }
 0x15b   :  { %2120 = vmatpush.bf16.msra.mxu2 %v5940_v28  ;;  %v5941_v28 = vld [vmem:[%s8419_s5 + $0x80] sm:$0xff] }
 0x15e   :  { %5094 = vmatmul.msk.bf16.vlgmr.msrb.gmra.mxu3 %vm1356_vm6, %v1648_v29 }
 0x15f   :  { %2121 = vmatpush.bf16.msra.mxu2 %v5939_v52 }
 0x160   :  { %5042 = vmatmul.msk.bf16.vlgmr.msrb.gmra.mxu1 %vm1356_vm6, %v1507_v19  ;;  %v5927_v19 = vld [vmem:[%s8419_s5 + $0x10] sm:$0xff] }
 0x161   :  { %2067 = vmatpush.bf16.msrb.mxu1 %v5936_v63  ;;  %1965 = vmatpush.bf16.msra.mxu3 %v5927_v19  ;;  %v6118_v63 = vld [vmem:[%s8418_s4] ss:$0 sm:$0xff] }
 0x162   :  { %v5953_v19 = vld [vmem:[%s8419_s5 + $0xe0] sm:$0xff] }
 0x163   :  { %2122 = vmatpush.bf16.msra.mxu2 %v5938_v4 }
 0x165   :  { %2068 = vmatpush.bf16.msrb.mxu1 %v5935_v37  ;;  %1966 = vmatpush.bf16.msra.mxu3 %v5926_v59 }
 0x166   :  { %5121 = vmatmul.msk.bf16.gmra.mxu0 %vm1356_vm6, %v1717_v42  ;;  %v5925_v42 = vld [vmem:[%s8419_s5] sm:$0xff] }
 0x167   :  { %2123 = vmatpush.bf16.msra.mxu2 %v5937_v50  ;;  %v5960_v50 = vld [vmem:[%s8419_s5 + $0x118] sm:$0xff] }
 0x169   :  { %2069 = vmatpush.bf16.msrb.mxu1 %v5934_v46  ;;  %1967 = vmatpush.bf16.msra.mxu3 %v5925_v42  ;;  %v5945_v46 = vld [vmem:[%s8419_s5 + $0xa0] sm:$0xff] }
 0x16a   :  { %5069 = vmatmul.msk.bf16.gmra.mxu2 %vm1356_vm6, %v1586_v48 }
 0x16d   :  { %2070 = vmatpush.bf16.msrb.mxu1 %v5933_v55 }
 0x16e   :  { %5095 = vmatmul.msk.bf16.gmra.mxu3 %vm1356_vm6, %v1649_v7  ;;  %v5952_v7 = vld [vmem:[%s8419_s5 + $0xd8] sm:$0xff] }
 0x170   :  { %5043 = vmatmul.msk.bf16.gmra.mxu1 %vm1356_vm6, %v1506_v30  ;;  %v5932_v30 = vld [vmem:[%s8419_s5 + $0x38] sm:$0xff] }
 0x171   :  { %2014 = vmatpush.bf16.msra.mxu0 %v5932_v30 }
 0x175   :  { %2015 = vmatpush.bf16.msra.mxu0 %v5931_v39 }
 0x179   :  { %2016 = vmatpush.bf16.msra.mxu0 %v5930_v2 }
 0x17a   :  { %5172 = vmatmul.msk.bf16.vlgmr.msrb.gmra.mxu2 %vm1356_vm6, %v1858_v20 }
 0x17d   :  { %2017 = vmatpush.bf16.msra.mxu0 %v5929_v5 }
 0x180   :  { %5146 = vmatmul.msk.bf16.vlgmr.msra.gmra.mxu1 %vm1356_vm6, %v1795_v61  ;;  %v5944_v61 = vld [vmem:[%s8419_s5 + $0x98] sm:$0xff] }
 0x181   :  { %2279 = vmatpush.bf16.msra.mxu1 %v5952_v7  ;;  %2173 = vmatpush.bf16.msrb.mxu3 %v5944_v61  ;;  %v5970_v7 = vld [vmem:[%s8419_s5 + $0x168] sm:$0xff] }
 0x182   :  { %v5974_v61 = vld [vmem:[%s8419_s5 + $0x188] sm:$0xff] }
 0x185   :  { %2280 = vmatpush.bf16.msra.mxu1 %v5951_v44  ;;  %v5961_v44 = vld [vmem:[%s8419_s5 + $0x120] sm:$0xff] }
 0x18a   :  { %5173 = vmatmul.msk.bf16.gmra.mxu2 %vm1356_vm6, %v1857_v13 }
 0x190   :  { %5147 = vmatmul.msk.bf16.gmra.mxu1 %vm1356_vm6, %v1794_v56 }
 0x1b6   :  { %v1418_v51 = vpop.f32.mrf.mxu2 }
 0x1bd   :  { %v1372_v10 = vpop.f32.mrf.mxu1 }
 0x1be   :  { %v1420_v3 = vpop.f32.mrf.mxu2  ;;  %v1419_v58 = vadd.f32 %v1418_v51, %v1372_v10  ;;  %v5948_v51 = vld [vmem:[%s8419_s5 + $0xb8] sm:$0xff] }
 0x1bf   :  { %v5956_v10 = vld [vmem:[%s8419_s5 + $0xf8] sm:$0xff]  ;;  %2226 = vmatpush.bf16.msrb.mxu0 %v5948_v51  ;;  %v5978_v51 = vld [vmem:[%s8419_s5 + $0x1a8] sm:$0xff] }
 0x1c0   :  { %2332 = vmatpush.bf16.msrb.mxu2 %v5956_v10  ;;  %v5986_v10 = vld [vmem:[%s8419_s5 + $0x1e8] sm:$0xff] }
 0x1c1   :  { %v1478_v12 = vpop.f32.mrf.mxu3 }
 0x1c2   :  { %v1487_v41 = vadd.f32 %v1478_v12, %v1419_v58  ;;  %v5943_v12 = vld [vmem:[%s8419_s5 + $0x90] sm:$0xff]  ;;  %v5964_v58 = vld [vmem:[%s8419_s5 + $0x138] sm:$0xff] }
 0x1c3   :  { %2174 = vmatpush.bf16.msrb.mxu3 %v5943_v12  ;;  %v5977_v12 = vld [vmem:[%s8419_s5 + $0x1a0] sm:$0xff] }
 0x1c5   :  { %v1374_v23 = vpop.f32.mrf.mxu1 }
 0x1c6   :  { %v7028_v24 = vpop.f32.mrf.mxu2  ;;  %v1421_v21 = vadd.f32 %v1420_v3, %v1374_v23  ;;  %v5950_v3 = vld [vmem:[%s8419_s5 + $0xc8] sm:$0xff]  ;;  %v5947_v23 = vld [vmem:[%s8419_s5 + $0xb0] sm:$0xff] }
 0x1c7   :  { %2281 = vmatpush.bf16.msra.mxu1 %v5950_v3  ;;  %2227 = vmatpush.bf16.msrb.mxu0 %v5947_v23  ;;  %v5973_v3 = vld [vmem:[%s8419_s5 + $0x180] sm:$0xff] }
 0x1c8   :  { %v5985_v23 = vld [vmem:[%s8419_s5 + $0x1e0] sm:$0xff] }
 0x1c9   :  { %v1480_v25 = vpop.f32.mrf.mxu3 }
 0x1ca   :  { %v1488_v0 = vadd.f32 %v1480_v25, %v1421_v21  ;;  %v5949_v25 = vld [vmem:[%s8419_s5 + $0xc0] sm:$0xff]  ;;  %v5963_v21 = vld [vmem:[%s8419_s5 + $0x130] sm:$0xff] }
 0x1cb   :  { %2282 = vmatpush.bf16.msra.mxu1 %v5949_v25  ;;  %v6123_v25 = vld [vmem:[%s8414_s1 + $0x38] sm:$0xff] }
 0x1cd   :  { %v7030_v26 = vpop.f32.mrf.mxu1 }
 0x1ce   :  { %v1425_v8 = vpop.f32.mrf.mxu2  ;;  %v1424_v11 = vadd.f32 %v7028_v24, %v7030_v26  ;;  %v5955_v24 = vld [vmem:[%s8419_s5 + $0xf0] sm:$0xff] }
 0x1cf   :  { %2333 = vmatpush.bf16.msrb.mxu2 %v5955_v24  ;;  %v6122_v24 = vld [vmem:[%s8414_s1 + $0x78] sm:$0xff] }
 0x1d1   :  { %v7035_v57 = vpop.f32.mrf.mxu3 }
 0x1d2   :  { %v1489_v36 = vadd.f32 %v7035_v57, %v1424_v11  ;;  %v5983_v11 = vld [vmem:[%s8419_s5 + $0x1d0] sm:$0xff] }
 0x1d3   :  { %v7037_v32 = vpop.f32.mrf.mxu0 }
 0x1d5   :  { %v1379_v49 = vpop.f32.mrf.mxu1 }
 0x1d9   :  { %v1485_v16 = vpop.f32.mrf.mxu3 }
 0x1da   :  { %v5942_v16 = vld [vmem:[%s8419_s5 + $0x88] sm:$0xff] }
 0x1db   :  { %v7042_v17 = vpop.f32.mrf.mxu0  ;;  %2175 = vmatpush.bf16.msrb.mxu3 %v5942_v16  ;;  %v5996_v16 = vld [vmem:[%s8419_s5 + $0x238] sm:$0xff] }
 0x1dd   :  { %v1547_v38 = vpop.f32.mrf.mxu1  ;;  %v1627_v35 = vpop.f32.mrf.mxu2 }
 0x1de   :  { %v1556_v53 = vadd.f32 %v1547_v38, %v1487_v41  ;;  %v5946_v38 = vld [vmem:[%s8419_s5 + $0xa8] sm:$0xff]  ;;  %v5972_v41 = vld [vmem:[%s8419_s5 + $0x178] sm:$0xff] }
 0x1df   :  { %2228 = vmatpush.bf16.msrb.mxu0 %v5946_v38  ;;  %2176 = vmatpush.bf16.msrb.mxu3 %v5941_v28  ;;  %v6130_v38 = vld [vmem:[%s8414_s1 + $0x58] sm:$0xff]  ;;  %v6133_v28 = vld [vmem:[%s8414_s1 + $0x10] sm:$0xff] }
 0x1e0   :  { %v1636_v29 = vadd.f32 %v1627_v35, %v1556_v53  ;;  %v5954_v35 = vld [vmem:[%s8419_s5 + $0xe8] sm:$0xff]  ;;  %v5959_v53 = vld [vmem:[%s8419_s5 + $0x110] sm:$0xff] }
 0x1e1   :  { %v1689_v34 = vpop.f32.mrf.mxu3  ;;  %2334 = vmatpush.bf16.msrb.mxu2 %v5954_v35  ;;  %v5991_v35 = vld [vmem:[%s8419_s5 + $0x210] sm:$0xff] }
 0x1e2   :  { %v1698_v45 = vadd.f32 %v1689_v34, %v1636_v29  ;;  %v5962_v29 = vld [vmem:[%s8419_s5 + $0x128] sm:$0xff] }
 0x1e3   :  { %v7053_v62 = vpop.f32.mrf.mxu0  ;;  %2229 = vmatpush.bf16.msrb.mxu0 %v5945_v46  ;;  %v5994_v46 = vld [vmem:[%s8419_s5 + $0x228] sm:$0xff] }
 0x1e4   :  { %v1767_v15 = vadd.f32 %v7037_v32, %v1698_v45  ;;  %v5984_v45 = vld [vmem:[%s8419_s5 + $0x1d8] sm:$0xff] }
 0x1e5   :  { %v1549_v40 = vpop.f32.mrf.mxu1  ;;  %v1629_v31 = vpop.f32.mrf.mxu2  ;;  %2335 = vmatpush.bf16.msrb.mxu2 %v5953_v19  ;;  %v6134_v19 = vld [vmem:[%s8414_s1 + $0x48] sm:$0xff] }
 0x1e6   :  { %v1557_v54 = vadd.f32 %v1549_v40, %v1488_v0  ;;  %v5958_v0 = vld [vmem:[%s8419_s5 + $0x108] sm:$0xff] }
 0x1e8   :  { %v1637_v13 = vadd.f32 %v1629_v31, %v1557_v54  ;;  %v5957_v54 = vld [vmem:[%s8419_s5 + $0x100] sm:$0xff] }
 0x1e9   :  { %v1691_v6 = vpop.f32.mrf.mxu3 }
 0x1ea   :  { %v1699_v20 = vadd.f32 %v1691_v6, %v1637_v13  ;;  %v5976_v13 = vld [vmem:[%s8419_s5 + $0x198] sm:$0xff] }
 0x1eb   :  { %v1765_v43 = vpop.f32.mrf.mxu0 }
 0x1ec   :  { %v1768_v57 = vadd.f32 %v7042_v17, %v1699_v20  ;;  %v5967_v43 = vld [vmem:[%s8419_s5 + $0x150] sm:$0xff] }
 0x1ed   :  { %v1552_v1 = vpop.f32.mrf.mxu1  ;;  %v1632_v47 = vpop.f32.mrf.mxu2  ;;  %v5979_v20 = vld [vmem:[%s8419_s5 + $0x1b0] sm:$0xff] }
 0x1ee   :  { %v1558_v60 = vadd.f32 %v1552_v1, %v1489_v36  ;;  %v5982_v36 = vld [vmem:[%s8419_s5 + $0x1c8] sm:$0xff] }
 0x1f0   :  { %v1638_v26 = vadd.f32 %v1632_v47, %v1558_v60  ;;  %v5987_v60 = vld [vmem:[%s8419_s5 + $0x1f0] sm:$0xff] }
 0x1f1   :  { %v1694_v27 = vpop.f32.mrf.mxu3 }
 0x1f2   :  { %v1700_v17 = vadd.f32 %v1694_v27, %v1638_v26  ;;  %v5966_v27 = vld [vmem:[%s8419_s5 + $0x148] sm:$0xff]  ;;  %v6124_v26 = vld [vmem:[%s8414_s1 + $0x70] sm:$0xff] }
 0x1f4   :  { %v1769_v31 = vadd.f32 %v7053_v62, %v1700_v17  ;;  %v5968_v62 = vld [vmem:[%s8419_s5 + $0x158] sm:$0xff] }
 0x1f5   :  { %v1554_v33 = vpop.f32.mrf.mxu1  ;;  %v1634_v48 = vpop.f32.mrf.mxu2  ;;  %v6131_v17 = vld [vmem:[%s8414_s1 + $0x18] sm:$0xff] }
 0x1f6   :  { %v5971_v33 = vld [vmem:[%s8419_s5 + $0x170] sm:$0xff]  ;;  %v5965_v48 = vld [vmem:[%s8419_s5 + $0x140] sm:$0xff] }
 0x1f9   :  { %v1696_v9 = vpop.f32.mrf.mxu3 }
 0x1fa   :  { %v5969_v9 = vld [vmem:[%s8419_s5 + $0x160] sm:$0xff] }
 0x1fd   :  { %v1835_v14 = vpop.f32.mrf.mxu1  ;;  %v1898_v18 = vpop.f32.mrf.mxu2 }
 0x1fe   :  { %v1844_v56 = vadd.f32 %v1835_v14, %v1767_v15  ;;  %v5980_v14 = vld [vmem:[%s8419_s5 + $0x1b8] sm:$0xff]  ;;  %v5975_v15 = vld [vmem:[%s8419_s5 + $0x190] sm:$0xff] }
 0x200   :  { %v1907_v8 = vadd.f32 %v1898_v18, %v1844_v56  ;;  %v5988_v18 = vld [vmem:[%s8419_s5 + $0x1f8] sm:$0xff]  ;;  %v5981_v56 = vld [vmem:[%s8419_s5 + $0x1c0] sm:$0xff] }
 0x202   :  { %v1914_v22 = vadd.f32 %v6118_v63, %v1907_v8  ;;  %v6125_v8 = vld [vmem:[%s8414_s1 + $0x30] sm:$0xff] }
 0x204   :  { %v1917_v39 = vmax.f32 %v1914_v22, 0.0  ;;  %v5995_v22 = vld [vmem:[%s8419_s5 + $0x230] sm:$0xff] }
 0x205   :  { %v1837_v32 = vpop.f32.mrf.mxu1  ;;  %v1900_v49 = vpop.f32.mrf.mxu2 }
 0x206   :  { %v1845_v37 = vadd.f32 %v1837_v32, %v1768_v57  ;;  %v6127_v57 = vld [vmem:[%s8414_s1 + $0x28] sm:$0xff]  ;;  %v6128_v32 = vld [vmem:[%s8414_s1 + $0x60] sm:$0xff] }
 0x208   :  { %v1908_v30 = vadd.f32 %v1900_v49, %v1845_v37  ;;  %v6129_v49 = vld [vmem:[%s8414_s1 + $0x20] sm:$0xff]  ;;  %v5992_v37 = vld [vmem:[%s8419_s5 + $0x218] sm:$0xff] }
 0x20a   :  { %v1915_v34 = vadd.f32 %v6118_v63, %v1908_v30  ;;  %v6132_v30 = vld [vmem:[%s8414_s1 + $0x50] sm:$0xff] }
 0x20c   :  { %v1918_v40 = vmax.f32 %v1915_v34, 0.0  ;;  %v5990_v34 = vld [vmem:[%s8419_s5 + $0x208] sm:$0xff] }
 0x20d   :  { %v1840_v52 = vpop.f32.mrf.mxu1  ;;  %v1903_v59 = vpop.f32.mrf.mxu2 }
 0x20e   :  { %v7145_v2 = vpack.c.bf16 %v1918_v40, %v1917_v39  ;;  %v1846_v4 = vadd.f32 %v1840_v52, %v1769_v31  ;;  %v6135_v39 = vld [vmem:[%s8414_s1 + $0x8] sm:$0xff]  ;;  %v5989_v40 = vld [vmem:[%s8419_s5 + $0x200] sm:$0xff] }
 0x20f   :  { %v5993_v31 = vld [vmem:[%s8419_s5 + $0x220] sm:$0xff] }
 0x210   :  { %5190 = vmatmul.msk.bf16.vlgmr.msra.gmra.mxu3 %vm1356_vm6, %v7145_v2  ;;  %5216 = vmatmul.msk.bf16.vlgmr.msra.gmra.mxu0 %vm1356_vm6, %v7145_v2  ;;  %v1909_v6 = vadd.f32 %v1903_v59, %v1846_v4  ;;  %v6136_v52 = vld [vmem:[%s8414_s1 + $0x40] sm:$0xff]  ;;  %v6138_v4 = vld [vmem:[%s8414_s1 + $0x138] sm:$0xff] }
 0x211   :  { %5242 = vmatmul.msk.bf16.vlgmr.msrb.gmra.mxu1 %vm1356_vm6, %v7145_v2  ;;  %5268 = vmatmul.msk.bf16.vlgmr.msra.gmra.mxu2 %vm1356_vm6, %v7145_v2  ;;  %v6137_v59 = vld [vmem:[%s8414_s1] sm:$0xff] }
 0x212   :  { %2488 = vmatpush.bf16.msrb.mxu1 %v5968_v62  ;;  %v1916_v5 = vadd.f32 %v6118_v63, %v1909_v6  ;;  %2385 = vmatpush.bf16.msra.mxu3 %v5960_v50  ;;  %v6126_v63 = vld [vmem:[%s8414_s1 + $0x68] sm:$0xff]  ;;  %v6139_v62 = vld [vmem:[%s8414_s1 + $0xb8] sm:$0xff] }
 0x213   :  { %2435 = vmatpush.bf16.msra.mxu0 %v5964_v58  ;;  %2541 = vmatpush.bf16.msra.mxu2 %v5972_v41  ;;  %v6140_v6 = vld [vmem:[%s8414_s1 + $0xf8] sm:$0xff]  ;;  %v6146_v50 = vld [vmem:[%s8414_s1 + $0xa8] sm:$0xff]  ;;  %v6085_v41 = vld [vmem:[%s8415_s0 + $0x34] sm:$0x8] }
 0x214   :  { %v1919_v1 = vmax.f32 %v1916_v5, 0.0  ;;  %v6144_v5 = vld [vmem:[%s8414_s1 + $0xf0] sm:$0xff]  ;;  %v6147_v58 = vld [vmem:[%s8414_s1 + $0x128] sm:$0xff] }
 0x215   :  { %v1842_v55 = vpop.f32.mrf.mxu1  ;;  %v1905_v42 = vpop.f32.mrf.mxu2 }
 0x216   :  { %2489 = vmatpush.bf16.msrb.mxu1 %v5967_v43  ;;  %v7161_v47 = vpack.c.bf16 %v1919_v1, %v1919_v1  ;;  %2386 = vmatpush.bf16.msra.mxu3 %v5959_v53  ;;  %v6141_v43 = vld [vmem:[%s8414_s1 + $0x178] sm:$0xff]  ;;  %v6142_v55 = vld [vmem:[%s8414_s1 + $0xb0] sm:$0xff]  ;;  %v6148_v53 = vld [vmem:[%s8414_s1 + $0xe8] sm:$0xff] }
 0x217   :  { %2436 = vmatpush.bf16.msra.mxu0 %v5963_v21  ;;  %2542 = vmatpush.bf16.msra.mxu2 %v5971_v33  ;;  %v6143_v42 = vld [vmem:[%s8414_s1 + $0x130] sm:$0xff]  ;;  %v6149_v21 = vld [vmem:[%s8414_s1 + $0x168] sm:$0xff]  ;;  %v7418_v33 = vld [vmem:[%s8415_s0 + $0x3c] sm:$0xff]  }
 0x218   :  { %v6145_v1 = vld [vmem:[%s8414_s1 + $0x170] sm:$0xff] }
 0x21a   :  { %2490 = vmatpush.bf16.msrb.mxu1 %v5966_v27  ;;  %2387 = vmatpush.bf16.msra.mxu3 %v5958_v0  ;;  %v6111_v27 = vld [vmem:[%s8415_s0 + $0x34] sm:$0xf0]   ;;  %v6150_v0 = vld [vmem:[%s8414_s1 + $0xa0] sm:$0xff] }
 0x21b   :  { %2437 = vmatpush.bf16.msra.mxu0 %v5962_v29  ;;  %2543 = vmatpush.bf16.msra.mxu2 %v5970_v7  ;;  %v6151_v29 = vld [vmem:[%s8414_s1 + $0x120] sm:$0xff] }
 0x21c   :  { %v6152_v7 = vld [vmem:[%s8414_s1 + $0xe0] sm:$0xff] }
 0x21e   :  { %2491 = vmatpush.bf16.msrb.mxu1 %v5965_v48  ;;  %2388 = vmatpush.bf16.msra.mxu3 %v5957_v54  ;;  %v6086_v48 = vor.u32 %v6111_v27, %v6085_v41  ;;  %v6153_v54 = vld [vmem:[%s8414_s1 + $0x160] sm:$0xff]  ;;  %v6177_v41 = vld [vmem:[%s8417_s3 + $0x30] sm:$0xff] }
 0x21f   :  { %2438 = vmatpush.bf16.msra.mxu0 %v5961_v44  ;;  %2544 = vmatpush.bf16.msra.mxu2 %v5969_v9 }
 0x220   :  { %5191 = vmatmul.msk.bf16.gmra.mxu3 %vm1356_vm6, %v7161_v47  ;;  %5217 = vmatmul.msk.bf16.gmra.mxu0 %vm1356_vm6, %v7161_v47  ;;  %v2909_v44 = vshrl.u32 %v6086_v48, 16  ;;  %v2912_v9 = vshll.u32 %v6086_v48, 16 }
 0x221   :  { %5243 = vmatmul.msk.bf16.gmra.mxu1 %vm1356_vm6, %v7161_v47  ;;  %5269 = vmatmul.msk.bf16.gmra.mxu2 %vm1356_vm6, %v7161_v47 }
 0x230   :  { %5294 = vmatmul.msk.bf16.vlgmr.msrb.gmra.mxu3 %vm1356_vm6, %v7145_v2  ;;  %5320 = vmatmul.msk.bf16.vlgmr.msrb.gmra.mxu0 %vm1356_vm6, %v7145_v2 }
 0x231   :  { %5346 = vmatmul.msk.bf16.vlgmr.msra.gmra.mxu1 %vm1356_vm6, %v7145_v2  ;;  %5372 = vmatmul.msk.bf16.vlgmr.msrb.gmra.mxu2 %vm1356_vm6, %v7145_v2 }
 0x232   :  { %2700 = vmatpush.bf16.msra.mxu1 %v5984_v45  ;;  %2594 = vmatpush.bf16.msrb.mxu3 %v5976_v13  ;;  %v2917_v45 = vshrl.u32 %v7418_v33, 16  ;;  %v6154_v13 = vld [vmem:[%s8414_s1 + $0x98] sm:$0xff] }
 0x233   :  { %2647 = vmatpush.bf16.msrb.mxu0 %v5980_v14  ;;  %2753 = vmatpush.bf16.msrb.mxu2 %v5988_v18  ;;  %v6155_v14 = vld [vmem:[%s8414_s1 + $0x118] sm:$0xff] }
 0x234   :  { %v6156_v18 = vld [vmem:[%s8414_s1 + $0xd8] sm:$0xff] }
 0x236   :  { %2701 = vmatpush.bf16.msra.mxu1 %v5983_v11  ;;  %2595 = vmatpush.bf16.msrb.mxu3 %v5975_v15  ;;  %v2920_v11 = vshll.u32 %v7418_v33, 16  ;;  %v2911_v15 = vrot.slane %v2909_v44, 3 }
 0x237   :  { %2648 = vmatpush.bf16.msrb.mxu0 %v5979_v20  ;;  %2754 = vmatpush.bf16.msrb.mxu2 %v5987_v60  ;;  %v2914_v20 = vrot.slane %v2912_v9, 4  ;;  %v2919_v60 = vrot.slane %v2917_v45, 3 }
 0x23a   :  { %2702 = vmatpush.bf16.msra.mxu1 %v5982_v36  ;;  %2596 = vmatpush.bf16.msrb.mxu3 %v5974_v61  ;;  %v6157_v36 = vld [vmem:[%s8414_s1 + $0x158] sm:$0xff]  ;;  %v6158_v61 = vld [vmem:[%s8414_s1 + $0x90] sm:$0xff] }
 0x23b   :  { %2649 = vmatpush.bf16.msrb.mxu0 %v5978_v51  ;;  %2755 = vmatpush.bf16.msrb.mxu2 %v5986_v10  ;;  %v6159_v51 = vld [vmem:[%s8414_s1 + $0x110] sm:$0xff] }
 0x23c   :  { %v6160_v10 = vld [vmem:[%s8414_s1 + $0xd0] sm:$0xff] }
 0x23e   :  { %2703 = vmatpush.bf16.msra.mxu1 %v5981_v56  ;;  %2597 = vmatpush.bf16.msrb.mxu3 %v5973_v3  ;;  %v2922_v56 = vrot.slane %v2920_v11, 4  ;;  %v6161_v3 = vld [vmem:[%s8414_s1 + $0x150] sm:$0xff] }
 0x23f   :  { %2650 = vmatpush.bf16.msrb.mxu0 %v5977_v12  ;;  %2756 = vmatpush.bf16.msrb.mxu2 %v5985_v23  ;;  %v2915_v12 = vor.u32 %v2914_v20, %v2911_v15  ;;  %v6183_v15 = vld [vmem:[%s8414_s1 + $0x1e0] sm:$0xff] }
 0x240   :  { %5295 = vmatmul.msk.bf16.gmra.mxu3 %vm1356_vm6, %v7161_v47  ;;  %5321 = vmatmul.msk.bf16.gmra.mxu0 %vm1356_vm6, %v7161_v47  ;;  %v7466_v23 = vor.u32 %v2922_v56, %v2919_v60  ;;  %v6184_v20 = vld [vmem:[%s8414_s1 + $0x220] sm:$0xff] }
 0x241   :  { %5347 = vmatmul.msk.bf16.gmra.mxu1 %vm1356_vm6, %v7161_v47  ;;  %5373 = vmatmul.msk.bf16.gmra.mxu2 %vm1356_vm6, %v7161_v47  ;;  %v6185_v60 = vld [vmem:[%s8417_s3 + $0x20] sm:$0xff] }
 0x250   :  { %5398 = vmatmul.msk.bf16.vlgmr.msra.gmra.mxu3 %vm1356_vm6, %v7145_v2  ;;  %5424 = vmatmul.msk.bf16.vlgmr.msra.gmra.mxu0 %vm1356_vm6, %v7145_v2 }
 0x251   :  { %5450 = vmatmul.msk.bf16.vlgmr.msrb.gmra.mxu1 %vm1356_vm6, %v7145_v2  ;;  %5476 = vmatmul.msk.bf16.vlgmr.msra.gmra.mxu2 %vm1356_vm6, %v7145_v2 }
 0x252   :  { %2956 = vmatpush.bf16.msrb.mxu1 %v6122_v24  ;;  %3001 = vmatpush.bf16.msra.mxu2 %v6123_v25  ;;  %v2988_v24 = vrot.slane %v6086_v48, 3  ;;  %v2989_v25 = vrot.slane %v7418_v33, 3  ;;  %v6178_v48 = vld [vmem:[%s8414_s1 + $0x1a8] sm:$0xff]  ;;  %v6182_v33 = vld [vmem:[%s8414_s1 + $0x1a0] sm:$0xff] }
 0x253   :  { %2806 = vmatpush.bf16.msra.mxu3 %v5992_v37  ;;  %2856 = vmatpush.bf16.msra.mxu0 %v5996_v16  ;;  %v2924_v37 = vsel %vm598_vm3, %v2915_v12, %v7466_v23  ;;  %v6187_v12 = vld [vmem:[%s8414_s1 + $0x1d8] sm:$0xff] }
 0x254   :  { %v2990_v16 = vsel %vm478_vm2, %v2988_v24, %v2989_v25 }
 0x256   :  { %2957 = vmatpush.bf16.msrb.mxu1 %v6124_v26  ;;  %3002 = vmatpush.bf16.msra.mxu2 %v6125_v8  ;;  %v6162_v26 = vld [vmem:[%s8414_s1 + $0x88] sm:$0xff] }
 0x257   :  { %2807 = vmatpush.bf16.msra.mxu3 %v5991_v35  ;;  %2857 = vmatpush.bf16.msra.mxu0 %v5995_v22  ;;  %v6163_v8 = vld [vmem:[%s8414_s1 + $0x108] sm:$0xff]  ;;  %v6166_v35 = vld [vmem:[%s8414_s1 + $0x80] sm:$0xff] }
 0x258   :  { %v6168_v22 = vld [vmem:[%s8414_s1 + $0xc0] sm:$0xff] }
 0x25a   :  { %2958 = vmatpush.bf16.msrb.mxu1 %v6126_v63  ;;  %3003 = vmatpush.bf16.msra.mxu2 %v6127_v57  ;;  %v6164_v63 = vld [vmem:[%s8414_s1 + $0xc8] sm:$0xff] }
 0x25b   :  { %2808 = vmatpush.bf16.msra.mxu3 %v5990_v34  ;;  %2858 = vmatpush.bf16.msra.mxu0 %v5994_v46  ;;  %v6165_v57 = vld [vmem:[%s8414_s1 + $0x148] sm:$0xff] }
 0x25e   :  { %2959 = vmatpush.bf16.msrb.mxu1 %v6128_v32  ;;  %3004 = vmatpush.bf16.msra.mxu2 %v6129_v49 }
 0x25f   :  { %2809 = vmatpush.bf16.msra.mxu3 %v5989_v40  ;;  %2859 = vmatpush.bf16.msra.mxu0 %v5993_v31  ;;  %v6173_v31 = vld [vmem:[%s8417_s3 + $0x38] sm:$0xff] }
 0x260   :  { %5399 = vmatmul.msk.bf16.gmra.mxu3 %vm1356_vm6, %v7161_v47  ;;  %5425 = vmatmul.msk.bf16.gmra.mxu0 %vm1356_vm6, %v7161_v47 }
 0x261   :  { %5451 = vmatmul.msk.bf16.gmra.mxu1 %vm1356_vm6, %v7161_v47  ;;  %5477 = vmatmul.msk.bf16.gmra.mxu2 %vm1356_vm6, %v7161_v47 }
 0x262   :  { %2960 = vmatpush.bf16.msrb.mxu1 %v6130_v38  ;;  %3005 = vmatpush.bf16.msra.mxu2 %v6131_v17  ;;  %v7489_v38 = vld [vmem:[%s8415_s0 + $0x44] sm:$0xff]  }
 0x263   :  { %v6167_v17 = vld [vmem:[%s8414_s1 + $0x100] sm:$0xff]  ;;  %v2929_v46 = vshll.u32 %v7489_v38, 16 }
 0x266   :  { %2961 = vmatpush.bf16.msrb.mxu1 %v6132_v30  ;;  %3006 = vmatpush.bf16.msra.mxu2 %v6133_v28  ;;  %v6169_v30 = vld [vmem:[%s8414_s1 + $0x140] sm:$0xff]  ;;  %v2926_v28 = vshrl.u32 %v7489_v38, 16 }
 0x26a   :  { %2962 = vmatpush.bf16.msrb.mxu1 %v6134_v19  ;;  %3007 = vmatpush.bf16.msra.mxu2 %v6135_v39  ;;  %v6170_v19 = vld [vmem:[%s8414_s1 + $0x1b8] sm:$0xff] }
 0x26b   :  { %v6171_v39 = vld [vmem:[%s8414_s1 + $0x1f8] sm:$0xff] }
 0x26e   :  { %2963 = vmatpush.bf16.msrb.mxu1 %v6136_v52  ;;  %3008 = vmatpush.bf16.msra.mxu2 %v6137_v59 }
 0x270   :  { %5502 = vmatmul.msk.bf16.vlgmr.msrb.gmra.mxu3 %vm1356_vm6, %v7145_v2  ;;  %5528 = vmatmul.msk.bf16.vlgmr.msrb.gmra.mxu0 %vm1356_vm6, %v7145_v2 }
 0x271   :  { %5554 = vmatmul.msk.bf16.vlgmr.msra.gmra.mxu1 %vm1356_vm6, %v7145_v2  ;;  %5580 = vmatmul.msk.bf16.vlgmr.msrb.gmra.mxu2 %vm1356_vm6, %v7145_v2 }
 0x272   :  { %3209 = vmatpush.bf16.msra.mxu1 %v6138_v4  ;;  %3038 = vmatpush.bf16.msrb.mxu3 %v6139_v62 }
 0x273   :  { %3120 = vmatpush.bf16.msrb.mxu0 %v6140_v6  ;;  %3263 = vmatpush.bf16.msrb.mxu2 %v6141_v43 }
 0x276   :  { %3039 = vmatpush.bf16.msrb.mxu3 %v6142_v55  ;;  %3210 = vmatpush.bf16.msra.mxu1 %v6143_v42  ;;  %v2928_v42 = vrot.slane %v2926_v28, 3 }
 0x277   :  { %3121 = vmatpush.bf16.msrb.mxu0 %v6144_v5  ;;  %3264 = vmatpush.bf16.msrb.mxu2 %v6145_v1  ;;  %v2931_v5 = vrot.slane %v2929_v46, 4  ;;  %v6174_v1 = vld [vmem:[%s8414_s1 + $0x1b0] sm:$0xff]  ;;  %v6192_v46 = vld [vmem:[%s8414_s1 + $0x188] sm:$0xff] }
 0x27a   :  { %3040 = vmatpush.bf16.msrb.mxu3 %v6146_v50  ;;  %3211 = vmatpush.bf16.msra.mxu1 %v6147_v58  ;;  %v6175_v50 = vld [vmem:[%s8414_s1 + $0x1f0] sm:$0xff] }
 0x27b   :  { %3122 = vmatpush.bf16.msrb.mxu0 %v6148_v53  ;;  %3265 = vmatpush.bf16.msrb.mxu2 %v6149_v21  ;;  %v6176_v58 = vld [vmem:[%s8414_s1 + $0x230] sm:$0xff]  ;;  %v7535_v53 = vor.u32 %v2931_v5, %v2928_v42  ;;  %v2991_v21 = vrot.slane %v7489_v38, 3  ;;  %v6196_v42 = vld [vmem:[%s8414_s1 + $0x1c0] sm:$0xff] }
 0x27c   :  { %v2883_v5 = vld [vmem:[%s8415_s0 + $0x54] sm:$0x7]  ;;  %v6197_v38 = vld [vmem:[%s8414_s1 + $0x200] sm:$0xff] }
 0x27d   :  { %v2933_v11 = vsel %vm598_vm3, %v7466_v23, %v7535_v53  ;;  %v6188_v23 = vld [vmem:[%s8414_s1 + $0x218] sm:$0xff] }
 0x27e   :  { %3041 = vmatpush.bf16.msrb.mxu3 %v6150_v0  ;;  %3212 = vmatpush.bf16.msra.mxu1 %v6151_v29  ;;  %v6179_v0 = vld [vmem:[%s8414_s1 + $0x1e8] sm:$0xff] }
 0x27f   :  { %3123 = vmatpush.bf16.msrb.mxu0 %v6152_v7  ;;  %3266 = vmatpush.bf16.msrb.mxu2 %v6153_v54  ;;  %v6180_v7 = vld [vmem:[%s8414_s1 + $0x228] sm:$0xff] }
 0x280   :  { %5503 = vmatmul.msk.bf16.gmra.mxu3 %vm1356_vm6, %v7161_v47  ;;  %5529 = vmatmul.msk.bf16.gmra.mxu0 %vm1356_vm6, %v7161_v47  ;;  %v6181_v54 = vld [vmem:[%s8417_s3 + $0x28] sm:$0xff] }
 0x281   :  { %5555 = vmatmul.msk.bf16.gmra.mxu1 %vm1356_vm6, %v7161_v47  ;;  %5581 = vmatmul.msk.bf16.gmra.mxu2 %vm1356_vm6, %v7161_v47 }
 0x282   :  { %3042 = vmatpush.bf16.msrb.mxu3 %v6154_v13  ;;  %3213 = vmatpush.bf16.msra.mxu1 %v6155_v14  ;;  %v2992_v13 = vsel %vm478_vm2, %v2989_v25, %v2991_v21  ;;  %v7561_v14 = vld [vmem:[%s8415_s0 + $0x4c] sm:$0xff]  }
 0x283   :  { %3124 = vmatpush.bf16.msrb.mxu0 %v6156_v18  ;;  %3267 = vmatpush.bf16.msrb.mxu2 %v6157_v36  ;;  %v3075_v18 = vld [vmem:[%s8415_s0 + $0x40] sm:$0xc]  ;;  %v7569_v36 = vld [vmem:[%s8415_s0 + $0x44] sm:$0xf]  ;;  %v2993_v28 = vrot.slane %v7561_v14, 3 }
 0x284   :  { %v3093_v56 = vunpack.c.l.b16 %v3075_v18  ;;  %v6200_v18 = vld [vmem:[%s8417_s3 + $0x10] sm:$0xff] }
 0x286   :  { %3043 = vmatpush.bf16.msrb.mxu3 %v6158_v61  ;;  %3214 = vmatpush.bf16.msra.mxu1 %v6159_v51  ;;  %v3094_v61 = vunpack.c.l.b16 %v7569_v36  ;;  %v2935_v51 = vshrl.u32 %v7561_v14, 16 }
 0x287   :  { %3125 = vmatpush.bf16.msrb.mxu0 %v6160_v10  ;;  %3268 = vmatpush.bf16.msrb.mxu2 %v6161_v3  ;;  %v2938_v10 = vshll.u32 %v7561_v14, 16  ;;  %v6186_v3 = vld [vmem:[%s8414_s1 + $0x198] sm:$0xff] }
 0x28a   :  { %3044 = vmatpush.bf16.msrb.mxu3 %v6162_v26  ;;  %3215 = vmatpush.bf16.msra.mxu1 %v6163_v8  ;;  %v7602_v26 = vld [vmem:[%s8415_s0 + $0x48] sm:$0xff]  ;;  %v7606_v8 = vpack.c.b16 %v3094_v61, %v3093_v56 }
 0x28b   :  { %3126 = vmatpush.bf16.msrb.mxu0 %v6164_v63  ;;  %3269 = vmatpush.bf16.msrb.mxu2 %v6165_v57  ;;  %v2937_v57 = vrot.slane %v2935_v51, 3 }
 0x28c   :  { %v3162_v14 = vshrl.u32 %v7606_v8, 16 }
 0x28d   :  { %v2019_v32 = vpop.f32.mrf.mxu0 }
 0x28e   :  { %v2072_v49 = vpop.f32.mrf.mxu1  ;;  %3045 = vmatpush.bf16.msrb.mxu3 %v6166_v35  ;;  %3216 = vmatpush.bf16.msra.mxu1 %v6167_v17  ;;  %v2027_v34 = vrot.slane %v2019_v32, 1  ;;  %v2940_v32 = vrot.slane %v2938_v10, 4  ;;  %v6191_v35 = vld [vmem:[%s8414_s1 + $0x210] sm:$0xff]  ;;  %v3107_v17 = vrot.slane %v7606_v8, 2 }
 0x28f   :  { %3127 = vmatpush.bf16.msrb.mxu0 %v6168_v22  ;;  %3270 = vmatpush.bf16.msrb.mxu2 %v6169_v30  ;;  %v2080_v52 = vrot.slane %v2072_v49, 2  ;;  %v7611_v49 = vld [vmem:[%s8415_s0 + $0x50] sm:$0xff]   ;;  %v3108_v22 = vrot.slane %v7602_v26, 2 }
 0x290   :  { %5606 = vmatmul.msk.bf16.vlgmr.msra.gmra.mxu3 %vm1356_vm6, %v7145_v2  ;;  %5632 = vmatmul.msk.bf16.vlgmr.msra.gmra.mxu0 %vm1356_vm6, %v7145_v2  ;;  %v6172_v2 = vld [vmem:[%s8414_s1 + $0x238] sm:$0xff]  ;;  %v6058_v30 = vunpack.c.h.b16 %v7611_v49 }
 0x291   :  { %2964 = vmatmul.bf16.vlgmr.msrb.gmra.mxu1 %v2924_v37  ;;  %3009 = vmatmul.bf16.vlgmr.msra.gmra.mxu2 %v2990_v16  ;;  %v6189_v37 = vld [vmem:[%s8414_s1 + $0x190] sm:$0xff] }
 0x292   :  { %3345 = vmatpush.bf16.msra.mxu3 %v6170_v19  ;;  %3489 = vmatpush.bf16.msrb.mxu1 %v6172_v2  ;;  %v6190_v16 = vld [vmem:[%s8414_s1 + $0x1d0] sm:$0xff]  ;;  %v6193_v19 = vld [vmem:[%s8414_s1 + $0x1c8] sm:$0xff] }
 0x293   :  { %3435 = vmatpush.bf16.msra.mxu0 %v6171_v39  ;;  %v1969_v40 = vpop.f32.mrf.mxu3  ;;  %3583 = vmatpush.bf16.msra.mxu2 %v6173_v31 }
 0x294   :  { %v2029_v59 = vadd.f32 %v2027_v34, %v1969_v40  ;;  %v2125_v4 = vpop.f32.mrf.mxu2  ;;  %v7625_v34 = vor.u32 %v2940_v32, %v2937_v57  ;;  %v6194_v40 = vld [vmem:[%s8414_s1 + $0x208] sm:$0xff] }
 0x295   :  { %v2021_v62 = vpop.f32.mrf.mxu0  ;;  %v2133_v43 = vrot.slane %v2125_v4, 3  ;;  %v2907_v4 = vpack.c.b16 %v6058_v30, %v6058_v30  ;;  %v3165_v30 = vshll.u32 %v7606_v8, 16 }
 0x296   :  { %v2082_v6 = vadd.f32 %v2080_v52, %v2029_v59  ;;  %v2074_v55 = vpop.f32.mrf.mxu1  ;;  %3346 = vmatpush.bf16.msra.mxu3 %v6174_v1  ;;  %3490 = vmatpush.bf16.msrb.mxu1 %v6176_v58  ;;  %v6075_v52 = vld [vmem:[%s8415_s0 + $0x38] sm:$0xff]   ;;  %v3109_v59 = vsel %vm891_vm4, %v3107_v17, %v3108_v22  ;;  %v2986_v58 = vunpack.c.l.b16 %v2883_v5  ;;  %v6205_v17 = vld [vmem:[%s8417_s3 + $0x40] sm:$0xff]  ;;  %v3251_v5 = vrot.slane %v7602_v26, 3 }
 0x297   :  { %3436 = vmatpush.bf16.msra.mxu0 %v6175_v50  ;;  %3584 = vmatpush.bf16.msra.mxu2 %v6177_v41  ;;  %v6195_v55 = vld [vmem:[%s8414_s1 + $0x180] sm:$0xff]  ;;  %v2944_v1 = vshrl.u32 %v2907_v4, 16  ;;  %v2947_v50 = vshll.u32 %v2907_v4, 16  ;;  %v6198_v41 = vld [vmem:[%s8417_s3 + $0x18] sm:$0xff] }
 0x298   :  { %v7533_v27 = vadd.f32 %v2133_v43, %v2082_v6  ;;  %v2942_v6 = vsel %vm598_vm3, %v7535_v53, %v7625_v34  ;;  %v2994_v43 = vsel %vm478_vm2, %v2991_v21, %v2993_v28  ;;  %v6199_v53 = vld [vmem:[%s8417_s3 + $0x58] sm:$0xff] }
 0x29a   :  { %3347 = vmatpush.bf16.msra.mxu3 %v6178_v48  ;;  %3491 = vmatpush.bf16.msrb.mxu1 %v6180_v7  ;;  %v2946_v7 = vrot.slane %v2944_v1, 3 }
 0x29b   :  { %3437 = vmatpush.bf16.msra.mxu0 %v6179_v0  ;;  %v1971_v29 = vpop.f32.mrf.mxu3  ;;  %3585 = vmatpush.bf16.msra.mxu2 %v6181_v54  ;;  %v7672_v54 = vld [vmem:[%s8415_s0 + $0x50] sm:$0xff] }
 0x29c   :  { %v2127_v44 = vpop.f32.mrf.mxu2 }
 0x29d   :  { %v2023_v9 = vpop.f32.mrf.mxu0 }
 0x29e   :  { %v2076_v45 = vpop.f32.mrf.mxu1  ;;  %3348 = vmatpush.bf16.msra.mxu3 %v6182_v33  ;;  %3492 = vmatpush.bf16.msrb.mxu1 %v6184_v20  ;;  %v6201_v33 = vld [vmem:[%s8417_s3 + $0x50] sm:$0xff] }
 0x29f   :  { %3438 = vmatpush.bf16.msra.mxu0 %v6183_v15  ;;  %3586 = vmatpush.bf16.msra.mxu2 %v6185_v60  ;;  %v3110_v60 = vrot.slane %v7672_v54, 2 }
 0x2a0   :  { %5607 = vmatmul.msk.bf16.gmra.mxu3 %vm1356_vm6, %v7161_v47  ;;  %5633 = vmatmul.msk.bf16.gmra.mxu0 %vm1356_vm6, %v7161_v47 }
 0x2a1   :  { %2969 = vmatmul.bf16.gmra.mxu1 %v2933_v11  ;;  %3014 = vmatmul.bf16.gmra.mxu2 %v2992_v13  ;;  %v2949_v11 = vrot.slane %v2947_v50, 4  ;;  %v2987_v13 = vpack.c.b16 %v2986_v58, %v2986_v58  ;;  %v3111_v57 = vsel %vm891_vm4, %v3108_v22, %v3110_v60  ;;  %v3246_v22 = vld [vmem:[%s8415_s0 + $0x40] sm:$0x8]  ;;  %v6077_v58 = vld [vmem:[%s8415_s0 + $0x48] sm:$0xff]  }
 0x2a2   :  { %3349 = vmatpush.bf16.msra.mxu3 %v6186_v3  ;;  %3493 = vmatpush.bf16.msrb.mxu1 %v6188_v23  ;;  %v6202_v3 = vld [vmem:[%s8417_s3 + $0x8] sm:$0xff] }
 0x2a3   :  { %3439 = vmatpush.bf16.msra.mxu0 %v6187_v12  ;;  %v1973_v47 = vpop.f32.mrf.mxu3  ;;  %v2995_v10 = vrot.slane %v2987_v13, 3  ;;  %v6203_v12 = vld [vmem:[%s8417_s3 + $0x48] sm:$0xff] }
 0x2a4   :  { %v2129_v24 = vpop.f32.mrf.mxu2 }
 0x2a5   :  { %v2024_v25 = vpop.f32.mrf.mxu0 }
 0x2a6   :  { %v2077_v63 = vpop.f32.mrf.mxu1  ;;  %3350 = vmatpush.bf16.msra.mxu3 %v6189_v37  ;;  %3494 = vmatpush.bf16.msrb.mxu1 %v6191_v35  ;;  %v6204_v35 = vld [vmem:[%s8417_s3] sm:$0xff] }
 0x2a7   :  { %3440 = vmatpush.bf16.msra.mxu0 %v6190_v16  ;;  %v6076_v63 = vld [vmem:[%s8415_s0 + $0x40] sm:$0xff]   ;;  %v2996_v16 = vsel %vm478_vm2, %v2993_v28, %v2995_v10  ;;  %v3173_v28 = vshll.u32 %v7602_v26, 16  ;;  %v3253_v10 = vrot.slane %v7672_v54, 3 }
 0x2aa   :  { %3351 = vmatpush.bf16.msra.mxu3 %v6192_v46  ;;  %3495 = vmatpush.bf16.msrb.mxu1 %v6194_v40  ;;  %v3248_v46 = vunpack.c.l.b16 %v3246_v22 }
 0x2ab   :  { %3441 = vmatpush.bf16.msra.mxu0 %v6193_v19  ;;  %v1974_v39 = vpop.f32.mrf.mxu3 }
 0x2ac   :  { %v2130_v2 = vpop.f32.mrf.mxu2  ;;  %v3249_v8 = vpack.c.b16 %v3094_v61, %v3248_v46 }
 0x2ad   :  { %v2231_v31 = vpop.f32.mrf.mxu0  ;;  %v3164_v2 = vrot.slane %v3162_v14, 2  ;;  %v3254_v14 = vsel %vm478_vm2, %v3251_v5, %v3253_v10 }
 0x2ae   :  { %v2284_v62 = vpop.f32.mrf.mxu1  ;;  %3352 = vmatpush.bf16.msra.mxu3 %v6195_v55  ;;  %3496 = vmatpush.bf16.msrb.mxu1 %v6197_v38  ;;  %v2239_v44 = vrot.slane %v2231_v31, 5  ;;  %v7717_v31 = vld [vmem:[%s8415_s0 + $0x58] sm:$0xff] }
 0x2af   :  { %3442 = vmatpush.bf16.msra.mxu0 %v6196_v42  ;;  %v2292_v15 = vrot.slane %v2284_v62, 6  ;;  %v3175_v62 = vrot.slane %v3173_v28, 3  ;;  %v3250_v42 = vrot.slane %v3249_v8, 3 }
 0x2b0   :  { %3046 = vmatmul.bf16.vlgmr.msrb.gmra.mxu3 %v6075_v52  ;;  %3128 = vmatmul.bf16.vlgmr.msrb.gmra.mxu0 %v3109_v59  ;;  %v3167_v59 = vrot.slane %v3165_v30, 3  ;;  %v6212_v30 = vld [vmem:[%s8417_s3 + $0x60] sm:$0xff] }
 0x2b1   :  { %2974 = vmatmul.bf16.gmra.mxu1 %v2942_v6  ;;  %3019 = vmatmul.bf16.gmra.mxu2 %v2994_v43  ;;  %v3112_v6 = vrot.slane %v7717_v31, 2  ;;  %v3252_v61 = vsel %vm478_vm2, %v3250_v42, %v3251_v5 }
 0x2b2   :  { %3605 = vmatpush.bf16.msrb.mxu3 %v6198_v41  ;;  %v3168_v43 = vor.u32 %v3167_v59, %v3164_v2  ;;  %v3191_v59 = vshll.u32 %v7717_v31, 16 }
 0x2b3   :  { %3632 = vmatpush.bf16.msrb.mxu0 %v6199_v53  ;;  %v2178_v21 = vpop.f32.mrf.mxu3  ;;  %v3113_v41 = vsel %vm891_vm4, %v3110_v60, %v3112_v6  ;;  %v3300_v60 = vld [vmem:[%s8415_s0 + $0x4c] sm:$0xe] }
 0x2b4   :  { %v2186_v48 = vrot.slane %v2178_v21, 4  ;;  %v2337_v0 = vpop.f32.mrf.mxu2  ;;  %v3083_v21 = vld [vmem:[%s8415_s0 + $0x60] sm:$0x3] }
 0x2b5   :  { %v2233_v29 = vpop.f32.mrf.mxu0  ;;  %v2345_v51 = vrot.slane %v2337_v0, 7  ;;  %v3182_v0 = vshll.u32 %v7672_v54, 16 }
 0x2b6   :  { %v2188_v9 = vadd.f32 %v2186_v48, %v7533_v27  ;;  %v2286_v45 = vpop.f32.mrf.mxu1  ;;  %3606 = vmatpush.bf16.msrb.mxu3 %v6200_v18  ;;  %v2950_v27 = vor.u32 %v2949_v11, %v2946_v7  ;;  %v3179_v48 = vshrl.u32 %v7672_v54, 16  ;;  %v6206_v29 = vld [vmem:[%s8417_s3 + $0x78] sm:$0xff] }
 0x2b7   :  { %3633 = vmatpush.bf16.msrb.mxu0 %v6201_v33  ;;  %v6207_v7 = vld [vmem:[%s8417_s3 + $0xd8] sm:$0xff]  ;;  %v3184_v33 = vrot.slane %v3182_v0, 3 }
 0x2b8   :  { %v2241_v20 = vadd.f32 %v2239_v44, %v2188_v9  ;;  %v2951_v37 = vsel %vm598_vm3, %v7625_v34, %v2950_v27  ;;  %v3170_v34 = vshrl.u32 %v7602_v26, 16  ;;  %v3101_v26 = vunpack.c.l.b16 %v3083_v21 }
 0x2b9   :  { %v3181_v18 = vrot.slane %v3179_v48, 2 }
 0x2ba   :  { %v2294_v56 = vadd.f32 %v2292_v15, %v2241_v20  ;;  %3607 = vmatpush.bf16.msrb.mxu3 %v6202_v3  ;;  %v3172_v4 = vrot.slane %v3170_v34, 2  ;;  %v3106_v11 = vpack.c.b16 %v3101_v26, %v3101_v26  ;;  %v6208_v15 = vld [vmem:[%s8417_s3 + $0x70] sm:$0xff]  ;;  %v6210_v3 = vld [vmem:[%s8417_s3 + $0x68] sm:$0xff] }
 0x2bb   :  { %3634 = vmatpush.bf16.msrb.mxu0 %v6203_v12  ;;  %v2180_v47 = vpop.f32.mrf.mxu3  ;;  %v6209_v20 = vld [vmem:[%s8417_s3 + $0xd0] sm:$0xff]  ;;  %v3185_v27 = vor.u32 %v3184_v33, %v3181_v18  ;;  %v6211_v12 = vld [vmem:[%s8417_s3 + $0xc8] sm:$0xff] }
 0x2bc   :  { %v7688_v23 = vadd.f32 %v2345_v51, %v2294_v56  ;;  %v2339_v24 = vpop.f32.mrf.mxu2  ;;  %v3176_v55 = vor.u32 %v3175_v62, %v3172_v4  ;;  %v7752_v56 = vld [vmem:[%s8415_s0 + $0x50] sm:$0xf]  ;;  %v3114_v51 = vrot.slane %v3106_v11, 2  ;;  %v7777_v34 = vld [vmem:[%s8415_s0 + $0x54] sm:$0xff] }
 0x2bd   :  { %v2235_v25 = vpop.f32.mrf.mxu0  ;;  %v3318_v24 = vunpack.c.l.b16 %v3300_v60  ;;  %v3399_v2 = vshll.u32 %v7777_v34, 16  ;;  %v6215_v60 = vld [vmem:[%s8417_s3 + $0xb8] sm:$0xff] }
 0x2be   :  { %v2288_v32 = vpop.f32.mrf.mxu1  ;;  %3608 = vmatpush.bf16.msrb.mxu3 %v6204_v35  ;;  %v3177_v36 = vsel %vm1011_vm5, %v3168_v43, %v3176_v55  ;;  %v3319_v25 = vunpack.c.l.b16 %v7752_v56  ;;  %v3186_v22 = vsel %vm1011_vm5, %v3176_v55, %v3185_v27 }
 0x2bf   :  { %3635 = vmatpush.bf16.msrb.mxu0 %v6205_v17 }
 0x2c0   :  { %3051 = vmatmul.bf16.gmra.mxu3 %v6076_v63  ;;  %3133 = vmatmul.bf16.gmra.mxu0 %v3111_v57  ;;  %v3327_v28 = vpack.c.b16 %v3319_v25, %v3318_v24 }
 0x2c1   :  { %2979 = vmatmul.bf16.gmra.mxu1 %v2951_v37  ;;  %3024 = vmatmul.bf16.gmra.mxu2 %v2996_v16  ;;  %v3115_v37 = vsel %vm891_vm4, %v3112_v6, %v3114_v51 }
 0x2c3   :  { %v2182_v19 = vpop.f32.mrf.mxu3 }
 0x2c4   :  { %v2341_v39 = vpop.f32.mrf.mxu2  ;;  %v3388_v19 = vshrl.u32 %v3327_v28, 16 }
 0x2c5   :  { %v2236_v40 = vpop.f32.mrf.mxu0  ;;  %v3391_v39 = vshll.u32 %v3327_v28, 16 }
 0x2c6   :  { %v2289_v52 = vpop.f32.mrf.mxu1  ;;  %v3396_v40 = vshrl.u32 %v7777_v34, 16  ;;  %v3390_v6 = vrot.slane %v3388_v19, 1 }
 0x2c7   :  { %v3188_v52 = vshrl.u32 %v7717_v31, 16  ;;  %v3393_v43 = vrot.slane %v3391_v39, 2 }
 0x2c8   :  { %v3398_v55 = vrot.slane %v3396_v40, 1 }
 0x2c9   :  { %v3190_v5 = vrot.slane %v3188_v52, 2 }
 0x2cb   :  { %v2183_v38 = vpop.f32.mrf.mxu3 }
 0x2cc   :  { %v2342_v1 = vpop.f32.mrf.mxu2  ;;  %v3193_v38 = vrot.slane %v3191_v59, 3 }
 0x2cd   :  { %v2440_v50 = vpop.f32.mrf.mxu0  ;;  %v3157_v1 = vld [vmem:[%s8415_s0 + $0x60] sm:$0x7] }
 0x2ce   :  { %v2493_v53 = vpop.f32.mrf.mxu1  ;;  %v3332_v50 = vrot.slane %v3327_v28, 1  ;;  %v3159_v21 = vunpack.c.l.b16 %v3157_v1 }
 0x2d0   :  { %3056 = vmatmul.bf16.gmra.mxu3 %v6077_v58  ;;  %3138 = vmatmul.bf16.gmra.mxu0 %v3113_v41  ;;  %v3333_v58 = vrot.slane %v7777_v34, 1  ;;  %v3394_v41 = vor.u32 %v3393_v43, %v3390_v6  ;;  %v3160_v11 = vpack.c.b16 %v3159_v21, %v3159_v21  ;;  %v6220_v6 = vld [vmem:[%s8417_s3 + $0x80] sm:$0xff] }
 0x2d1   :  { %3217 = vmatmul.bf16.vlgmr.msra.gmra.mxu1 %v3177_v36  ;;  %3271 = vmatmul.bf16.vlgmr.msrb.gmra.mxu2 %v3252_v61  ;;  %v3194_v36 = vor.u32 %v3193_v38, %v3190_v5  ;;  %v3255_v61 = vrot.slane %v7717_v31, 3  ;;  %v7840_v43 = vld [vmem:[%s8415_s0 + $0x64] sm:$0xff] }
 0x2d2   :  { %3668 = vmatpush.bf16.msrb.mxu2 %v6206_v29  ;;  %3780 = vmatpush.bf16.msra.mxu1 %v6207_v7  ;;  %v3334_v29 = vsel %vm330_vm1, %v3332_v50, %v3333_v58  ;;  %v3197_v33 = vshrl.u32 %v3160_v11, 16  ;;  %v3414_v5 = vshrl.u32 %v7840_v43, 16  ;;  %v3417_v38 = vshll.u32 %v7840_v43, 16 }
 0x2d3   :  { %v2390_v44 = vpop.f32.mrf.mxu3 }
 0x2d4   :  { %v2546_v9 = vpop.f32.mrf.mxu2  ;;  %v3199_v24 = vrot.slane %v3197_v33, 2 }
 0x2d5   :  { %v2441_v45 = vpop.f32.mrf.mxu0  ;;  %v3195_v9 = vsel %vm1011_vm5, %v3185_v27, %v3194_v36 }
 0x2d6   :  { %v2494_v13 = vpop.f32.mrf.mxu1  ;;  %3669 = vmatpush.bf16.msrb.mxu2 %v6208_v15  ;;  %3781 = vmatpush.bf16.msra.mxu1 %v6209_v20  ;;  %v2448_v63 = vrot.slane %v2441_v45, 1  ;;  %v3256_v45 = vsel %vm478_vm2, %v3253_v10, %v3255_v61  ;;  %v3200_v15 = vshll.u32 %v3160_v11, 16  ;;  %v6214_v20 = vld [vmem:[%s8417_s3 + $0x98] sm:$0xff] }
 0x2d7   :  { %v2501_v16 = vrot.slane %v2494_v13, 2  ;;  %v7800_v13 = vld [vmem:[%s8415_s0 + $0x5c] sm:$0xff] }
 0x2d8   :  { %v3405_v31 = vshrl.u32 %v7800_v13, 16  ;;  %v3408_v18 = vshll.u32 %v7800_v13, 16 }
 0x2da   :  { %3670 = vmatpush.bf16.msrb.mxu2 %v6210_v3  ;;  %3782 = vmatpush.bf16.msra.mxu1 %v6211_v12  ;;  %v3407_v3 = vrot.slane %v3405_v31, 1  ;;  %v3410_v12 = vrot.slane %v3408_v18, 2 }
 0x2db   :  { %v2391_v47 = vpop.f32.mrf.mxu3 }
 0x2dc   :  { %v2397_v57 = vadd.f32 %v2391_v47, %v7688_v23  ;;  %v7763_v32 = vpop.f32.mrf.mxu2  ;;  %v6213_v23 = vld [vmem:[%s8417_s3 + $0xc0] sm:$0xff] }
 0x2dd   :  { %v2444_v54 = vpop.f32.mrf.mxu0 }
 0x2de   :  { %v2450_v35 = vadd.f32 %v2448_v63, %v2397_v57  ;;  %v2497_v17 = vpop.f32.mrf.mxu1  ;;  %3671 = vmatpush.bf16.msrb.mxu2 %v6212_v30  ;;  %3783 = vmatpush.bf16.msra.mxu1 %v6213_v23  ;;  %v3202_v63 = vrot.slane %v3200_v15, 3  ;;  %v6216_v57 = vld [vmem:[%s8417_s3 + $0x90] sm:$0xff]  ;;  %v6219_v30 = vld [vmem:[%s8417_s3 + $0xa8] sm:$0xff] }
 0x2df   :  { %v6217_v54 = vld [vmem:[%s8417_s3 + $0xb0] sm:$0xff] }
 0x2e0   :  { %v7781_v46 = vadd.f32 %v2501_v16, %v2450_v35  ;;  %3061 = vmatmul.bf16.gmra.mxu3 %v7611_v49  ;;  %3143 = vmatmul.bf16.gmra.mxu0 %v3115_v37  ;;  %v3401_v49 = vrot.slane %v3399_v2, 2  ;;  %v3335_v37 = vrot.slane %v7800_v13, 1  ;;  %v3411_v16 = vor.u32 %v3410_v12, %v3407_v3 }
 0x2e1   :  { %3222 = vmatmul.bf16.gmra.mxu1 %v3186_v22  ;;  %3276 = vmatmul.bf16.gmra.mxu2 %v3254_v14  ;;  %v2554_v35 = vrot.slane %v7763_v32, 3  ;;  %v3203_v17 = vor.u32 %v3202_v63, %v3199_v24  ;;  %v3257_v22 = vrot.slane %v3160_v11, 3  ;;  %v6218_v14 = vld [vmem:[%s8417_s3 + $0x88] sm:$0xff] }
 0x2e2   :  { %v3402_v53 = vor.u32 %v3401_v49, %v3398_v55  ;;  %v3336_v32 = vsel %vm330_vm1, %v3333_v58, %v3335_v37  ;;  %v3472_v55 = vld [vmem:[%s8415_s0 + $0x4c] sm:$0xc] }
 0x2e3   :  { %v2394_v4 = vpop.f32.mrf.mxu3  ;;  %v2556_v28 = vadd.f32 %v2554_v35, %v7781_v46  ;;  %v6221_v46 = vld [vmem:[%s8417_s3 + $0xa0] sm:$0xff]  ;;  %v3474_v1 = vunpack.c.l.b16 %v3472_v55 }
 0x2e4   :  { %v2550_v62 = vpop.f32.mrf.mxu2  ;;  %v3403_v7 = vsel %vm3386_vm7, %v3394_v41, %v3402_v53  ;;  %v3412_v2 = vsel %vm3386_vm7, %v3402_v53, %v3411_v16 }
 0x2e5   :  { %v2445_v8 = vpop.f32.mrf.mxu0  ;;  %v3204_v62 = vsel %vm1011_vm5, %v3194_v36, %v3203_v17  ;;  %v3416_v36 = vrot.slane %v3414_v5, 1  ;;  %v3479_v17 = vrot.slane %v7800_v13, 2  ;;  %v6225_v13 = vld [vmem:[%s8419_s5 + $0x20] sm:$0xff] }
 0x2e6   :  { %v2498_v42 = vpop.f32.mrf.mxu1  ;;  %v3258_v8 = vsel %vm478_vm2, %v3255_v61, %v3257_v22  ;;  %v3419_v61 = vrot.slane %v3417_v38, 2  ;;  %v6224_v22 = vld [vmem:[%s8419_s5 + $0x28] sm:$0xff] }
 0x2eb   :  { %v2395_v26 = vpop.f32.mrf.mxu3 }
 0x2ec   :  { %v2551_v48 = vpop.f32.mrf.mxu2  ;;  %v3475_v26 = vpack.c.b16 %v3319_v25, %v3474_v1 }
 0x2ed   :  { %v2652_v0 = vpop.f32.mrf.mxu0  ;;  %v3382_v48 = vld [vmem:[%s8415_s0 + $0x6c] sm:$0x3] }
 0x2ee   :  { %v2705_v44 = vpop.f32.mrf.mxu1  ;;  %v3337_v0 = vrot.slane %v7840_v43, 1 }
 0x2ef   :  { %v3476_v44 = vrot.slane %v3475_v26, 2 }
 0x2f0   :  { %3353 = vmatmul.bf16.vlgmr.msra.gmra.mxu3 %v3334_v29  ;;  %3443 = vmatmul.bf16.vlgmr.msra.gmra.mxu0 %v3403_v7  ;;  %v3420_v29 = vor.u32 %v3419_v61, %v3416_v36  ;;  %v3384_v7 = vunpack.c.l.b16 %v3382_v48  ;;  %v3338_v18 = vsel %vm330_vm1, %v3335_v37, %v3337_v0  ;;  %v6223_v37 = vld [vmem:[%s8419_s5 + $0x30] sm:$0xff] }
 0x2f1   :  { %3227 = vmatmul.bf16.gmra.mxu1 %v3195_v9  ;;  %3281 = vmatmul.bf16.gmra.mxu2 %v3256_v45  ;;  %v3477_v9 = vrot.slane %v7777_v34, 2 }
 0x2f2   :  { %3715 = vmatpush.bf16.msra.mxu3 %v6214_v20  ;;  %3744 = vmatpush.bf16.msra.mxu0 %v6215_v60  ;;  %v3421_v33 = vsel %vm3386_vm7, %v3411_v16, %v3420_v29  ;;  %v7856_v56 = vpack.c.b16 %v3384_v7, %v3384_v7  ;;  %v3308_v20 = vld [vmem:[%s8415_s0 + $0x6c] sm:$0x1] }
 0x2f3   :  { %v2599_v51 = vpop.f32.mrf.mxu3  ;;  %v3478_v15 = vsel %vm891_vm4, %v3476_v44, %v3477_v9  ;;  %v3326_v34 = vunpack.c.l.b16 %v3308_v20 }
 0x2f4   :  { %v2758_v27 = vpop.f32.mrf.mxu2  ;;  %v3423_v60 = vshrl.u32 %v7856_v56, 16  ;;  %v3426_v51 = vshll.u32 %v7856_v56, 16  ;;  %v3483_v26 = vrot.slane %v7856_v56, 2 }
 0x2f5   :  { %v2653_v10 = vpop.f32.mrf.mxu0  ;;  %v6222_v27 = vld [vmem:[%s8419_s5 + $0x38] sm:$0xff]  ;;  %v3331_v24 = vpack.c.b16 %v3326_v34, %v3326_v34 }
 0x2f6   :  { %v2706_v47 = vpop.f32.mrf.mxu1  ;;  %3716 = vmatpush.bf16.msra.mxu3 %v6216_v57  ;;  %3745 = vmatpush.bf16.msra.mxu0 %v6217_v54  ;;  %v2660_v52 = vrot.slane %v2653_v10, 5  ;;  %v3425_v63 = vrot.slane %v3423_v60, 1  ;;  %v3428_v57 = vrot.slane %v3426_v51, 2 }
 0x2f7   :  { %v2713_v49 = vrot.slane %v2706_v47, 6  ;;  %v3339_v16 = vrot.slane %v3331_v24, 1 }
 0x2f8   :  { %v3429_v35 = vor.u32 %v3428_v57, %v3425_v63 }
 0x2fa   :  { %3717 = vmatpush.bf16.msra.mxu3 %v6218_v14  ;;  %3746 = vmatpush.bf16.msra.mxu0 %v6219_v30 }
 0x2fb   :  { %v2600_v23 = vpop.f32.mrf.mxu3 }
 0x2fc   :  { %v2607_v19 = vrot.slane %v2600_v23, 4  ;;  %v7825_v39 = vpop.f32.mrf.mxu2 }
 0x2fd   :  { %v2656_v40 = vpop.f32.mrf.mxu0 }
 0x2fe   :  { %v2609_v59 = vadd.f32 %v2607_v19, %v2556_v28  ;;  %v2709_v4 = vpop.f32.mrf.mxu1  ;;  %3718 = vmatpush.bf16.msra.mxu3 %v6220_v6  ;;  %3747 = vmatpush.bf16.msra.mxu0 %v6221_v46  ;;  %v3340_v28 = vsel %vm330_vm1, %v3337_v0, %v3339_v16  ;;  %v3430_v19 = vsel %vm3386_vm7, %v3420_v29, %v3429_v35 }
 0x300   :  { %v2662_v42 = vadd.f32 %v2660_v52, %v2609_v59  ;;  %3358 = vmatmul.bf16.gmra.mxu3 %v3336_v32  ;;  %3448 = vmatmul.bf16.gmra.mxu0 %v3412_v2  ;;  %v3480_v32 = vsel %vm891_vm4, %v3477_v9, %v3479_v17  ;;  %v2766_v2 = vrot.slane %v7825_v39, 7 }
 0x301   :  { %3232 = vmatmul.bf16.gmra.mxu1 %v3204_v62  ;;  %3286 = vmatmul.bf16.gmra.mxu2 %v3258_v8 }
 0x302   :  { %v2715_v50 = vadd.f32 %v2713_v49, %v2662_v42  ;;  %v3481_v49 = vrot.slane %v7840_v43, 2 }
 0x303   :  { %v2603_v58 = vpop.f32.mrf.mxu3 }
 0x304   :  { %v2762_v41 = vpop.f32.mrf.mxu2  ;;  %v2768_v52 = vadd.f32 %v2766_v2, %v2715_v50  ;;  %v3482_v1 = vsel %vm891_vm4, %v3479_v17, %v3481_v49  ;;  %v3484_v7 = vsel %vm891_vm4, %v3481_v49, %v3483_v26 }
 0x305   :  { %v2657_v53 = vpop.f32.mrf.mxu0 }
 0x306   :  { %v2710_v21 = vpop.f32.mrf.mxu1 }
 0x30b   :  { %v2604_v45 = vpop.f32.mrf.mxu3 }
 0x30c   :  { %v2763_v11 = vpop.f32.mrf.mxu2 }
 0x30d   :  { %v2861_v31 = vpop.f32.mrf.mxu0 }
 0x30e   :  { %v2965_v25 = vpop.f32.mrf.mxu1 }
 0x310   :  { %3363 = vmatmul.bf16.gmra.mxu3 %v3338_v18  ;;  %3453 = vmatmul.bf16.gmra.mxu0 %v3421_v33 }
 0x311   :  { %3497 = vmatmul.bf16.vlgmr.msrb.gmra.mxu1 %v3478_v15 }
 0x312   :  { %3906 = vmatpush.bf16.msrb.mxu1 %v6222_v27 }
 0x313   :  { %v2811_v10 = vpop.f32.mrf.mxu3 }
 0x314   :  { %v3010_v3 = vpop.f32.mrf.mxu2 }
 0x315   :  { %v3011_v12 = vadd.f32 %v3010_v3, %v2965_v25  ;;  %v2862_v47 = vpop.f32.mrf.mxu0 }
 0x316   :  { %v7867_v54 = vpop.f32.mrf.mxu1  ;;  %3907 = vmatpush.bf16.msrb.mxu1 %v6223_v37 }
 0x31a   :  { %3908 = vmatpush.bf16.msrb.mxu1 %v6224_v22 }
 0x31b   :  { %v2812_v14 = vpop.f32.mrf.mxu3 }
 0x31c   :  { %v7876_v30 = vpop.f32.mrf.mxu2 }
 0x31d   :  { %v2864_v23 = vpop.f32.mrf.mxu0 }
 0x31e   :  { %v7880_v40 = vpop.f32.mrf.mxu1  ;;  %3909 = vmatpush.bf16.msrb.mxu1 %v6225_v13  ;;  %v2869_v4 = vrot.slane %v2864_v23, 1 }
 0x320   :  { %3368 = vmatmul.bf16.gmra.mxu3 %v3340_v28  ;;  %3458 = vmatmul.bf16.gmra.mxu0 %v3430_v19 }
 0x321   :  { %3502 = vmatmul.bf16.gmra.mxu1 %v3480_v32 }
 0x323   :  { %v2814_v59 = vpop.f32.mrf.mxu3 }
 0x324   :  { %v2818_v62 = vadd.f32 %v2814_v59, %v2768_v52  ;;  %v7887_v8 = vpop.f32.mrf.mxu2  ;;  %v3013_v52 = vadd.f32 %v7876_v30, %v7867_v54 }
 0x325   :  { %v2866_v6 = vpop.f32.mrf.mxu0 }
 0x326   :  { %v7889_v46 = vadd.f32 %v2869_v4, %v2818_v62  ;;  %v7891_v55 = vpop.f32.mrf.mxu1 }
 0x32b   :  { %v2816_v42 = vpop.f32.mrf.mxu3 }
 0x32c   :  { %v7894_v5 = vpop.f32.mrf.mxu2 }
 0x32d   :  { %v3129_v39 = vpop.f32.mrf.mxu0 }
 0x32e   :  { %v2975_v38 = vpop.f32.mrf.mxu1 }
 0x331   :  { %3507 = vmatmul.bf16.gmra.mxu1 %v3482_v1  ;;  %v3016_v1 = vadd.f32 %v7887_v8, %v7880_v40  ;;  %v3018_v40 = vadd.f32 %v7894_v5, %v7891_v55 }
 0x333   :  { %v3047_v50 = vpop.f32.mrf.mxu3 }
 0x334   :  { %v3020_v58 = vpop.f32.mrf.mxu2  ;;  %v3067_v41 = vadd.f32 %v3047_v50, %v3011_v12 }
 0x335   :  { %v3021_v53 = vadd.f32 %v3020_v58, %v2975_v38  ;;  %v3131_v36 = vpop.f32.mrf.mxu0 }
 0x336   :  { %v7897_v61 = vpop.f32.mrf.mxu1  ;;  %v3149_v21 = vadd.f32 %v3129_v39, %v3067_v41 }
 0x33b   :  { %v3049_v48 = vpop.f32.mrf.mxu3 }
 0x33c   :  { %v7900_v43 = vpop.f32.mrf.mxu2  ;;  %v3068_v62 = vadd.f32 %v3049_v48, %v3013_v52  ;;  %v7932_v48 = vld [vmem:[%s8416_s2] ss:$0 sm:$0xff] }
 0x33d   :  { %v3134_v0 = vpop.f32.mrf.mxu0 }
 0x33e   :  { %v2980_v29 = vpop.f32.mrf.mxu1  ;;  %v3150_v39 = vadd.f32 %v3131_v36, %v3068_v62 }
 0x341   :  { %3512 = vmatmul.bf16.gmra.mxu1 %v3484_v7 }
 0x343   :  { %v3052_v44 = vpop.f32.mrf.mxu3 }
 0x344   :  { %v3025_v9 = vpop.f32.mrf.mxu2 }
 0x345   :  { %v3026_v45 = vadd.f32 %v3025_v9, %v2980_v29  ;;  %v7903_v11 = vpop.f32.mrf.mxu0 }
 0x346   :  { %v7905_v31 = vpop.f32.mrf.mxu1 }
 0x34b   :  { %v3054_v18 = vpop.f32.mrf.mxu3 }
 0x34c   :  { %v7911_v57 = vpop.f32.mrf.mxu2 }
 0x34d   :  { %v3139_v15 = vpop.f32.mrf.mxu0 }
 0x34e   :  { %v3218_v33 = vpop.f32.mrf.mxu1 }
 0x34f   :  { %v3238_v25 = vadd.f32 %v3218_v33, %v3149_v21  ;;  %v3070_v33 = vadd.f32 %v3054_v18, %v3018_v40  ;;  %v6229_v40 = vld [vmem:[%s8417_s3 + $0x108] sm:$0xff] }
 0x353   :  { %v3057_v56 = vpop.f32.mrf.mxu3 }
 0x354   :  { %v3071_v20 = vadd.f32 %v3057_v56, %v3021_v53  ;;  %v3272_v22 = vpop.f32.mrf.mxu2  ;;  %v3069_v53 = vadd.f32 %v3052_v44, %v3016_v1 }
 0x355   :  { %v7907_v51 = vpop.f32.mrf.mxu0  ;;  %v3292_v6 = vadd.f32 %v3272_v22, %v3238_v25 }
 0x356   :  { %v3153_v34 = vadd.f32 %v3139_v15, %v3071_v20  ;;  %v3220_v60 = vpop.f32.mrf.mxu1  ;;  %v3151_v30 = vadd.f32 %v3134_v0, %v3069_v53 }
 0x357   :  { %v3239_v50 = vadd.f32 %v3220_v60, %v3150_v39  ;;  %v3152_v60 = vadd.f32 %v7903_v11, %v3070_v33  ;;  %v3023_v11 = vadd.f32 %v7900_v43, %v7897_v61  ;;  %v6228_v61 = vld [vmem:[%s8417_s3 + $0x110] sm:$0xff] }
 0x35b   :  { %v7909_v27 = vpop.f32.mrf.mxu3 }
 0x35c   :  { %v3274_v13 = vpop.f32.mrf.mxu2 }
 0x35d   :  { %v3144_v12 = vpop.f32.mrf.mxu0  ;;  %v3293_v21 = vadd.f32 %v3274_v13, %v3239_v50 }
 0x35e   :  { %v3223_v10 = vpop.f32.mrf.mxu1 }
 0x35f   :  { %v3240_v8 = vadd.f32 %v3223_v10, %v3151_v30 }
 0x363   :  { %v3062_v3 = vpop.f32.mrf.mxu3 }
 0x364   :  { %v3073_v47 = vadd.f32 %v3062_v3, %v3026_v45  ;;  %v3277_v42 = vpop.f32.mrf.mxu2 }
 0x365   :  { %v7917_v17 = vpop.f32.mrf.mxu0  ;;  %v3294_v25 = vadd.f32 %v3277_v42, %v3240_v8  ;;  %v3072_v42 = vadd.f32 %v7909_v27, %v3023_v11 }
 0x366   :  { %v3155_v24 = vadd.f32 %v3144_v12, %v3073_v47  ;;  %v3225_v63 = vpop.f32.mrf.mxu1 }
 0x367   :  { %v3241_v47 = vadd.f32 %v3225_v63, %v3152_v60 }
 0x36b   :  { %v7913_v37 = vpop.f32.mrf.mxu3 }
 0x36c   :  { %v3279_v7 = vpop.f32.mrf.mxu2 }
 0x36d   :  { %v3444_v28 = vpop.f32.mrf.mxu0  ;;  %v3295_v10 = vadd.f32 %v3279_v7, %v3241_v47 }
 0x36e   :  { %v3228_v16 = vpop.f32.mrf.mxu1 }
 0x36f   :  { %v7915_v35 = vadd.f32 %v3228_v16, %v3153_v34 }
 0x373   :  { %v3354_v23 = vpop.f32.mrf.mxu3 }
 0x374   :  { %v3374_v49 = vadd.f32 %v3354_v23, %v3292_v6  ;;  %v3282_v55 = vpop.f32.mrf.mxu2 }
 0x375   :  { %v3446_v59 = vpop.f32.mrf.mxu0 }
 0x376   :  { %v7919_v14 = vpop.f32.mrf.mxu1  ;;  %v3464_v58 = vadd.f32 %v3444_v28, %v3374_v49 }
 0x37b   :  { %v3356_v2 = vpop.f32.mrf.mxu3 }
 0x37c   :  { %v3375_v54 = vadd.f32 %v3356_v2, %v3293_v21 }
 0x37d   :  { %v3449_v29 = vpop.f32.mrf.mxu0 }
 0x37e   :  { %v3233_v19 = vpop.f32.mrf.mxu1  ;;  %v3465_v9 = vadd.f32 %v3446_v59, %v3375_v54  ;;  %v6227_v59 = vld [vmem:[%s8417_s3 + $0x118] sm:$0xff] }
 0x37f   :  { %v7921_v32 = vadd.f32 %v3233_v19, %v3155_v24 }
 0x383   :  { %v3359_v38 = vpop.f32.mrf.mxu3 }
 0x384   :  { %v3376_v0 = vadd.f32 %v3359_v38, %v3294_v25  ;;  %v3296_v38 = vadd.f32 %v3282_v55, %v7915_v35  ;;  %v3028_v55 = vadd.f32 %v7911_v57, %v7905_v31  ;;  %v6235_v31 = vld [vmem:[%s8419_s5 + $0x8] sm:$0xff] }
 0x385   :  { %v3451_v34 = vpop.f32.mrf.mxu0 }
 0x386   :  { %v7925_v4 = vpop.f32.mrf.mxu1  ;;  %v3466_v24 = vadd.f32 %v3449_v29, %v3376_v0  ;;  %v6230_v0 = vld [vmem:[%s8419_s5 + $0x18] sm:$0xff] }
 0x38b   :  { %v3361_v45 = vpop.f32.mrf.mxu3 }
 0x38c   :  { %v3377_v19 = vadd.f32 %v3361_v45, %v3295_v10 }
 0x38d   :  { %v3454_v63 = vpop.f32.mrf.mxu0 }
 0x38e   :  { %v3498_v41 = vpop.f32.mrf.mxu1  ;;  %v3467_v62 = vadd.f32 %v3451_v34, %v3377_v19 }
 0x38f   :  { %v3518_v26 = vadd.f32 %v3498_v41, %v3464_v58  ;;  %v3284_v58 = vpop.f32.mrf.mxu2 }
 0x391   :  { %v3526_v36 = vadd.f32 %v7932_v48, %v3518_v26  ;;  %v3154_v26 = vadd.f32 %v7907_v51, %v3072_v42  ;;  %v6237_v42 = vld [vmem:[%s8419_s5] sm:$0xff] }
 0x393   :  { %v3534_v15 = vmax.f32 %v3526_v36, 0.0  ;;  %v3364_v28 = vpop.f32.mrf.mxu3  ;;  %v3243_v7 = vadd.f32 %v7919_v14, %v3154_v26 }
 0x394   :  { %v3378_v43 = vadd.f32 %v3364_v28, %v3296_v38 }
 0x395   :  { %v3542_v3 = vpack.c.bf16 %v3534_v15, %v3534_v15  ;;  %v3297_v25 = vadd.f32 %v3284_v58, %v3243_v7 }
 0x396   :  { %v3500_v44 = vpop.f32.mrf.mxu1  ;;  %v3468_v8 = vadd.f32 %v3454_v63, %v3378_v43 }
 0x397   :  { %v3519_v56 = vadd.f32 %v3500_v44, %v3465_v9  ;;  %v3553_v22 = vunpack.c.l.b16 %v3542_v3  ;;  %v3456_v44 = vpop.f32.mrf.mxu0  ;;  %v6232_v3 = vld [vmem:[%s8417_s3 + $0xf8] sm:$0xff] }
 0x399   :  { %v3527_v20 = vadd.f32 %v7932_v48, %v3519_v56 }
 0x39b   :  { %v3535_v12 = vmax.f32 %v3527_v20, 0.0  ;;  %v3366_v27 = vpop.f32.mrf.mxu3  ;;  %v6231_v20 = vld [vmem:[%s8417_s3 + $0x100] sm:$0xff] }
 0x39c   :  { %v3379_v34 = vadd.f32 %v3366_v27, %v3297_v25 }
 0x39d   :  { %v3543_v16 = vpack.c.bf16 %v3535_v12, %v3535_v12  ;;  %v3287_v12 = vpop.f32.mrf.mxu2 }
 0x39e   :  { %v3503_v5 = vpop.f32.mrf.mxu1  ;;  %v3469_v10 = vadd.f32 %v3456_v44, %v3379_v34  ;;  %v3298_v19 = vadd.f32 %v3287_v12, %v7921_v32 }
 0x39f   :  { %v3554_v23 = vunpack.c.l.b16 %v3543_v16  ;;  %v3520_v18 = vadd.f32 %v3503_v5, %v3466_v24  ;;  %v6233_v16 = vld [vmem:[%s8419_s5 + $0x10] sm:$0xff]  ;;  %v3459_v57 = vpop.f32.mrf.mxu0 }
 0x3a1   :  { %v3556_v13 = vpack.c.b16 %v3554_v23, %v3553_v22  ;;  %v3528_v2 = vadd.f32 %v7932_v48, %v3520_v18  ;;  %v6234_v23 = vld [vmem:[%s8417_s3 + $0xf0] sm:$0xff]  ;;  %v3074_v18 = vadd.f32 %v7913_v37, %v3028_v55  ;;  %v6236_v37 = vld [vmem:[%s8417_s3 + $0xe8] sm:$0xff] }
 0x3a3   :  { %v3536_v52 = vmax.f32 %v3528_v2, 0.0  ;;  %5660 = vmatmul.msk.bf16.vlgmr.msrb.gmra.mxu3 %vm1356_vm6, %v3556_v13  ;;  %v3561_v6 = vshll.u32 %v3556_v13, 16  ;;  %v3619_v29 = vrot.slane %v3556_v13, 1  ;;  %v3559_v30 = vshrl.u32 %v3556_v13, 16  ;;  %v3369_v5 = vpop.f32.mrf.mxu3 }
 0x3a4   :  { %3854 = vmatpush.bf16.msrb.mxu3 %v6227_v59  ;;  %v3380_v11 = vadd.f32 %v3369_v5, %v3298_v19  ;;  %v3156_v32 = vadd.f32 %v7917_v17, %v3074_v18  ;;  %v6238_v17 = vld [vmem:[%s8417_s3 + $0xe0] sm:$0xff]  ;;  %v6244_v19 = vld [vmem:[%s8419_s5 + $0x90] sm:$0xff] }
 0x3a5   :  { %v3544_v49 = vpack.c.bf16 %v3536_v52, %v3536_v52  ;;  %v3563_v21 = vrot.slane %v3561_v6, 1 }
 0x3a6   :  { %v3505_v39 = vpop.f32.mrf.mxu1 }
 0x3a7   :  { %v3555_v1 = vunpack.c.l.b16 %v3544_v49  ;;  %v3521_v50 = vadd.f32 %v3505_v39, %v3467_v62  ;;  %v3564_v9 = vor.u32 %v3563_v21, %v3559_v30  ;;  %v3289_v39 = vpop.f32.mrf.mxu2 }
 0x3a8   :  { %3855 = vmatpush.bf16.msrb.mxu3 %v6228_v61 }
 0x3a9   :  { %v7951_v41 = vpack.c.b16 %v3555_v1, %v3555_v1  ;;  %v3529_v53 = vadd.f32 %v7932_v48, %v3521_v50  ;;  %v3470_v50 = vadd.f32 %v3459_v57, %v3380_v11  ;;  %v6248_v57 = vld [vmem:[%s8419_s5 + $0x88] sm:$0xff] }
 0x3aa   :  { %v6249_v11 = vld [vmem:[%s8419_s5 + $0x48] sm:$0xff] }
 0x3ab   :  { %v3537_v54 = vmax.f32 %v3529_v53, 0.0  ;;  %v3620_v35 = vrot.slane %v7951_v41, 1  ;;  %v3566_v36 = vshll.u32 %v7951_v41, 16  ;;  %v3570_v38 = vshrl.u32 %v7951_v41, 16  ;;  %v3371_v53 = vpop.f32.mrf.mxu3 }
 0x3ac   :  { %3856 = vmatpush.bf16.msrb.mxu3 %v6229_v40 }
 0x3ad   :  { %v3621_v51 = vsel %vm330_vm1, %v3619_v29, %v3620_v35  ;;  %v3568_v45 = vrot.slane %v3566_v36, 1  ;;  %v7965_v15 = vpack.c.bf16 %v3537_v54, %v3537_v54 }
 0x3ae   :  { %v3508_v33 = vpop.f32.mrf.mxu1  ;;  %5662 = vmatmul.msk.bf16.vlgmr.msrb.gmra.mxu0 %vm1356_vm6, %v3621_v51 }
 0x3af   :  { %v3522_v14 = vadd.f32 %v3508_v33, %v3468_v8  ;;  %v3569_v56 = vsel %vm110_vm0, %v3564_v9, %v3568_v45  ;;  %3889 = vmatpush.bf16.msrb.mxu0 %v6230_v0  ;;  %v3651_v47 = vunpack.c.l.b16 %v7965_v15  ;;  %v3572_v26 = vor.u32 %v3570_v38, %v3568_v45  ;;  %v3461_v8 = vpop.f32.mrf.mxu0 }
 0x3b0   :  { %5658 = vmatmul.msk.bf16.vlgmr.msra.gmra.mxu2 %vm1356_vm6, %v3569_v56  ;;  %3857 = vmatpush.bf16.msrb.mxu3 %v6231_v20 }
 0x3b1   :  { %v3530_v60 = vadd.f32 %v7932_v48, %v3522_v14  ;;  %3824 = vmatpush.bf16.msra.mxu2 %v6232_v3  ;;  %v3653_v13 = vpack.c.b16 %v3651_v47, %v3555_v1  ;;  %v3245_v1 = vadd.f32 %v7925_v4, %v3156_v32  ;;  %v6252_v32 = vld [vmem:[%s8419_s5 + $0x40] sm:$0xff] }
 0x3b3   :  { %v3538_v24 = vmax.f32 %v3530_v60, 0.0  ;;  %5661 = vmatmul.msk.bf16.gmra.mxu3 %vm1356_vm6, %v7951_v41  ;;  %3890 = vmatpush.bf16.msrb.mxu0 %v6233_v16  ;;  %v3655_v62 = vrot.slane %v3653_v13, 3  ;;  %v3689_v43 = vshrl.u32 %v3653_v13, 16  ;;  %v3299_v27 = vadd.f32 %v3289_v39, %v3245_v1  ;;  %v6254_v39 = vld [vmem:[%s8419_s5 + $0xa0] sm:$0xff] }
 0x3b4   :  { %v3692_v4 = vshll.u32 %v3653_v13, 16 }
 0x3b5   :  { %v3546_v22 = vpack.c.bf16 %v3538_v24, %v3538_v24  ;;  %3825 = vmatpush.bf16.msra.mxu2 %v6234_v23  ;;  %v3381_v30 = vadd.f32 %v3371_v53, %v3299_v27  ;;  %v3691_v40 = vrot.slane %v3689_v43, 3  ;;  %v6239_v24 = vld [vmem:[%s8419_s5 + $0x78] sm:$0xff] }
 0x3b6   :  { %v3510_v28 = vpop.f32.mrf.mxu1  ;;  %v3694_v51 = vrot.slane %v3692_v4, 4 }
 0x3b7   :  { %v3652_v2 = vunpack.c.l.b16 %v3546_v22  ;;  %v3523_v52 = vadd.f32 %v3510_v28, %v3469_v10  ;;  %3891 = vmatpush.bf16.msrb.mxu0 %v6235_v31  ;;  %v6240_v10 = vld [vmem:[%s8419_s5 + $0x70] sm:$0xff]  ;;  %v6241_v22 = vld [vmem:[%s8419_s5 + $0x98] sm:$0xff]  ;;  %v6243_v28 = vld [vmem:[%s8419_s5 + $0x68] sm:$0xff] }
 0x3b8   :  { %v3695_v0 = vor.u32 %v3694_v51, %v3691_v40  ;;  %v6247_v31 = vld [vmem:[%s8419_s5 + $0xb8] sm:$0xff]  ;;  %v6261_v40 = vld [vmem:[%s8419_s5 + $0xc8] sm:$0xff] }
 0x3b9   :  { %v3654_v63 = vpack.c.b16 %v3652_v2, %v3652_v2  ;;  %v3531_v59 = vadd.f32 %v7932_v48, %v3523_v52  ;;  %3826 = vmatpush.bf16.msra.mxu2 %v6236_v37  ;;  %v3732_v16 = vpack.c.b16 %v3652_v2, %v3651_v47  ;;  %v6242_v47 = vld [vmem:[%s8419_s5 + $0x58] sm:$0xff]  ;;  %v6246_v52 = vld [vmem:[%s8419_s5 + $0x60] sm:$0xff] }
 0x3ba   :  { %v6251_v37 = vld [vmem:[%s8419_s5 + $0x80] sm:$0xff] }
 0x3bb   :  { %v8002_v6 = vrot.slane %v3654_v63, 3  ;;  %v3539_v49 = vmax.f32 %v3531_v59, 0.0  ;;  %3892 = vmatpush.bf16.msrb.mxu0 %v6237_v42  ;;  %v6250_v63 = vld [vmem:[%s8419_s5 + $0xb0] sm:$0xff] }
 0x3bd   :  { %v3547_v58 = vpack.c.bf16 %v3539_v49, %v3539_v49  ;;  %v3657_v61 = vsel %vm478_vm2, %v3655_v62, %v8002_v6  ;;  %3827 = vmatpush.bf16.msra.mxu2 %v6238_v17  ;;  %v6253_v62 = vld [vmem:[%s8419_s5 + $0xa8] sm:$0xff] }
 0x3be   :  { %v3513_v21 = vpop.f32.mrf.mxu1  ;;  %5663 = vmatmul.msk.bf16.gmra.mxu0 %vm1356_vm6, %v3620_v35  ;;  %v3471_v35 = vadd.f32 %v3461_v8, %v3381_v30  ;;  %v6258_v30 = vld [vmem:[%s8419_s5 + $0xe8] sm:$0xff]  ;;  %v6262_v8 = vld [vmem:[%s8419_s5 + $0xc0] sm:$0xff] }
 0x3bf   :  { %v8017_v29 = vunpack.c.l.b16 %v3547_v58  ;;  %v3524_v54 = vadd.f32 %v3513_v21, %v3470_v50 }
 0x3c0   :  { %5659 = vmatmul.msk.bf16.gmra.mxu2 %vm1356_vm6, %v3572_v26  ;;  %v6255_v26 = vld [vmem:[%s8419_s5 + $0xf8] sm:$0xff] }
 0x3c1   :  { %v3687_v36 = vpack.c.b16 %v8017_v29, %v3652_v2  ;;  %v3532_v7 = vadd.f32 %v7932_v48, %v3524_v54  ;;  %v6245_v2 = vld [vmem:[%s8419_s5 + $0x50] sm:$0xff]  ;;  %v3733_v59 = vpack.c.b16 %v8017_v29, %v8017_v29  ;;  %v6257_v54 = vld [vmem:[%s8419_s5 + $0xd8] sm:$0xff] }
 0x3c3   :  { %v3697_v9 = vshrl.u32 %v3687_v36, 16  ;;  %v3700_v41 = vshll.u32 %v3687_v36, 16  ;;  %v3540_v44 = vmax.f32 %v3532_v7, 0.0  ;;  %v6259_v36 = vld [vmem:[%s8419_s5 + $0xd0] sm:$0xff]  ;;  %v6260_v7 = vld [vmem:[%s8419_s5 + $0xe0] sm:$0xff] }
 0x3c5   :  { %v3699_v45 = vrot.slane %v3697_v9, 3  ;;  %v3702_v33 = vrot.slane %v3700_v41, 4  ;;  %v3548_v14 = vpack.c.bf16 %v3540_v44, %v3540_v44 }
 0x3c6   :  { %v3515_v25 = vpop.f32.mrf.mxu1 }
 0x3c7   :  { %v3525_v56 = vadd.f32 %v3515_v25, %v3471_v35  ;;  %v3703_v20 = vor.u32 %v3702_v33, %v3699_v45  ;;  %v3763_v3 = vunpack.c.l.b16 %v3548_v14 }
 0x3c9   :  { %v3533_v34 = vadd.f32 %v7932_v48, %v3525_v56  ;;  %v3704_v60 = vsel %vm598_vm3, %v3695_v0, %v3703_v20  ;;  %v3765_v5 = vpack.c.b16 %v3763_v3, %v8017_v29  ;;  %v6256_v29 = vld [vmem:[%s8419_s5 + $0xf0] sm:$0xff] }
 0x3ca   :  { %5666 = vmatmul.msk.bf16.vlgmr.msra.gmra.mxu3 %vm1356_vm6, %v3704_v60 }
 0x3cb   :  { %v3541_v12 = vmax.f32 %v3533_v34, 0.0  ;;  %3946 = vmatpush.bf16.msra.mxu3 %v6239_v24  ;;  %v3767_v23 = vrot.slane %v3765_v5, 2  ;;  %v3798_v38 = vshrl.u32 %v3765_v5, 16  ;;  %v3801_v1 = vshll.u32 %v3765_v5, 16 }
 0x3cc   :  { %v3841_v17 = vrot.slane %v3765_v5, 3 }
 0x3cd   :  { %v3549_v55 = vpack.c.bf16 %v3541_v12, %v3541_v12  ;;  %v3800_v43 = vrot.slane %v3798_v38, 2 }
 0x3ce   :  { %5668 = vmatmul.msk.bf16.vlgmr.msra.gmra.mxu0 %vm1356_vm6, %v3732_v16 }
 0x3cf   :  { %v3764_v48 = vunpack.c.l.b16 %v3549_v55  ;;  %3947 = vmatpush.bf16.msra.mxu3 %v6240_v10  ;;  %3966 = vmatpush.bf16.msra.mxu0 %v6241_v22 }
 0x3d0   :  { %5664 = vmatmul.msk.bf16.vlgmr.msrb.gmra.mxu2 %vm1356_vm6, %v3657_v61 }
 0x3d1   :  { %v8039_v15 = vpack.c.b16 %v3764_v48, %v3764_v48  ;;  %3926 = vmatpush.bf16.msrb.mxu2 %v6242_v47 }
 0x3d3   :  { %v3768_v18 = vrot.slane %v8039_v15, 2  ;;  %3948 = vmatpush.bf16.msra.mxu3 %v6243_v28  ;;  %3967 = vmatpush.bf16.msra.mxu0 %v6244_v19  ;;  %v3806_v49 = vshrl.u32 %v8039_v15, 16  ;;  %v3809_v42 = vshll.u32 %v8039_v15, 16  ;;  %v3842_v50 = vrot.slane %v8039_v15, 3 }
 0x3d5   :  { %v3769_v13 = vsel %vm891_vm4, %v3767_v23, %v3768_v18  ;;  %3927 = vmatpush.bf16.msrb.mxu2 %v6245_v2  ;;  %v3808_v58 = vrot.slane %v3806_v49, 2  ;;  %v3811_v61 = vrot.slane %v3809_v42, 3  ;;  %v3843_v53 = vsel %vm478_vm2, %v3841_v17, %v3842_v50 }
 0x3d6   :  { %5670 = vmatmul.msk.bf16.vlgmr.msra.gmra.mxu1 %vm1356_vm6, %v3769_v13 }
 0x3d7   :  { %3949 = vmatpush.bf16.msra.mxu3 %v6246_v52  ;;  %3986 = vmatpush.bf16.msra.mxu1 %v6247_v31  ;;  %v3812_v21 = vor.u32 %v3811_v61, %v3808_v58 }
 0x3d8   :  { %3968 = vmatpush.bf16.msra.mxu0 %v6248_v57 }
 0x3d9   :  { %3928 = vmatpush.bf16.msrb.mxu2 %v6249_v11 }
 0x3da   :  { %5667 = vmatmul.msk.bf16.gmra.mxu3 %vm1356_vm6, %v3703_v20 }
 0x3db   :  { %3987 = vmatpush.bf16.msra.mxu1 %v6250_v63 }
 0x3dc   :  { %3969 = vmatpush.bf16.msra.mxu0 %v6251_v37 }
 0x3dd   :  { %3929 = vmatpush.bf16.msrb.mxu2 %v6252_v32 }
 0x3de   :  { %5669 = vmatmul.msk.bf16.gmra.mxu0 %vm1356_vm6, %v3733_v59 }
 0x3df   :  { %3988 = vmatpush.bf16.msra.mxu1 %v6253_v62 }
 0x3e0   :  { %5665 = vmatmul.msk.bf16.gmra.mxu2 %vm1356_vm6, %v8002_v6  ;;  %v3803_v6 = vrot.slane %v3801_v1, 3 }
 0x3e2   :  { %v3804_v27 = vor.u32 %v3803_v6, %v3800_v43 }
 0x3e3   :  { %3989 = vmatpush.bf16.msra.mxu1 %v6254_v39 }
 0x3e4   :  { %v3813_v4 = vsel %vm1011_vm5, %v3804_v27, %v3812_v21 }
 0x3e6   :  { %5671 = vmatmul.msk.bf16.gmra.mxu1 %vm1356_vm6, %v3768_v18 }
 0x3ea   :  { %5674 = vmatmul.msk.bf16.vlgmr.msrb.gmra.mxu3 %vm1356_vm6, %v3843_v53 }
 0x3eb   :  { %4026 = vmatpush.bf16.msrb.mxu3 %v6255_v26  ;;  %v6263_v26 = vld [vmem:[%s8418_s4] ss:$0 sm:$0xff] }
 0x3ef   :  { %4027 = vmatpush.bf16.msrb.mxu3 %v6256_v29 }
 0x3f0   :  { %5672 = vmatmul.msk.bf16.vlgmr.msra.gmra.mxu2 %vm1356_vm6, %v3813_v4 }
 0x3f1   :  { %4006 = vmatpush.bf16.msra.mxu2 %v6257_v54 }
 0x3f3   :  { %4028 = vmatpush.bf16.msrb.mxu3 %v6258_v30 }
 0x3f5   :  { %4007 = vmatpush.bf16.msra.mxu2 %v6259_v36 }
 0x3f7   :  { %4029 = vmatpush.bf16.msrb.mxu3 %v6260_v7 }
 0x3f9   :  { %4008 = vmatpush.bf16.msra.mxu2 %v6261_v40 }
 0x3fa   :  { %5675 = vmatmul.msk.bf16.gmra.mxu3 %vm1356_vm6, %v3842_v50 }
 0x3fd   :  { %4009 = vmatpush.bf16.msra.mxu2 %v6262_v8 }
 0x400   :  { %5673 = vmatmul.msk.bf16.gmra.mxu2 %vm1356_vm6, %v3812_v21 }
 0x426   :  { %v3610_v51 = vpop.f32.mrf.mxu3 }
 0x42b   :  { %v3637_v9 = vpop.f32.mrf.mxu0 }
 0x42e   :  { %v3612_v41 = vpop.f32.mrf.mxu3 }
 0x433   :  { %v3588_v44 = vpop.f32.mrf.mxu2  ;;  %v3639_v35 = vpop.f32.mrf.mxu0 }
 0x434   :  { %v3611_v45 = vadd.f32 %v3610_v51, %v3588_v44  ;;  %v6265_v44 = vld [vmem:[%s8419_s5 + $0x138] sm:$0xff] }
 0x436   :  { %v3615_v33 = vpop.f32.mrf.mxu3  ;;  %v3646_v25 = vadd.f32 %v3637_v9, %v3611_v45  ;;  %v6267_v45 = vld [vmem:[%s8419_s5 + $0x178] sm:$0xff] }
 0x43b   :  { %v3590_v14 = vpop.f32.mrf.mxu2  ;;  %v3642_v56 = vpop.f32.mrf.mxu0 }
 0x43c   :  { %v3613_v2 = vadd.f32 %v3612_v41, %v3590_v14  ;;  %v6264_v41 = vld [vmem:[%s8419_s5 + $0x118] sm:$0xff]  ;;  %v6268_v14 = vld [vmem:[%s8419_s5 + $0x110] sm:$0xff] }
 0x43e   :  { %v3617_v0 = vpop.f32.mrf.mxu3  ;;  %v3647_v11 = vadd.f32 %v3639_v35, %v3613_v2  ;;  %v6266_v35 = vld [vmem:[%s8419_s5 + $0x158] sm:$0xff]  ;;  %v6288_v2 = vld [vmem:[%s8419_s5 + $0x188] sm:$0xff] }
 0x43f   :  { %v6270_v0 = vld [vmem:[%s8419_s5 + $0x150] sm:$0xff] }
 0x443   :  { %v3593_v20 = vpop.f32.mrf.mxu2  ;;  %v3644_v34 = vpop.f32.mrf.mxu0 }
 0x444   :  { %v3616_v60 = vadd.f32 %v3615_v33, %v3593_v20  ;;  %v6271_v20 = vld [vmem:[%s8419_s5 + $0x170] sm:$0xff] }
 0x446   :  { %v3648_v3 = vadd.f32 %v3642_v56, %v3616_v60  ;;  %v6269_v56 = vld [vmem:[%s8419_s5 + $0x130] sm:$0xff]  ;;  %v6272_v60 = vld [vmem:[%s8419_s5 + $0x108] sm:$0xff] }
 0x44b   :  { %v3595_v12 = vpop.f32.mrf.mxu2  ;;  %v3749_v24 = vpop.f32.mrf.mxu0 }
 0x44c   :  { %v6274_v12 = vld [vmem:[%s8419_s5 + $0x148] sm:$0xff] }
 0x44d   :  { %v3720_v16 = vpop.f32.mrf.mxu3 }
 0x453   :  { %v3673_v55 = vpop.f32.mrf.mxu2  ;;  %v3751_v5 = vpop.f32.mrf.mxu0 }
 0x454   :  { %v3785_v48 = vpop.f32.mrf.mxu1  ;;  %v3682_v52 = vadd.f32 %v3673_v55, %v3646_v25  ;;  %v6276_v55 = vld [vmem:[%s8419_s5 + $0x100] sm:$0xff] }
 0x455   :  { %v3722_v10 = vpop.f32.mrf.mxu3 }
 0x456   :  { %v3729_v57 = vadd.f32 %v3720_v16, %v3682_v52  ;;  %v6289_v52 = vld [vmem:[%s8419_s5 + $0x1a8] sm:$0xff] }
 0x458   :  { %v3758_v32 = vadd.f32 %v3749_v24, %v3729_v57  ;;  %v6275_v24 = vld [vmem:[%s8419_s5 + $0x168] sm:$0xff] }
 0x459   :  { %v6291_v57 = vld [vmem:[%s8419_s5 + $0x1e8] sm:$0xff] }
 0x45a   :  { %v3794_v42 = vadd.f32 %v3785_v48, %v3758_v32  ;;  %v6278_v48 = vld [vmem:[%s8419_s5 + $0x140] sm:$0xff]  ;;  %v6296_v32 = vld [vmem:[%s8419_s5 + $0x218] sm:$0xff] }
 0x45b   :  { %v3675_v22 = vpop.f32.mrf.mxu2  ;;  %v3754_v15 = vpop.f32.mrf.mxu0 }
 0x45c   :  { %v3787_v47 = vpop.f32.mrf.mxu1  ;;  %v3683_v37 = vadd.f32 %v3675_v22, %v3647_v11  ;;  %v6280_v22 = vld [vmem:[%s8419_s5 + $0x198] sm:$0xff]  ;;  %v6292_v11 = vld [vmem:[%s8419_s5 + $0x180] sm:$0xff] }
 0x45d   :  { %v3725_v23 = vpop.f32.mrf.mxu3 }
 0x45e   :  { %v3730_v62 = vadd.f32 %v3722_v10, %v3683_v37  ;;  %v6279_v10 = vld [vmem:[%s8419_s5 + $0x160] sm:$0xff] }
 0x45f   :  { %v6295_v37 = vld [vmem:[%s8419_s5 + $0x1e0] sm:$0xff] }
 0x460   :  { %v3759_v38 = vadd.f32 %v3751_v5, %v3730_v62  ;;  %v6277_v5 = vld [vmem:[%s8419_s5 + $0x120] sm:$0xff]  ;;  %v6297_v62 = vld [vmem:[%s8419_s5 + $0x238] sm:$0xff] }
 0x462   :  { %v3795_v58 = vadd.f32 %v3787_v47, %v3759_v38  ;;  %v6282_v47 = vld [vmem:[%s8419_s5 + $0x1d8] sm:$0xff]  ;;  %v6301_v38 = vld [vmem:[%s8419_s5 + $0x228] sm:$0xff] }
 0x463   :  { %v3678_v18 = vpop.f32.mrf.mxu2  ;;  %v3756_v28 = vpop.f32.mrf.mxu0 }
 0x464   :  { %v3790_v19 = vpop.f32.mrf.mxu1  ;;  %v3684_v1 = vadd.f32 %v3678_v18, %v3648_v3  ;;  %v6273_v3 = vld [vmem:[%s8419_s5 + $0x128] sm:$0xff]  ;;  %v6284_v18 = vld [vmem:[%s8419_s5 + $0x190] sm:$0xff] }
 0x465   :  { %v3727_v13 = vpop.f32.mrf.mxu3  ;;  %v6285_v28 = vld [vmem:[%s8419_s5 + $0x1b0] sm:$0xff] }
 0x466   :  { %v3731_v61 = vadd.f32 %v3725_v23, %v3684_v1  ;;  %v6283_v23 = vld [vmem:[%s8419_s5 + $0x1f8] sm:$0xff]  ;;  %v6287_v13 = vld [vmem:[%s8419_s5 + $0x1f0] sm:$0xff]  ;;  %v6302_v1 = vld [vmem:[%s8419_s5 + $0x200] sm:$0xff] }
 0x468   :  { %v3760_v21 = vadd.f32 %v3754_v15, %v3731_v61  ;;  %v6281_v15 = vld [vmem:[%s8419_s5 + $0x1b8] sm:$0xff] }
 0x46a   :  { %v3796_v54 = vadd.f32 %v3790_v19, %v3760_v21  ;;  %v6286_v19 = vld [vmem:[%s8419_s5 + $0x1d0] sm:$0xff] }
 0x46b   :  { %v3680_v31 = vpop.f32.mrf.mxu2 }
 0x46c   :  { %v3792_v63 = vpop.f32.mrf.mxu1  ;;  %v6290_v31 = vld [vmem:[%s8419_s5 + $0x1c8] sm:$0xff] }
 0x46d   :  { %v3859_v59 = vpop.f32.mrf.mxu3  ;;  %v6293_v63 = vld [vmem:[%s8419_s5 + $0x1a0] sm:$0xff] }
 0x473   :  { %v3829_v49 = vpop.f32.mrf.mxu2 }
 0x474   :  { %v3838_v50 = vadd.f32 %v3829_v49, %v3794_v42  ;;  %v6298_v49 = vld [vmem:[%s8419_s5 + $0x210] sm:$0xff] }
 0x475   :  { %v3861_v39 = vpop.f32.mrf.mxu3  ;;  %v6299_v42 = vld [vmem:[%s8419_s5 + $0x230] sm:$0xff] }
 0x476   :  { %v3868_v17 = vadd.f32 %v3859_v59, %v3838_v50  ;;  %v6294_v59 = vld [vmem:[%s8419_s5 + $0x1c0] sm:$0xff] }
 0x477   :  { %v6303_v50 = vld [vmem:[%s8419_s5 + $0x220] sm:$0xff] }
 0x478   :  { %v3871_v27 = vadd.f32 %v6263_v26, %v3868_v17 }
 0x47a   :  { %v3874_v30 = vmax.f32 %v3871_v27, 0.0 }
 0x47b   :  { %v3831_v43 = vpop.f32.mrf.mxu2 }
 0x47c   :  { %v3839_v6 = vadd.f32 %v3831_v43, %v3795_v58 }
 0x47d   :  { %v3864_v53 = vpop.f32.mrf.mxu3 }
 0x47e   :  { %v3869_v4 = vadd.f32 %v3861_v39, %v3839_v6  ;;  %v6300_v39 = vld [vmem:[%s8419_s5 + $0x208] sm:$0xff] }
 0x480   :  { %v3872_v29 = vadd.f32 %v6263_v26, %v3869_v4 }
 0x482   :  { %v3875_v36 = vmax.f32 %v3872_v29, 0.0 }
 0x483   :  { %v3834_v7 = vpop.f32.mrf.mxu2 }
 0x484   :  { %v8126_v40 = vpack.c.bf16 %v3875_v36, %v3874_v30  ;;  %v3840_v8 = vadd.f32 %v3834_v7, %v3796_v54 }
 0x485   :  { %v3866_v51 = vpop.f32.mrf.mxu3 }
 0x486   :  { %5676 = vmatmul.msk.bf16.vlgmr.msrb.gmra.mxu0 %vm1356_vm6, %v8126_v40  ;;  %5678 = vmatmul.msk.bf16.vlgmr.msrb.gmra.mxu1 %vm1356_vm6, %v8126_v40  ;;  %v3870_v9 = vadd.f32 %v3864_v53, %v3840_v8 }
 0x487   :  { %5680 = vmatmul.msk.bf16.vlgmr.msrb.gmra.mxu2 %vm1356_vm6, %v8126_v40  ;;  %5682 = vmatmul.msk.bf16.vlgmr.msra.gmra.mxu3 %vm1356_vm6, %v8126_v40 }
 0x488   :  { %4046 = vmatpush.bf16.msrb.mxu0 %v6264_v41  ;;  %4063 = vmatpush.bf16.msrb.mxu1 %v6265_v44  ;;  %v3873_v25 = vadd.f32 %v6263_v26, %v3870_v9 }
 0x489   :  { %4083 = vmatpush.bf16.msrb.mxu2 %v6266_v35  ;;  %4103 = vmatpush.bf16.msra.mxu3 %v6267_v45 }
 0x48a   :  { %v3876_v34 = vmax.f32 %v3873_v25, 0.0 }
 0x48b   :  { %v3836_v33 = vpop.f32.mrf.mxu2 }
 0x48c   :  { %4047 = vmatpush.bf16.msrb.mxu0 %v6268_v14  ;;  %4064 = vmatpush.bf16.msrb.mxu1 %v6269_v56  ;;  %v8172_v16 = vpack.c.bf16 %v3876_v34, %v3876_v34 }
 0x48d   :  { %4084 = vmatpush.bf16.msrb.mxu2 %v6270_v0  ;;  %4104 = vmatpush.bf16.msra.mxu3 %v6271_v20 }
 0x490   :  { %4048 = vmatpush.bf16.msrb.mxu0 %v6272_v60  ;;  %4065 = vmatpush.bf16.msrb.mxu1 %v6273_v3 }
 0x491   :  { %4085 = vmatpush.bf16.msrb.mxu2 %v6274_v12  ;;  %4105 = vmatpush.bf16.msra.mxu3 %v6275_v24 }
 0x494   :  { %4049 = vmatpush.bf16.msrb.mxu0 %v6276_v55  ;;  %4066 = vmatpush.bf16.msrb.mxu1 %v6277_v5 }
 0x495   :  { %4086 = vmatpush.bf16.msrb.mxu2 %v6278_v48  ;;  %4106 = vmatpush.bf16.msra.mxu3 %v6279_v10 }
 0x496   :  { %5677 = vmatmul.msk.bf16.gmra.mxu0 %vm1356_vm6, %v8172_v16  ;;  %5679 = vmatmul.msk.bf16.gmra.mxu1 %vm1356_vm6, %v8172_v16 }
 0x497   :  { %5681 = vmatmul.msk.bf16.gmra.mxu2 %vm1356_vm6, %v8172_v16  ;;  %5683 = vmatmul.msk.bf16.gmra.mxu3 %vm1356_vm6, %v8172_v16 }
 0x4a6   :  { %5684 = vmatmul.msk.bf16.vlgmr.msra.gmra.mxu0 %vm1356_vm6, %v8126_v40  ;;  %5686 = vmatmul.msk.bf16.vlgmr.msra.gmra.mxu1 %vm1356_vm6, %v8126_v40 }
 0x4a7   :  { %5688 = vmatmul.msk.bf16.vlgmr.msra.gmra.mxu2 %vm1356_vm6, %v8126_v40  ;;  %5690 = vmatmul.msk.bf16.vlgmr.msrb.gmra.mxu3 %vm1356_vm6, %v8126_v40 }
 0x4a8   :  { %4123 = vmatpush.bf16.msra.mxu0 %v6280_v22  ;;  %4143 = vmatpush.bf16.msra.mxu1 %v6281_v15 }
 0x4a9   :  { %4163 = vmatpush.bf16.msra.mxu2 %v6282_v47  ;;  %4183 = vmatpush.bf16.msrb.mxu3 %v6283_v23 }
 0x4ac   :  { %4124 = vmatpush.bf16.msra.mxu0 %v6284_v18  ;;  %4144 = vmatpush.bf16.msra.mxu1 %v6285_v28 }
 0x4ad   :  { %4164 = vmatpush.bf16.msra.mxu2 %v6286_v19  ;;  %4184 = vmatpush.bf16.msrb.mxu3 %v6287_v13 }
 0x4b0   :  { %4125 = vmatpush.bf16.msra.mxu0 %v6288_v2  ;;  %4145 = vmatpush.bf16.msra.mxu1 %v6289_v52 }
 0x4b1   :  { %4165 = vmatpush.bf16.msra.mxu2 %v6290_v31  ;;  %4185 = vmatpush.bf16.msrb.mxu3 %v6291_v57 }
 0x4b4   :  { %4126 = vmatpush.bf16.msra.mxu0 %v6292_v11  ;;  %4146 = vmatpush.bf16.msra.mxu1 %v6293_v63 }
 0x4b5   :  { %4166 = vmatpush.bf16.msra.mxu2 %v6294_v59  ;;  %4186 = vmatpush.bf16.msrb.mxu3 %v6295_v37 }
 0x4b6   :  { %5685 = vmatmul.msk.bf16.gmra.mxu0 %vm1356_vm6, %v8172_v16  ;;  %5687 = vmatmul.msk.bf16.gmra.mxu1 %vm1356_vm6, %v8172_v16 }
 0x4b7   :  { %5689 = vmatmul.msk.bf16.gmra.mxu2 %vm1356_vm6, %v8172_v16  ;;  %5691 = vmatmul.msk.bf16.gmra.mxu3 %vm1356_vm6, %v8172_v16 }
 0x4c6   :  { %5692 = vmatmul.msk.bf16.vlgmr.msrb.gmra.mxu0 %vm1356_vm6, %v8126_v40  ;;  %5694 = vmatmul.msk.bf16.vlgmr.msrb.gmra.mxu1 %vm1356_vm6, %v8126_v40 }
 0x4c7   :  { %5696 = vmatmul.msk.bf16.vlgmr.msrb.gmra.mxu2 %vm1356_vm6, %v8126_v40  ;;  %5698 = vmatmul.msk.bf16.vlgmr.msra.gmra.mxu3 %vm1356_vm6, %v8126_v40 }
 0x4c8   :  { %4203 = vmatpush.bf16.msrb.mxu0 %v6296_v32  ;;  %4220 = vmatpush.bf16.msrb.mxu1 %v6297_v62 }
 0x4cc   :  { %4204 = vmatpush.bf16.msrb.mxu0 %v6298_v49  ;;  %4221 = vmatpush.bf16.msrb.mxu1 %v6299_v42 }
 0x4d0   :  { %4205 = vmatpush.bf16.msrb.mxu0 %v6300_v39  ;;  %4222 = vmatpush.bf16.msrb.mxu1 %v6301_v38 }
 0x4d4   :  { %4206 = vmatpush.bf16.msrb.mxu0 %v6302_v1  ;;  %4223 = vmatpush.bf16.msrb.mxu1 %v6303_v50 }
 0x4d6   :  { %5693 = vmatmul.msk.bf16.gmra.mxu0 %vm1356_vm6, %v8172_v16  ;;  %5695 = vmatmul.msk.bf16.gmra.mxu1 %vm1356_vm6, %v8172_v16 }
 0x4d7   :  { %5697 = vmatmul.msk.bf16.gmra.mxu2 %vm1356_vm6, %v8172_v16  ;;  %5699 = vmatmul.msk.bf16.gmra.mxu3 %vm1356_vm6, %v8172_v16 }
 0x4e6   :  { %5700 = vmatmul.msk.bf16.vlgmr.msra.gmra.mxu0 %vm1356_vm6, %v8126_v40  ;;  %5702 = vmatmul.msk.bf16.vlgmr.msra.gmra.mxu1 %vm1356_vm6, %v8126_v40 }
 0x4e7   :  { %5704 = vmatmul.msk.bf16.vlgmr.msra.gmra.mxu2 %vm1356_vm6, %v8126_v40  ;;  %5706 = vmatmul.msk.bf16.vlgmr.msrb.gmra.mxu3 %vm1356_vm6, %v8126_v40 }
 0x4f6   :  { %5701 = vmatmul.msk.bf16.gmra.mxu0 %vm1356_vm6, %v8172_v16  ;;  %5703 = vmatmul.msk.bf16.gmra.mxu1 %vm1356_vm6, %v8172_v16 }
 0x4f7   :  { %5705 = vmatmul.msk.bf16.gmra.mxu2 %vm1356_vm6, %v8172_v16  ;;  %5707 = vmatmul.msk.bf16.gmra.mxu3 %vm1356_vm6, %v8172_v16 }
 0x503   :  { %v3894_v58 = vpop.f32.mrf.mxu0  ;;  %v3911_v61 = vpop.f32.mrf.mxu1 }
 0x504   :  { %v3919_v17 = vrot.slane %v3911_v61, 1  ;;  %v6010_v61 = vld [vmem:[%s8421_s7 + $0x38] sm:$0xff] }
 0x505   :  { %4324 = vmatpush.bf16.msrb.mxu2 %v6010_v61 }
 0x506   :  { %v3921_v43 = vadd.f32 %v3919_v17, %v3894_v58  ;;  %5708 = vmatmul.msk.bf16.vlgmr.msrb.gmra.mxu0 %vm1356_vm6, %v8126_v40  ;;  %5710 = vmatmul.msk.bf16.vlgmr.msrb.gmra.mxu1 %vm1356_vm6, %v8126_v40  ;;  %v6009_v17 = vld [vmem:[%s8421_s7 + $0x30] sm:$0xff] }
 0x509   :  { %4325 = vmatpush.bf16.msrb.mxu2 %v6009_v17 }
 0x50a   :  { %v3931_v6 = vpop.f32.mrf.mxu2  ;;  %v3951_v53 = vpop.f32.mrf.mxu3 }
 0x50b   :  { %v3939_v21 = vrot.slane %v3931_v6, 2  ;;  %v3896_v26 = vpop.f32.mrf.mxu0  ;;  %v3913_v27 = vpop.f32.mrf.mxu1  ;;  %v3959_v29 = vrot.slane %v3951_v53, 3 }
 0x50c   :  { %v6008_v26 = vld [vmem:[%s8421_s7 + $0x28] sm:$0xff]  ;;  %v6007_v27 = vld [vmem:[%s8421_s7 + $0x20] sm:$0xff] }
 0x50d   :  { %v3941_v4 = vadd.f32 %v3939_v21, %v3921_v43  ;;  %4326 = vmatpush.bf16.msrb.mxu2 %v6008_v26  ;;  %v6025_v26 = vld [vmem:[%s8425_s11 + $0x30] sm:$0xff] }
 0x50f   :  { %v3961_v54 = vadd.f32 %v3959_v29, %v3941_v4 }
 0x511   :  { %4327 = vmatpush.bf16.msrb.mxu2 %v6007_v27  ;;  %v6024_v27 = vld [vmem:[%s8425_s11 + $0x28] sm:$0xff] }
 0x512   :  { %v3933_v30 = vpop.f32.mrf.mxu2  ;;  %v3953_v36 = vpop.f32.mrf.mxu3 }
 0x513   :  { %v3898_v7 = vpop.f32.mrf.mxu0  ;;  %v3915_v8 = vpop.f32.mrf.mxu1  ;;  %v6006_v36 = vld [vmem:[%s8421_s7 + $0x18] sm:$0xff] }
 0x515   :  { %4328 = vmatpush.bf16.msrb.mxu2 %v6006_v36  ;;  %v6020_v36 = vld [vmem:[%s8425_s11 + $0x8] sm:$0xff] }
 0x516   :  { %5709 = vmatmul.msk.bf16.gmra.mxu0 %vm1356_vm6, %v8172_v16  ;;  %5711 = vmatmul.msk.bf16.gmra.mxu1 %vm1356_vm6, %v8172_v16 }
 0x51a   :  { %v3935_v51 = vpop.f32.mrf.mxu2  ;;  %v3955_v40 = vpop.f32.mrf.mxu3 }
 0x51b   :  { %v3899_v9 = vpop.f32.mrf.mxu0  ;;  %v3916_v41 = vpop.f32.mrf.mxu1  ;;  %v6005_v51 = vld [vmem:[%s8421_s7 + $0x10] sm:$0xff] }
 0x51c   :  { %4329 = vmatpush.bf16.msrb.mxu2 %v6005_v51 }
 0x522   :  { %v3936_v44 = vpop.f32.mrf.mxu2  ;;  %v3956_v35 = vpop.f32.mrf.mxu3 }
 0x523   :  { %v3971_v45 = vpop.f32.mrf.mxu0  ;;  %v3991_v33 = vpop.f32.mrf.mxu1 }
 0x524   :  { %v3979_v25 = vrot.slane %v3971_v45, 4  ;;  %v3999_v56 = vrot.slane %v3991_v33, 5  ;;  %v6004_v45 = vld [vmem:[%s8421_s7 + $0x8] sm:$0xff] }
 0x525   :  { %4330 = vmatpush.bf16.msrb.mxu2 %v6004_v45 }
 0x526   :  { %v3981_v14 = vadd.f32 %v3979_v25, %v3961_v54 }
 0x528   :  { %v4001_v0 = vadd.f32 %v3999_v56, %v3981_v14 }
 0x52a   :  { %v4011_v20 = vpop.f32.mrf.mxu2  ;;  %v4031_v34 = vpop.f32.mrf.mxu3 }
 0x52b   :  { %v4019_v60 = vrot.slane %v4011_v20, 6  ;;  %v3973_v3 = vpop.f32.mrf.mxu0  ;;  %v3993_v12 = vpop.f32.mrf.mxu1  ;;  %v4039_v55 = vrot.slane %v4031_v34, 7 }
 0x52d   :  { %v4021_v24 = vadd.f32 %v4019_v60, %v4001_v0  ;;  %v6003_v0 = vld [vmem:[%s8421_s7] sm:$0xff] }
 0x52e   :  { %4331 = vmatpush.bf16.msrb.mxu2 %v6003_v0 }
 0x52f   :  { %v4041_v16 = vadd.f32 %v4039_v55, %v4021_v24  ;;  %v6018_v24 = vld [vmem:[%s8422_s9 + $0x38] sm:$0xff] }
 0x530   :  { %4407 = vmatpush.bf16.msra.mxu3 %v6018_v24 }
 0x532   :  { %v4013_v5 = vpop.f32.mrf.mxu2  ;;  %v4033_v48 = vpop.f32.mrf.mxu3 }
 0x533   :  { %v3975_v10 = vpop.f32.mrf.mxu0  ;;  %v3995_v22 = vpop.f32.mrf.mxu1 }
 0x53a   :  { %v4015_v15 = vpop.f32.mrf.mxu2  ;;  %v4035_v47 = vpop.f32.mrf.mxu3 }
 0x53b   :  { %v3976_v23 = vpop.f32.mrf.mxu0  ;;  %v3996_v18 = vpop.f32.mrf.mxu1  ;;  %v6016_v47 = vld [vmem:[%s8422_s9 + $0x28] sm:$0xff] }
 0x542   :  { %v4016_v28 = vpop.f32.mrf.mxu2  ;;  %v4036_v19 = vpop.f32.mrf.mxu3 }
 0x543   :  { %v4051_v13 = vpop.f32.mrf.mxu0  ;;  %v4068_v2 = vpop.f32.mrf.mxu1  ;;  %v6015_v28 = vld [vmem:[%s8422_s9 + $0x20] sm:$0xff] }
 0x54a   :  { %v4088_v52 = vpop.f32.mrf.mxu2  ;;  %v4108_v31 = vpop.f32.mrf.mxu3 }
 0x54b   :  { %v4052_v57 = vpop.f32.mrf.mxu0  ;;  %v4069_v11 = vpop.f32.mrf.mxu1 }
 0x54c   :  { %v4058_v41 = vadd.f32 %v4052_v57, %v4041_v16  ;;  %v4076_v44 = vrot.slane %v4069_v11, 1  ;;  %v6017_v16 = vld [vmem:[%s8422_s9 + $0x30] sm:$0xff]  ;;  %v6014_v57 = vld [vmem:[%s8422_s9 + $0x18] sm:$0xff]  ;;  %v2872_v11 = vld [vmem:[%s8423_s6] sm:$0x1] }
 0x54d   :  { %4408 = vmatpush.bf16.msra.mxu3 %v6017_v16 }
 0x54e   :  { %v4078_v33 = vadd.f32 %v4076_v44, %v4058_v41  ;;  %v6019_v41 = vld [vmem:[%s8425_s11] sm:$0xff] }
 0x54f   :  { %v6120_v44 = vld [vmem:[%s8424_s10] ss:$0 sm:$0xff] }
 0x551   :  { %4409 = vmatpush.bf16.msra.mxu3 %v6016_v47 }
 0x552   :  { %v4089_v63 = vpop.f32.mrf.mxu2  ;;  %v4109_v59 = vpop.f32.mrf.mxu3 }
 0x553   :  { %v4055_v37 = vpop.f32.mrf.mxu0  ;;  %v4072_v32 = vpop.f32.mrf.mxu1  ;;  %v4096_v35 = vrot.slane %v4089_v63, 2  ;;  %v4116_v60 = vrot.slane %v4109_v59, 3  ;;  %v2873_v59 = vadd.f32 %v2872_v11, %v7889_v46 }
 0x554   :  { %v6013_v32 = vld [vmem:[%s8422_s9 + $0x10] sm:$0xff] }
 0x555   :  { %v4098_v25 = vadd.f32 %v4096_v35, %v4078_v33  ;;  %4410 = vmatpush.bf16.msra.mxu3 %v6015_v28 }
 0x557   :  { %v4118_v12 = vadd.f32 %v4116_v60, %v4098_v25 }
 0x559   :  { %4411 = vmatpush.bf16.msra.mxu3 %v6014_v57 }
 0x55a   :  { %v4092_v62 = vpop.f32.mrf.mxu2  ;;  %v4112_v49 = vpop.f32.mrf.mxu3 }
 0x55b   :  { %v4056_v42 = vpop.f32.mrf.mxu0  ;;  %v4073_v39 = vpop.f32.mrf.mxu1 }
 0x55c   :  { %v2874_v39 = vmax.f32 %v2873_v59, 0.0 }
 0x55d   :  { %4412 = vmatpush.bf16.msra.mxu3 %v6013_v32 }
 0x562   :  { %v4093_v38 = vpop.f32.mrf.mxu2  ;;  %v4113_v1 = vpop.f32.mrf.mxu3 }
 0x563   :  { %v4128_v50 = vpop.f32.mrf.mxu0  ;;  %v4148_v58 = vpop.f32.mrf.mxu1  ;;  %v6012_v1 = vld [vmem:[%s8422_s9 + $0x8] sm:$0xff] }
 0x564   :  { %4413 = vmatpush.bf16.msra.mxu3 %v6012_v1 }
 0x56a   :  { %v4168_v43 = vpop.f32.mrf.mxu2  ;;  %v4188_v6 = vpop.f32.mrf.mxu3 }
 0x56b   :  { %v4129_v53 = vpop.f32.mrf.mxu0  ;;  %v4149_v21 = vpop.f32.mrf.mxu1 }
 0x56c   :  { %v4136_v3 = vrot.slane %v4129_v53, 4  ;;  %v4156_v5 = vrot.slane %v4149_v21, 5  ;;  %v6011_v53 = vld [vmem:[%s8422_s9] sm:$0xff]  ;;  %v6026_v21 = vld [vmem:[%s8425_s11 + $0x38] sm:$0xff] }
 0x56d   :  { %4414 = vmatpush.bf16.msra.mxu3 %v6011_v53  ;;  %4490 = vmatpush.bf16.msra.mxu0 %v6026_v21 }
 0x56e   :  { %v4138_v55 = vadd.f32 %v4136_v3, %v4118_v12 }
 0x570   :  { %v4158_v15 = vadd.f32 %v4156_v5, %v4138_v55 }
 0x571   :  { %4491 = vmatpush.bf16.msra.mxu0 %v6025_v26 }
 0x572   :  { %v4169_v4 = vpop.f32.mrf.mxu2  ;;  %v4189_v29 = vpop.f32.mrf.mxu3 }
 0x573   :  { %v4132_v54 = vpop.f32.mrf.mxu0  ;;  %v4152_v30 = vpop.f32.mrf.mxu1  ;;  %v4176_v48 = vrot.slane %v4169_v4, 6  ;;  %v4196_v18 = vrot.slane %v4189_v29, 7  ;;  %v6023_v4 = vld [vmem:[%s8425_s11 + $0x20] sm:$0xff]  ;;  %v6022_v29 = vld [vmem:[%s8425_s11 + $0x18] sm:$0xff] }
 0x574   :  { %v6021_v54 = vld [vmem:[%s8425_s11 + $0x10] sm:$0xff]  ;;  %v6119_v30 = vld [vmem:[%s8420_s8] ss:$0 sm:$0xff] }
 0x575   :  { %v4178_v23 = vadd.f32 %v4176_v48, %v4158_v15  ;;  %4492 = vmatpush.bf16.msra.mxu0 %v6024_v27 }
 0x577   :  { %v4198_v19 = vadd.f32 %v4196_v18, %v4178_v23 }
 0x579   :  { %4493 = vmatpush.bf16.msra.mxu0 %v6023_v4 }
 0x57a   :  { %v4172_v7 = vpop.f32.mrf.mxu2  ;;  %v4192_v8 = vpop.f32.mrf.mxu3 }
 0x57b   :  { %v4133_v40 = vpop.f32.mrf.mxu0  ;;  %v4153_v9 = vpop.f32.mrf.mxu1 }
 0x57d   :  { %4494 = vmatpush.bf16.msra.mxu0 %v6022_v29 }
 0x581   :  { %4495 = vmatpush.bf16.msra.mxu0 %v6021_v54 }
 0x582   :  { %v4173_v14 = vpop.f32.mrf.mxu2  ;;  %v4193_v56 = vpop.f32.mrf.mxu3 }
 0x583   :  { %v4208_v20 = vpop.f32.mrf.mxu0  ;;  %v4225_v34 = vpop.f32.mrf.mxu1  ;;  %v6121_v56 = vld [vmem:[%s8426_s12] ss:$0 sm:$0xff] }
 0x585   :  { %4496 = vmatpush.bf16.msra.mxu0 %v6020_v36 }
 0x589   :  { %4497 = vmatpush.bf16.msra.mxu0 %v6019_v41 }
 0x58b   :  { %v4209_v10 = vpop.f32.mrf.mxu0  ;;  %v4226_v22 = vpop.f32.mrf.mxu1 }
 0x593   :  { %v4211_v13 = vpop.f32.mrf.mxu0  ;;  %v4228_v2 = vpop.f32.mrf.mxu1 }
 0x594   :  { %v4215_v52 = vadd.f32 %v4211_v13, %v4198_v19  ;;  %v4233_v31 = vrot.slane %v4228_v2, 1 }
 0x596   :  { %v4235_v63 = vadd.f32 %v4233_v31, %v4215_v52 }
 0x598   :  { %v4236_v37 = vadd.f32 %v4235_v63, %v2872_v11 }
 0x59a   :  { %v4237_v62 = vmax.f32 %v4236_v37, 0.0 }
 0x59b   :  { %v4213_v49 = vpop.f32.mrf.mxu0  ;;  %v4230_v42 = vpop.f32.mrf.mxu1 }
 0x59c   :  { %v4239_v38 = vrot.slane %v4237_v62, 7 }
 0x59e   :  { %v4242_v46 = vsel %vm4241_vm8, %v2874_v39, %v4239_v38 }
 0x59f   :  { %v4244_v50 = vsel %vm4243_vm9, %v4242_v46, 0.0 }
 0x5a0   :  { %v4246_v58 = vsel %vm4245_vm10, %v4244_v50, 0.0 }
 0x5a1   :  { %v4248_v61 = vsel %vm4247_vm11, %v4246_v58, 0.0 }
 0x5a2   :  { %v4250_v17 = vsel %vm478_vm2, %v4248_v61, 0.0 }
 0x5a3   :  { %v4252_v43 = vsel %vm891_vm4, %v4250_v17, 0.0 }
 0x5a4   :  { %v5745_v6 = vpack.c.bf16 %v4252_v43, %v4252_v43 }
 0x5a6   :  { %5746 = vmatmul.msk.bf16.vlgmr.msrb.gmra.mxu2 %vm5744_vm12, %v5745_v6 }
 0x629   :  { %v4333_v7 = vpop.f32.mrf.mxu2 }
 0x62a   :  { %v4334_v8 = vadd.f32 %v6119_v30, %v4333_v7 }
 0x62c   :  { %v4337_v51 = vmax.f32 %v4334_v8, 0.0 }
 0x62e   :  { %v4338_v40 = vpack.c.bf16 %v4337_v51, %v4337_v51 }
 0x630   :  { %4415 = vmatmul.bf16.vlgmr.msra.gmra.mxu3 %v4338_v40 }
 0x631   :  { %v4335_v9 = vpop.f32.mrf.mxu2 }
 0x6b3   :  { %v4416_v35 = vpop.f32.mrf.mxu3 }
 0x6b4   :  { %v4417_v45 = vadd.f32 %v6120_v44, %v4416_v35 }
 0x6b6   :  { %v4420_v33 = vmax.f32 %v4417_v45, 0.0 }
 0x6b8   :  { %v4421_v25 = vpack.c.bf16 %v4420_v33, %v4420_v33 }
 0x6ba   :  { %4498 = vmatmul.bf16.vlgmr.msra.gmra.mxu0 %v4421_v25 }
 0x6bb   :  { %v4418_v14 = vpop.f32.mrf.mxu3 }
 0x737   :  { %v4499_v0 = vpop.f32.mrf.mxu0 }
 0x738   :  { %v4500_v20 = vadd.f32 %v6121_v56, %v4499_v0 }
 0x73a   :  { %4503 = vst [vmem:[%s8427_s13] sm:$0xff] %v4500_v20 }
 0x73f   :  { %v4501_v34 = vpop.f32.mrf.mxu0 }

</bundles_post_ra>
